<compile_context>
chip_gen: v7x
topology: tpu7x:2x2x1
jax: 0.10.0
libtpu: 0.0.40
codegen_flags: <defaults>
</compile_context>

<pallas_src>
import jax
import jax.numpy as jnp
from jax import lax
from jax.experimental import pallas as pl
from jax.experimental.pallas import tpu as pltpu


# ---------------------------------------------------------------------------
# Pallas kernel 1: single-block matmul + bias + ReLU (used by the convs)
#   a:(M,K) bf16   w:(K,O) bf16   b:(1,O) f32   out:(M,O) bf16
# ---------------------------------------------------------------------------
def _mm_bias_relu_kernel(a_ref, w_ref, b_ref, o_ref):
    acc = jnp.dot(a_ref[...], w_ref[...], preferred_element_type=jnp.float32)
    acc = acc + b_ref[...]
    o_ref[...] = jnp.maximum(acc, 0.0).astype(o_ref.dtype)


def conv2d_relu(x, w, b, stride):
    """Conv2d (valid, square kernel) + ReLU.  x: NCHW; w: (O,C,kh,kw) bf16."""
    O, C, kh, kw = w.shape
    N = x.shape[0]
    x = x.astype(jnp.bfloat16)

    # Fused patch extraction (replaces kh*kw python slice/stack ops).
    # Output: (N, C*kh*kw, Ho, Wo), feature ordering (C, kh, kw) -- matches
    # torch's Conv2d weight.reshape(O, C*kh*kw) ordering.
    patches = lax.conv_general_dilated_patches(
        x, filter_shape=(kh, kw), window_strides=(stride, stride),
        padding="VALID")
    _, K, Ho, Wo = patches.shape
    cols = patches.transpose(0, 2, 3, 1).reshape(N * Ho * Wo, K)   # (M,K) bf16
    w_mat = w.reshape(O, K).T                                      # (K,O) bf16
    bias = b.reshape(1, O).astype(jnp.float32)

    # Whole problem fits comfortably in VMEM (<~2 MB) -> single invocation,
    # no grid, no padding, no output slicing.
    out = pl.pallas_call(
        _mm_bias_relu_kernel,
        out_shape=jax.ShapeDtypeStruct((N * Ho * Wo, O), jnp.bfloat16),
    )(cols, w_mat, bias)

    return out.reshape(N, Ho, Wo, O).transpose(0, 3, 1, 2)         # NCHW


# ---------------------------------------------------------------------------
# Pallas kernel 2: fused FC head.
#   FC1 (K gridded, bf16 weights, f32 accum) -> ReLU -> FC2 (+bias) epilogue.
# ---------------------------------------------------------------------------
def _fc_head_kernel(a_ref, w1_ref, b1_ref, w2_ref, b2_ref, o_ref, acc_ref):
    k = pl.program_id(0)

    @pl.when(k == 0)
    def _():
        acc_ref[...] = jnp.zeros_like(acc_ref)

    acc_ref[...] += jnp.dot(a_ref[...], w1_ref[...],
                            preferred_element_type=jnp.float32)

    @pl.when(k == pl.num_programs(0) - 1)
    def _():
        h = jnp.maximum(acc_ref[...] + b1_ref[...], 0.0)       # FC1 + ReLU
        out = jnp.dot(h, w2_ref[...], preferred_element_type=jnp.float32)
        o_ref[...] = (out + b2_ref[...]).astype(o_ref.dtype)   # FC2 + bias


def fc_head(flat, w1, b1, w2, b2, *, tk=1408):
    """flat:(B,K1) bf16; w1:(K1,H) bf16; b1:(H,); w2:(H,O) f32; b2:(O,)."""
    B, K1 = flat.shape
    H = w1.shape[1]
    O = w2.shape[1]
    assert K1 % tk == 0, (K1, tk)
    n_k = K1 // tk

    Bp = 8                                    # min sublane tile, NOT 128
    a = jnp.pad(flat, ((0, Bp - B), (0, 0)))  # (8, K1) bf16
    b1r = b1.reshape(1, H).astype(jnp.float32)
    b2r = b2.reshape(1, O).astype(jnp.float32)

    out = pl.pallas_call(
        _fc_head_kernel,
        out_shape=jax.ShapeDtypeStruct((Bp, O), jnp.float32),
        grid_spec=pltpu.PrefetchScalarGridSpec(
            num_scalar_prefetch=0,
            grid=(n_k,),
            in_specs=[
                pl.BlockSpec((Bp, tk), lambda k: (0, k)),   # activations
                pl.BlockSpec((tk, H), lambda k: (k, 0)),    # fc1 weight slab
                pl.BlockSpec((1, H), lambda k: (0, 0)),     # fc1 bias
                pl.BlockSpec((H, O), lambda k: (0, 0)),     # fc2 weight (whole)
                pl.BlockSpec((1, O), lambda k: (0, 0)),     # fc2 bias
            ],
            out_specs=pl.BlockSpec((Bp, O), lambda k: (0, 0)),
            scratch_shapes=[pltpu.VMEM((Bp, H), jnp.float32)],
        ),
        compiler_params=pltpu.CompilerParams(
            dimension_semantics=("arbitrary",)),
    )(a, w1, b1r, w2, b2r)
    return out[:B]


# ---------------------------------------------------------------------------
# AgentNet parameters & forward
# ---------------------------------------------------------------------------
def init_params(output_size, key):
    ks = jax.random.split(key, 10)

    def uniform(k, shape, fan_in, dtype=jnp.float32):
        bound = 1.0 / jnp.sqrt(float(fan_in))
        return jax.random.uniform(k, shape, jnp.float32, -bound, bound).astype(dtype)

    p = {}
    # Matmul operands stored in bf16 (halves the HBM weight stream); biases f32.
    p["conv1_w"] = uniform(ks[0], (16, 2, 8, 8), 2 * 8 * 8, jnp.bfloat16)
    p["conv1_b"] = uniform(ks[1], (16,), 2 * 8 * 8)
    p["conv2_w"] = uniform(ks[2], (32, 16, 4, 4), 16 * 4 * 4, jnp.bfloat16)
    p["conv2_b"] = uniform(ks[3], (32,), 16 * 4 * 4)
    p["conv3_w"] = uniform(ks[4], (32, 32, 3, 3), 32 * 3 * 3, jnp.bfloat16)
    p["conv3_b"] = uniform(ks[5], (32,), 32 * 3 * 3)
    # fc weights stored (in, out) — transpose of torch.nn.Linear's (out, in).
    p["fc1_w"] = uniform(ks[6], (5632, 512), 5632, jnp.bfloat16)
    p["fc1_b"] = uniform(ks[7], (512,), 5632)
    p["fc2_w"] = uniform(ks[8], (512, output_size), 512)   # small: keep f32
    p["fc2_b"] = uniform(ks[9], (output_size,), 512)
    return p


def agent_net_forward(params, x):
    # x: (N, 2, 156, 116) float32, NCHW
    h = conv2d_relu(x, params["conv1_w"], params["conv1_b"], stride=4)
    # TODO(synk): Dropout(0.2) treated as identity (eval mode); training-mode
    # RNG masking + 1/(1-p) scaling not implemented.
    h = conv2d_relu(h, params["conv2_w"], params["conv2_b"], stride=2)
    h = conv2d_relu(h, params["conv3_w"], params["conv3_b"], stride=1)
    N = x.shape[0]
    flat = h.reshape(N, -1)                     # NCHW flatten == torch.Flatten
    return fc_head(flat, params["fc1_w"], params["fc1_b"],
                   params["fc2_w"], params["fc2_b"])


if __name__ == "__main__":
    key = jax.random.PRNGKey(0)
    k_param, k_x = jax.random.split(key)

    output_size = 4
    params = init_params(output_size, k_param)

    # Smallest spatial input consistent with Linear(5632, 512): 156 x 116.
    x = jax.random.normal(k_x, (2, 2, 156, 116), dtype=jnp.float32)

    fwd = jax.jit(agent_net_forward)
    out = fwd(params, x)
    jax.block_until_ready(out)

    assert out.shape == (2, output_size), out.shape
    assert jnp.all(jnp.isfinite(out))
    print("KERNEL_OK")
</pallas_src>

<mosaic_0001>
module attributes {stable_mosaic.version = 11 : i64} {
  func.func @_mm_bias_relu_kernel(%arg0: memref<2128x128xbf16, #tpu.memory_space<vmem>>, %arg1: memref<128x16xbf16, #tpu.memory_space<vmem>>, %arg2: memref<1x16xf32, #tpu.memory_space<vmem>>, %arg3: memref<2128x16xbf16, #tpu.memory_space<vmem>>) attributes {dimension_semantics = [], scalar_prefetch = 0 : i64, scratch_operands = 0 : i64, tpu.core_type = #tpu.core_type<tc>} {
    %c0 = arith.constant 0 : index
    %c0_0 = arith.constant 0 : index
    %0 = vector.load %arg0[%c0, %c0_0] : memref<2128x128xbf16, #tpu.memory_space<vmem>>, vector<2128x128xbf16>
    %c0_1 = arith.constant 0 : index
    %c0_2 = arith.constant 0 : index
    %1 = vector.load %arg1[%c0_1, %c0_2] : memref<128x16xbf16, #tpu.memory_space<vmem>>, vector<128x16xbf16>
    %cst = arith.constant dense<0.000000e+00> : vector<2128x16xf32>
    %2 = tpu.matmul %0, %1, %cst {dimension_numbers = #tpu.dot_dimension_numbers<[1], [0], [0], [1], [0, 0, 1, 1], [], []>} : vector<2128x128xbf16>, vector<128x16xbf16>, vector<2128x16xf32> -> vector<2128x16xf32>
    %c0_3 = arith.constant 0 : index
    %c0_4 = arith.constant 0 : index
    %3 = vector.load %arg2[%c0_3, %c0_4] : memref<1x16xf32, #tpu.memory_space<vmem>>, vector<1x16xf32>
    %4 = vector.broadcast %3 : vector<1x16xf32> to vector<2128x16xf32>
    %5 = arith.addf %2, %4 : vector<2128x16xf32>
    %cst_5 = arith.constant 0.000000e+00 : f32
    %6 = vector.broadcast %cst_5 : f32 to vector<2128x16xf32>
    %7 = arith.maximumf %5, %6 : vector<2128x16xf32>
    %8 = arith.truncf %7 : vector<2128x16xf32> to vector<2128x16xbf16>
    %c0_6 = arith.constant 0 : index
    %c0_7 = arith.constant 0 : index
    %9 = vector.load %arg3[%c0_6, %c0_7] : memref<2128x16xbf16, #tpu.memory_space<vmem>>, vector<2128x16xbf16>
    tpu.vector_store %arg3[%c0_6, %c0_7], %8 {strides = array<i32>} : memref<2128x16xbf16, #tpu.memory_space<vmem>>, vector<2128x16xbf16>,
    return
  }
}

module attributes {stable_mosaic.version = 11 : i64} {
  func.func @_mm_bias_relu_kernel(%arg0: memref<468x256xbf16, #tpu.memory_space<vmem>>, %arg1: memref<256x32xbf16, #tpu.memory_space<vmem>>, %arg2: memref<1x32xf32, #tpu.memory_space<vmem>>, %arg3: memref<468x32xbf16, #tpu.memory_space<vmem>>) attributes {dimension_semantics = [], scalar_prefetch = 0 : i64, scratch_operands = 0 : i64, tpu.core_type = #tpu.core_type<tc>} {
    %c0 = arith.constant 0 : index
    %c0_0 = arith.constant 0 : index
    %0 = vector.load %arg0[%c0, %c0_0] : memref<468x256xbf16, #tpu.memory_space<vmem>>, vector<468x256xbf16>
    %c0_1 = arith.constant 0 : index
    %c0_2 = arith.constant 0 : index
    %1 = vector.load %arg1[%c0_1, %c0_2] : memref<256x32xbf16, #tpu.memory_space<vmem>>, vector<256x32xbf16>
    %cst = arith.constant dense<0.000000e+00> : vector<468x32xf32>
    %2 = tpu.matmul %0, %1, %cst {dimension_numbers = #tpu.dot_dimension_numbers<[1], [0], [0], [1], [0, 0, 1, 1], [], []>} : vector<468x256xbf16>, vector<256x32xbf16>, vector<468x32xf32> -> vector<468x32xf32>
    %c0_3 = arith.constant 0 : index
    %c0_4 = arith.constant 0 : index
    %3 = vector.load %arg2[%c0_3, %c0_4] : memref<1x32xf32, #tpu.memory_space<vmem>>, vector<1x32xf32>
    %4 = vector.broadcast %3 : vector<1x32xf32> to vector<468x32xf32>
    %5 = arith.addf %2, %4 : vector<468x32xf32>
    %cst_5 = arith.constant 0.000000e+00 : f32
    %6 = vector.broadcast %cst_5 : f32 to vector<468x32xf32>
    %7 = arith.maximumf %5, %6 : vector<468x32xf32>
    %8 = arith.truncf %7 : vector<468x32xf32> to vector<468x32xbf16>
    %c0_6 = arith.constant 0 : index
    %c0_7 = arith.constant 0 : index
    %9 = vector.load %arg3[%c0_6, %c0_7] : memref<468x32xbf16, #tpu.memory_space<vmem>>, vector<468x32xbf16>
    tpu.vector_store %arg3[%c0_6, %c0_7], %8 {strides = array<i32>} : memref<468x32xbf16, #tpu.memory_space<vmem>>, vector<468x32xbf16>,
    return
  }
}

module attributes {stable_mosaic.version = 11 : i64} {
  func.func @_mm_bias_relu_kernel(%arg0: memref<352x288xbf16, #tpu.memory_space<vmem>>, %arg1: memref<288x32xbf16, #tpu.memory_space<vmem>>, %arg2: memref<1x32xf32, #tpu.memory_space<vmem>>, %arg3: memref<352x32xbf16, #tpu.memory_space<vmem>>) attributes {dimension_semantics = [], scalar_prefetch = 0 : i64, scratch_operands = 0 : i64, tpu.core_type = #tpu.core_type<tc>} {
    %c0 = arith.constant 0 : index
    %c0_0 = arith.constant 0 : index
    %0 = vector.load %arg0[%c0, %c0_0] : memref<352x288xbf16, #tpu.memory_space<vmem>>, vector<352x288xbf16>
    %c0_1 = arith.constant 0 : index
    %c0_2 = arith.constant 0 : index
    %1 = vector.load %arg1[%c0_1, %c0_2] : memref<288x32xbf16, #tpu.memory_space<vmem>>, vector<288x32xbf16>
    %cst = arith.constant dense<0.000000e+00> : vector<352x32xf32>
    %2 = tpu.matmul %0, %1, %cst {dimension_numbers = #tpu.dot_dimension_numbers<[1], [0], [0], [1], [0, 0, 1, 1], [], []>} : vector<352x288xbf16>, vector<288x32xbf16>, vector<352x32xf32> -> vector<352x32xf32>
    %c0_3 = arith.constant 0 : index
    %c0_4 = arith.constant 0 : index
    %3 = vector.load %arg2[%c0_3, %c0_4] : memref<1x32xf32, #tpu.memory_space<vmem>>, vector<1x32xf32>
    %4 = vector.broadcast %3 : vector<1x32xf32> to vector<352x32xf32>
    %5 = arith.addf %2, %4 : vector<352x32xf32>
    %cst_5 = arith.constant 0.000000e+00 : f32
    %6 = vector.broadcast %cst_5 : f32 to vector<352x32xf32>
    %7 = arith.maximumf %5, %6 : vector<352x32xf32>
    %8 = arith.truncf %7 : vector<352x32xf32> to vector<352x32xbf16>
    %c0_6 = arith.constant 0 : index
    %c0_7 = arith.constant 0 : index
    %9 = vector.load %arg3[%c0_6, %c0_7] : memref<352x32xbf16, #tpu.memory_space<vmem>>, vector<352x32xbf16>
    tpu.vector_store %arg3[%c0_6, %c0_7], %8 {strides = array<i32>} : memref<352x32xbf16, #tpu.memory_space<vmem>>, vector<352x32xbf16>,
    return
  }
}

module attributes {stable_mosaic.version = 11 : i64} {
  func.func @_fc_head_kernel(%arg0: i32, %arg1: memref<8x1408xbf16, #tpu.memory_space<vmem>>, %arg2: memref<1408x512xbf16, #tpu.memory_space<vmem>>, %arg3: memref<1x512xf32, #tpu.memory_space<vmem>>, %arg4: memref<512x4xf32, #tpu.memory_space<vmem>>, %arg5: memref<1x4xf32, #tpu.memory_space<vmem>>, %arg6: memref<8x4xf32, #tpu.memory_space<vmem>>, %arg7: memref<8x512xf32, #tpu.memory_space<vmem>>) attributes {dimension_semantics = [#tpu.dimension_semantics<arbitrary>], iteration_bounds = array<i64: 4>, scalar_prefetch = 0 : i64, scratch_operands = 1 : i64, tpu.core_type = #tpu.core_type<tc>, window_params = [{transform_indices = @transform_0, window_bounds = array<i64: 8, 1408>}, {transform_indices = @transform_1, window_bounds = array<i64: 1408, 512>}, {pipeline_mode = #tpu.pipeline_mode<synchronous>, transform_indices = @transform_2, window_bounds = array<i64: 1, 512>}, {pipeline_mode = #tpu.pipeline_mode<synchronous>, transform_indices = @transform_3, window_bounds = array<i64: 512, 4>}, {pipeline_mode = #tpu.pipeline_mode<synchronous>, transform_indices = @transform_4, window_bounds = array<i64: 1, 4>}, {pipeline_mode = #tpu.pipeline_mode<synchronous>, transform_indices = @transform_5, window_bounds = array<i64: 8, 4>}]} {
    %c0_i32 = arith.constant 0 : i32
    %0 = arith.cmpi eq, %arg0, %c0_i32 : i32
    %1 = arith.extui %0 : i1 to i32
    %c0_i32_0 = arith.constant 0 : i32
    %2 = arith.cmpi ne, %1, %c0_i32_0 : i32
    scf.if %2 {
      %cst_9 = arith.constant 0.000000e+00 : f32
      %12 = vector.broadcast %cst_9 : f32 to vector<8x512xf32>
      %c0_10 = arith.constant 0 : index
      %c0_11 = arith.constant 0 : index
      %13 = vector.load %arg7[%c0_10, %c0_11] : memref<8x512xf32, #tpu.memory_space<vmem>>, vector<8x512xf32>
      tpu.vector_store %arg7[%c0_10, %c0_11], %12 {strides = array<i32>} : memref<8x512xf32, #tpu.memory_space<vmem>>, vector<8x512xf32>,
    } else {
    }
    %c0 = arith.constant 0 : index
    %c0_1 = arith.constant 0 : index
    %3 = vector.load %arg7[%c0, %c0_1] : memref<8x512xf32, #tpu.memory_space<vmem>>, vector<8x512xf32>
    %c0_2 = arith.constant 0 : index
    %c0_3 = arith.constant 0 : index
    %4 = vector.load %arg1[%c0_2, %c0_3] : memref<8x1408xbf16, #tpu.memory_space<vmem>>, vector<8x1408xbf16>
    %c0_4 = arith.constant 0 : index
    %c0_5 = arith.constant 0 : index
    %5 = vector.load %arg2[%c0_4, %c0_5] : memref<1408x512xbf16, #tpu.memory_space<vmem>>, vector<1408x512xbf16>
    %cst = arith.constant dense<0.000000e+00> : vector<8x512xf32>
    %6 = tpu.matmul %4, %5, %cst {dimension_numbers = #tpu.dot_dimension_numbers<[1], [0], [0], [1], [0, 0, 1, 1], [], []>} : vector<8x1408xbf16>, vector<1408x512xbf16>, vector<8x512xf32> -> vector<8x512xf32>
    %7 = arith.addf %3, %6 : vector<8x512xf32>
    %c0_6 = arith.constant 0 : index
    %c0_7 = arith.constant 0 : index
    %8 = vector.load %arg7[%c0_6, %c0_7] : memref<8x512xf32, #tpu.memory_space<vmem>>, vector<8x512xf32>
    tpu.vector_store %arg7[%c0_6, %c0_7], %7 {strides = array<i32>} : memref<8x512xf32, #tpu.memory_space<vmem>>, vector<8x512xf32>,
    %c3_i32 = arith.constant 3 : i32
    %9 = arith.cmpi eq, %arg0, %c3_i32 : i32
    %10 = arith.extui %9 : i1 to i32
    %c0_i32_8 = arith.constant 0 : i32
    %11 = arith.cmpi ne, %10, %c0_i32_8 : i32
    scf.if %11 {
      %c0_9 = arith.constant 0 : index
      %c0_10 = arith.constant 0 : index
      %12 = vector.load %arg7[%c0_9, %c0_10] : memref<8x512xf32, #tpu.memory_space<vmem>>, vector<8x512xf32>
      %c0_11 = arith.constant 0 : index
      %c0_12 = arith.constant 0 : index
      %13 = vector.load %arg3[%c0_11, %c0_12] : memref<1x512xf32, #tpu.memory_space<vmem>>, vector<1x512xf32>
      %14 = vector.broadcast %13 : vector<1x512xf32> to vector<8x512xf32>
      %15 = arith.addf %12, %14 : vector<8x512xf32>
      %cst_13 = arith.constant 0.000000e+00 : f32
      %16 = vector.broadcast %cst_13 : f32 to vector<8x512xf32>
      %17 = arith.maximumf %15, %16 : vector<8x512xf32>
      %c0_14 = arith.constant 0 : index
      %c0_15 = arith.constant 0 : index
      %18 = vector.load %arg4[%c0_14, %c0_15] : memref<512x4xf32, #tpu.memory_space<vmem>>, vector<512x4xf32>
      %cst_16 = arith.constant dense<0.000000e+00> : vector<8x4xf32>
      %19 = tpu.matmul %17, %18, %cst_16 {dimension_numbers = #tpu.dot_dimension_numbers<[1], [0], [0], [1], [0, 0, 1, 1], [], []>} : vector<8x512xf32>, vector<512x4xf32>, vector<8x4xf32> -> vector<8x4xf32>
      %c0_17 = arith.constant 0 : index
      %c0_18 = arith.constant 0 : index
      %20 = vector.load %arg5[%c0_17, %c0_18] : memref<1x4xf32, #tpu.memory_space<vmem>>, vector<1x4xf32>
      %21 = vector.broadcast %20 : vector<1x4xf32> to vector<8x4xf32>
      %22 = arith.addf %19, %21 : vector<8x4xf32>
      %c0_19 = arith.constant 0 : index
      %c0_20 = arith.constant 0 : index
      %23 = vector.load %arg6[%c0_19, %c0_20] : memref<8x4xf32, #tpu.memory_space<vmem>>, vector<8x4xf32>
      tpu.vector_store %arg6[%c0_19, %c0_20], %22 {strides = array<i32>} : memref<8x4xf32, #tpu.memory_space<vmem>>, vector<8x4xf32>,
    } else {
    }
    return
  }
  func.func @transform_0(%arg0: i32) -> (i32, i32) {
    %c0_i32 = arith.constant 0 : i32
    %c0_i32_0 = arith.constant 0 : i32
    return %c0_i32, %arg0 : i32, i32
  }
  func.func @transform_1(%arg0: i32) -> (i32, i32) {
    %c0_i32 = arith.constant 0 : i32
    %c0_i32_0 = arith.constant 0 : i32
    return %arg0, %c0_i32 : i32, i32
  }
  func.func @transform_2(%arg0: i32) -> (i32, i32) {
    %c0_i32 = arith.constant 0 : i32
    %c0_i32_0 = arith.constant 0 : i32
    %c0_i32_1 = arith.constant 0 : i32
    return %c0_i32, %c0_i32_0 : i32, i32
  }
  func.func @transform_3(%arg0: i32) -> (i32, i32) {
    %c0_i32 = arith.constant 0 : i32
    %c0_i32_0 = arith.constant 0 : i32
    %c0_i32_1 = arith.constant 0 : i32
    return %c0_i32, %c0_i32_0 : i32, i32
  }
  func.func @transform_4(%arg0: i32) -> (i32, i32) {
    %c0_i32 = arith.constant 0 : i32
    %c0_i32_0 = arith.constant 0 : i32
    %c0_i32_1 = arith.constant 0 : i32
    return %c0_i32, %c0_i32_0 : i32, i32
  }
  func.func @transform_5(%arg0: i32) -> (i32, i32) {
    %c0_i32 = arith.constant 0 : i32
    %c0_i32_0 = arith.constant 0 : i32
    %c0_i32_1 = arith.constant 0 : i32
    return %c0_i32, %c0_i32_0 : i32, i32
  }
}

</mosaic_0001>

<bundles_post_ra>
// kernel: agent_net_forward.4
= control target key start
LH: loop header
LB: loop body
LE: loop exit
PB: predicated region body
PF: predicated region fallthrough
CT: control target
= control target key end

     0   :  { %v5373_v0 = vmov 0.0   ;;  %vm5374_vm0 = vmmov 0   ;;  %vm3577_vm1 = vcmask 125952   ;;  %s7450_s1 = inlined_call_operand.vmem [shape: bf16[128,16], index: 1, kind: input, shape index: {}]   ;;  %s7451_s0 = inlined_call_operand.vmem [shape: bf16[2128,128], index: 0, kind: input, shape index: {}]   ;;  %s7452_s2 = inlined_call_operand.vmem [shape: f32[1,16], index: 2, kind: input, shape index: {}]   ;;  %s7453_s3 = inlined_call_operand.vmem [shape: bf16[2128,16], index: 3, kind: output, shape index: {}]  }
   0x1   :  { %4663 = vmatprep.subr.bf16.mxu0 %v5373_v0  ;;  %v5229_v1 = vld [vmem:[%s7450_s1] sm:$0xff]   ;;  %5211 = vmatprep.subr.bf16.mxu1 %v5373_v0  ;;  %v5230_v2 = vld [vmem:[%s7450_s1 + $0x8] sm:$0xff]   ;;  %v5231_v3 = vld [vmem:[%s7450_s1 + $0x10] sm:$0xff]  }
   0x2   :  { %4679 = vmatprep.mubr.msk.bf16.mxu0 %vm5374_vm0, %v5373_v0  ;;  %4947 = vmatprep.mubr.msk.bf16.mxu1 %vm5374_vm0, %v5373_v0  ;;  %v5232_v4 = vld [vmem:[%s7450_s1 + $0x18] sm:$0xff]   ;;  %v5233_v5 = vld [vmem:[%s7450_s1 + $0x20] sm:$0xff]   ;;  %v5234_v6 = vld [vmem:[%s7450_s1 + $0x28] sm:$0xff]  }
   0x3   :  { %4664 = vmatpush3.bf16.msra.mxu0 %v5229_v1  ;;  %5219 = vmatpush3.bf16.msra.mxu1 %v5229_v1  ;;  %v5235_v7 = vld [vmem:[%s7450_s1 + $0x30] sm:$0xff]   ;;  %v5236_v8 = vld [vmem:[%s7450_s1 + $0x38] sm:$0xff]   ;;  %v5237_v9 = vld [vmem:[%s7451_s0] sm:$0xff]  }
   0x4   :  { %4665 = vmatprep.subr.bf16.mxu0 %v5373_v0  ;;  %5212 = vmatprep.subr.bf16.mxu1 %v5373_v0  ;;  %v5238_v10 = vld [vmem:[%s7451_s0 + $0x218] sm:$0xff]   ;;  %v5239_v11 = vld [vmem:[%s7451_s0 + $0x8] sm:$0xff]   ;;  %v5240_v12 = vld [vmem:[%s7451_s0 + $0x220] sm:$0xff]  }
   0x5   :  { %v5241_v13 = vld [vmem:[%s7451_s0 + $0x10] sm:$0xff]   ;;  %v5242_v14 = vld [vmem:[%s7451_s0 + $0x228] sm:$0xff]   ;;  %v5243_v15 = vld [vmem:[%s7451_s0 + $0x18] sm:$0xff]  }
   0x6   :  { %v5244_v16 = vld [vmem:[%s7451_s0 + $0x230] sm:$0xff]   ;;  %v5245_v17 = vld [vmem:[%s7451_s0 + $0x20] sm:$0xff]   ;;  %v5246_v18 = vld [vmem:[%s7451_s0 + $0x238] sm:$0xff]  }
   0x7   :  { %4666 = vmatpush3.bf16.msra.mxu0 %v5230_v2  ;;  %5220 = vmatpush3.bf16.msra.mxu1 %v5230_v2  ;;  %v5247_v19 = vld [vmem:[%s7451_s0 + $0x28] sm:$0xff]   ;;  %v5248_v20 = vld [vmem:[%s7451_s0 + $0x240] sm:$0xff]   ;;  %v5249_v21 = vld [vmem:[%s7451_s0 + $0x30] sm:$0xff]  }
   0x8   :  { %4667 = vmatprep.subr.bf16.mxu0 %v5373_v0  ;;  %5213 = vmatprep.subr.bf16.mxu1 %v5373_v0  ;;  %v5250_v22 = vld [vmem:[%s7451_s0 + $0x248] sm:$0xff]   ;;  %v5251_v23 = vld [vmem:[%s7451_s0 + $0x38] sm:$0xff]   ;;  %v5252_v24 = vld [vmem:[%s7451_s0 + $0x250] sm:$0xff]  }
   0x9   :  { %v5253_v25 = vld [vmem:[%s7451_s0 + $0x40] sm:$0xff]   ;;  %v5254_v26 = vld [vmem:[%s7451_s0 + $0x258] sm:$0xff]   ;;  %v5255_v27 = vld [vmem:[%s7451_s0 + $0x48] sm:$0xff]  }
   0xa   :  { %v5256_v28 = vld [vmem:[%s7451_s0 + $0x260] sm:$0xff]   ;;  %v5257_v29 = vld [vmem:[%s7451_s0 + $0x50] sm:$0xff]   ;;  %v5258_v30 = vld [vmem:[%s7451_s0 + $0x268] sm:$0xff]  }
   0xb   :  { %4668 = vmatpush3.bf16.msra.mxu0 %v5231_v3  ;;  %5221 = vmatpush3.bf16.msra.mxu1 %v5231_v3  ;;  %v5259_v31 = vld [vmem:[%s7451_s0 + $0x58] sm:$0xff]   ;;  %v5260_v32 = vld [vmem:[%s7451_s0 + $0x270] sm:$0xff]   ;;  %v5261_v33 = vld [vmem:[%s7451_s0 + $0x60] sm:$0xff]  }
   0xc   :  { %4669 = vmatprep.subr.bf16.mxu0 %v5373_v0  ;;  %5214 = vmatprep.subr.bf16.mxu1 %v5373_v0  ;;  %v5262_v34 = vld [vmem:[%s7451_s0 + $0x278] sm:$0xff]   ;;  %v5263_v35 = vld [vmem:[%s7451_s0 + $0x68] sm:$0xff]   ;;  %v5264_v36 = vld [vmem:[%s7451_s0 + $0x280] sm:$0xff]  }
   0xd   :  { %v5265_v37 = vld [vmem:[%s7451_s0 + $0x70] sm:$0xff]   ;;  %v5266_v38 = vld [vmem:[%s7451_s0 + $0x288] sm:$0xff]   ;;  %v5267_v39 = vld [vmem:[%s7451_s0 + $0x78] sm:$0xff]  }
   0xe   :  { %v5268_v40 = vld [vmem:[%s7451_s0 + $0x290] sm:$0xff]   ;;  %v5269_v41 = vld [vmem:[%s7451_s0 + $0x80] sm:$0xff]   ;;  %v5270_v42 = vld [vmem:[%s7451_s0 + $0x298] sm:$0xff]  }
   0xf   :  { %4670 = vmatpush3.bf16.msra.mxu0 %v5232_v4  ;;  %5222 = vmatpush3.bf16.msra.mxu1 %v5232_v4  ;;  %v5271_v43 = vld [vmem:[%s7451_s0 + $0x88] sm:$0xff]   ;;  %v5272_v44 = vld [vmem:[%s7451_s0 + $0x2a0] sm:$0xff]   ;;  %v5273_v45 = vld [vmem:[%s7451_s0 + $0x90] sm:$0xff]  }
  0x10   :  { %4671 = vmatprep.subr.bf16.mxu0 %v5373_v0  ;;  %5215 = vmatprep.subr.bf16.mxu1 %v5373_v0  ;;  %v5274_v46 = vld [vmem:[%s7451_s0 + $0x2a8] sm:$0xff]   ;;  %v5275_v47 = vld [vmem:[%s7451_s0 + $0x98] sm:$0xff]   ;;  %v5276_v48 = vld [vmem:[%s7451_s0 + $0x2b0] sm:$0xff]  }
  0x11   :  { %v5277_v49 = vld [vmem:[%s7451_s0 + $0xa0] sm:$0xff]   ;;  %v5278_v50 = vld [vmem:[%s7451_s0 + $0x2b8] sm:$0xff]   ;;  %v5279_v51 = vld [vmem:[%s7451_s0 + $0xa8] sm:$0xff]  }
  0x12   :  { %v5280_v52 = vld [vmem:[%s7451_s0 + $0x2c0] sm:$0xff]   ;;  %v5281_v53 = vld [vmem:[%s7451_s0 + $0xb0] sm:$0xff]   ;;  %v5282_v54 = vld [vmem:[%s7451_s0 + $0x2c8] sm:$0xff]  }
  0x13   :  { %4672 = vmatpush3.bf16.msra.mxu0 %v5233_v5  ;;  %5223 = vmatpush3.bf16.msra.mxu1 %v5233_v5  ;;  %v5283_v55 = vld [vmem:[%s7451_s0 + $0xb8] sm:$0xff]   ;;  %v5284_v56 = vld [vmem:[%s7451_s0 + $0x2d0] sm:$0xff]   ;;  %v5285_v57 = vld [vmem:[%s7451_s0 + $0xc0] sm:$0xff]  }
  0x14   :  { %4673 = vmatprep.subr.bf16.mxu0 %v5373_v0  ;;  %5216 = vmatprep.subr.bf16.mxu1 %v5373_v0  ;;  %v5286_v58 = vld [vmem:[%s7451_s0 + $0x2d8] sm:$0xff]   ;;  %v5287_v59 = vld [vmem:[%s7451_s0 + $0xc8] sm:$0xff]   ;;  %v5288_v60 = vld [vmem:[%s7451_s0 + $0x2e0] sm:$0xff]  }
  0x15   :  { %v5289_v61 = vld [vmem:[%s7451_s0 + $0xd0] sm:$0xff]   ;;  %v5290_v62 = vld [vmem:[%s7451_s0 + $0x2e8] sm:$0xff]   ;;  %v5708_v63 = vld [vmem:[%s7452_s2] ss:$0 sm:$0xff] }
  0x16   :  { %v5291_v5 = vld [vmem:[%s7451_s0 + $0xd8] sm:$0xff]  }
  0x17   :  { %4674 = vmatpush3.bf16.msra.mxu0 %v5234_v6  ;;  %5224 = vmatpush3.bf16.msra.mxu1 %v5234_v6 }
  0x18   :  { %4675 = vmatprep.subr.bf16.mxu0 %v5373_v0  ;;  %5217 = vmatprep.subr.bf16.mxu1 %v5373_v0 }
  0x1b   :  { %4676 = vmatpush3.bf16.msra.mxu0 %v5235_v7  ;;  %5225 = vmatpush3.bf16.msra.mxu1 %v5235_v7 }
  0x1c   :  { %4677 = vmatprep.subr.bf16.mxu0 %v5373_v0  ;;  %5218 = vmatprep.subr.bf16.mxu1 %v5373_v0 }
  0x1f   :  { %4678 = vmatpush3.bf16.msra.mxu0 %v5236_v8  ;;  %5226 = vmatpush3.bf16.msra.mxu1 %v5236_v8  ;;  %v5292_v8 = vld [vmem:[%s7451_s0 + $0x2f0] sm:$0xff]  }
  0x22   :  { %4680 = vmatmul.mubr.bf16.vlgmr.msra.gmra.mrb[0].mxu0 %v5237_v9  ;;  %4948 = vmatmul.mubr.bf16.vlgmr.msra.gmra.mrb[0].mxu1 %v5238_v10 }
  0x23   :  { %4683 = vmatprep.mubr.msk.bf16.mxu0 %vm5374_vm0, %v5373_v0  ;;  %4951 = vmatprep.mubr.msk.bf16.mxu1 %vm5374_vm0, %v5373_v0 }
  0x2a   :  { %4684 = vmatmul.mubr.bf16.gmra.mrb[4].mxu0 %v5239_v11  ;;  %4952 = vmatmul.mubr.bf16.gmra.mrb[4].mxu1 %v5240_v12 }
  0x2b   :  { %4687 = vmatprep.mubr.msk.bf16.mxu0 %vm5374_vm0, %v5373_v0  ;;  %4955 = vmatprep.mubr.msk.bf16.mxu1 %vm5374_vm0, %v5373_v0 }
  0x32   :  { %4688 = vmatmul.mubr.bf16.gmra.mrb[8].mxu0 %v5241_v13  ;;  %4956 = vmatmul.mubr.bf16.gmra.mrb[8].mxu1 %v5242_v14 }
  0x33   :  { %4691 = vmatprep.mubr.msk.bf16.mxu0 %vm5374_vm0, %v5373_v0  ;;  %4959 = vmatprep.mubr.msk.bf16.mxu1 %vm5374_vm0, %v5373_v0 }
  0x3a   :  { %4692 = vmatmul.mubr.bf16.gmra.mrb[12].mxu0 %v5243_v15  ;;  %4960 = vmatmul.mubr.bf16.gmra.mrb[12].mxu1 %v5244_v16 }
  0x3b   :  { %4695 = vmatprep.mubr.msk.bf16.mxu0 %vm5374_vm0, %v5373_v0  ;;  %4963 = vmatprep.mubr.msk.bf16.mxu1 %vm5374_vm0, %v5373_v0 }
  0x42   :  { %4696 = vmatmul.mubr.bf16.gmra.mrb[16].mxu0 %v5245_v17  ;;  %4964 = vmatmul.mubr.bf16.gmra.mrb[16].mxu1 %v5246_v18 }
  0x43   :  { %4699 = vmatprep.mubr.msk.bf16.mxu0 %vm5374_vm0, %v5373_v0  ;;  %4967 = vmatprep.mubr.msk.bf16.mxu1 %vm5374_vm0, %v5373_v0 }
  0x4a   :  { %4700 = vmatmul.mubr.bf16.gmra.mrb[20].mxu0 %v5247_v19  ;;  %4968 = vmatmul.mubr.bf16.gmra.mrb[20].mxu1 %v5248_v20 }
  0x4b   :  { %4703 = vmatprep.mubr.msk.bf16.mxu0 %vm5374_vm0, %v5373_v0  ;;  %4971 = vmatprep.mubr.msk.bf16.mxu1 %vm5374_vm0, %v5373_v0 }
  0x52   :  { %4704 = vmatmul.mubr.bf16.gmra.mrb[24].mxu0 %v5249_v21  ;;  %4972 = vmatmul.mubr.bf16.gmra.mrb[24].mxu1 %v5250_v22 }
  0x53   :  { %4707 = vmatprep.mubr.msk.bf16.mxu0 %vm5374_vm0, %v5373_v0  ;;  %4975 = vmatprep.mubr.msk.bf16.mxu1 %vm5374_vm0, %v5373_v0 }
  0x5a   :  { %4708 = vmatmul.mubr.bf16.gmra.mrb[28].mxu0 %v5251_v23  ;;  %4976 = vmatmul.mubr.bf16.gmra.mrb[28].mxu1 %v5252_v24 }
  0x5b   :  { %4711 = vmatprep.mubr.msk.bf16.mxu0 %vm5374_vm0, %v5373_v0  ;;  %4979 = vmatprep.mubr.msk.bf16.mxu1 %vm5374_vm0, %v5373_v0 }
  0x62   :  { %4712 = vmatmul.mubr.bf16.gmra.mrb[32].mxu0 %v5253_v25  ;;  %4980 = vmatmul.mubr.bf16.gmra.mrb[32].mxu1 %v5254_v26 }
  0x63   :  { %4715 = vmatprep.mubr.msk.bf16.mxu0 %vm5374_vm0, %v5373_v0  ;;  %4983 = vmatprep.mubr.msk.bf16.mxu1 %vm5374_vm0, %v5373_v0 }
  0x6a   :  { %4716 = vmatmul.mubr.bf16.gmra.mrb[36].mxu0 %v5255_v27  ;;  %4984 = vmatmul.mubr.bf16.gmra.mrb[36].mxu1 %v5256_v28  ;;  %v5293_v27 = vld [vmem:[%s7451_s0 + $0xe0] sm:$0xff]  }
  0x6b   :  { %4719 = vmatprep.mubr.msk.bf16.mxu0 %vm5374_vm0, %v5373_v0  ;;  %4987 = vmatprep.mubr.msk.bf16.mxu1 %vm5374_vm0, %v5373_v0 }
  0x72   :  { %4720 = vmatmul.mubr.bf16.gmra.mrb[40].mxu0 %v5257_v29  ;;  %4988 = vmatmul.mubr.bf16.gmra.mrb[40].mxu1 %v5258_v30  ;;  %v5294_v30 = vld [vmem:[%s7451_s0 + $0x2f8] sm:$0xff]  }
  0x73   :  { %4723 = vmatprep.mubr.msk.bf16.mxu0 %vm5374_vm0, %v5373_v0  ;;  %4991 = vmatprep.mubr.msk.bf16.mxu1 %vm5374_vm0, %v5373_v0 }
  0x7a   :  { %4724 = vmatmul.mubr.bf16.gmra.mrb[44].mxu0 %v5259_v31  ;;  %4992 = vmatmul.mubr.bf16.gmra.mrb[44].mxu1 %v5260_v32 }
  0x7b   :  { %4727 = vmatprep.mubr.msk.bf16.mxu0 %vm5374_vm0, %v5373_v0  ;;  %4995 = vmatprep.mubr.msk.bf16.mxu1 %vm5374_vm0, %v5373_v0 }
  0x82   :  { %4728 = vmatmul.mubr.bf16.gmra.mrb[48].mxu0 %v5261_v33  ;;  %4996 = vmatmul.mubr.bf16.gmra.mrb[48].mxu1 %v5262_v34 }
  0x83   :  { %4731 = vmatprep.mubr.msk.bf16.mxu0 %vm5374_vm0, %v5373_v0  ;;  %4999 = vmatprep.mubr.msk.bf16.mxu1 %vm5374_vm0, %v5373_v0 }
  0x8a   :  { %4732 = vmatmul.mubr.bf16.gmra.mrb[52].mxu0 %v5263_v35  ;;  %5000 = vmatmul.mubr.bf16.gmra.mrb[52].mxu1 %v5264_v36 }
  0x8b   :  { %4735 = vmatprep.mubr.msk.bf16.mxu0 %vm5374_vm0, %v5373_v0  ;;  %5003 = vmatprep.mubr.msk.bf16.mxu1 %vm5374_vm0, %v5373_v0 }
  0x92   :  { %4736 = vmatmul.mubr.bf16.gmra.mrb[56].mxu0 %v5265_v37  ;;  %5004 = vmatmul.mubr.bf16.gmra.mrb[56].mxu1 %v5266_v38 }
  0x93   :  { %4739 = vmatprep.mubr.msk.bf16.mxu0 %vm5374_vm0, %v5373_v0  ;;  %5007 = vmatprep.mubr.msk.bf16.mxu1 %vm5374_vm0, %v5373_v0 }
  0x9a   :  { %4740 = vmatmul.mubr.bf16.gmra.mrb[60].mxu0 %v5267_v39  ;;  %5008 = vmatmul.mubr.bf16.gmra.mrb[60].mxu1 %v5268_v40 }
  0x9b   :  { %4743 = vmatprep.mubr.msk.bf16.mxu0 %vm5374_vm0, %v5373_v0  ;;  %5011 = vmatprep.mubr.msk.bf16.mxu1 %vm5374_vm0, %v5373_v0 }
  0xa2   :  { %4744 = vmatmul.mubr.bf16.gmra.mrb[64].mxu0 %v5269_v41  ;;  %5012 = vmatmul.mubr.bf16.gmra.mrb[64].mxu1 %v5270_v42 }
  0xa3   :  { %4747 = vmatprep.mubr.msk.bf16.mxu0 %vm5374_vm0, %v5373_v0  ;;  %5015 = vmatprep.mubr.msk.bf16.mxu1 %vm5374_vm0, %v5373_v0 }
  0xaa   :  { %4748 = vmatmul.mubr.bf16.gmra.mrb[68].mxu0 %v5271_v43  ;;  %5016 = vmatmul.mubr.bf16.gmra.mrb[68].mxu1 %v5272_v44 }
  0xab   :  { %4751 = vmatprep.mubr.msk.bf16.mxu0 %vm5374_vm0, %v5373_v0  ;;  %5019 = vmatprep.mubr.msk.bf16.mxu1 %vm5374_vm0, %v5373_v0 }
  0xb2   :  { %4752 = vmatmul.mubr.bf16.gmra.mrb[72].mxu0 %v5273_v45  ;;  %5020 = vmatmul.mubr.bf16.gmra.mrb[72].mxu1 %v5274_v46 }
  0xb3   :  { %4755 = vmatprep.mubr.msk.bf16.mxu0 %vm5374_vm0, %v5373_v0  ;;  %5023 = vmatprep.mubr.msk.bf16.mxu1 %vm5374_vm0, %v5373_v0 }
  0xba   :  { %4756 = vmatmul.mubr.bf16.gmra.mrb[76].mxu0 %v5275_v47  ;;  %5024 = vmatmul.mubr.bf16.gmra.mrb[76].mxu1 %v5276_v48 }
  0xbb   :  { %4759 = vmatprep.mubr.msk.bf16.mxu0 %vm5374_vm0, %v5373_v0  ;;  %5027 = vmatprep.mubr.msk.bf16.mxu1 %vm5374_vm0, %v5373_v0 }
  0xc2   :  { %4760 = vmatmul.mubr.bf16.gmra.mrb[80].mxu0 %v5277_v49  ;;  %5028 = vmatmul.mubr.bf16.gmra.mrb[80].mxu1 %v5278_v50  ;;  %v5295_v49 = vld [vmem:[%s7451_s0 + $0xe8] sm:$0xff]  }
  0xc3   :  { %4763 = vmatprep.mubr.msk.bf16.mxu0 %vm5374_vm0, %v5373_v0  ;;  %5031 = vmatprep.mubr.msk.bf16.mxu1 %vm5374_vm0, %v5373_v0 }
  0xca   :  { %4764 = vmatmul.mubr.bf16.gmra.mrb[84].mxu0 %v5279_v51  ;;  %5032 = vmatmul.mubr.bf16.gmra.mrb[84].mxu1 %v5280_v52  ;;  %v5296_v52 = vld [vmem:[%s7451_s0 + $0x300] sm:$0xff]  }
  0xcb   :  { %4767 = vmatprep.mubr.msk.bf16.mxu0 %vm5374_vm0, %v5373_v0  ;;  %5035 = vmatprep.mubr.msk.bf16.mxu1 %vm5374_vm0, %v5373_v0 }
  0xd2   :  { %4768 = vmatmul.mubr.bf16.gmra.mrb[88].mxu0 %v5281_v53  ;;  %5036 = vmatmul.mubr.bf16.gmra.mrb[88].mxu1 %v5282_v54 }
  0xd3   :  { %4771 = vmatprep.mubr.msk.bf16.mxu0 %vm5374_vm0, %v5373_v0  ;;  %5039 = vmatprep.mubr.msk.bf16.mxu1 %vm5374_vm0, %v5373_v0 }
  0xda   :  { %4772 = vmatmul.mubr.bf16.gmra.mrb[92].mxu0 %v5283_v55  ;;  %5040 = vmatmul.mubr.bf16.gmra.mrb[92].mxu1 %v5284_v56 }
  0xdb   :  { %4775 = vmatprep.mubr.msk.bf16.mxu0 %vm5374_vm0, %v5373_v0  ;;  %5043 = vmatprep.mubr.msk.bf16.mxu1 %vm5374_vm0, %v5373_v0 }
  0xe2   :  { %4776 = vmatmul.mubr.bf16.gmra.mrb[96].mxu0 %v5285_v57  ;;  %5044 = vmatmul.mubr.bf16.gmra.mrb[96].mxu1 %v5286_v58 }
  0xe3   :  { %4779 = vmatprep.mubr.msk.bf16.mxu0 %vm5374_vm0, %v5373_v0  ;;  %5047 = vmatprep.mubr.msk.bf16.mxu1 %vm5374_vm0, %v5373_v0 }
  0xea   :  { %4780 = vmatmul.mubr.bf16.gmra.mrb[100].mxu0 %v5287_v59  ;;  %5048 = vmatmul.mubr.bf16.gmra.mrb[100].mxu1 %v5288_v60 }
  0xeb   :  { %4783 = vmatprep.mubr.msk.bf16.mxu0 %vm5374_vm0, %v5373_v0  ;;  %5051 = vmatprep.mubr.msk.bf16.mxu1 %vm5374_vm0, %v5373_v0 }
  0xf2   :  { %4784 = vmatmul.mubr.bf16.gmra.mrb[104].mxu0 %v5289_v61  ;;  %5052 = vmatmul.mubr.bf16.gmra.mrb[104].mxu1 %v5290_v62 }
  0xf3   :  { %4787 = vmatprep.mubr.msk.bf16.mxu0 %vm5374_vm0, %v5373_v0  ;;  %5055 = vmatprep.mubr.msk.bf16.mxu1 %vm5374_vm0, %v5373_v0 }
  0xf5   :  { %v1184_v1 = vpop.f32.mrb[0].mxu0  ;;  %v1720_v2 = vpop.f32.mrb[0].mxu1 }
  0xf6   :  { %v1185_v3 = vadd.f32 %v5708_v63, %v1184_v1  ;;  %v4681_v4 = vpop.f32.mrb[1].mxu0  ;;  %v1721_v6 = vadd.f32 %v5708_v63, %v1720_v2  ;;  %v4949_v7 = vpop.f32.mrb[1].mxu1 }
  0xf7   :  { %v1187_v9 = vpop.f32.mrb[2].mxu0  ;;  %v1723_v10 = vpop.f32.mrb[2].mxu1 }
  0xf8   :  { %v2247_v11 = vmax.f32 %v1185_v3, 0.0  ;;  %v1188_v12 = vadd.f32 %v5708_v63, %v1187_v9  ;;  %v4682_v13 = vpop.f32.mrb[3].mxu0  ;;  %v2381_v14 = vmax.f32 %v1721_v6, 0.0  ;;  %v1724_v15 = vadd.f32 %v5708_v63, %v1723_v10  ;;  %v4950_v16 = vpop.f32.mrb[3].mxu1  ;;  %v5297_v9 = vld [vmem:[%s7451_s0 + $0xf0] sm:$0xff]  }
  0xfa   :  { %v4256_v17 = vpack.c.bf16 %v2247_v11, %v2247_v11  ;;  %v2248_v18 = vmax.f32 %v1188_v12, 0.0  ;;  %4788 = vmatmul.mubr.bf16.gmra.mrb[108].mxu0 %v5291_v5  ;;  %v4390_v19 = vpack.c.bf16 %v2381_v14, %v2381_v14  ;;  %v2382_v20 = vmax.f32 %v1724_v15, 0.0  ;;  %5056 = vmatmul.mubr.bf16.gmra.mrb[108].mxu1 %v5292_v8  ;;  %v5298_v12 = vld [vmem:[%s7451_s0 + $0x308] sm:$0xff]  }
  0xfb   :  { %4791 = vmatprep.mubr.msk.bf16.mxu0 %vm5374_vm0, %v5373_v0  ;;  %5059 = vmatprep.mubr.msk.bf16.mxu1 %vm5374_vm0, %v5373_v0 }
  0xfc   :  { %3578 = vst.msk [vmem:[%s7453_s3] sm:$0xf] %vm3577_vm1, %v4256_v17  ;;  %v4257_v21 = vpack.c.bf16 %v2248_v18, %v2248_v18  ;;  %3712 = vst.msk [vmem:[%s7453_s3 + $0x218] sm:$0xf] %vm3577_vm1, %v4390_v19  ;;  %v4391_v22 = vpack.c.bf16 %v2382_v20, %v2382_v20 }
  0xfd   :  { %v1192_v23 = vpop.f32.mrb[4].mxu0  ;;  %v1728_v24 = vpop.f32.mrb[4].mxu1 }
  0xfe   :  { %3579 = vst.msk [vmem:[%s7453_s3 + $0x4] sm:$0xf] %vm3577_vm1, %v4257_v21  ;;  %3713 = vst.msk [vmem:[%s7453_s3 + $0x21c] sm:$0xf] %vm3577_vm1, %v4391_v22  ;;  %v1193_v25 = vadd.f32 %v5708_v63, %v1192_v23  ;;  %v4685_v26 = vpop.f32.mrb[5].mxu0  ;;  %v1729_v28 = vadd.f32 %v5708_v63, %v1728_v24  ;;  %v4953_v29 = vpop.f32.mrb[5].mxu1 }
  0xff   :  { %v1195_v31 = vpop.f32.mrb[6].mxu0  ;;  %v1731_v32 = vpop.f32.mrb[6].mxu1 }
 0x100   :  { %v2249_v33 = vmax.f32 %v1193_v25, 0.0  ;;  %v1196_v34 = vadd.f32 %v5708_v63, %v1195_v31  ;;  %v4686_v35 = vpop.f32.mrb[7].mxu0  ;;  %v2383_v36 = vmax.f32 %v1729_v28, 0.0  ;;  %v1732_v37 = vadd.f32 %v5708_v63, %v1731_v32  ;;  %v4954_v38 = vpop.f32.mrb[7].mxu1  ;;  %v5299_v31 = vld [vmem:[%s7451_s0 + $0xf8] sm:$0xff]  }
 0x102   :  { %v4258_v39 = vpack.c.bf16 %v2249_v33, %v2249_v33  ;;  %v2250_v40 = vmax.f32 %v1196_v34, 0.0  ;;  %4792 = vmatmul.mubr.bf16.gmra.mrb[112].mxu0 %v5293_v27  ;;  %v4392_v41 = vpack.c.bf16 %v2383_v36, %v2383_v36  ;;  %v2384_v42 = vmax.f32 %v1732_v37, 0.0  ;;  %5060 = vmatmul.mubr.bf16.gmra.mrb[112].mxu1 %v5294_v30  ;;  %v5300_v34 = vld [vmem:[%s7451_s0 + $0x310] sm:$0xff]  }
 0x103   :  { %4795 = vmatprep.mubr.msk.bf16.mxu0 %vm5374_vm0, %v5373_v0  ;;  %5063 = vmatprep.mubr.msk.bf16.mxu1 %vm5374_vm0, %v5373_v0 }
 0x104   :  { %3580 = vst.msk [vmem:[%s7453_s3 + $0x8] sm:$0xf] %vm3577_vm1, %v4258_v39  ;;  %v4259_v43 = vpack.c.bf16 %v2250_v40, %v2250_v40  ;;  %3714 = vst.msk [vmem:[%s7453_s3 + $0x220] sm:$0xf] %vm3577_vm1, %v4392_v41  ;;  %v4393_v44 = vpack.c.bf16 %v2384_v42, %v2384_v42 }
 0x105   :  { %v1200_v45 = vpop.f32.mrb[8].mxu0  ;;  %v1736_v46 = vpop.f32.mrb[8].mxu1 }
 0x106   :  { %3581 = vst.msk [vmem:[%s7453_s3 + $0xc] sm:$0xf] %vm3577_vm1, %v4259_v43  ;;  %3715 = vst.msk [vmem:[%s7453_s3 + $0x224] sm:$0xf] %vm3577_vm1, %v4393_v44  ;;  %v1201_v47 = vadd.f32 %v5708_v63, %v1200_v45  ;;  %v4689_v48 = vpop.f32.mrb[9].mxu0  ;;  %v1737_v50 = vadd.f32 %v5708_v63, %v1736_v46  ;;  %v4957_v51 = vpop.f32.mrb[9].mxu1 }
 0x107   :  { %v1203_v53 = vpop.f32.mrb[10].mxu0  ;;  %v1739_v54 = vpop.f32.mrb[10].mxu1 }
 0x108   :  { %v2251_v55 = vmax.f32 %v1201_v47, 0.0  ;;  %v1204_v56 = vadd.f32 %v5708_v63, %v1203_v53  ;;  %v4690_v57 = vpop.f32.mrb[11].mxu0  ;;  %v2385_v58 = vmax.f32 %v1737_v50, 0.0  ;;  %v1740_v59 = vadd.f32 %v5708_v63, %v1739_v54  ;;  %v4958_v60 = vpop.f32.mrb[11].mxu1  ;;  %v5301_v53 = vld [vmem:[%s7451_s0 + $0x100] sm:$0xff]  }
 0x10a   :  { %v4260_v61 = vpack.c.bf16 %v2251_v55, %v2251_v55  ;;  %v2252_v62 = vmax.f32 %v1204_v56, 0.0  ;;  %4796 = vmatmul.mubr.bf16.gmra.mrb[116].mxu0 %v5295_v49  ;;  %v4394_v1 = vpack.c.bf16 %v2385_v58, %v2385_v58  ;;  %v2386_v2 = vmax.f32 %v1740_v59, 0.0  ;;  %5064 = vmatmul.mubr.bf16.gmra.mrb[116].mxu1 %v5296_v52  ;;  %v5302_v56 = vld [vmem:[%s7451_s0 + $0x318] sm:$0xff]  }
 0x10b   :  { %4799 = vmatprep.mubr.msk.bf16.mxu0 %vm5374_vm0, %v5373_v0  ;;  %5067 = vmatprep.mubr.msk.bf16.mxu1 %vm5374_vm0, %v5373_v0 }
 0x10c   :  { %3582 = vst.msk [vmem:[%s7453_s3 + $0x10] sm:$0xf] %vm3577_vm1, %v4260_v61  ;;  %v4261_v3 = vpack.c.bf16 %v2252_v62, %v2252_v62  ;;  %3716 = vst.msk [vmem:[%s7453_s3 + $0x228] sm:$0xf] %vm3577_vm1, %v4394_v1  ;;  %v4395_v4 = vpack.c.bf16 %v2386_v2, %v2386_v2 }
 0x10d   :  { %v1208_v5 = vpop.f32.mrb[12].mxu0  ;;  %v1744_v6 = vpop.f32.mrb[12].mxu1 }
 0x10e   :  { %3583 = vst.msk [vmem:[%s7453_s3 + $0x14] sm:$0xf] %vm3577_vm1, %v4261_v3  ;;  %3717 = vst.msk [vmem:[%s7453_s3 + $0x22c] sm:$0xf] %vm3577_vm1, %v4395_v4  ;;  %v1209_v7 = vadd.f32 %v5708_v63, %v1208_v5  ;;  %v4693_v8 = vpop.f32.mrb[13].mxu0  ;;  %v1745_v10 = vadd.f32 %v5708_v63, %v1744_v6  ;;  %v4961_v11 = vpop.f32.mrb[13].mxu1 }
 0x10f   :  { %v1211_v13 = vpop.f32.mrb[14].mxu0  ;;  %v1747_v14 = vpop.f32.mrb[14].mxu1 }
 0x110   :  { %v2253_v15 = vmax.f32 %v1209_v7, 0.0  ;;  %v1212_v16 = vadd.f32 %v5708_v63, %v1211_v13  ;;  %v4694_v17 = vpop.f32.mrb[15].mxu0  ;;  %v2387_v18 = vmax.f32 %v1745_v10, 0.0  ;;  %v1748_v19 = vadd.f32 %v5708_v63, %v1747_v14  ;;  %v4962_v20 = vpop.f32.mrb[15].mxu1  ;;  %v5303_v13 = vld [vmem:[%s7451_s0 + $0x108] sm:$0xff]  }
 0x112   :  { %v4262_v21 = vpack.c.bf16 %v2253_v15, %v2253_v15  ;;  %v2254_v22 = vmax.f32 %v1212_v16, 0.0  ;;  %4800 = vmatmul.mubr.bf16.gmra.mrb[120].mxu0 %v5297_v9  ;;  %v4396_v23 = vpack.c.bf16 %v2387_v18, %v2387_v18  ;;  %v2388_v24 = vmax.f32 %v1748_v19, 0.0  ;;  %5068 = vmatmul.mubr.bf16.gmra.mrb[120].mxu1 %v5298_v12  ;;  %v5304_v16 = vld [vmem:[%s7451_s0 + $0x320] sm:$0xff]  }
 0x113   :  { %4803 = vmatprep.mubr.msk.bf16.mxu0 %vm5374_vm0, %v5373_v0  ;;  %5071 = vmatprep.mubr.msk.bf16.mxu1 %vm5374_vm0, %v5373_v0 }
 0x114   :  { %3584 = vst.msk [vmem:[%s7453_s3 + $0x18] sm:$0xf] %vm3577_vm1, %v4262_v21  ;;  %v4263_v25 = vpack.c.bf16 %v2254_v22, %v2254_v22  ;;  %3718 = vst.msk [vmem:[%s7453_s3 + $0x230] sm:$0xf] %vm3577_vm1, %v4396_v23  ;;  %v4397_v26 = vpack.c.bf16 %v2388_v24, %v2388_v24 }
 0x115   :  { %v1216_v27 = vpop.f32.mrb[16].mxu0  ;;  %v1752_v28 = vpop.f32.mrb[16].mxu1 }
 0x116   :  { %3585 = vst.msk [vmem:[%s7453_s3 + $0x1c] sm:$0xf] %vm3577_vm1, %v4263_v25  ;;  %3719 = vst.msk [vmem:[%s7453_s3 + $0x234] sm:$0xf] %vm3577_vm1, %v4397_v26  ;;  %v1217_v29 = vadd.f32 %v5708_v63, %v1216_v27  ;;  %v4697_v30 = vpop.f32.mrb[17].mxu0  ;;  %v1753_v32 = vadd.f32 %v5708_v63, %v1752_v28  ;;  %v4965_v33 = vpop.f32.mrb[17].mxu1 }
 0x117   :  { %v1219_v35 = vpop.f32.mrb[18].mxu0  ;;  %v1755_v36 = vpop.f32.mrb[18].mxu1 }
 0x118   :  { %v2255_v37 = vmax.f32 %v1217_v29, 0.0  ;;  %v1220_v38 = vadd.f32 %v5708_v63, %v1219_v35  ;;  %v4698_v39 = vpop.f32.mrb[19].mxu0  ;;  %v2389_v40 = vmax.f32 %v1753_v32, 0.0  ;;  %v1756_v41 = vadd.f32 %v5708_v63, %v1755_v36  ;;  %v4966_v42 = vpop.f32.mrb[19].mxu1  ;;  %v5305_v35 = vld [vmem:[%s7451_s0 + $0x110] sm:$0xff]  }
 0x11a   :  { %v4264_v43 = vpack.c.bf16 %v2255_v37, %v2255_v37  ;;  %v2256_v44 = vmax.f32 %v1220_v38, 0.0  ;;  %4804 = vmatmul.mubr.bf16.gmra.mrb[124].mxu0 %v5299_v31  ;;  %v4398_v45 = vpack.c.bf16 %v2389_v40, %v2389_v40  ;;  %v2390_v46 = vmax.f32 %v1756_v41, 0.0  ;;  %5072 = vmatmul.mubr.bf16.gmra.mrb[124].mxu1 %v5300_v34  ;;  %v5306_v38 = vld [vmem:[%s7451_s0 + $0x328] sm:$0xff]  }
 0x11b   :  { %4807 = vmatprep.mubr.msk.bf16.mxu0 %vm5374_vm0, %v5373_v0  ;;  %5075 = vmatprep.mubr.msk.bf16.mxu1 %vm5374_vm0, %v5373_v0 }
 0x11c   :  { %3586 = vst.msk [vmem:[%s7453_s3 + $0x20] sm:$0xf] %vm3577_vm1, %v4264_v43  ;;  %v4265_v47 = vpack.c.bf16 %v2256_v44, %v2256_v44  ;;  %3720 = vst.msk [vmem:[%s7453_s3 + $0x238] sm:$0xf] %vm3577_vm1, %v4398_v45  ;;  %v4399_v48 = vpack.c.bf16 %v2390_v46, %v2390_v46 }
 0x11d   :  { %v1224_v49 = vpop.f32.mrb[20].mxu0  ;;  %v1760_v50 = vpop.f32.mrb[20].mxu1 }
 0x11e   :  { %3587 = vst.msk [vmem:[%s7453_s3 + $0x24] sm:$0xf] %vm3577_vm1, %v4265_v47  ;;  %3721 = vst.msk [vmem:[%s7453_s3 + $0x23c] sm:$0xf] %vm3577_vm1, %v4399_v48  ;;  %v1225_v51 = vadd.f32 %v5708_v63, %v1224_v49  ;;  %v4701_v52 = vpop.f32.mrb[21].mxu0  ;;  %v1761_v54 = vadd.f32 %v5708_v63, %v1760_v50  ;;  %v4969_v55 = vpop.f32.mrb[21].mxu1 }
 0x11f   :  { %v1227_v57 = vpop.f32.mrb[22].mxu0  ;;  %v1763_v58 = vpop.f32.mrb[22].mxu1 }
 0x120   :  { %v2257_v59 = vmax.f32 %v1225_v51, 0.0  ;;  %v1228_v60 = vadd.f32 %v5708_v63, %v1227_v57  ;;  %v4702_v61 = vpop.f32.mrb[23].mxu0  ;;  %v2391_v62 = vmax.f32 %v1761_v54, 0.0  ;;  %v1764_v1 = vadd.f32 %v5708_v63, %v1763_v58  ;;  %v4970_v2 = vpop.f32.mrb[23].mxu1  ;;  %v5307_v57 = vld [vmem:[%s7451_s0 + $0x118] sm:$0xff]  }
 0x122   :  { %v4266_v3 = vpack.c.bf16 %v2257_v59, %v2257_v59  ;;  %v2258_v4 = vmax.f32 %v1228_v60, 0.0  ;;  %4808 = vmatmul.mubr.bf16.gmra.mrb[128].mxu0 %v5301_v53  ;;  %v4400_v5 = vpack.c.bf16 %v2391_v62, %v2391_v62  ;;  %v2392_v6 = vmax.f32 %v1764_v1, 0.0  ;;  %5076 = vmatmul.mubr.bf16.gmra.mrb[128].mxu1 %v5302_v56  ;;  %v5308_v60 = vld [vmem:[%s7451_s0 + $0x330] sm:$0xff]  }
 0x123   :  { %4811 = vmatprep.mubr.msk.bf16.mxu0 %vm5374_vm0, %v5373_v0  ;;  %5079 = vmatprep.mubr.msk.bf16.mxu1 %vm5374_vm0, %v5373_v0 }
 0x124   :  { %3588 = vst.msk [vmem:[%s7453_s3 + $0x28] sm:$0xf] %vm3577_vm1, %v4266_v3  ;;  %v4267_v7 = vpack.c.bf16 %v2258_v4, %v2258_v4  ;;  %3722 = vst.msk [vmem:[%s7453_s3 + $0x240] sm:$0xf] %vm3577_vm1, %v4400_v5  ;;  %v4401_v8 = vpack.c.bf16 %v2392_v6, %v2392_v6 }
 0x125   :  { %v1232_v9 = vpop.f32.mrb[24].mxu0  ;;  %v1768_v10 = vpop.f32.mrb[24].mxu1 }
 0x126   :  { %3589 = vst.msk [vmem:[%s7453_s3 + $0x2c] sm:$0xf] %vm3577_vm1, %v4267_v7  ;;  %3723 = vst.msk [vmem:[%s7453_s3 + $0x244] sm:$0xf] %vm3577_vm1, %v4401_v8  ;;  %v1233_v11 = vadd.f32 %v5708_v63, %v1232_v9  ;;  %v4705_v12 = vpop.f32.mrb[25].mxu0  ;;  %v1769_v14 = vadd.f32 %v5708_v63, %v1768_v10  ;;  %v4973_v15 = vpop.f32.mrb[25].mxu1 }
 0x127   :  { %v1235_v17 = vpop.f32.mrb[26].mxu0  ;;  %v1771_v18 = vpop.f32.mrb[26].mxu1 }
 0x128   :  { %v2259_v19 = vmax.f32 %v1233_v11, 0.0  ;;  %v1236_v20 = vadd.f32 %v5708_v63, %v1235_v17  ;;  %v4706_v21 = vpop.f32.mrb[27].mxu0  ;;  %v2393_v22 = vmax.f32 %v1769_v14, 0.0  ;;  %v1772_v23 = vadd.f32 %v5708_v63, %v1771_v18  ;;  %v4974_v24 = vpop.f32.mrb[27].mxu1  ;;  %v5309_v17 = vld [vmem:[%s7451_s0 + $0x120] sm:$0xff]  }
 0x12a   :  { %v4268_v25 = vpack.c.bf16 %v2259_v19, %v2259_v19  ;;  %v2260_v26 = vmax.f32 %v1236_v20, 0.0  ;;  %4812 = vmatmul.mubr.bf16.gmra.mrb[132].mxu0 %v5303_v13  ;;  %v4402_v27 = vpack.c.bf16 %v2393_v22, %v2393_v22  ;;  %v2394_v28 = vmax.f32 %v1772_v23, 0.0  ;;  %5080 = vmatmul.mubr.bf16.gmra.mrb[132].mxu1 %v5304_v16  ;;  %v5310_v20 = vld [vmem:[%s7451_s0 + $0x338] sm:$0xff]  }
 0x12b   :  { %4815 = vmatprep.mubr.msk.bf16.mxu0 %vm5374_vm0, %v5373_v0  ;;  %5083 = vmatprep.mubr.msk.bf16.mxu1 %vm5374_vm0, %v5373_v0 }
 0x12c   :  { %3590 = vst.msk [vmem:[%s7453_s3 + $0x30] sm:$0xf] %vm3577_vm1, %v4268_v25  ;;  %v4269_v29 = vpack.c.bf16 %v2260_v26, %v2260_v26  ;;  %3724 = vst.msk [vmem:[%s7453_s3 + $0x248] sm:$0xf] %vm3577_vm1, %v4402_v27  ;;  %v4403_v30 = vpack.c.bf16 %v2394_v28, %v2394_v28 }
 0x12d   :  { %v1240_v31 = vpop.f32.mrb[28].mxu0  ;;  %v1776_v32 = vpop.f32.mrb[28].mxu1 }
 0x12e   :  { %3591 = vst.msk [vmem:[%s7453_s3 + $0x34] sm:$0xf] %vm3577_vm1, %v4269_v29  ;;  %3725 = vst.msk [vmem:[%s7453_s3 + $0x24c] sm:$0xf] %vm3577_vm1, %v4403_v30  ;;  %v1241_v33 = vadd.f32 %v5708_v63, %v1240_v31  ;;  %v4709_v34 = vpop.f32.mrb[29].mxu0  ;;  %v1777_v36 = vadd.f32 %v5708_v63, %v1776_v32  ;;  %v4977_v37 = vpop.f32.mrb[29].mxu1 }
 0x12f   :  { %v1243_v39 = vpop.f32.mrb[30].mxu0  ;;  %v1779_v40 = vpop.f32.mrb[30].mxu1 }
 0x130   :  { %v2261_v41 = vmax.f32 %v1241_v33, 0.0  ;;  %v1244_v42 = vadd.f32 %v5708_v63, %v1243_v39  ;;  %v4710_v43 = vpop.f32.mrb[31].mxu0  ;;  %v2395_v44 = vmax.f32 %v1777_v36, 0.0  ;;  %v1780_v45 = vadd.f32 %v5708_v63, %v1779_v40  ;;  %v4978_v46 = vpop.f32.mrb[31].mxu1  ;;  %v5311_v39 = vld [vmem:[%s7451_s0 + $0x128] sm:$0xff]  }
 0x132   :  { %v4270_v47 = vpack.c.bf16 %v2261_v41, %v2261_v41  ;;  %v2262_v48 = vmax.f32 %v1244_v42, 0.0  ;;  %4816 = vmatmul.mubr.bf16.gmra.mrb[136].mxu0 %v5305_v35  ;;  %v4404_v49 = vpack.c.bf16 %v2395_v44, %v2395_v44  ;;  %v2396_v50 = vmax.f32 %v1780_v45, 0.0  ;;  %5084 = vmatmul.mubr.bf16.gmra.mrb[136].mxu1 %v5306_v38  ;;  %v5312_v42 = vld [vmem:[%s7451_s0 + $0x340] sm:$0xff]  }
 0x133   :  { %4819 = vmatprep.mubr.msk.bf16.mxu0 %vm5374_vm0, %v5373_v0  ;;  %5087 = vmatprep.mubr.msk.bf16.mxu1 %vm5374_vm0, %v5373_v0 }
 0x134   :  { %3592 = vst.msk [vmem:[%s7453_s3 + $0x38] sm:$0xf] %vm3577_vm1, %v4270_v47  ;;  %v4271_v51 = vpack.c.bf16 %v2262_v48, %v2262_v48  ;;  %3726 = vst.msk [vmem:[%s7453_s3 + $0x250] sm:$0xf] %vm3577_vm1, %v4404_v49  ;;  %v4405_v52 = vpack.c.bf16 %v2396_v50, %v2396_v50 }
 0x135   :  { %v1248_v53 = vpop.f32.mrb[32].mxu0  ;;  %v1784_v54 = vpop.f32.mrb[32].mxu1 }
 0x136   :  { %3593 = vst.msk [vmem:[%s7453_s3 + $0x3c] sm:$0xf] %vm3577_vm1, %v4271_v51  ;;  %3727 = vst.msk [vmem:[%s7453_s3 + $0x254] sm:$0xf] %vm3577_vm1, %v4405_v52  ;;  %v1249_v55 = vadd.f32 %v5708_v63, %v1248_v53  ;;  %v4713_v56 = vpop.f32.mrb[33].mxu0  ;;  %v1785_v58 = vadd.f32 %v5708_v63, %v1784_v54  ;;  %v4981_v59 = vpop.f32.mrb[33].mxu1 }
 0x137   :  { %v1251_v61 = vpop.f32.mrb[34].mxu0  ;;  %v1787_v62 = vpop.f32.mrb[34].mxu1 }
 0x138   :  { %v2263_v1 = vmax.f32 %v1249_v55, 0.0  ;;  %v1252_v2 = vadd.f32 %v5708_v63, %v1251_v61  ;;  %v4714_v3 = vpop.f32.mrb[35].mxu0  ;;  %v2397_v4 = vmax.f32 %v1785_v58, 0.0  ;;  %v1788_v5 = vadd.f32 %v5708_v63, %v1787_v62  ;;  %v4982_v6 = vpop.f32.mrb[35].mxu1  ;;  %v5313_v61 = vld [vmem:[%s7451_s0 + $0x130] sm:$0xff]  }
 0x13a   :  { %v4272_v7 = vpack.c.bf16 %v2263_v1, %v2263_v1  ;;  %v2264_v8 = vmax.f32 %v1252_v2, 0.0  ;;  %4820 = vmatmul.mubr.bf16.gmra.mrb[140].mxu0 %v5307_v57  ;;  %v4406_v9 = vpack.c.bf16 %v2397_v4, %v2397_v4  ;;  %v2398_v10 = vmax.f32 %v1788_v5, 0.0  ;;  %5088 = vmatmul.mubr.bf16.gmra.mrb[140].mxu1 %v5308_v60  ;;  %v5314_v2 = vld [vmem:[%s7451_s0 + $0x348] sm:$0xff]  }
 0x13b   :  { %4823 = vmatprep.mubr.msk.bf16.mxu0 %vm5374_vm0, %v5373_v0  ;;  %5091 = vmatprep.mubr.msk.bf16.mxu1 %vm5374_vm0, %v5373_v0 }
 0x13c   :  { %3594 = vst.msk [vmem:[%s7453_s3 + $0x40] sm:$0xf] %vm3577_vm1, %v4272_v7  ;;  %v4273_v11 = vpack.c.bf16 %v2264_v8, %v2264_v8  ;;  %3728 = vst.msk [vmem:[%s7453_s3 + $0x258] sm:$0xf] %vm3577_vm1, %v4406_v9  ;;  %v4407_v12 = vpack.c.bf16 %v2398_v10, %v2398_v10 }
 0x13d   :  { %v1256_v13 = vpop.f32.mrb[36].mxu0  ;;  %v1792_v14 = vpop.f32.mrb[36].mxu1 }
 0x13e   :  { %3595 = vst.msk [vmem:[%s7453_s3 + $0x44] sm:$0xf] %vm3577_vm1, %v4273_v11  ;;  %3729 = vst.msk [vmem:[%s7453_s3 + $0x25c] sm:$0xf] %vm3577_vm1, %v4407_v12  ;;  %v1257_v15 = vadd.f32 %v5708_v63, %v1256_v13  ;;  %v4717_v16 = vpop.f32.mrb[37].mxu0  ;;  %v1793_v18 = vadd.f32 %v5708_v63, %v1792_v14  ;;  %v4985_v19 = vpop.f32.mrb[37].mxu1 }
 0x13f   :  { %v1259_v21 = vpop.f32.mrb[38].mxu0  ;;  %v1795_v22 = vpop.f32.mrb[38].mxu1 }
 0x140   :  { %v2265_v23 = vmax.f32 %v1257_v15, 0.0  ;;  %v1260_v24 = vadd.f32 %v5708_v63, %v1259_v21  ;;  %v4718_v25 = vpop.f32.mrb[39].mxu0  ;;  %v2399_v26 = vmax.f32 %v1793_v18, 0.0  ;;  %v1796_v27 = vadd.f32 %v5708_v63, %v1795_v22  ;;  %v4986_v28 = vpop.f32.mrb[39].mxu1  ;;  %v5315_v21 = vld [vmem:[%s7451_s0 + $0x138] sm:$0xff]  }
 0x142   :  { %v4274_v29 = vpack.c.bf16 %v2265_v23, %v2265_v23  ;;  %v2266_v30 = vmax.f32 %v1260_v24, 0.0  ;;  %4824 = vmatmul.mubr.bf16.gmra.mrb[144].mxu0 %v5309_v17  ;;  %v4408_v31 = vpack.c.bf16 %v2399_v26, %v2399_v26  ;;  %v2400_v32 = vmax.f32 %v1796_v27, 0.0  ;;  %5092 = vmatmul.mubr.bf16.gmra.mrb[144].mxu1 %v5310_v20  ;;  %v5316_v24 = vld [vmem:[%s7451_s0 + $0x350] sm:$0xff]  }
 0x143   :  { %4827 = vmatprep.mubr.msk.bf16.mxu0 %vm5374_vm0, %v5373_v0  ;;  %5095 = vmatprep.mubr.msk.bf16.mxu1 %vm5374_vm0, %v5373_v0 }
 0x144   :  { %3596 = vst.msk [vmem:[%s7453_s3 + $0x48] sm:$0xf] %vm3577_vm1, %v4274_v29  ;;  %v4275_v33 = vpack.c.bf16 %v2266_v30, %v2266_v30  ;;  %3730 = vst.msk [vmem:[%s7453_s3 + $0x260] sm:$0xf] %vm3577_vm1, %v4408_v31  ;;  %v4409_v34 = vpack.c.bf16 %v2400_v32, %v2400_v32 }
 0x145   :  { %v1264_v35 = vpop.f32.mrb[40].mxu0  ;;  %v1800_v36 = vpop.f32.mrb[40].mxu1 }
 0x146   :  { %3597 = vst.msk [vmem:[%s7453_s3 + $0x4c] sm:$0xf] %vm3577_vm1, %v4275_v33  ;;  %3731 = vst.msk [vmem:[%s7453_s3 + $0x264] sm:$0xf] %vm3577_vm1, %v4409_v34  ;;  %v1265_v37 = vadd.f32 %v5708_v63, %v1264_v35  ;;  %v4721_v38 = vpop.f32.mrb[41].mxu0  ;;  %v1801_v40 = vadd.f32 %v5708_v63, %v1800_v36  ;;  %v4989_v41 = vpop.f32.mrb[41].mxu1 }
 0x147   :  { %v1267_v43 = vpop.f32.mrb[42].mxu0  ;;  %v1803_v44 = vpop.f32.mrb[42].mxu1 }
 0x148   :  { %v2267_v45 = vmax.f32 %v1265_v37, 0.0  ;;  %v1268_v46 = vadd.f32 %v5708_v63, %v1267_v43  ;;  %v4722_v47 = vpop.f32.mrb[43].mxu0  ;;  %v2401_v48 = vmax.f32 %v1801_v40, 0.0  ;;  %v1804_v49 = vadd.f32 %v5708_v63, %v1803_v44  ;;  %v4990_v50 = vpop.f32.mrb[43].mxu1  ;;  %v5317_v43 = vld [vmem:[%s7451_s0 + $0x140] sm:$0xff]  }
 0x14a   :  { %v4276_v51 = vpack.c.bf16 %v2267_v45, %v2267_v45  ;;  %v2268_v52 = vmax.f32 %v1268_v46, 0.0  ;;  %4828 = vmatmul.mubr.bf16.gmra.mrb[148].mxu0 %v5311_v39  ;;  %v4410_v53 = vpack.c.bf16 %v2401_v48, %v2401_v48  ;;  %v2402_v54 = vmax.f32 %v1804_v49, 0.0  ;;  %5096 = vmatmul.mubr.bf16.gmra.mrb[148].mxu1 %v5312_v42  ;;  %v5318_v46 = vld [vmem:[%s7451_s0 + $0x358] sm:$0xff]  }
 0x14b   :  { %4831 = vmatprep.mubr.msk.bf16.mxu0 %vm5374_vm0, %v5373_v0  ;;  %5099 = vmatprep.mubr.msk.bf16.mxu1 %vm5374_vm0, %v5373_v0 }
 0x14c   :  { %3598 = vst.msk [vmem:[%s7453_s3 + $0x50] sm:$0xf] %vm3577_vm1, %v4276_v51  ;;  %v4277_v55 = vpack.c.bf16 %v2268_v52, %v2268_v52  ;;  %3732 = vst.msk [vmem:[%s7453_s3 + $0x268] sm:$0xf] %vm3577_vm1, %v4410_v53  ;;  %v4411_v56 = vpack.c.bf16 %v2402_v54, %v2402_v54 }
 0x14d   :  { %v1272_v57 = vpop.f32.mrb[44].mxu0  ;;  %v1808_v58 = vpop.f32.mrb[44].mxu1 }
 0x14e   :  { %3599 = vst.msk [vmem:[%s7453_s3 + $0x54] sm:$0xf] %vm3577_vm1, %v4277_v55  ;;  %3733 = vst.msk [vmem:[%s7453_s3 + $0x26c] sm:$0xf] %vm3577_vm1, %v4411_v56  ;;  %v1273_v59 = vadd.f32 %v5708_v63, %v1272_v57  ;;  %v4725_v60 = vpop.f32.mrb[45].mxu0  ;;  %v1809_v62 = vadd.f32 %v5708_v63, %v1808_v58  ;;  %v4993_v1 = vpop.f32.mrb[45].mxu1 }
 0x14f   :  { %v1275_v3 = vpop.f32.mrb[46].mxu0  ;;  %v1811_v4 = vpop.f32.mrb[46].mxu1 }
 0x150   :  { %v2269_v5 = vmax.f32 %v1273_v59, 0.0  ;;  %v1276_v6 = vadd.f32 %v5708_v63, %v1275_v3  ;;  %v4726_v7 = vpop.f32.mrb[47].mxu0  ;;  %v2403_v8 = vmax.f32 %v1809_v62, 0.0  ;;  %v1812_v9 = vadd.f32 %v5708_v63, %v1811_v4  ;;  %v4994_v10 = vpop.f32.mrb[47].mxu1  ;;  %v5319_v3 = vld [vmem:[%s7451_s0 + $0x148] sm:$0xff]  }
 0x152   :  { %v4278_v11 = vpack.c.bf16 %v2269_v5, %v2269_v5  ;;  %v2270_v12 = vmax.f32 %v1276_v6, 0.0  ;;  %4832 = vmatmul.mubr.bf16.gmra.mrb[152].mxu0 %v5313_v61  ;;  %v4412_v13 = vpack.c.bf16 %v2403_v8, %v2403_v8  ;;  %v2404_v14 = vmax.f32 %v1812_v9, 0.0  ;;  %5100 = vmatmul.mubr.bf16.gmra.mrb[152].mxu1 %v5314_v2  ;;  %v5320_v6 = vld [vmem:[%s7451_s0 + $0x360] sm:$0xff]  }
 0x153   :  { %4835 = vmatprep.mubr.msk.bf16.mxu0 %vm5374_vm0, %v5373_v0  ;;  %5103 = vmatprep.mubr.msk.bf16.mxu1 %vm5374_vm0, %v5373_v0 }
 0x154   :  { %3600 = vst.msk [vmem:[%s7453_s3 + $0x58] sm:$0xf] %vm3577_vm1, %v4278_v11  ;;  %v4279_v15 = vpack.c.bf16 %v2270_v12, %v2270_v12  ;;  %3734 = vst.msk [vmem:[%s7453_s3 + $0x270] sm:$0xf] %vm3577_vm1, %v4412_v13  ;;  %v4413_v16 = vpack.c.bf16 %v2404_v14, %v2404_v14 }
 0x155   :  { %v1280_v17 = vpop.f32.mrb[48].mxu0  ;;  %v1816_v18 = vpop.f32.mrb[48].mxu1 }
 0x156   :  { %3601 = vst.msk [vmem:[%s7453_s3 + $0x5c] sm:$0xf] %vm3577_vm1, %v4279_v15  ;;  %3735 = vst.msk [vmem:[%s7453_s3 + $0x274] sm:$0xf] %vm3577_vm1, %v4413_v16  ;;  %v1281_v19 = vadd.f32 %v5708_v63, %v1280_v17  ;;  %v4729_v20 = vpop.f32.mrb[49].mxu0  ;;  %v1817_v22 = vadd.f32 %v5708_v63, %v1816_v18  ;;  %v4997_v23 = vpop.f32.mrb[49].mxu1 }
 0x157   :  { %v1283_v25 = vpop.f32.mrb[50].mxu0  ;;  %v1819_v26 = vpop.f32.mrb[50].mxu1 }
 0x158   :  { %v2271_v27 = vmax.f32 %v1281_v19, 0.0  ;;  %v1284_v28 = vadd.f32 %v5708_v63, %v1283_v25  ;;  %v4730_v29 = vpop.f32.mrb[51].mxu0  ;;  %v2405_v30 = vmax.f32 %v1817_v22, 0.0  ;;  %v1820_v31 = vadd.f32 %v5708_v63, %v1819_v26  ;;  %v4998_v32 = vpop.f32.mrb[51].mxu1  ;;  %v5321_v25 = vld [vmem:[%s7451_s0 + $0x150] sm:$0xff]  }
 0x15a   :  { %v4280_v33 = vpack.c.bf16 %v2271_v27, %v2271_v27  ;;  %v2272_v34 = vmax.f32 %v1284_v28, 0.0  ;;  %4836 = vmatmul.mubr.bf16.gmra.mrb[156].mxu0 %v5315_v21  ;;  %v4414_v35 = vpack.c.bf16 %v2405_v30, %v2405_v30  ;;  %v2406_v36 = vmax.f32 %v1820_v31, 0.0  ;;  %5104 = vmatmul.mubr.bf16.gmra.mrb[156].mxu1 %v5316_v24  ;;  %v5322_v28 = vld [vmem:[%s7451_s0 + $0x368] sm:$0xff]  }
 0x15b   :  { %4839 = vmatprep.mubr.msk.bf16.mxu0 %vm5374_vm0, %v5373_v0  ;;  %5107 = vmatprep.mubr.msk.bf16.mxu1 %vm5374_vm0, %v5373_v0 }
 0x15c   :  { %3602 = vst.msk [vmem:[%s7453_s3 + $0x60] sm:$0xf] %vm3577_vm1, %v4280_v33  ;;  %v4281_v37 = vpack.c.bf16 %v2272_v34, %v2272_v34  ;;  %3736 = vst.msk [vmem:[%s7453_s3 + $0x278] sm:$0xf] %vm3577_vm1, %v4414_v35  ;;  %v4415_v38 = vpack.c.bf16 %v2406_v36, %v2406_v36 }
 0x15d   :  { %v1288_v39 = vpop.f32.mrb[52].mxu0  ;;  %v1824_v40 = vpop.f32.mrb[52].mxu1 }
 0x15e   :  { %3603 = vst.msk [vmem:[%s7453_s3 + $0x64] sm:$0xf] %vm3577_vm1, %v4281_v37  ;;  %3737 = vst.msk [vmem:[%s7453_s3 + $0x27c] sm:$0xf] %vm3577_vm1, %v4415_v38  ;;  %v1289_v41 = vadd.f32 %v5708_v63, %v1288_v39  ;;  %v4733_v42 = vpop.f32.mrb[53].mxu0  ;;  %v1825_v44 = vadd.f32 %v5708_v63, %v1824_v40  ;;  %v5001_v45 = vpop.f32.mrb[53].mxu1 }
 0x15f   :  { %v1291_v47 = vpop.f32.mrb[54].mxu0  ;;  %v1827_v48 = vpop.f32.mrb[54].mxu1 }
 0x160   :  { %v2273_v49 = vmax.f32 %v1289_v41, 0.0  ;;  %v1292_v50 = vadd.f32 %v5708_v63, %v1291_v47  ;;  %v4734_v51 = vpop.f32.mrb[55].mxu0  ;;  %v2407_v52 = vmax.f32 %v1825_v44, 0.0  ;;  %v1828_v53 = vadd.f32 %v5708_v63, %v1827_v48  ;;  %v5002_v54 = vpop.f32.mrb[55].mxu1  ;;  %v5323_v47 = vld [vmem:[%s7451_s0 + $0x158] sm:$0xff]  }
 0x162   :  { %v4282_v55 = vpack.c.bf16 %v2273_v49, %v2273_v49  ;;  %v2274_v56 = vmax.f32 %v1292_v50, 0.0  ;;  %4840 = vmatmul.mubr.bf16.gmra.mrb[160].mxu0 %v5317_v43  ;;  %v4416_v57 = vpack.c.bf16 %v2407_v52, %v2407_v52  ;;  %v2408_v58 = vmax.f32 %v1828_v53, 0.0  ;;  %5108 = vmatmul.mubr.bf16.gmra.mrb[160].mxu1 %v5318_v46  ;;  %v5324_v50 = vld [vmem:[%s7451_s0 + $0x370] sm:$0xff]  }
 0x163   :  { %4843 = vmatprep.mubr.msk.bf16.mxu0 %vm5374_vm0, %v5373_v0  ;;  %5111 = vmatprep.mubr.msk.bf16.mxu1 %vm5374_vm0, %v5373_v0 }
 0x164   :  { %3604 = vst.msk [vmem:[%s7453_s3 + $0x68] sm:$0xf] %vm3577_vm1, %v4282_v55  ;;  %v4283_v59 = vpack.c.bf16 %v2274_v56, %v2274_v56  ;;  %3738 = vst.msk [vmem:[%s7453_s3 + $0x280] sm:$0xf] %vm3577_vm1, %v4416_v57  ;;  %v4417_v60 = vpack.c.bf16 %v2408_v58, %v2408_v58 }
 0x165   :  { %v1296_v61 = vpop.f32.mrb[56].mxu0  ;;  %v1832_v62 = vpop.f32.mrb[56].mxu1 }
 0x166   :  { %3605 = vst.msk [vmem:[%s7453_s3 + $0x6c] sm:$0xf] %vm3577_vm1, %v4283_v59  ;;  %3739 = vst.msk [vmem:[%s7453_s3 + $0x284] sm:$0xf] %vm3577_vm1, %v4417_v60  ;;  %v1297_v1 = vadd.f32 %v5708_v63, %v1296_v61  ;;  %v4737_v2 = vpop.f32.mrb[57].mxu0  ;;  %v1833_v4 = vadd.f32 %v5708_v63, %v1832_v62  ;;  %v5005_v5 = vpop.f32.mrb[57].mxu1 }
 0x167   :  { %v1299_v7 = vpop.f32.mrb[58].mxu0  ;;  %v1835_v8 = vpop.f32.mrb[58].mxu1 }
 0x168   :  { %v2275_v9 = vmax.f32 %v1297_v1, 0.0  ;;  %v1300_v10 = vadd.f32 %v5708_v63, %v1299_v7  ;;  %v4738_v11 = vpop.f32.mrb[59].mxu0  ;;  %v2409_v12 = vmax.f32 %v1833_v4, 0.0  ;;  %v1836_v13 = vadd.f32 %v5708_v63, %v1835_v8  ;;  %v5006_v14 = vpop.f32.mrb[59].mxu1  ;;  %v6227_v4 = vld [vmem:[%s7452_s2] ss:$0 sm:$0xff] }
 0x169   :  { %v5325_v7 = vld [vmem:[%s7451_s0 + $0x160] sm:$0xff]  }
 0x16a   :  { %v4284_v15 = vpack.c.bf16 %v2275_v9, %v2275_v9  ;;  %v2276_v16 = vmax.f32 %v1300_v10, 0.0  ;;  %4844 = vmatmul.mubr.bf16.gmra.mrb[164].mxu0 %v5319_v3  ;;  %v4418_v17 = vpack.c.bf16 %v2409_v12, %v2409_v12  ;;  %v2410_v18 = vmax.f32 %v1836_v13, 0.0  ;;  %5112 = vmatmul.mubr.bf16.gmra.mrb[164].mxu1 %v5320_v6  ;;  %v5326_v10 = vld [vmem:[%s7451_s0 + $0x378] sm:$0xff]  }
 0x16b   :  { %4847 = vmatprep.mubr.msk.bf16.mxu0 %vm5374_vm0, %v5373_v0  ;;  %5115 = vmatprep.mubr.msk.bf16.mxu1 %vm5374_vm0, %v5373_v0 }
 0x16c   :  { %3606 = vst.msk [vmem:[%s7453_s3 + $0x70] sm:$0xf] %vm3577_vm1, %v4284_v15  ;;  %v4285_v19 = vpack.c.bf16 %v2276_v16, %v2276_v16  ;;  %3740 = vst.msk [vmem:[%s7453_s3 + $0x288] sm:$0xf] %vm3577_vm1, %v4418_v17  ;;  %v4419_v20 = vpack.c.bf16 %v2410_v18, %v2410_v18 }
 0x16d   :  { %v1304_v21 = vpop.f32.mrb[60].mxu0  ;;  %v1840_v22 = vpop.f32.mrb[60].mxu1 }
 0x16e   :  { %3607 = vst.msk [vmem:[%s7453_s3 + $0x74] sm:$0xf] %vm3577_vm1, %v4285_v19  ;;  %3741 = vst.msk [vmem:[%s7453_s3 + $0x28c] sm:$0xf] %vm3577_vm1, %v4419_v20  ;;  %v1305_v23 = vadd.f32 %v5708_v63, %v1304_v21  ;;  %v4741_v24 = vpop.f32.mrb[61].mxu0  ;;  %v1841_v26 = vadd.f32 %v5708_v63, %v1840_v22  ;;  %v5009_v27 = vpop.f32.mrb[61].mxu1 }
 0x16f   :  { %v1307_v29 = vpop.f32.mrb[62].mxu0  ;;  %v1843_v30 = vpop.f32.mrb[62].mxu1 }
 0x170   :  { %v2277_v31 = vmax.f32 %v1305_v23, 0.0  ;;  %v1308_v32 = vadd.f32 %v5708_v63, %v1307_v29  ;;  %v4742_v33 = vpop.f32.mrb[63].mxu0  ;;  %v2411_v34 = vmax.f32 %v1841_v26, 0.0  ;;  %v1844_v35 = vadd.f32 %v5708_v63, %v1843_v30  ;;  %v5010_v36 = vpop.f32.mrb[63].mxu1  ;;  %v5327_v29 = vld [vmem:[%s7451_s0 + $0x168] sm:$0xff]  }
 0x172   :  { %v4286_v37 = vpack.c.bf16 %v2277_v31, %v2277_v31  ;;  %v2278_v38 = vmax.f32 %v1308_v32, 0.0  ;;  %4848 = vmatmul.mubr.bf16.gmra.mrb[168].mxu0 %v5321_v25  ;;  %v4420_v39 = vpack.c.bf16 %v2411_v34, %v2411_v34  ;;  %v2412_v40 = vmax.f32 %v1844_v35, 0.0  ;;  %5116 = vmatmul.mubr.bf16.gmra.mrb[168].mxu1 %v5322_v28  ;;  %v5328_v32 = vld [vmem:[%s7451_s0 + $0x380] sm:$0xff]  }
 0x173   :  { %4851 = vmatprep.mubr.msk.bf16.mxu0 %vm5374_vm0, %v5373_v0  ;;  %5119 = vmatprep.mubr.msk.bf16.mxu1 %vm5374_vm0, %v5373_v0 }
 0x174   :  { %3608 = vst.msk [vmem:[%s7453_s3 + $0x78] sm:$0xf] %vm3577_vm1, %v4286_v37  ;;  %v4287_v41 = vpack.c.bf16 %v2278_v38, %v2278_v38  ;;  %3742 = vst.msk [vmem:[%s7453_s3 + $0x290] sm:$0xf] %vm3577_vm1, %v4420_v39  ;;  %v4421_v42 = vpack.c.bf16 %v2412_v40, %v2412_v40 }
 0x175   :  { %v1312_v43 = vpop.f32.mrb[64].mxu0  ;;  %v1848_v44 = vpop.f32.mrb[64].mxu1 }
 0x176   :  { %3609 = vst.msk [vmem:[%s7453_s3 + $0x7c] sm:$0xf] %vm3577_vm1, %v4287_v41  ;;  %3743 = vst.msk [vmem:[%s7453_s3 + $0x294] sm:$0xf] %vm3577_vm1, %v4421_v42  ;;  %v1313_v45 = vadd.f32 %v5708_v63, %v1312_v43  ;;  %v4745_v46 = vpop.f32.mrb[65].mxu0  ;;  %v1849_v48 = vadd.f32 %v5708_v63, %v1848_v44  ;;  %v5013_v49 = vpop.f32.mrb[65].mxu1 }
 0x177   :  { %v1315_v51 = vpop.f32.mrb[66].mxu0  ;;  %v1851_v52 = vpop.f32.mrb[66].mxu1 }
 0x178   :  { %v2279_v53 = vmax.f32 %v1313_v45, 0.0  ;;  %v1316_v54 = vadd.f32 %v5708_v63, %v1315_v51  ;;  %v4746_v55 = vpop.f32.mrb[67].mxu0  ;;  %v2413_v56 = vmax.f32 %v1849_v48, 0.0  ;;  %v1852_v57 = vadd.f32 %v5708_v63, %v1851_v52  ;;  %v5014_v58 = vpop.f32.mrb[67].mxu1  ;;  %v5329_v51 = vld [vmem:[%s7451_s0 + $0x170] sm:$0xff]  }
 0x17a   :  { %v4288_v59 = vpack.c.bf16 %v2279_v53, %v2279_v53  ;;  %v2280_v60 = vmax.f32 %v1316_v54, 0.0  ;;  %4852 = vmatmul.mubr.bf16.gmra.mrb[172].mxu0 %v5323_v47  ;;  %v4422_v61 = vpack.c.bf16 %v2413_v56, %v2413_v56  ;;  %v2414_v62 = vmax.f32 %v1852_v57, 0.0  ;;  %5120 = vmatmul.mubr.bf16.gmra.mrb[172].mxu1 %v5324_v50  ;;  %v5330_v54 = vld [vmem:[%s7451_s0 + $0x388] sm:$0xff]  }
 0x17b   :  { %4855 = vmatprep.mubr.msk.bf16.mxu0 %vm5374_vm0, %v5373_v0  ;;  %5123 = vmatprep.mubr.msk.bf16.mxu1 %vm5374_vm0, %v5373_v0 }
 0x17c   :  { %3610 = vst.msk [vmem:[%s7453_s3 + $0x80] sm:$0xf] %vm3577_vm1, %v4288_v59  ;;  %v4289_v1 = vpack.c.bf16 %v2280_v60, %v2280_v60  ;;  %3744 = vst.msk [vmem:[%s7453_s3 + $0x298] sm:$0xf] %vm3577_vm1, %v4422_v61  ;;  %v4423_v63 = vpack.c.bf16 %v2414_v62, %v2414_v62 }
 0x17d   :  { %v1320_v2 = vpop.f32.mrb[68].mxu0  ;;  %v1856_v3 = vpop.f32.mrb[68].mxu1 }
 0x17e   :  { %3611 = vst.msk [vmem:[%s7453_s3 + $0x84] sm:$0xf] %vm3577_vm1, %v4289_v1  ;;  %3745 = vst.msk [vmem:[%s7453_s3 + $0x29c] sm:$0xf] %vm3577_vm1, %v4423_v63  ;;  %v1321_v5 = vadd.f32 %v6227_v4, %v1320_v2  ;;  %v4749_v6 = vpop.f32.mrb[69].mxu0  ;;  %v1857_v8 = vadd.f32 %v6227_v4, %v1856_v3  ;;  %v5017_v9 = vpop.f32.mrb[69].mxu1 }
 0x17f   :  { %v1323_v11 = vpop.f32.mrb[70].mxu0  ;;  %v1859_v12 = vpop.f32.mrb[70].mxu1 }
 0x180   :  { %v2281_v13 = vmax.f32 %v1321_v5, 0.0  ;;  %v1324_v14 = vadd.f32 %v6227_v4, %v1323_v11  ;;  %v4750_v15 = vpop.f32.mrb[71].mxu0  ;;  %v2415_v16 = vmax.f32 %v1857_v8, 0.0  ;;  %v1860_v17 = vadd.f32 %v6227_v4, %v1859_v12  ;;  %v5018_v18 = vpop.f32.mrb[71].mxu1  ;;  %v5331_v11 = vld [vmem:[%s7451_s0 + $0x178] sm:$0xff]  }
 0x182   :  { %v4290_v19 = vpack.c.bf16 %v2281_v13, %v2281_v13  ;;  %v2282_v20 = vmax.f32 %v1324_v14, 0.0  ;;  %4856 = vmatmul.mubr.bf16.gmra.mrb[176].mxu0 %v5325_v7  ;;  %v4424_v21 = vpack.c.bf16 %v2415_v16, %v2415_v16  ;;  %v2416_v22 = vmax.f32 %v1860_v17, 0.0  ;;  %5124 = vmatmul.mubr.bf16.gmra.mrb[176].mxu1 %v5326_v10  ;;  %v5332_v14 = vld [vmem:[%s7451_s0 + $0x390] sm:$0xff]  }
 0x183   :  { %4859 = vmatprep.mubr.msk.bf16.mxu0 %vm5374_vm0, %v5373_v0  ;;  %5127 = vmatprep.mubr.msk.bf16.mxu1 %vm5374_vm0, %v5373_v0 }
 0x184   :  { %3612 = vst.msk [vmem:[%s7453_s3 + $0x88] sm:$0xf] %vm3577_vm1, %v4290_v19  ;;  %v4291_v23 = vpack.c.bf16 %v2282_v20, %v2282_v20  ;;  %3746 = vst.msk [vmem:[%s7453_s3 + $0x2a0] sm:$0xf] %vm3577_vm1, %v4424_v21  ;;  %v4425_v24 = vpack.c.bf16 %v2416_v22, %v2416_v22 }
 0x185   :  { %v1328_v25 = vpop.f32.mrb[72].mxu0  ;;  %v1864_v26 = vpop.f32.mrb[72].mxu1 }
 0x186   :  { %3613 = vst.msk [vmem:[%s7453_s3 + $0x8c] sm:$0xf] %vm3577_vm1, %v4291_v23  ;;  %3747 = vst.msk [vmem:[%s7453_s3 + $0x2a4] sm:$0xf] %vm3577_vm1, %v4425_v24  ;;  %v1329_v27 = vadd.f32 %v6227_v4, %v1328_v25  ;;  %v4753_v28 = vpop.f32.mrb[73].mxu0  ;;  %v1865_v30 = vadd.f32 %v6227_v4, %v1864_v26  ;;  %v5021_v31 = vpop.f32.mrb[73].mxu1 }
 0x187   :  { %v1331_v33 = vpop.f32.mrb[74].mxu0  ;;  %v1867_v34 = vpop.f32.mrb[74].mxu1 }
 0x188   :  { %v2283_v35 = vmax.f32 %v1329_v27, 0.0  ;;  %v1332_v36 = vadd.f32 %v6227_v4, %v1331_v33  ;;  %v4754_v37 = vpop.f32.mrb[75].mxu0  ;;  %v2417_v38 = vmax.f32 %v1865_v30, 0.0  ;;  %v1868_v39 = vadd.f32 %v6227_v4, %v1867_v34  ;;  %v5022_v40 = vpop.f32.mrb[75].mxu1  ;;  %v5333_v33 = vld [vmem:[%s7451_s0 + $0x180] sm:$0xff]  }
 0x18a   :  { %v4292_v41 = vpack.c.bf16 %v2283_v35, %v2283_v35  ;;  %v2284_v42 = vmax.f32 %v1332_v36, 0.0  ;;  %4860 = vmatmul.mubr.bf16.gmra.mrb[180].mxu0 %v5327_v29  ;;  %v4426_v43 = vpack.c.bf16 %v2417_v38, %v2417_v38  ;;  %v2418_v44 = vmax.f32 %v1868_v39, 0.0  ;;  %5128 = vmatmul.mubr.bf16.gmra.mrb[180].mxu1 %v5328_v32  ;;  %v5334_v36 = vld [vmem:[%s7451_s0 + $0x398] sm:$0xff]  }
 0x18b   :  { %4863 = vmatprep.mubr.msk.bf16.mxu0 %vm5374_vm0, %v5373_v0  ;;  %5131 = vmatprep.mubr.msk.bf16.mxu1 %vm5374_vm0, %v5373_v0 }
 0x18c   :  { %3614 = vst.msk [vmem:[%s7453_s3 + $0x90] sm:$0xf] %vm3577_vm1, %v4292_v41  ;;  %v4293_v45 = vpack.c.bf16 %v2284_v42, %v2284_v42  ;;  %3748 = vst.msk [vmem:[%s7453_s3 + $0x2a8] sm:$0xf] %vm3577_vm1, %v4426_v43  ;;  %v4427_v46 = vpack.c.bf16 %v2418_v44, %v2418_v44 }
 0x18d   :  { %v1336_v47 = vpop.f32.mrb[76].mxu0  ;;  %v1872_v48 = vpop.f32.mrb[76].mxu1 }
 0x18e   :  { %3615 = vst.msk [vmem:[%s7453_s3 + $0x94] sm:$0xf] %vm3577_vm1, %v4293_v45  ;;  %3749 = vst.msk [vmem:[%s7453_s3 + $0x2ac] sm:$0xf] %vm3577_vm1, %v4427_v46  ;;  %v1337_v49 = vadd.f32 %v6227_v4, %v1336_v47  ;;  %v4757_v50 = vpop.f32.mrb[77].mxu0  ;;  %v1873_v52 = vadd.f32 %v6227_v4, %v1872_v48  ;;  %v5025_v53 = vpop.f32.mrb[77].mxu1 }
 0x18f   :  { %v1339_v55 = vpop.f32.mrb[78].mxu0  ;;  %v1875_v56 = vpop.f32.mrb[78].mxu1 }
 0x190   :  { %v2285_v57 = vmax.f32 %v1337_v49, 0.0  ;;  %v1340_v58 = vadd.f32 %v6227_v4, %v1339_v55  ;;  %v4758_v59 = vpop.f32.mrb[79].mxu0  ;;  %v2419_v60 = vmax.f32 %v1873_v52, 0.0  ;;  %v1876_v61 = vadd.f32 %v6227_v4, %v1875_v56  ;;  %v5026_v62 = vpop.f32.mrb[79].mxu1  ;;  %v5335_v55 = vld [vmem:[%s7451_s0 + $0x188] sm:$0xff]  }
 0x192   :  { %v4294_v1 = vpack.c.bf16 %v2285_v57, %v2285_v57  ;;  %v2286_v63 = vmax.f32 %v1340_v58, 0.0  ;;  %4864 = vmatmul.mubr.bf16.gmra.mrb[184].mxu0 %v5329_v51  ;;  %v4428_v2 = vpack.c.bf16 %v2419_v60, %v2419_v60  ;;  %v2420_v3 = vmax.f32 %v1876_v61, 0.0  ;;  %5132 = vmatmul.mubr.bf16.gmra.mrb[184].mxu1 %v5330_v54  ;;  %v5336_v58 = vld [vmem:[%s7451_s0 + $0x3a0] sm:$0xff]  }
 0x193   :  { %4867 = vmatprep.mubr.msk.bf16.mxu0 %vm5374_vm0, %v5373_v0  ;;  %5135 = vmatprep.mubr.msk.bf16.mxu1 %vm5374_vm0, %v5373_v0 }
 0x194   :  { %3616 = vst.msk [vmem:[%s7453_s3 + $0x98] sm:$0xf] %vm3577_vm1, %v4294_v1  ;;  %v4295_v5 = vpack.c.bf16 %v2286_v63, %v2286_v63  ;;  %3750 = vst.msk [vmem:[%s7453_s3 + $0x2b0] sm:$0xf] %vm3577_vm1, %v4428_v2  ;;  %v4429_v6 = vpack.c.bf16 %v2420_v3, %v2420_v3 }
 0x195   :  { %v1344_v7 = vpop.f32.mrb[80].mxu0  ;;  %v1880_v8 = vpop.f32.mrb[80].mxu1 }
 0x196   :  { %3617 = vst.msk [vmem:[%s7453_s3 + $0x9c] sm:$0xf] %vm3577_vm1, %v4295_v5  ;;  %3751 = vst.msk [vmem:[%s7453_s3 + $0x2b4] sm:$0xf] %vm3577_vm1, %v4429_v6  ;;  %v1345_v9 = vadd.f32 %v6227_v4, %v1344_v7  ;;  %v4761_v10 = vpop.f32.mrb[81].mxu0  ;;  %v1881_v12 = vadd.f32 %v6227_v4, %v1880_v8  ;;  %v5029_v13 = vpop.f32.mrb[81].mxu1 }
 0x197   :  { %v1347_v15 = vpop.f32.mrb[82].mxu0  ;;  %v1883_v16 = vpop.f32.mrb[82].mxu1 }
 0x198   :  { %v2287_v17 = vmax.f32 %v1345_v9, 0.0  ;;  %v1348_v18 = vadd.f32 %v6227_v4, %v1347_v15  ;;  %v4762_v19 = vpop.f32.mrb[83].mxu0  ;;  %v2421_v20 = vmax.f32 %v1881_v12, 0.0  ;;  %v1884_v21 = vadd.f32 %v6227_v4, %v1883_v16  ;;  %v5030_v22 = vpop.f32.mrb[83].mxu1  ;;  %v5337_v15 = vld [vmem:[%s7451_s0 + $0x190] sm:$0xff]  }
 0x19a   :  { %v4296_v23 = vpack.c.bf16 %v2287_v17, %v2287_v17  ;;  %v2288_v24 = vmax.f32 %v1348_v18, 0.0  ;;  %4868 = vmatmul.mubr.bf16.gmra.mrb[188].mxu0 %v5331_v11  ;;  %v4430_v25 = vpack.c.bf16 %v2421_v20, %v2421_v20  ;;  %v2422_v26 = vmax.f32 %v1884_v21, 0.0  ;;  %5136 = vmatmul.mubr.bf16.gmra.mrb[188].mxu1 %v5332_v14  ;;  %v5338_v18 = vld [vmem:[%s7451_s0 + $0x3a8] sm:$0xff]  }
 0x19b   :  { %4871 = vmatprep.mubr.msk.bf16.mxu0 %vm5374_vm0, %v5373_v0  ;;  %5139 = vmatprep.mubr.msk.bf16.mxu1 %vm5374_vm0, %v5373_v0 }
 0x19c   :  { %3618 = vst.msk [vmem:[%s7453_s3 + $0xa0] sm:$0xf] %vm3577_vm1, %v4296_v23  ;;  %v4297_v27 = vpack.c.bf16 %v2288_v24, %v2288_v24  ;;  %3752 = vst.msk [vmem:[%s7453_s3 + $0x2b8] sm:$0xf] %vm3577_vm1, %v4430_v25  ;;  %v4431_v28 = vpack.c.bf16 %v2422_v26, %v2422_v26 }
 0x19d   :  { %v1352_v29 = vpop.f32.mrb[84].mxu0  ;;  %v1888_v30 = vpop.f32.mrb[84].mxu1 }
 0x19e   :  { %3619 = vst.msk [vmem:[%s7453_s3 + $0xa4] sm:$0xf] %vm3577_vm1, %v4297_v27  ;;  %3753 = vst.msk [vmem:[%s7453_s3 + $0x2bc] sm:$0xf] %vm3577_vm1, %v4431_v28  ;;  %v1353_v31 = vadd.f32 %v6227_v4, %v1352_v29  ;;  %v4765_v32 = vpop.f32.mrb[85].mxu0  ;;  %v1889_v34 = vadd.f32 %v6227_v4, %v1888_v30  ;;  %v5033_v35 = vpop.f32.mrb[85].mxu1 }
 0x19f   :  { %v1355_v37 = vpop.f32.mrb[86].mxu0  ;;  %v1891_v38 = vpop.f32.mrb[86].mxu1 }
 0x1a0   :  { %v2289_v39 = vmax.f32 %v1353_v31, 0.0  ;;  %v1356_v40 = vadd.f32 %v6227_v4, %v1355_v37  ;;  %v4766_v41 = vpop.f32.mrb[87].mxu0  ;;  %v2423_v42 = vmax.f32 %v1889_v34, 0.0  ;;  %v1892_v43 = vadd.f32 %v6227_v4, %v1891_v38  ;;  %v5034_v44 = vpop.f32.mrb[87].mxu1  ;;  %v5339_v37 = vld [vmem:[%s7451_s0 + $0x198] sm:$0xff]  }
 0x1a2   :  { %v4298_v45 = vpack.c.bf16 %v2289_v39, %v2289_v39  ;;  %v2290_v46 = vmax.f32 %v1356_v40, 0.0  ;;  %4872 = vmatmul.mubr.bf16.gmra.mrb[192].mxu0 %v5333_v33  ;;  %v4432_v47 = vpack.c.bf16 %v2423_v42, %v2423_v42  ;;  %v2424_v48 = vmax.f32 %v1892_v43, 0.0  ;;  %5140 = vmatmul.mubr.bf16.gmra.mrb[192].mxu1 %v5334_v36  ;;  %v5340_v40 = vld [vmem:[%s7451_s0 + $0x3b0] sm:$0xff]  }
 0x1a3   :  { %4875 = vmatprep.mubr.msk.bf16.mxu0 %vm5374_vm0, %v5373_v0  ;;  %5143 = vmatprep.mubr.msk.bf16.mxu1 %vm5374_vm0, %v5373_v0 }
 0x1a4   :  { %3620 = vst.msk [vmem:[%s7453_s3 + $0xa8] sm:$0xf] %vm3577_vm1, %v4298_v45  ;;  %v4299_v49 = vpack.c.bf16 %v2290_v46, %v2290_v46  ;;  %3754 = vst.msk [vmem:[%s7453_s3 + $0x2c0] sm:$0xf] %vm3577_vm1, %v4432_v47  ;;  %v4433_v50 = vpack.c.bf16 %v2424_v48, %v2424_v48 }
 0x1a5   :  { %v1360_v51 = vpop.f32.mrb[88].mxu0  ;;  %v1896_v52 = vpop.f32.mrb[88].mxu1 }
 0x1a6   :  { %3621 = vst.msk [vmem:[%s7453_s3 + $0xac] sm:$0xf] %vm3577_vm1, %v4299_v49  ;;  %3755 = vst.msk [vmem:[%s7453_s3 + $0x2c4] sm:$0xf] %vm3577_vm1, %v4433_v50  ;;  %v1361_v53 = vadd.f32 %v6227_v4, %v1360_v51  ;;  %v4769_v54 = vpop.f32.mrb[89].mxu0  ;;  %v1897_v56 = vadd.f32 %v6227_v4, %v1896_v52  ;;  %v5037_v57 = vpop.f32.mrb[89].mxu1 }
 0x1a7   :  { %v1363_v59 = vpop.f32.mrb[90].mxu0  ;;  %v1899_v60 = vpop.f32.mrb[90].mxu1 }
 0x1a8   :  { %v2291_v61 = vmax.f32 %v1361_v53, 0.0  ;;  %v1364_v62 = vadd.f32 %v6227_v4, %v1363_v59  ;;  %v4770_v1 = vpop.f32.mrb[91].mxu0  ;;  %v2425_v63 = vmax.f32 %v1897_v56, 0.0  ;;  %v1900_v2 = vadd.f32 %v6227_v4, %v1899_v60  ;;  %v5038_v3 = vpop.f32.mrb[91].mxu1  ;;  %v5341_v59 = vld [vmem:[%s7451_s0 + $0x1a0] sm:$0xff]  }
 0x1aa   :  { %v4300_v5 = vpack.c.bf16 %v2291_v61, %v2291_v61  ;;  %v2292_v6 = vmax.f32 %v1364_v62, 0.0  ;;  %4876 = vmatmul.mubr.bf16.gmra.mrb[196].mxu0 %v5335_v55  ;;  %v4434_v7 = vpack.c.bf16 %v2425_v63, %v2425_v63  ;;  %v2426_v8 = vmax.f32 %v1900_v2, 0.0  ;;  %5144 = vmatmul.mubr.bf16.gmra.mrb[196].mxu1 %v5336_v58  ;;  %v5342_v62 = vld [vmem:[%s7451_s0 + $0x3b8] sm:$0xff]  }
 0x1ab   :  { %4879 = vmatprep.mubr.msk.bf16.mxu0 %vm5374_vm0, %v5373_v0  ;;  %5147 = vmatprep.mubr.msk.bf16.mxu1 %vm5374_vm0, %v5373_v0 }
 0x1ac   :  { %3622 = vst.msk [vmem:[%s7453_s3 + $0xb0] sm:$0xf] %vm3577_vm1, %v4300_v5  ;;  %v4301_v9 = vpack.c.bf16 %v2292_v6, %v2292_v6  ;;  %3756 = vst.msk [vmem:[%s7453_s3 + $0x2c8] sm:$0xf] %vm3577_vm1, %v4434_v7  ;;  %v4435_v10 = vpack.c.bf16 %v2426_v8, %v2426_v8 }
 0x1ad   :  { %v1368_v11 = vpop.f32.mrb[92].mxu0  ;;  %v1904_v12 = vpop.f32.mrb[92].mxu1 }
 0x1ae   :  { %3623 = vst.msk [vmem:[%s7453_s3 + $0xb4] sm:$0xf] %vm3577_vm1, %v4301_v9  ;;  %3757 = vst.msk [vmem:[%s7453_s3 + $0x2cc] sm:$0xf] %vm3577_vm1, %v4435_v10  ;;  %v1369_v13 = vadd.f32 %v6227_v4, %v1368_v11  ;;  %v4773_v14 = vpop.f32.mrb[93].mxu0  ;;  %v1905_v16 = vadd.f32 %v6227_v4, %v1904_v12  ;;  %v5041_v17 = vpop.f32.mrb[93].mxu1 }
 0x1af   :  { %v1371_v19 = vpop.f32.mrb[94].mxu0  ;;  %v1907_v20 = vpop.f32.mrb[94].mxu1 }
 0x1b0   :  { %v2293_v21 = vmax.f32 %v1369_v13, 0.0  ;;  %v1372_v22 = vadd.f32 %v6227_v4, %v1371_v19  ;;  %v4774_v23 = vpop.f32.mrb[95].mxu0  ;;  %v2427_v24 = vmax.f32 %v1905_v16, 0.0  ;;  %v1908_v25 = vadd.f32 %v6227_v4, %v1907_v20  ;;  %v5042_v26 = vpop.f32.mrb[95].mxu1  ;;  %v5343_v19 = vld [vmem:[%s7451_s0 + $0x1a8] sm:$0xff]  }
 0x1b2   :  { %v4302_v27 = vpack.c.bf16 %v2293_v21, %v2293_v21  ;;  %v2294_v28 = vmax.f32 %v1372_v22, 0.0  ;;  %4880 = vmatmul.mubr.bf16.gmra.mrb[200].mxu0 %v5337_v15  ;;  %v4436_v29 = vpack.c.bf16 %v2427_v24, %v2427_v24  ;;  %v2428_v30 = vmax.f32 %v1908_v25, 0.0  ;;  %5148 = vmatmul.mubr.bf16.gmra.mrb[200].mxu1 %v5338_v18  ;;  %v5344_v22 = vld [vmem:[%s7451_s0 + $0x3c0] sm:$0xff]  }
 0x1b3   :  { %4883 = vmatprep.mubr.msk.bf16.mxu0 %vm5374_vm0, %v5373_v0  ;;  %5151 = vmatprep.mubr.msk.bf16.mxu1 %vm5374_vm0, %v5373_v0 }
 0x1b4   :  { %3624 = vst.msk [vmem:[%s7453_s3 + $0xb8] sm:$0xf] %vm3577_vm1, %v4302_v27  ;;  %v4303_v31 = vpack.c.bf16 %v2294_v28, %v2294_v28  ;;  %3758 = vst.msk [vmem:[%s7453_s3 + $0x2d0] sm:$0xf] %vm3577_vm1, %v4436_v29  ;;  %v4437_v32 = vpack.c.bf16 %v2428_v30, %v2428_v30 }
 0x1b5   :  { %v1376_v33 = vpop.f32.mrb[96].mxu0  ;;  %v1912_v34 = vpop.f32.mrb[96].mxu1 }
 0x1b6   :  { %3625 = vst.msk [vmem:[%s7453_s3 + $0xbc] sm:$0xf] %vm3577_vm1, %v4303_v31  ;;  %3759 = vst.msk [vmem:[%s7453_s3 + $0x2d4] sm:$0xf] %vm3577_vm1, %v4437_v32  ;;  %v1377_v35 = vadd.f32 %v6227_v4, %v1376_v33  ;;  %v4777_v36 = vpop.f32.mrb[97].mxu0  ;;  %v1913_v38 = vadd.f32 %v6227_v4, %v1912_v34  ;;  %v5045_v39 = vpop.f32.mrb[97].mxu1 }
 0x1b7   :  { %v1379_v41 = vpop.f32.mrb[98].mxu0  ;;  %v1915_v42 = vpop.f32.mrb[98].mxu1 }
 0x1b8   :  { %v2295_v43 = vmax.f32 %v1377_v35, 0.0  ;;  %v1380_v44 = vadd.f32 %v6227_v4, %v1379_v41  ;;  %v4778_v45 = vpop.f32.mrb[99].mxu0  ;;  %v2429_v46 = vmax.f32 %v1913_v38, 0.0  ;;  %v1916_v47 = vadd.f32 %v6227_v4, %v1915_v42  ;;  %v5046_v48 = vpop.f32.mrb[99].mxu1  ;;  %v5345_v41 = vld [vmem:[%s7451_s0 + $0x1b0] sm:$0xff]  }
 0x1ba   :  { %v4304_v49 = vpack.c.bf16 %v2295_v43, %v2295_v43  ;;  %v2296_v50 = vmax.f32 %v1380_v44, 0.0  ;;  %4884 = vmatmul.mubr.bf16.gmra.mrb[204].mxu0 %v5339_v37  ;;  %v4438_v51 = vpack.c.bf16 %v2429_v46, %v2429_v46  ;;  %v2430_v52 = vmax.f32 %v1916_v47, 0.0  ;;  %5152 = vmatmul.mubr.bf16.gmra.mrb[204].mxu1 %v5340_v40  ;;  %v5346_v44 = vld [vmem:[%s7451_s0 + $0x3c8] sm:$0xff]  }
 0x1bb   :  { %4887 = vmatprep.mubr.msk.bf16.mxu0 %vm5374_vm0, %v5373_v0  ;;  %5155 = vmatprep.mubr.msk.bf16.mxu1 %vm5374_vm0, %v5373_v0 }
 0x1bc   :  { %3626 = vst.msk [vmem:[%s7453_s3 + $0xc0] sm:$0xf] %vm3577_vm1, %v4304_v49  ;;  %v4305_v53 = vpack.c.bf16 %v2296_v50, %v2296_v50  ;;  %3760 = vst.msk [vmem:[%s7453_s3 + $0x2d8] sm:$0xf] %vm3577_vm1, %v4438_v51  ;;  %v4439_v54 = vpack.c.bf16 %v2430_v52, %v2430_v52 }
 0x1bd   :  { %v1384_v55 = vpop.f32.mrb[100].mxu0  ;;  %v1920_v56 = vpop.f32.mrb[100].mxu1 }
 0x1be   :  { %3627 = vst.msk [vmem:[%s7453_s3 + $0xc4] sm:$0xf] %vm3577_vm1, %v4305_v53  ;;  %3761 = vst.msk [vmem:[%s7453_s3 + $0x2dc] sm:$0xf] %vm3577_vm1, %v4439_v54  ;;  %v1385_v57 = vadd.f32 %v6227_v4, %v1384_v55  ;;  %v4781_v58 = vpop.f32.mrb[101].mxu0  ;;  %v1921_v60 = vadd.f32 %v6227_v4, %v1920_v56  ;;  %v5049_v61 = vpop.f32.mrb[101].mxu1 }
 0x1bf   :  { %v1387_v1 = vpop.f32.mrb[102].mxu0  ;;  %v1923_v63 = vpop.f32.mrb[102].mxu1 }
 0x1c0   :  { %v2297_v2 = vmax.f32 %v1385_v57, 0.0  ;;  %v1388_v3 = vadd.f32 %v6227_v4, %v1387_v1  ;;  %v4782_v5 = vpop.f32.mrb[103].mxu0  ;;  %v2431_v6 = vmax.f32 %v1921_v60, 0.0  ;;  %v1924_v7 = vadd.f32 %v6227_v4, %v1923_v63  ;;  %v5050_v8 = vpop.f32.mrb[103].mxu1  ;;  %v5347_v1 = vld [vmem:[%s7451_s0 + $0x1b8] sm:$0xff]  }
 0x1c2   :  { %v4306_v9 = vpack.c.bf16 %v2297_v2, %v2297_v2  ;;  %v2298_v10 = vmax.f32 %v1388_v3, 0.0  ;;  %4888 = vmatmul.mubr.bf16.gmra.mrb[208].mxu0 %v5341_v59  ;;  %v4440_v11 = vpack.c.bf16 %v2431_v6, %v2431_v6  ;;  %v2432_v12 = vmax.f32 %v1924_v7, 0.0  ;;  %5156 = vmatmul.mubr.bf16.gmra.mrb[208].mxu1 %v5342_v62  ;;  %v5348_v3 = vld [vmem:[%s7451_s0 + $0x3d0] sm:$0xff]  }
 0x1c3   :  { %4891 = vmatprep.mubr.msk.bf16.mxu0 %vm5374_vm0, %v5373_v0  ;;  %5159 = vmatprep.mubr.msk.bf16.mxu1 %vm5374_vm0, %v5373_v0 }
 0x1c4   :  { %3628 = vst.msk [vmem:[%s7453_s3 + $0xc8] sm:$0xf] %vm3577_vm1, %v4306_v9  ;;  %v4307_v13 = vpack.c.bf16 %v2298_v10, %v2298_v10  ;;  %3762 = vst.msk [vmem:[%s7453_s3 + $0x2e0] sm:$0xf] %vm3577_vm1, %v4440_v11  ;;  %v4441_v14 = vpack.c.bf16 %v2432_v12, %v2432_v12 }
 0x1c5   :  { %v1392_v15 = vpop.f32.mrb[104].mxu0  ;;  %v1928_v16 = vpop.f32.mrb[104].mxu1 }
 0x1c6   :  { %3629 = vst.msk [vmem:[%s7453_s3 + $0xcc] sm:$0xf] %vm3577_vm1, %v4307_v13  ;;  %3763 = vst.msk [vmem:[%s7453_s3 + $0x2e4] sm:$0xf] %vm3577_vm1, %v4441_v14  ;;  %v1393_v17 = vadd.f32 %v6227_v4, %v1392_v15  ;;  %v4785_v18 = vpop.f32.mrb[105].mxu0  ;;  %v1929_v20 = vadd.f32 %v6227_v4, %v1928_v16  ;;  %v5053_v21 = vpop.f32.mrb[105].mxu1 }
 0x1c7   :  { %v1395_v23 = vpop.f32.mrb[106].mxu0  ;;  %v1931_v24 = vpop.f32.mrb[106].mxu1 }
 0x1c8   :  { %v2299_v25 = vmax.f32 %v1393_v17, 0.0  ;;  %v1396_v26 = vadd.f32 %v6227_v4, %v1395_v23  ;;  %v4786_v27 = vpop.f32.mrb[107].mxu0  ;;  %v2433_v28 = vmax.f32 %v1929_v20, 0.0  ;;  %v1932_v29 = vadd.f32 %v6227_v4, %v1931_v24  ;;  %v5054_v30 = vpop.f32.mrb[107].mxu1  ;;  %v5349_v23 = vld [vmem:[%s7451_s0 + $0x1c0] sm:$0xff]  }
 0x1ca   :  { %v4308_v31 = vpack.c.bf16 %v2299_v25, %v2299_v25  ;;  %v2300_v32 = vmax.f32 %v1396_v26, 0.0  ;;  %4892 = vmatmul.mubr.bf16.gmra.mrb[212].mxu0 %v5343_v19  ;;  %v4442_v33 = vpack.c.bf16 %v2433_v28, %v2433_v28  ;;  %v2434_v34 = vmax.f32 %v1932_v29, 0.0  ;;  %5160 = vmatmul.mubr.bf16.gmra.mrb[212].mxu1 %v5344_v22  ;;  %v5350_v26 = vld [vmem:[%s7451_s0 + $0x3d8] sm:$0xff]  }
 0x1cb   :  { %4895 = vmatprep.mubr.msk.bf16.mxu0 %vm5374_vm0, %v5373_v0  ;;  %5163 = vmatprep.mubr.msk.bf16.mxu1 %vm5374_vm0, %v5373_v0 }
 0x1cc   :  { %3630 = vst.msk [vmem:[%s7453_s3 + $0xd0] sm:$0xf] %vm3577_vm1, %v4308_v31  ;;  %v4309_v35 = vpack.c.bf16 %v2300_v32, %v2300_v32  ;;  %3764 = vst.msk [vmem:[%s7453_s3 + $0x2e8] sm:$0xf] %vm3577_vm1, %v4442_v33  ;;  %v4443_v36 = vpack.c.bf16 %v2434_v34, %v2434_v34 }
 0x1cd   :  { %v1400_v37 = vpop.f32.mrb[108].mxu0  ;;  %v1936_v38 = vpop.f32.mrb[108].mxu1 }
 0x1ce   :  { %3631 = vst.msk [vmem:[%s7453_s3 + $0xd4] sm:$0xf] %vm3577_vm1, %v4309_v35  ;;  %3765 = vst.msk [vmem:[%s7453_s3 + $0x2ec] sm:$0xf] %vm3577_vm1, %v4443_v36  ;;  %v1401_v39 = vadd.f32 %v6227_v4, %v1400_v37  ;;  %v4789_v40 = vpop.f32.mrb[109].mxu0  ;;  %v1937_v42 = vadd.f32 %v6227_v4, %v1936_v38  ;;  %v5057_v43 = vpop.f32.mrb[109].mxu1 }
 0x1cf   :  { %v1403_v45 = vpop.f32.mrb[110].mxu0  ;;  %v1939_v46 = vpop.f32.mrb[110].mxu1 }
 0x1d0   :  { %v2301_v47 = vmax.f32 %v1401_v39, 0.0  ;;  %v1404_v48 = vadd.f32 %v6227_v4, %v1403_v45  ;;  %v4790_v49 = vpop.f32.mrb[111].mxu0  ;;  %v2435_v50 = vmax.f32 %v1937_v42, 0.0  ;;  %v1940_v51 = vadd.f32 %v6227_v4, %v1939_v46  ;;  %v5058_v52 = vpop.f32.mrb[111].mxu1  ;;  %v5351_v45 = vld [vmem:[%s7451_s0 + $0x1c8] sm:$0xff]  }
 0x1d2   :  { %v4310_v53 = vpack.c.bf16 %v2301_v47, %v2301_v47  ;;  %v2302_v54 = vmax.f32 %v1404_v48, 0.0  ;;  %4896 = vmatmul.mubr.bf16.gmra.mrb[216].mxu0 %v5345_v41  ;;  %v4444_v55 = vpack.c.bf16 %v2435_v50, %v2435_v50  ;;  %v2436_v56 = vmax.f32 %v1940_v51, 0.0  ;;  %5164 = vmatmul.mubr.bf16.gmra.mrb[216].mxu1 %v5346_v44  ;;  %v5352_v48 = vld [vmem:[%s7451_s0 + $0x3e0] sm:$0xff]  }
 0x1d3   :  { %4899 = vmatprep.mubr.msk.bf16.mxu0 %vm5374_vm0, %v5373_v0  ;;  %5167 = vmatprep.mubr.msk.bf16.mxu1 %vm5374_vm0, %v5373_v0 }
 0x1d4   :  { %3632 = vst.msk [vmem:[%s7453_s3 + $0xd8] sm:$0xf] %vm3577_vm1, %v4310_v53  ;;  %v4311_v57 = vpack.c.bf16 %v2302_v54, %v2302_v54  ;;  %3766 = vst.msk [vmem:[%s7453_s3 + $0x2f0] sm:$0xf] %vm3577_vm1, %v4444_v55  ;;  %v4445_v58 = vpack.c.bf16 %v2436_v56, %v2436_v56 }
 0x1d5   :  { %v1408_v59 = vpop.f32.mrb[112].mxu0  ;;  %v1944_v60 = vpop.f32.mrb[112].mxu1 }
 0x1d6   :  { %3633 = vst.msk [vmem:[%s7453_s3 + $0xdc] sm:$0xf] %vm3577_vm1, %v4311_v57  ;;  %3767 = vst.msk [vmem:[%s7453_s3 + $0x2f4] sm:$0xf] %vm3577_vm1, %v4445_v58  ;;  %v1409_v61 = vadd.f32 %v6227_v4, %v1408_v59  ;;  %v4793_v62 = vpop.f32.mrb[113].mxu0  ;;  %v1945_v63 = vadd.f32 %v6227_v4, %v1944_v60  ;;  %v5061_v2 = vpop.f32.mrb[113].mxu1 }
 0x1d7   :  { %v1411_v5 = vpop.f32.mrb[114].mxu0  ;;  %v1947_v6 = vpop.f32.mrb[114].mxu1 }
 0x1d8   :  { %v2303_v7 = vmax.f32 %v1409_v61, 0.0  ;;  %v1412_v8 = vadd.f32 %v6227_v4, %v1411_v5  ;;  %v4794_v9 = vpop.f32.mrb[115].mxu0  ;;  %v2437_v10 = vmax.f32 %v1945_v63, 0.0  ;;  %v1948_v11 = vadd.f32 %v6227_v4, %v1947_v6  ;;  %v5062_v12 = vpop.f32.mrb[115].mxu1  ;;  %v5353_v5 = vld [vmem:[%s7451_s0 + $0x1d0] sm:$0xff]  }
 0x1da   :  { %v4312_v13 = vpack.c.bf16 %v2303_v7, %v2303_v7  ;;  %v2304_v14 = vmax.f32 %v1412_v8, 0.0  ;;  %4900 = vmatmul.mubr.bf16.gmra.mrb[220].mxu0 %v5347_v1  ;;  %v4446_v15 = vpack.c.bf16 %v2437_v10, %v2437_v10  ;;  %v2438_v16 = vmax.f32 %v1948_v11, 0.0  ;;  %5168 = vmatmul.mubr.bf16.gmra.mrb[220].mxu1 %v5348_v3  ;;  %v5354_v8 = vld [vmem:[%s7451_s0 + $0x3e8] sm:$0xff]  }
 0x1db   :  { %4903 = vmatprep.mubr.msk.bf16.mxu0 %vm5374_vm0, %v5373_v0  ;;  %5171 = vmatprep.mubr.msk.bf16.mxu1 %vm5374_vm0, %v5373_v0 }
 0x1dc   :  { %3634 = vst.msk [vmem:[%s7453_s3 + $0xe0] sm:$0xf] %vm3577_vm1, %v4312_v13  ;;  %v4313_v17 = vpack.c.bf16 %v2304_v14, %v2304_v14  ;;  %3768 = vst.msk [vmem:[%s7453_s3 + $0x2f8] sm:$0xf] %vm3577_vm1, %v4446_v15  ;;  %v4447_v18 = vpack.c.bf16 %v2438_v16, %v2438_v16 }
 0x1dd   :  { %v1416_v19 = vpop.f32.mrb[116].mxu0  ;;  %v1952_v20 = vpop.f32.mrb[116].mxu1 }
 0x1de   :  { %3635 = vst.msk [vmem:[%s7453_s3 + $0xe4] sm:$0xf] %vm3577_vm1, %v4313_v17  ;;  %3769 = vst.msk [vmem:[%s7453_s3 + $0x2fc] sm:$0xf] %vm3577_vm1, %v4447_v18  ;;  %v1417_v21 = vadd.f32 %v6227_v4, %v1416_v19  ;;  %v4797_v22 = vpop.f32.mrb[117].mxu0  ;;  %v1953_v24 = vadd.f32 %v6227_v4, %v1952_v20  ;;  %v5065_v25 = vpop.f32.mrb[117].mxu1 }
 0x1df   :  { %v1419_v27 = vpop.f32.mrb[118].mxu0  ;;  %v1955_v28 = vpop.f32.mrb[118].mxu1 }
 0x1e0   :  { %v2305_v29 = vmax.f32 %v1417_v21, 0.0  ;;  %v1420_v30 = vadd.f32 %v6227_v4, %v1419_v27  ;;  %v4798_v31 = vpop.f32.mrb[119].mxu0  ;;  %v2439_v32 = vmax.f32 %v1953_v24, 0.0  ;;  %v1956_v33 = vadd.f32 %v6227_v4, %v1955_v28  ;;  %v5066_v34 = vpop.f32.mrb[119].mxu1  ;;  %v5355_v27 = vld [vmem:[%s7451_s0 + $0x1d8] sm:$0xff]  }
 0x1e2   :  { %v4314_v35 = vpack.c.bf16 %v2305_v29, %v2305_v29  ;;  %v2306_v36 = vmax.f32 %v1420_v30, 0.0  ;;  %4904 = vmatmul.mubr.bf16.gmra.mrb[224].mxu0 %v5349_v23  ;;  %v4448_v37 = vpack.c.bf16 %v2439_v32, %v2439_v32  ;;  %v2440_v38 = vmax.f32 %v1956_v33, 0.0  ;;  %5172 = vmatmul.mubr.bf16.gmra.mrb[224].mxu1 %v5350_v26  ;;  %v5356_v30 = vld [vmem:[%s7451_s0 + $0x3f0] sm:$0xff]  }
 0x1e3   :  { %4907 = vmatprep.mubr.msk.bf16.mxu0 %vm5374_vm0, %v5373_v0  ;;  %5175 = vmatprep.mubr.msk.bf16.mxu1 %vm5374_vm0, %v5373_v0 }
 0x1e4   :  { %3636 = vst.msk [vmem:[%s7453_s3 + $0xe8] sm:$0xf] %vm3577_vm1, %v4314_v35  ;;  %v4315_v39 = vpack.c.bf16 %v2306_v36, %v2306_v36  ;;  %3770 = vst.msk [vmem:[%s7453_s3 + $0x300] sm:$0xf] %vm3577_vm1, %v4448_v37  ;;  %v4449_v40 = vpack.c.bf16 %v2440_v38, %v2440_v38 }
 0x1e5   :  { %v1424_v41 = vpop.f32.mrb[120].mxu0  ;;  %v1960_v42 = vpop.f32.mrb[120].mxu1 }
 0x1e6   :  { %3637 = vst.msk [vmem:[%s7453_s3 + $0xec] sm:$0xf] %vm3577_vm1, %v4315_v39  ;;  %3771 = vst.msk [vmem:[%s7453_s3 + $0x304] sm:$0xf] %vm3577_vm1, %v4449_v40  ;;  %v1425_v43 = vadd.f32 %v6227_v4, %v1424_v41  ;;  %v4801_v44 = vpop.f32.mrb[121].mxu0  ;;  %v1961_v46 = vadd.f32 %v6227_v4, %v1960_v42  ;;  %v5069_v47 = vpop.f32.mrb[121].mxu1 }
 0x1e7   :  { %v1427_v49 = vpop.f32.mrb[122].mxu0  ;;  %v1963_v50 = vpop.f32.mrb[122].mxu1 }
 0x1e8   :  { %v2307_v51 = vmax.f32 %v1425_v43, 0.0  ;;  %v1428_v52 = vadd.f32 %v6227_v4, %v1427_v49  ;;  %v4802_v53 = vpop.f32.mrb[123].mxu0  ;;  %v2441_v54 = vmax.f32 %v1961_v46, 0.0  ;;  %v1964_v55 = vadd.f32 %v6227_v4, %v1963_v50  ;;  %v5070_v56 = vpop.f32.mrb[123].mxu1  ;;  %v5357_v49 = vld [vmem:[%s7451_s0 + $0x1e0] sm:$0xff]  }
 0x1ea   :  { %v4316_v57 = vpack.c.bf16 %v2307_v51, %v2307_v51  ;;  %v2308_v58 = vmax.f32 %v1428_v52, 0.0  ;;  %4908 = vmatmul.mubr.bf16.gmra.mrb[228].mxu0 %v5351_v45  ;;  %v4450_v59 = vpack.c.bf16 %v2441_v54, %v2441_v54  ;;  %v2442_v60 = vmax.f32 %v1964_v55, 0.0  ;;  %5176 = vmatmul.mubr.bf16.gmra.mrb[228].mxu1 %v5352_v48  ;;  %v5358_v52 = vld [vmem:[%s7451_s0 + $0x3f8] sm:$0xff]  }
 0x1eb   :  { %4911 = vmatprep.mubr.msk.bf16.mxu0 %vm5374_vm0, %v5373_v0  ;;  %5179 = vmatprep.mubr.msk.bf16.mxu1 %vm5374_vm0, %v5373_v0 }
 0x1ec   :  { %3638 = vst.msk [vmem:[%s7453_s3 + $0xf0] sm:$0xf] %vm3577_vm1, %v4316_v57  ;;  %v4317_v61 = vpack.c.bf16 %v2308_v58, %v2308_v58  ;;  %3772 = vst.msk [vmem:[%s7453_s3 + $0x308] sm:$0xf] %vm3577_vm1, %v4450_v59  ;;  %v4451_v62 = vpack.c.bf16 %v2442_v60, %v2442_v60 }
 0x1ed   :  { %v1432_v1 = vpop.f32.mrb[124].mxu0  ;;  %v1968_v63 = vpop.f32.mrb[124].mxu1 }
 0x1ee   :  { %3639 = vst.msk [vmem:[%s7453_s3 + $0xf4] sm:$0xf] %vm3577_vm1, %v4317_v61  ;;  %3773 = vst.msk [vmem:[%s7453_s3 + $0x30c] sm:$0xf] %vm3577_vm1, %v4451_v62  ;;  %v1433_v2 = vadd.f32 %v6227_v4, %v1432_v1  ;;  %v4805_v3 = vpop.f32.mrb[125].mxu0  ;;  %v1969_v6 = vadd.f32 %v6227_v4, %v1968_v63  ;;  %v5073_v7 = vpop.f32.mrb[125].mxu1 }
 0x1ef   :  { %v1435_v9 = vpop.f32.mrb[126].mxu0  ;;  %v1971_v10 = vpop.f32.mrb[126].mxu1 }
 0x1f0   :  { %v2309_v11 = vmax.f32 %v1433_v2, 0.0  ;;  %v1436_v12 = vadd.f32 %v6227_v4, %v1435_v9  ;;  %v4806_v13 = vpop.f32.mrb[127].mxu0  ;;  %v2443_v14 = vmax.f32 %v1969_v6, 0.0  ;;  %v1972_v15 = vadd.f32 %v6227_v4, %v1971_v10  ;;  %v5074_v16 = vpop.f32.mrb[127].mxu1  ;;  %v5359_v9 = vld [vmem:[%s7451_s0 + $0x1e8] sm:$0xff]  }
 0x1f1   :  { %v6746_v10 = vld [vmem:[%s7452_s2] ss:$0 sm:$0xff] }
 0x1f2   :  { %v4318_v17 = vpack.c.bf16 %v2309_v11, %v2309_v11  ;;  %v2310_v18 = vmax.f32 %v1436_v12, 0.0  ;;  %4912 = vmatmul.mubr.bf16.gmra.mrb[232].mxu0 %v5353_v5  ;;  %v4452_v19 = vpack.c.bf16 %v2443_v14, %v2443_v14  ;;  %v2444_v20 = vmax.f32 %v1972_v15, 0.0  ;;  %5180 = vmatmul.mubr.bf16.gmra.mrb[232].mxu1 %v5354_v8  ;;  %v5360_v13 = vld [vmem:[%s7451_s0 + $0x400] sm:$0xff]  }
 0x1f3   :  { %4915 = vmatprep.mubr.msk.bf16.mxu0 %vm5374_vm0, %v5373_v0  ;;  %5183 = vmatprep.mubr.msk.bf16.mxu1 %vm5374_vm0, %v5373_v0 }
 0x1f4   :  { %3640 = vst.msk [vmem:[%s7453_s3 + $0xf8] sm:$0xf] %vm3577_vm1, %v4318_v17  ;;  %v4319_v21 = vpack.c.bf16 %v2310_v18, %v2310_v18  ;;  %3774 = vst.msk [vmem:[%s7453_s3 + $0x310] sm:$0xf] %vm3577_vm1, %v4452_v19  ;;  %v4453_v22 = vpack.c.bf16 %v2444_v20, %v2444_v20 }
 0x1f5   :  { %v1440_v23 = vpop.f32.mrb[128].mxu0  ;;  %v1976_v24 = vpop.f32.mrb[128].mxu1 }
 0x1f6   :  { %3641 = vst.msk [vmem:[%s7453_s3 + $0xfc] sm:$0xf] %vm3577_vm1, %v4319_v21  ;;  %3775 = vst.msk [vmem:[%s7453_s3 + $0x314] sm:$0xf] %vm3577_vm1, %v4453_v22  ;;  %v1441_v25 = vadd.f32 %v6227_v4, %v1440_v23  ;;  %v4809_v26 = vpop.f32.mrb[129].mxu0  ;;  %v1977_v28 = vadd.f32 %v6227_v4, %v1976_v24  ;;  %v5077_v29 = vpop.f32.mrb[129].mxu1 }
 0x1f7   :  { %v1443_v31 = vpop.f32.mrb[130].mxu0  ;;  %v1979_v32 = vpop.f32.mrb[130].mxu1 }
 0x1f8   :  { %v2311_v33 = vmax.f32 %v1441_v25, 0.0  ;;  %v1444_v34 = vadd.f32 %v6227_v4, %v1443_v31  ;;  %v4810_v35 = vpop.f32.mrb[131].mxu0  ;;  %v2445_v36 = vmax.f32 %v1977_v28, 0.0  ;;  %v1980_v37 = vadd.f32 %v6227_v4, %v1979_v32  ;;  %v5078_v38 = vpop.f32.mrb[131].mxu1  ;;  %v5361_v31 = vld [vmem:[%s7451_s0 + $0x1f0] sm:$0xff]  }
 0x1fa   :  { %v4320_v39 = vpack.c.bf16 %v2311_v33, %v2311_v33  ;;  %v2312_v40 = vmax.f32 %v1444_v34, 0.0  ;;  %4916 = vmatmul.mubr.bf16.gmra.mrb[236].mxu0 %v5355_v27  ;;  %v4454_v41 = vpack.c.bf16 %v2445_v36, %v2445_v36  ;;  %v2446_v42 = vmax.f32 %v1980_v37, 0.0  ;;  %5184 = vmatmul.mubr.bf16.gmra.mrb[236].mxu1 %v5356_v30  ;;  %v5362_v34 = vld [vmem:[%s7451_s0 + $0x408] sm:$0xff]  }
 0x1fb   :  { %4919 = vmatprep.mubr.msk.bf16.mxu0 %vm5374_vm0, %v5373_v0  ;;  %5187 = vmatprep.mubr.msk.bf16.mxu1 %vm5374_vm0, %v5373_v0 }
 0x1fc   :  { %3642 = vst.msk [vmem:[%s7453_s3 + $0x100] sm:$0xf] %vm3577_vm1, %v4320_v39  ;;  %v4321_v43 = vpack.c.bf16 %v2312_v40, %v2312_v40  ;;  %3776 = vst.msk [vmem:[%s7453_s3 + $0x318] sm:$0xf] %vm3577_vm1, %v4454_v41  ;;  %v4455_v44 = vpack.c.bf16 %v2446_v42, %v2446_v42 }
 0x1fd   :  { %v1448_v45 = vpop.f32.mrb[132].mxu0  ;;  %v1984_v46 = vpop.f32.mrb[132].mxu1 }
 0x1fe   :  { %3643 = vst.msk [vmem:[%s7453_s3 + $0x104] sm:$0xf] %vm3577_vm1, %v4321_v43  ;;  %3777 = vst.msk [vmem:[%s7453_s3 + $0x31c] sm:$0xf] %vm3577_vm1, %v4455_v44  ;;  %v1449_v47 = vadd.f32 %v6227_v4, %v1448_v45  ;;  %v4813_v48 = vpop.f32.mrb[133].mxu0  ;;  %v1985_v50 = vadd.f32 %v6227_v4, %v1984_v46  ;;  %v5081_v51 = vpop.f32.mrb[133].mxu1 }
 0x1ff   :  { %v1451_v53 = vpop.f32.mrb[134].mxu0  ;;  %v1987_v54 = vpop.f32.mrb[134].mxu1 }
 0x200   :  { %v2313_v55 = vmax.f32 %v1449_v47, 0.0  ;;  %v1452_v56 = vadd.f32 %v6227_v4, %v1451_v53  ;;  %v4814_v57 = vpop.f32.mrb[135].mxu0  ;;  %v2447_v58 = vmax.f32 %v1985_v50, 0.0  ;;  %v1988_v59 = vadd.f32 %v6227_v4, %v1987_v54  ;;  %v5082_v60 = vpop.f32.mrb[135].mxu1  ;;  %v5363_v53 = vld [vmem:[%s7451_s0 + $0x1f8] sm:$0xff]  }
 0x202   :  { %v4322_v61 = vpack.c.bf16 %v2313_v55, %v2313_v55  ;;  %v2314_v62 = vmax.f32 %v1452_v56, 0.0  ;;  %4920 = vmatmul.mubr.bf16.gmra.mrb[240].mxu0 %v5357_v49  ;;  %v4456_v1 = vpack.c.bf16 %v2447_v58, %v2447_v58  ;;  %v2448_v63 = vmax.f32 %v1988_v59, 0.0  ;;  %5188 = vmatmul.mubr.bf16.gmra.mrb[240].mxu1 %v5358_v52  ;;  %v5364_v56 = vld [vmem:[%s7451_s0 + $0x410] sm:$0xff]  }
 0x203   :  { %4923 = vmatprep.mubr.msk.bf16.mxu0 %vm5374_vm0, %v5373_v0  ;;  %5191 = vmatprep.mubr.msk.bf16.mxu1 %vm5374_vm0, %v5373_v0 }
 0x204   :  { %3644 = vst.msk [vmem:[%s7453_s3 + $0x108] sm:$0xf] %vm3577_vm1, %v4322_v61  ;;  %v4323_v2 = vpack.c.bf16 %v2314_v62, %v2314_v62  ;;  %3778 = vst.msk [vmem:[%s7453_s3 + $0x320] sm:$0xf] %vm3577_vm1, %v4456_v1  ;;  %v4457_v3 = vpack.c.bf16 %v2448_v63, %v2448_v63 }
 0x205   :  { %v1456_v5 = vpop.f32.mrb[136].mxu0  ;;  %v1992_v6 = vpop.f32.mrb[136].mxu1 }
 0x206   :  { %3645 = vst.msk [vmem:[%s7453_s3 + $0x10c] sm:$0xf] %vm3577_vm1, %v4323_v2  ;;  %3779 = vst.msk [vmem:[%s7453_s3 + $0x324] sm:$0xf] %vm3577_vm1, %v4457_v3  ;;  %v1457_v7 = vadd.f32 %v6227_v4, %v1456_v5  ;;  %v4817_v8 = vpop.f32.mrb[137].mxu0  ;;  %v1993_v11 = vadd.f32 %v6746_v10, %v1992_v6  ;;  %v5085_v12 = vpop.f32.mrb[137].mxu1 }
 0x207   :  { %v1459_v14 = vpop.f32.mrb[138].mxu0  ;;  %v1995_v15 = vpop.f32.mrb[138].mxu1 }
 0x208   :  { %v2315_v4 = vmax.f32 %v1457_v7, 0.0  ;;  %v1460_v16 = vadd.f32 %v6746_v10, %v1459_v14  ;;  %v4818_v17 = vpop.f32.mrb[139].mxu0  ;;  %v2449_v18 = vmax.f32 %v1993_v11, 0.0  ;;  %v1996_v19 = vadd.f32 %v6746_v10, %v1995_v15  ;;  %v5086_v20 = vpop.f32.mrb[139].mxu1  ;;  %v5365_v14 = vld [vmem:[%s7451_s0 + $0x200] sm:$0xff]  }
 0x20a   :  { %v4324_v21 = vpack.c.bf16 %v2315_v4, %v2315_v4  ;;  %v2316_v22 = vmax.f32 %v1460_v16, 0.0  ;;  %4924 = vmatmul.mubr.bf16.gmra.mrb[244].mxu0 %v5359_v9  ;;  %v4458_v23 = vpack.c.bf16 %v2449_v18, %v2449_v18  ;;  %v2450_v24 = vmax.f32 %v1996_v19, 0.0  ;;  %5192 = vmatmul.mubr.bf16.gmra.mrb[244].mxu1 %v5360_v13  ;;  %v5366_v16 = vld [vmem:[%s7451_s0 + $0x418] sm:$0xff]  }
 0x20b   :  { %4927 = vmatprep.mubr.msk.bf16.mxu0 %vm5374_vm0, %v5373_v0  ;;  %5195 = vmatprep.mubr.msk.bf16.mxu1 %vm5374_vm0, %v5373_v0 }
 0x20c   :  { %3646 = vst.msk [vmem:[%s7453_s3 + $0x110] sm:$0xf] %vm3577_vm1, %v4324_v21  ;;  %v4325_v25 = vpack.c.bf16 %v2316_v22, %v2316_v22  ;;  %3780 = vst.msk [vmem:[%s7453_s3 + $0x328] sm:$0xf] %vm3577_vm1, %v4458_v23  ;;  %v4459_v26 = vpack.c.bf16 %v2450_v24, %v2450_v24 }
 0x20d   :  { %v1464_v27 = vpop.f32.mrb[140].mxu0  ;;  %v2000_v28 = vpop.f32.mrb[140].mxu1 }
 0x20e   :  { %3647 = vst.msk [vmem:[%s7453_s3 + $0x114] sm:$0xf] %vm3577_vm1, %v4325_v25  ;;  %3781 = vst.msk [vmem:[%s7453_s3 + $0x32c] sm:$0xf] %vm3577_vm1, %v4459_v26  ;;  %v1465_v29 = vadd.f32 %v6746_v10, %v1464_v27  ;;  %v4821_v30 = vpop.f32.mrb[141].mxu0  ;;  %v2001_v32 = vadd.f32 %v6746_v10, %v2000_v28  ;;  %v5089_v33 = vpop.f32.mrb[141].mxu1 }
 0x20f   :  { %v1467_v35 = vpop.f32.mrb[142].mxu0  ;;  %v2003_v36 = vpop.f32.mrb[142].mxu1 }
 0x210   :  { %v2317_v37 = vmax.f32 %v1465_v29, 0.0  ;;  %v1468_v38 = vadd.f32 %v6746_v10, %v1467_v35  ;;  %v4822_v39 = vpop.f32.mrb[143].mxu0  ;;  %v2451_v40 = vmax.f32 %v2001_v32, 0.0  ;;  %v2004_v41 = vadd.f32 %v6746_v10, %v2003_v36  ;;  %v5090_v42 = vpop.f32.mrb[143].mxu1  ;;  %v5367_v35 = vld [vmem:[%s7451_s0 + $0x208] sm:$0xff]  }
 0x212   :  { %v4326_v43 = vpack.c.bf16 %v2317_v37, %v2317_v37  ;;  %v2318_v44 = vmax.f32 %v1468_v38, 0.0  ;;  %4928 = vmatmul.mubr.bf16.gmra.mrb[248].mxu0 %v5361_v31  ;;  %v4460_v45 = vpack.c.bf16 %v2451_v40, %v2451_v40  ;;  %v2452_v46 = vmax.f32 %v2004_v41, 0.0  ;;  %5196 = vmatmul.mubr.bf16.gmra.mrb[248].mxu1 %v5362_v34  ;;  %v5368_v38 = vld [vmem:[%s7451_s0 + $0x420] sm:$0xff]  }
 0x213   :  { %4931 = vmatprep.mubr.msk.bf16.mxu0 %vm5374_vm0, %v5373_v0  ;;  %5199 = vmatprep.mubr.msk.bf16.mxu1 %vm5374_vm0, %v5373_v0 }
 0x214   :  { %3648 = vst.msk [vmem:[%s7453_s3 + $0x118] sm:$0xf] %vm3577_vm1, %v4326_v43  ;;  %v4327_v47 = vpack.c.bf16 %v2318_v44, %v2318_v44  ;;  %3782 = vst.msk [vmem:[%s7453_s3 + $0x330] sm:$0xf] %vm3577_vm1, %v4460_v45  ;;  %v4461_v48 = vpack.c.bf16 %v2452_v46, %v2452_v46 }
 0x215   :  { %v1472_v49 = vpop.f32.mrb[144].mxu0  ;;  %v2008_v50 = vpop.f32.mrb[144].mxu1 }
 0x216   :  { %3649 = vst.msk [vmem:[%s7453_s3 + $0x11c] sm:$0xf] %vm3577_vm1, %v4327_v47  ;;  %3783 = vst.msk [vmem:[%s7453_s3 + $0x334] sm:$0xf] %vm3577_vm1, %v4461_v48  ;;  %v1473_v51 = vadd.f32 %v6746_v10, %v1472_v49  ;;  %v4825_v52 = vpop.f32.mrb[145].mxu0  ;;  %v2009_v54 = vadd.f32 %v6746_v10, %v2008_v50  ;;  %v5093_v55 = vpop.f32.mrb[145].mxu1 }
 0x217   :  { %v1475_v57 = vpop.f32.mrb[146].mxu0  ;;  %v2011_v58 = vpop.f32.mrb[146].mxu1 }
 0x218   :  { %v2319_v59 = vmax.f32 %v1473_v51, 0.0  ;;  %v1476_v60 = vadd.f32 %v6746_v10, %v1475_v57  ;;  %v4826_v61 = vpop.f32.mrb[147].mxu0  ;;  %v2453_v62 = vmax.f32 %v2009_v54, 0.0  ;;  %v2012_v1 = vadd.f32 %v6746_v10, %v2011_v58  ;;  %v5094_v63 = vpop.f32.mrb[147].mxu1 }
 0x21a   :  { %v4328_v2 = vpack.c.bf16 %v2319_v59, %v2319_v59  ;;  %v2320_v3 = vmax.f32 %v1476_v60, 0.0  ;;  %4932 = vmatmul.mubr.bf16.gmra.mrb[252].mxu0 %v5363_v53  ;;  %v4462_v5 = vpack.c.bf16 %v2453_v62, %v2453_v62  ;;  %v2454_v6 = vmax.f32 %v2012_v1, 0.0  ;;  %5200 = vmatmul.mubr.bf16.gmra.mrb[252].mxu1 %v5364_v56  ;;  %v5369_v56 = vld [vmem:[%s7451_s0 + $0x210] sm:$0xff]  }
 0x21b   :  { %4935 = vmatprep.mubr.msk.bf16.mxu0 %vm5374_vm0, %v5373_v0  ;;  %5203 = vmatprep.mubr.msk.bf16.mxu1 %vm5374_vm0, %v5373_v0 }
 0x21c   :  { %3650 = vst.msk [vmem:[%s7453_s3 + $0x120] sm:$0xf] %vm3577_vm1, %v4328_v2  ;;  %v4329_v7 = vpack.c.bf16 %v2320_v3, %v2320_v3  ;;  %3784 = vst.msk [vmem:[%s7453_s3 + $0x338] sm:$0xf] %vm3577_vm1, %v4462_v5  ;;  %v4463_v8 = vpack.c.bf16 %v2454_v6, %v2454_v6 }
 0x21d   :  { %v1480_v9 = vpop.f32.mrb[148].mxu0  ;;  %v2016_v11 = vpop.f32.mrb[148].mxu1 }
 0x21e   :  { %3651 = vst.msk [vmem:[%s7453_s3 + $0x124] sm:$0xf] %vm3577_vm1, %v4329_v7  ;;  %3785 = vst.msk [vmem:[%s7453_s3 + $0x33c] sm:$0xf] %vm3577_vm1, %v4463_v8  ;;  %v1481_v12 = vadd.f32 %v6746_v10, %v1480_v9  ;;  %v4829_v13 = vpop.f32.mrb[149].mxu0  ;;  %v2017_v15 = vadd.f32 %v6746_v10, %v2016_v11  ;;  %v5097_v4 = vpop.f32.mrb[149].mxu1 }
 0x21f   :  { %v1483_v17 = vpop.f32.mrb[150].mxu0  ;;  %v2019_v18 = vpop.f32.mrb[150].mxu1 }
 0x220   :  { %v2321_v19 = vmax.f32 %v1481_v12, 0.0  ;;  %v1484_v20 = vadd.f32 %v6746_v10, %v1483_v17  ;;  %v4830_v21 = vpop.f32.mrb[151].mxu0  ;;  %v2455_v22 = vmax.f32 %v2017_v15, 0.0  ;;  %v2020_v23 = vadd.f32 %v6746_v10, %v2019_v18  ;;  %v5098_v24 = vpop.f32.mrb[151].mxu1 }
 0x222   :  { %v4330_v25 = vpack.c.bf16 %v2321_v19, %v2321_v19  ;;  %v2322_v26 = vmax.f32 %v1484_v20, 0.0  ;;  %4936 = vmatmul.mubr.bf16.gmra.mrb[0].mxu0 %v5365_v14  ;;  %v4464_v27 = vpack.c.bf16 %v2455_v22, %v2455_v22  ;;  %v2456_v28 = vmax.f32 %v2020_v23, 0.0  ;;  %5204 = vmatmul.mubr.bf16.gmra.mrb[0].mxu1 %v5366_v16 }
 0x223   :  { %4939 = vmatprep.mubr.msk.bf16.mxu0 %vm5374_vm0, %v5373_v0  ;;  %5207 = vmatprep.mubr.msk.bf16.mxu1 %vm5374_vm0, %v5373_v0 }
 0x224   :  { %3652 = vst.msk [vmem:[%s7453_s3 + $0x128] sm:$0xf] %vm3577_vm1, %v4330_v25  ;;  %v4331_v29 = vpack.c.bf16 %v2322_v26, %v2322_v26  ;;  %3786 = vst.msk [vmem:[%s7453_s3 + $0x340] sm:$0xf] %vm3577_vm1, %v4464_v27  ;;  %v4465_v30 = vpack.c.bf16 %v2456_v28, %v2456_v28 }
 0x225   :  { %v1488_v31 = vpop.f32.mrb[152].mxu0  ;;  %v2024_v32 = vpop.f32.mrb[152].mxu1 }
 0x226   :  { %3653 = vst.msk [vmem:[%s7453_s3 + $0x12c] sm:$0xf] %vm3577_vm1, %v4331_v29  ;;  %3787 = vst.msk [vmem:[%s7453_s3 + $0x344] sm:$0xf] %vm3577_vm1, %v4465_v30  ;;  %v1489_v33 = vadd.f32 %v6746_v10, %v1488_v31  ;;  %v4833_v34 = vpop.f32.mrb[153].mxu0  ;;  %v2025_v36 = vadd.f32 %v6746_v10, %v2024_v32  ;;  %v5101_v37 = vpop.f32.mrb[153].mxu1 }
 0x227   :  { %v1491_v39 = vpop.f32.mrb[154].mxu0  ;;  %v2027_v40 = vpop.f32.mrb[154].mxu1 }
 0x228   :  { %v2323_v41 = vmax.f32 %v1489_v33, 0.0  ;;  %v1492_v42 = vadd.f32 %v6746_v10, %v1491_v39  ;;  %v4834_v43 = vpop.f32.mrb[155].mxu0  ;;  %v2457_v44 = vmax.f32 %v2025_v36, 0.0  ;;  %v2028_v45 = vadd.f32 %v6746_v10, %v2027_v40  ;;  %v5102_v46 = vpop.f32.mrb[155].mxu1 }
 0x22a   :  { %v4332_v47 = vpack.c.bf16 %v2323_v41, %v2323_v41  ;;  %v2324_v48 = vmax.f32 %v1492_v42, 0.0  ;;  %4940 = vmatmul.mubr.bf16.gmra.mrb[4].mxu0 %v5367_v35  ;;  %v4466_v49 = vpack.c.bf16 %v2457_v44, %v2457_v44  ;;  %v2458_v50 = vmax.f32 %v2028_v45, 0.0  ;;  %5208 = vmatmul.mubr.bf16.gmra.mrb[4].mxu1 %v5368_v38 }
 0x22b   :  { %4943 = vmatprep.mubr.msk.bf16.mxu0 %vm5374_vm0, %v5373_v0 }
 0x22c   :  { %3654 = vst.msk [vmem:[%s7453_s3 + $0x130] sm:$0xf] %vm3577_vm1, %v4332_v47  ;;  %v4333_v51 = vpack.c.bf16 %v2324_v48, %v2324_v48  ;;  %3788 = vst.msk [vmem:[%s7453_s3 + $0x348] sm:$0xf] %vm3577_vm1, %v4466_v49  ;;  %v4467_v52 = vpack.c.bf16 %v2458_v50, %v2458_v50 }
 0x22d   :  { %v1496_v53 = vpop.f32.mrb[156].mxu0  ;;  %v2032_v54 = vpop.f32.mrb[156].mxu1 }
 0x22e   :  { %3655 = vst.msk [vmem:[%s7453_s3 + $0x134] sm:$0xf] %vm3577_vm1, %v4333_v51  ;;  %3789 = vst.msk [vmem:[%s7453_s3 + $0x34c] sm:$0xf] %vm3577_vm1, %v4467_v52  ;;  %v1497_v0 = vadd.f32 %v6746_v10, %v1496_v53  ;;  %v4837_v55 = vpop.f32.mrb[157].mxu0  ;;  %v2033_v57 = vadd.f32 %v6746_v10, %v2032_v54  ;;  %v5105_v58 = vpop.f32.mrb[157].mxu1 }
 0x22f   :  { %v1499_v59 = vpop.f32.mrb[158].mxu0  ;;  %v2035_v60 = vpop.f32.mrb[158].mxu1 }
 0x230   :  { %v2325_v61 = vmax.f32 %v1497_v0, 0.0  ;;  %v1500_v62 = vadd.f32 %v6746_v10, %v1499_v59  ;;  %v4838_v1 = vpop.f32.mrb[159].mxu0  ;;  %v2459_v63 = vmax.f32 %v2033_v57, 0.0  ;;  %v2036_v2 = vadd.f32 %v6746_v10, %v2035_v60  ;;  %v5106_v3 = vpop.f32.mrb[159].mxu1 }
 0x232   :  { %v4334_v5 = vpack.c.bf16 %v2325_v61, %v2325_v61  ;;  %v2326_v6 = vmax.f32 %v1500_v62, 0.0  ;;  %4944 = vmatmul.mubr.bf16.gmra.mrb[8].mxu0 %v5369_v56  ;;  %v4468_v7 = vpack.c.bf16 %v2459_v63, %v2459_v63  ;;  %v2460_v8 = vmax.f32 %v2036_v2, 0.0 }
 0x234   :  { %3656 = vst.msk [vmem:[%s7453_s3 + $0x138] sm:$0xf] %vm3577_vm1, %v4334_v5  ;;  %v4335_v9 = vpack.c.bf16 %v2326_v6, %v2326_v6  ;;  %3790 = vst.msk [vmem:[%s7453_s3 + $0x350] sm:$0xf] %vm3577_vm1, %v4468_v7  ;;  %v4469_v11 = vpack.c.bf16 %v2460_v8, %v2460_v8 }
 0x235   :  { %v1504_v12 = vpop.f32.mrb[160].mxu0  ;;  %v2040_v13 = vpop.f32.mrb[160].mxu1 }
 0x236   :  { %3657 = vst.msk [vmem:[%s7453_s3 + $0x13c] sm:$0xf] %vm3577_vm1, %v4335_v9  ;;  %3791 = vst.msk [vmem:[%s7453_s3 + $0x354] sm:$0xf] %vm3577_vm1, %v4469_v11  ;;  %v1505_v14 = vadd.f32 %v6746_v10, %v1504_v12  ;;  %v4841_v15 = vpop.f32.mrb[161].mxu0  ;;  %v2041_v4 = vadd.f32 %v6746_v10, %v2040_v13  ;;  %v5109_v16 = vpop.f32.mrb[161].mxu1 }
 0x237   :  { %v1507_v17 = vpop.f32.mrb[162].mxu0  ;;  %v2043_v18 = vpop.f32.mrb[162].mxu1 }
 0x238   :  { %v2327_v19 = vmax.f32 %v1505_v14, 0.0  ;;  %v1508_v20 = vadd.f32 %v6746_v10, %v1507_v17  ;;  %v4842_v21 = vpop.f32.mrb[163].mxu0  ;;  %v2461_v22 = vmax.f32 %v2041_v4, 0.0  ;;  %v2044_v23 = vadd.f32 %v6746_v10, %v2043_v18  ;;  %v5110_v24 = vpop.f32.mrb[163].mxu1 }
 0x23a   :  { %v4336_v25 = vpack.c.bf16 %v2327_v19, %v2327_v19  ;;  %v2328_v26 = vmax.f32 %v1508_v20, 0.0  ;;  %v4470_v27 = vpack.c.bf16 %v2461_v22, %v2461_v22  ;;  %v2462_v28 = vmax.f32 %v2044_v23, 0.0 }
 0x23c   :  { %3658 = vst.msk [vmem:[%s7453_s3 + $0x140] sm:$0xf] %vm3577_vm1, %v4336_v25  ;;  %v4337_v29 = vpack.c.bf16 %v2328_v26, %v2328_v26  ;;  %3792 = vst.msk [vmem:[%s7453_s3 + $0x358] sm:$0xf] %vm3577_vm1, %v4470_v27  ;;  %v4471_v30 = vpack.c.bf16 %v2462_v28, %v2462_v28 }
 0x23d   :  { %v1512_v31 = vpop.f32.mrb[164].mxu0  ;;  %v2048_v32 = vpop.f32.mrb[164].mxu1 }
 0x23e   :  { %3659 = vst.msk [vmem:[%s7453_s3 + $0x144] sm:$0xf] %vm3577_vm1, %v4337_v29  ;;  %3793 = vst.msk [vmem:[%s7453_s3 + $0x35c] sm:$0xf] %vm3577_vm1, %v4471_v30  ;;  %v1513_v33 = vadd.f32 %v6746_v10, %v1512_v31  ;;  %v4845_v34 = vpop.f32.mrb[165].mxu0  ;;  %v2049_v35 = vadd.f32 %v6746_v10, %v2048_v32  ;;  %v5113_v36 = vpop.f32.mrb[165].mxu1 }
 0x23f   :  { %v1515_v37 = vpop.f32.mrb[166].mxu0  ;;  %v2051_v38 = vpop.f32.mrb[166].mxu1 }
 0x240   :  { %v2329_v39 = vmax.f32 %v1513_v33, 0.0  ;;  %v1516_v40 = vadd.f32 %v6746_v10, %v1515_v37  ;;  %v4846_v41 = vpop.f32.mrb[167].mxu0  ;;  %v2463_v42 = vmax.f32 %v2049_v35, 0.0  ;;  %v2052_v43 = vadd.f32 %v6746_v10, %v2051_v38  ;;  %v5114_v44 = vpop.f32.mrb[167].mxu1 }
 0x242   :  { %v4338_v45 = vpack.c.bf16 %v2329_v39, %v2329_v39  ;;  %v2330_v46 = vmax.f32 %v1516_v40, 0.0  ;;  %v4472_v47 = vpack.c.bf16 %v2463_v42, %v2463_v42  ;;  %v2464_v48 = vmax.f32 %v2052_v43, 0.0 }
 0x244   :  { %3660 = vst.msk [vmem:[%s7453_s3 + $0x148] sm:$0xf] %vm3577_vm1, %v4338_v45  ;;  %v4339_v49 = vpack.c.bf16 %v2330_v46, %v2330_v46  ;;  %3794 = vst.msk [vmem:[%s7453_s3 + $0x360] sm:$0xf] %vm3577_vm1, %v4472_v47  ;;  %v4473_v50 = vpack.c.bf16 %v2464_v48, %v2464_v48 }
 0x245   :  { %v1520_v51 = vpop.f32.mrb[168].mxu0  ;;  %v2056_v52 = vpop.f32.mrb[168].mxu1 }
 0x246   :  { %3661 = vst.msk [vmem:[%s7453_s3 + $0x14c] sm:$0xf] %vm3577_vm1, %v4339_v49  ;;  %3795 = vst.msk [vmem:[%s7453_s3 + $0x364] sm:$0xf] %vm3577_vm1, %v4473_v50  ;;  %v1521_v53 = vadd.f32 %v6746_v10, %v1520_v51  ;;  %v4849_v54 = vpop.f32.mrb[169].mxu0  ;;  %v2057_v0 = vadd.f32 %v6746_v10, %v2056_v52  ;;  %v5117_v55 = vpop.f32.mrb[169].mxu1 }
 0x247   :  { %v1523_v56 = vpop.f32.mrb[170].mxu0  ;;  %v2059_v57 = vpop.f32.mrb[170].mxu1 }
 0x248   :  { %v2331_v58 = vmax.f32 %v1521_v53, 0.0  ;;  %v1524_v59 = vadd.f32 %v6746_v10, %v1523_v56  ;;  %v4850_v60 = vpop.f32.mrb[171].mxu0  ;;  %v2465_v61 = vmax.f32 %v2057_v0, 0.0  ;;  %v2060_v62 = vadd.f32 %v6746_v10, %v2059_v57  ;;  %v5118_v1 = vpop.f32.mrb[171].mxu1 }
 0x24a   :  { %v4340_v63 = vpack.c.bf16 %v2331_v58, %v2331_v58  ;;  %v2332_v2 = vmax.f32 %v1524_v59, 0.0  ;;  %v4474_v3 = vpack.c.bf16 %v2465_v61, %v2465_v61  ;;  %v2466_v5 = vmax.f32 %v2060_v62, 0.0 }
 0x24c   :  { %3662 = vst.msk [vmem:[%s7453_s3 + $0x150] sm:$0xf] %vm3577_vm1, %v4340_v63  ;;  %v4341_v6 = vpack.c.bf16 %v2332_v2, %v2332_v2  ;;  %3796 = vst.msk [vmem:[%s7453_s3 + $0x368] sm:$0xf] %vm3577_vm1, %v4474_v3  ;;  %v4475_v7 = vpack.c.bf16 %v2466_v5, %v2466_v5 }
 0x24d   :  { %v1528_v8 = vpop.f32.mrb[172].mxu0  ;;  %v2064_v9 = vpop.f32.mrb[172].mxu1 }
 0x24e   :  { %3663 = vst.msk [vmem:[%s7453_s3 + $0x154] sm:$0xf] %vm3577_vm1, %v4341_v6  ;;  %3797 = vst.msk [vmem:[%s7453_s3 + $0x36c] sm:$0xf] %vm3577_vm1, %v4475_v7  ;;  %v1529_v11 = vadd.f32 %v6746_v10, %v1528_v8  ;;  %v4853_v12 = vpop.f32.mrb[173].mxu0  ;;  %v2065_v13 = vadd.f32 %v6746_v10, %v2064_v9  ;;  %v5121_v14 = vpop.f32.mrb[173].mxu1 }
 0x24f   :  { %v1531_v15 = vpop.f32.mrb[174].mxu0  ;;  %v2067_v4 = vpop.f32.mrb[174].mxu1 }
 0x250   :  { %v2333_v16 = vmax.f32 %v1529_v11, 0.0  ;;  %v1532_v17 = vadd.f32 %v6746_v10, %v1531_v15  ;;  %v4854_v18 = vpop.f32.mrb[175].mxu0  ;;  %v2467_v19 = vmax.f32 %v2065_v13, 0.0  ;;  %v2068_v20 = vadd.f32 %v6746_v10, %v2067_v4  ;;  %v5122_v21 = vpop.f32.mrb[175].mxu1 }
 0x252   :  { %v4342_v22 = vpack.c.bf16 %v2333_v16, %v2333_v16  ;;  %v2334_v23 = vmax.f32 %v1532_v17, 0.0  ;;  %v4476_v24 = vpack.c.bf16 %v2467_v19, %v2467_v19  ;;  %v2468_v25 = vmax.f32 %v2068_v20, 0.0 }
 0x254   :  { %3664 = vst.msk [vmem:[%s7453_s3 + $0x158] sm:$0xf] %vm3577_vm1, %v4342_v22  ;;  %v4343_v26 = vpack.c.bf16 %v2334_v23, %v2334_v23  ;;  %3798 = vst.msk [vmem:[%s7453_s3 + $0x370] sm:$0xf] %vm3577_vm1, %v4476_v24  ;;  %v4477_v27 = vpack.c.bf16 %v2468_v25, %v2468_v25 }
 0x255   :  { %v1536_v28 = vpop.f32.mrb[176].mxu0  ;;  %v2072_v29 = vpop.f32.mrb[176].mxu1 }
 0x256   :  { %3665 = vst.msk [vmem:[%s7453_s3 + $0x15c] sm:$0xf] %vm3577_vm1, %v4343_v26  ;;  %3799 = vst.msk [vmem:[%s7453_s3 + $0x374] sm:$0xf] %vm3577_vm1, %v4477_v27  ;;  %v1537_v30 = vadd.f32 %v6746_v10, %v1536_v28  ;;  %v4857_v31 = vpop.f32.mrb[177].mxu0  ;;  %v2073_v32 = vadd.f32 %v6746_v10, %v2072_v29  ;;  %v5125_v33 = vpop.f32.mrb[177].mxu1 }
 0x257   :  { %v1539_v34 = vpop.f32.mrb[178].mxu0  ;;  %v2075_v35 = vpop.f32.mrb[178].mxu1 }
 0x258   :  { %v2335_v36 = vmax.f32 %v1537_v30, 0.0  ;;  %v1540_v37 = vadd.f32 %v6746_v10, %v1539_v34  ;;  %v4858_v38 = vpop.f32.mrb[179].mxu0  ;;  %v2469_v39 = vmax.f32 %v2073_v32, 0.0  ;;  %v2076_v40 = vadd.f32 %v6746_v10, %v2075_v35  ;;  %v5126_v41 = vpop.f32.mrb[179].mxu1 }
 0x25a   :  { %v4344_v42 = vpack.c.bf16 %v2335_v36, %v2335_v36  ;;  %v2336_v43 = vmax.f32 %v1540_v37, 0.0  ;;  %v4478_v44 = vpack.c.bf16 %v2469_v39, %v2469_v39  ;;  %v2470_v45 = vmax.f32 %v2076_v40, 0.0 }
 0x25c   :  { %3666 = vst.msk [vmem:[%s7453_s3 + $0x160] sm:$0xf] %vm3577_vm1, %v4344_v42  ;;  %v4345_v46 = vpack.c.bf16 %v2336_v43, %v2336_v43  ;;  %3800 = vst.msk [vmem:[%s7453_s3 + $0x378] sm:$0xf] %vm3577_vm1, %v4478_v44  ;;  %v4479_v47 = vpack.c.bf16 %v2470_v45, %v2470_v45 }
 0x25d   :  { %v1544_v48 = vpop.f32.mrb[180].mxu0  ;;  %v2080_v49 = vpop.f32.mrb[180].mxu1 }
 0x25e   :  { %3667 = vst.msk [vmem:[%s7453_s3 + $0x164] sm:$0xf] %vm3577_vm1, %v4345_v46  ;;  %3801 = vst.msk [vmem:[%s7453_s3 + $0x37c] sm:$0xf] %vm3577_vm1, %v4479_v47  ;;  %v1545_v50 = vadd.f32 %v6746_v10, %v1544_v48  ;;  %v4861_v51 = vpop.f32.mrb[181].mxu0  ;;  %v2081_v52 = vadd.f32 %v6746_v10, %v2080_v49  ;;  %v5129_v53 = vpop.f32.mrb[181].mxu1 }
 0x25f   :  { %v1547_v54 = vpop.f32.mrb[182].mxu0  ;;  %v2083_v0 = vpop.f32.mrb[182].mxu1 }
 0x260   :  { %v2337_v55 = vmax.f32 %v1545_v50, 0.0  ;;  %v1548_v56 = vadd.f32 %v6746_v10, %v1547_v54  ;;  %v4862_v57 = vpop.f32.mrb[183].mxu0  ;;  %v2471_v58 = vmax.f32 %v2081_v52, 0.0  ;;  %v2084_v59 = vadd.f32 %v6746_v10, %v2083_v0  ;;  %v5130_v60 = vpop.f32.mrb[183].mxu1 }
 0x262   :  { %v4346_v61 = vpack.c.bf16 %v2337_v55, %v2337_v55  ;;  %v2338_v62 = vmax.f32 %v1548_v56, 0.0  ;;  %v4480_v1 = vpack.c.bf16 %v2471_v58, %v2471_v58  ;;  %v2472_v63 = vmax.f32 %v2084_v59, 0.0 }
 0x264   :  { %3668 = vst.msk [vmem:[%s7453_s3 + $0x168] sm:$0xf] %vm3577_vm1, %v4346_v61  ;;  %v4347_v2 = vpack.c.bf16 %v2338_v62, %v2338_v62  ;;  %3802 = vst.msk [vmem:[%s7453_s3 + $0x380] sm:$0xf] %vm3577_vm1, %v4480_v1  ;;  %v4481_v3 = vpack.c.bf16 %v2472_v63, %v2472_v63 }
 0x265   :  { %v1552_v5 = vpop.f32.mrb[184].mxu0  ;;  %v2088_v6 = vpop.f32.mrb[184].mxu1 }
 0x266   :  { %3669 = vst.msk [vmem:[%s7453_s3 + $0x16c] sm:$0xf] %vm3577_vm1, %v4347_v2  ;;  %3803 = vst.msk [vmem:[%s7453_s3 + $0x384] sm:$0xf] %vm3577_vm1, %v4481_v3  ;;  %v1553_v7 = vadd.f32 %v6746_v10, %v1552_v5  ;;  %v4865_v8 = vpop.f32.mrb[185].mxu0  ;;  %v2089_v9 = vadd.f32 %v6746_v10, %v2088_v6  ;;  %v5133_v11 = vpop.f32.mrb[185].mxu1 }
 0x267   :  { %v1555_v12 = vpop.f32.mrb[186].mxu0  ;;  %v2091_v13 = vpop.f32.mrb[186].mxu1 }
 0x268   :  { %v2339_v14 = vmax.f32 %v1553_v7, 0.0  ;;  %v1556_v15 = vadd.f32 %v6746_v10, %v1555_v12  ;;  %v4866_v4 = vpop.f32.mrb[187].mxu0  ;;  %v2473_v16 = vmax.f32 %v2089_v9, 0.0  ;;  %v2092_v17 = vadd.f32 %v6746_v10, %v2091_v13  ;;  %v5134_v18 = vpop.f32.mrb[187].mxu1 }
 0x26a   :  { %v4348_v19 = vpack.c.bf16 %v2339_v14, %v2339_v14  ;;  %v2340_v20 = vmax.f32 %v1556_v15, 0.0  ;;  %v4482_v21 = vpack.c.bf16 %v2473_v16, %v2473_v16  ;;  %v2474_v22 = vmax.f32 %v2092_v17, 0.0 }
 0x26c   :  { %3670 = vst.msk [vmem:[%s7453_s3 + $0x170] sm:$0xf] %vm3577_vm1, %v4348_v19  ;;  %v4349_v23 = vpack.c.bf16 %v2340_v20, %v2340_v20  ;;  %3804 = vst.msk [vmem:[%s7453_s3 + $0x388] sm:$0xf] %vm3577_vm1, %v4482_v21  ;;  %v4483_v24 = vpack.c.bf16 %v2474_v22, %v2474_v22 }
 0x26d   :  { %v1560_v25 = vpop.f32.mrb[188].mxu0  ;;  %v2096_v26 = vpop.f32.mrb[188].mxu1 }
 0x26e   :  { %3671 = vst.msk [vmem:[%s7453_s3 + $0x174] sm:$0xf] %vm3577_vm1, %v4349_v23  ;;  %3805 = vst.msk [vmem:[%s7453_s3 + $0x38c] sm:$0xf] %vm3577_vm1, %v4483_v24  ;;  %v1561_v27 = vadd.f32 %v6746_v10, %v1560_v25  ;;  %v4869_v28 = vpop.f32.mrb[189].mxu0  ;;  %v2097_v29 = vadd.f32 %v6746_v10, %v2096_v26  ;;  %v5137_v30 = vpop.f32.mrb[189].mxu1 }
 0x26f   :  { %v1563_v31 = vpop.f32.mrb[190].mxu0  ;;  %v2099_v32 = vpop.f32.mrb[190].mxu1 }
 0x270   :  { %v2341_v33 = vmax.f32 %v1561_v27, 0.0  ;;  %v1564_v34 = vadd.f32 %v6746_v10, %v1563_v31  ;;  %v4870_v35 = vpop.f32.mrb[191].mxu0  ;;  %v2475_v36 = vmax.f32 %v2097_v29, 0.0  ;;  %v2100_v37 = vadd.f32 %v6746_v10, %v2099_v32  ;;  %v5138_v38 = vpop.f32.mrb[191].mxu1 }
 0x272   :  { %v4350_v39 = vpack.c.bf16 %v2341_v33, %v2341_v33  ;;  %v2342_v40 = vmax.f32 %v1564_v34, 0.0  ;;  %v4484_v41 = vpack.c.bf16 %v2475_v36, %v2475_v36  ;;  %v2476_v42 = vmax.f32 %v2100_v37, 0.0 }
 0x274   :  { %3672 = vst.msk [vmem:[%s7453_s3 + $0x178] sm:$0xf] %vm3577_vm1, %v4350_v39  ;;  %v4351_v43 = vpack.c.bf16 %v2342_v40, %v2342_v40  ;;  %3806 = vst.msk [vmem:[%s7453_s3 + $0x390] sm:$0xf] %vm3577_vm1, %v4484_v41  ;;  %v4485_v44 = vpack.c.bf16 %v2476_v42, %v2476_v42 }
 0x275   :  { %v1568_v45 = vpop.f32.mrb[192].mxu0  ;;  %v2104_v46 = vpop.f32.mrb[192].mxu1 }
 0x276   :  { %3673 = vst.msk [vmem:[%s7453_s3 + $0x17c] sm:$0xf] %vm3577_vm1, %v4351_v43  ;;  %3807 = vst.msk [vmem:[%s7453_s3 + $0x394] sm:$0xf] %vm3577_vm1, %v4485_v44  ;;  %v1569_v47 = vadd.f32 %v6746_v10, %v1568_v45  ;;  %v4873_v48 = vpop.f32.mrb[193].mxu0  ;;  %v2105_v49 = vadd.f32 %v6746_v10, %v2104_v46  ;;  %v5141_v50 = vpop.f32.mrb[193].mxu1 }
 0x277   :  { %v1571_v51 = vpop.f32.mrb[194].mxu0  ;;  %v2107_v52 = vpop.f32.mrb[194].mxu1 }
 0x278   :  { %v2343_v53 = vmax.f32 %v1569_v47, 0.0  ;;  %v1572_v54 = vadd.f32 %v6746_v10, %v1571_v51  ;;  %v4874_v0 = vpop.f32.mrb[195].mxu0  ;;  %v2477_v55 = vmax.f32 %v2105_v49, 0.0  ;;  %v2108_v56 = vadd.f32 %v6746_v10, %v2107_v52  ;;  %v5142_v57 = vpop.f32.mrb[195].mxu1 }
 0x27a   :  { %v4352_v58 = vpack.c.bf16 %v2343_v53, %v2343_v53  ;;  %v2344_v59 = vmax.f32 %v1572_v54, 0.0  ;;  %v4486_v60 = vpack.c.bf16 %v2477_v55, %v2477_v55  ;;  %v2478_v61 = vmax.f32 %v2108_v56, 0.0 }
 0x27c   :  { %3674 = vst.msk [vmem:[%s7453_s3 + $0x180] sm:$0xf] %vm3577_vm1, %v4352_v58  ;;  %v4353_v62 = vpack.c.bf16 %v2344_v59, %v2344_v59  ;;  %3808 = vst.msk [vmem:[%s7453_s3 + $0x398] sm:$0xf] %vm3577_vm1, %v4486_v60  ;;  %v4487_v1 = vpack.c.bf16 %v2478_v61, %v2478_v61 }
 0x27d   :  { %v1576_v63 = vpop.f32.mrb[196].mxu0  ;;  %v2112_v2 = vpop.f32.mrb[196].mxu1 }
 0x27e   :  { %3675 = vst.msk [vmem:[%s7453_s3 + $0x184] sm:$0xf] %vm3577_vm1, %v4353_v62  ;;  %3809 = vst.msk [vmem:[%s7453_s3 + $0x39c] sm:$0xf] %vm3577_vm1, %v4487_v1  ;;  %v1577_v3 = vadd.f32 %v6746_v10, %v1576_v63  ;;  %v4877_v5 = vpop.f32.mrb[197].mxu0  ;;  %v2113_v6 = vadd.f32 %v6746_v10, %v2112_v2  ;;  %v5145_v7 = vpop.f32.mrb[197].mxu1 }
 0x27f   :  { %v1579_v8 = vpop.f32.mrb[198].mxu0  ;;  %v2115_v9 = vpop.f32.mrb[198].mxu1 }
 0x280   :  { %v2345_v11 = vmax.f32 %v1577_v3, 0.0  ;;  %v1580_v12 = vadd.f32 %v6746_v10, %v1579_v8  ;;  %v4878_v13 = vpop.f32.mrb[199].mxu0  ;;  %v2479_v14 = vmax.f32 %v2113_v6, 0.0  ;;  %v2116_v15 = vadd.f32 %v6746_v10, %v2115_v9  ;;  %v5146_v4 = vpop.f32.mrb[199].mxu1 }
 0x282   :  { %v4354_v16 = vpack.c.bf16 %v2345_v11, %v2345_v11  ;;  %v2346_v17 = vmax.f32 %v1580_v12, 0.0  ;;  %v4488_v18 = vpack.c.bf16 %v2479_v14, %v2479_v14  ;;  %v2480_v19 = vmax.f32 %v2116_v15, 0.0 }
 0x284   :  { %3676 = vst.msk [vmem:[%s7453_s3 + $0x188] sm:$0xf] %vm3577_vm1, %v4354_v16  ;;  %v4355_v20 = vpack.c.bf16 %v2346_v17, %v2346_v17  ;;  %3810 = vst.msk [vmem:[%s7453_s3 + $0x3a0] sm:$0xf] %vm3577_vm1, %v4488_v18  ;;  %v4489_v21 = vpack.c.bf16 %v2480_v19, %v2480_v19 }
 0x285   :  { %v1584_v22 = vpop.f32.mrb[200].mxu0  ;;  %v2120_v23 = vpop.f32.mrb[200].mxu1 }
 0x286   :  { %3677 = vst.msk [vmem:[%s7453_s3 + $0x18c] sm:$0xf] %vm3577_vm1, %v4355_v20  ;;  %3811 = vst.msk [vmem:[%s7453_s3 + $0x3a4] sm:$0xf] %vm3577_vm1, %v4489_v21  ;;  %v1585_v24 = vadd.f32 %v6746_v10, %v1584_v22  ;;  %v4881_v25 = vpop.f32.mrb[201].mxu0  ;;  %v2121_v26 = vadd.f32 %v6746_v10, %v2120_v23  ;;  %v5149_v27 = vpop.f32.mrb[201].mxu1 }
 0x287   :  { %v1587_v28 = vpop.f32.mrb[202].mxu0  ;;  %v2123_v29 = vpop.f32.mrb[202].mxu1 }
 0x288   :  { %v2347_v30 = vmax.f32 %v1585_v24, 0.0  ;;  %v1588_v31 = vadd.f32 %v6746_v10, %v1587_v28  ;;  %v4882_v32 = vpop.f32.mrb[203].mxu0  ;;  %v2481_v33 = vmax.f32 %v2121_v26, 0.0  ;;  %v2124_v34 = vadd.f32 %v6746_v10, %v2123_v29  ;;  %v5150_v35 = vpop.f32.mrb[203].mxu1 }
 0x28a   :  { %v4356_v36 = vpack.c.bf16 %v2347_v30, %v2347_v30  ;;  %v2348_v37 = vmax.f32 %v1588_v31, 0.0  ;;  %v4490_v38 = vpack.c.bf16 %v2481_v33, %v2481_v33  ;;  %v2482_v39 = vmax.f32 %v2124_v34, 0.0 }
 0x28c   :  { %3678 = vst.msk [vmem:[%s7453_s3 + $0x190] sm:$0xf] %vm3577_vm1, %v4356_v36  ;;  %v4357_v40 = vpack.c.bf16 %v2348_v37, %v2348_v37  ;;  %3812 = vst.msk [vmem:[%s7453_s3 + $0x3a8] sm:$0xf] %vm3577_vm1, %v4490_v38  ;;  %v4491_v41 = vpack.c.bf16 %v2482_v39, %v2482_v39 }
 0x28d   :  { %v1592_v42 = vpop.f32.mrb[204].mxu0  ;;  %v2128_v43 = vpop.f32.mrb[204].mxu1 }
 0x28e   :  { %3679 = vst.msk [vmem:[%s7453_s3 + $0x194] sm:$0xf] %vm3577_vm1, %v4357_v40  ;;  %3813 = vst.msk [vmem:[%s7453_s3 + $0x3ac] sm:$0xf] %vm3577_vm1, %v4491_v41  ;;  %v1593_v44 = vadd.f32 %v6746_v10, %v1592_v42  ;;  %v4885_v45 = vpop.f32.mrb[205].mxu0  ;;  %v2129_v46 = vadd.f32 %v6746_v10, %v2128_v43  ;;  %v5153_v47 = vpop.f32.mrb[205].mxu1 }
 0x28f   :  { %v1595_v48 = vpop.f32.mrb[206].mxu0  ;;  %v2131_v49 = vpop.f32.mrb[206].mxu1 }
 0x290   :  { %v2349_v50 = vmax.f32 %v1593_v44, 0.0  ;;  %v1596_v51 = vadd.f32 %v6746_v10, %v1595_v48  ;;  %v4886_v52 = vpop.f32.mrb[207].mxu0  ;;  %v2483_v53 = vmax.f32 %v2129_v46, 0.0  ;;  %v2132_v54 = vadd.f32 %v6746_v10, %v2131_v49  ;;  %v5154_v0 = vpop.f32.mrb[207].mxu1  ;;  %v7200_v48 = vld [vmem:[%s7452_s2] ss:$0 sm:$0xff] }
 0x292   :  { %v4358_v55 = vpack.c.bf16 %v2349_v50, %v2349_v50  ;;  %v2350_v56 = vmax.f32 %v1596_v51, 0.0  ;;  %v4492_v57 = vpack.c.bf16 %v2483_v53, %v2483_v53  ;;  %v2484_v58 = vmax.f32 %v2132_v54, 0.0 }
 0x294   :  { %3680 = vst.msk [vmem:[%s7453_s3 + $0x198] sm:$0xf] %vm3577_vm1, %v4358_v55  ;;  %v4359_v59 = vpack.c.bf16 %v2350_v56, %v2350_v56  ;;  %3814 = vst.msk [vmem:[%s7453_s3 + $0x3b0] sm:$0xf] %vm3577_vm1, %v4492_v57  ;;  %v4493_v60 = vpack.c.bf16 %v2484_v58, %v2484_v58 }
 0x295   :  { %v1600_v61 = vpop.f32.mrb[208].mxu0  ;;  %v2136_v62 = vpop.f32.mrb[208].mxu1 }
 0x296   :  { %3681 = vst.msk [vmem:[%s7453_s3 + $0x19c] sm:$0xf] %vm3577_vm1, %v4359_v59  ;;  %3815 = vst.msk [vmem:[%s7453_s3 + $0x3b4] sm:$0xf] %vm3577_vm1, %v4493_v60  ;;  %v1601_v1 = vadd.f32 %v6746_v10, %v1600_v61  ;;  %v4889_v63 = vpop.f32.mrb[209].mxu0  ;;  %v2137_v2 = vadd.f32 %v6746_v10, %v2136_v62  ;;  %v5157_v3 = vpop.f32.mrb[209].mxu1 }
 0x297   :  { %v1603_v5 = vpop.f32.mrb[210].mxu0  ;;  %v2139_v6 = vpop.f32.mrb[210].mxu1 }
 0x298   :  { %v2351_v7 = vmax.f32 %v1601_v1, 0.0  ;;  %v1604_v8 = vadd.f32 %v6746_v10, %v1603_v5  ;;  %v4890_v9 = vpop.f32.mrb[211].mxu0  ;;  %v2485_v11 = vmax.f32 %v2137_v2, 0.0  ;;  %v2140_v12 = vadd.f32 %v6746_v10, %v2139_v6  ;;  %v5158_v13 = vpop.f32.mrb[211].mxu1 }
 0x29a   :  { %v4360_v14 = vpack.c.bf16 %v2351_v7, %v2351_v7  ;;  %v2352_v15 = vmax.f32 %v1604_v8, 0.0  ;;  %v4494_v4 = vpack.c.bf16 %v2485_v11, %v2485_v11  ;;  %v2486_v16 = vmax.f32 %v2140_v12, 0.0 }
 0x29c   :  { %3682 = vst.msk [vmem:[%s7453_s3 + $0x1a0] sm:$0xf] %vm3577_vm1, %v4360_v14  ;;  %v4361_v17 = vpack.c.bf16 %v2352_v15, %v2352_v15  ;;  %3816 = vst.msk [vmem:[%s7453_s3 + $0x3b8] sm:$0xf] %vm3577_vm1, %v4494_v4  ;;  %v4495_v18 = vpack.c.bf16 %v2486_v16, %v2486_v16 }
 0x29d   :  { %v1608_v19 = vpop.f32.mrb[212].mxu0  ;;  %v2144_v20 = vpop.f32.mrb[212].mxu1 }
 0x29e   :  { %3683 = vst.msk [vmem:[%s7453_s3 + $0x1a4] sm:$0xf] %vm3577_vm1, %v4361_v17  ;;  %3817 = vst.msk [vmem:[%s7453_s3 + $0x3bc] sm:$0xf] %vm3577_vm1, %v4495_v18  ;;  %v1609_v21 = vadd.f32 %v6746_v10, %v1608_v19  ;;  %v4893_v22 = vpop.f32.mrb[213].mxu0  ;;  %v2145_v23 = vadd.f32 %v6746_v10, %v2144_v20  ;;  %v5161_v24 = vpop.f32.mrb[213].mxu1 }
 0x29f   :  { %v1611_v25 = vpop.f32.mrb[214].mxu0  ;;  %v2147_v26 = vpop.f32.mrb[214].mxu1 }
 0x2a0   :  { %v2353_v27 = vmax.f32 %v1609_v21, 0.0  ;;  %v1612_v28 = vadd.f32 %v6746_v10, %v1611_v25  ;;  %v4894_v29 = vpop.f32.mrb[215].mxu0  ;;  %v2487_v30 = vmax.f32 %v2145_v23, 0.0  ;;  %v2148_v31 = vadd.f32 %v6746_v10, %v2147_v26  ;;  %v5162_v32 = vpop.f32.mrb[215].mxu1 }
 0x2a2   :  { %v4362_v33 = vpack.c.bf16 %v2353_v27, %v2353_v27  ;;  %v2354_v34 = vmax.f32 %v1612_v28, 0.0  ;;  %v4496_v35 = vpack.c.bf16 %v2487_v30, %v2487_v30  ;;  %v2488_v36 = vmax.f32 %v2148_v31, 0.0 }
 0x2a4   :  { %3684 = vst.msk [vmem:[%s7453_s3 + $0x1a8] sm:$0xf] %vm3577_vm1, %v4362_v33  ;;  %v4363_v37 = vpack.c.bf16 %v2354_v34, %v2354_v34  ;;  %3818 = vst.msk [vmem:[%s7453_s3 + $0x3c0] sm:$0xf] %vm3577_vm1, %v4496_v35  ;;  %v4497_v38 = vpack.c.bf16 %v2488_v36, %v2488_v36 }
 0x2a5   :  { %v1616_v39 = vpop.f32.mrb[216].mxu0  ;;  %v2152_v40 = vpop.f32.mrb[216].mxu1 }
 0x2a6   :  { %3685 = vst.msk [vmem:[%s7453_s3 + $0x1ac] sm:$0xf] %vm3577_vm1, %v4363_v37  ;;  %3819 = vst.msk [vmem:[%s7453_s3 + $0x3c4] sm:$0xf] %vm3577_vm1, %v4497_v38  ;;  %v1617_v41 = vadd.f32 %v6746_v10, %v1616_v39  ;;  %v4897_v42 = vpop.f32.mrb[217].mxu0  ;;  %v2153_v43 = vadd.f32 %v6746_v10, %v2152_v40  ;;  %v5165_v44 = vpop.f32.mrb[217].mxu1 }
 0x2a7   :  { %v1619_v45 = vpop.f32.mrb[218].mxu0  ;;  %v2155_v46 = vpop.f32.mrb[218].mxu1 }
 0x2a8   :  { %v2355_v47 = vmax.f32 %v1617_v41, 0.0  ;;  %v1620_v49 = vadd.f32 %v7200_v48, %v1619_v45  ;;  %v4898_v50 = vpop.f32.mrb[219].mxu0  ;;  %v2489_v51 = vmax.f32 %v2153_v43, 0.0  ;;  %v2156_v52 = vadd.f32 %v7200_v48, %v2155_v46  ;;  %v5166_v53 = vpop.f32.mrb[219].mxu1 }
 0x2aa   :  { %v4364_v54 = vpack.c.bf16 %v2355_v47, %v2355_v47  ;;  %v2356_v0 = vmax.f32 %v1620_v49, 0.0  ;;  %v4498_v55 = vpack.c.bf16 %v2489_v51, %v2489_v51  ;;  %v2490_v10 = vmax.f32 %v2156_v52, 0.0 }
 0x2ac   :  { %3686 = vst.msk [vmem:[%s7453_s3 + $0x1b0] sm:$0xf] %vm3577_vm1, %v4364_v54  ;;  %v4365_v56 = vpack.c.bf16 %v2356_v0, %v2356_v0  ;;  %3820 = vst.msk [vmem:[%s7453_s3 + $0x3c8] sm:$0xf] %vm3577_vm1, %v4498_v55  ;;  %v4499_v57 = vpack.c.bf16 %v2490_v10, %v2490_v10 }
 0x2ad   :  { %v1624_v58 = vpop.f32.mrb[220].mxu0  ;;  %v2160_v59 = vpop.f32.mrb[220].mxu1 }
 0x2ae   :  { %3687 = vst.msk [vmem:[%s7453_s3 + $0x1b4] sm:$0xf] %vm3577_vm1, %v4365_v56  ;;  %3821 = vst.msk [vmem:[%s7453_s3 + $0x3cc] sm:$0xf] %vm3577_vm1, %v4499_v57  ;;  %v1625_v60 = vadd.f32 %v7200_v48, %v1624_v58  ;;  %v4901_v61 = vpop.f32.mrb[221].mxu0  ;;  %v2161_v62 = vadd.f32 %v7200_v48, %v2160_v59  ;;  %v5169_v1 = vpop.f32.mrb[221].mxu1 }
 0x2af   :  { %v1627_v63 = vpop.f32.mrb[222].mxu0  ;;  %v2163_v2 = vpop.f32.mrb[222].mxu1 }
 0x2b0   :  { %v2357_v3 = vmax.f32 %v1625_v60, 0.0  ;;  %v1628_v5 = vadd.f32 %v7200_v48, %v1627_v63  ;;  %v4902_v6 = vpop.f32.mrb[223].mxu0  ;;  %v2491_v7 = vmax.f32 %v2161_v62, 0.0  ;;  %v2164_v8 = vadd.f32 %v7200_v48, %v2163_v2  ;;  %v5170_v9 = vpop.f32.mrb[223].mxu1 }
 0x2b2   :  { %v4366_v11 = vpack.c.bf16 %v2357_v3, %v2357_v3  ;;  %v2358_v12 = vmax.f32 %v1628_v5, 0.0  ;;  %v4500_v13 = vpack.c.bf16 %v2491_v7, %v2491_v7  ;;  %v2492_v14 = vmax.f32 %v2164_v8, 0.0 }
 0x2b4   :  { %3688 = vst.msk [vmem:[%s7453_s3 + $0x1b8] sm:$0xf] %vm3577_vm1, %v4366_v11  ;;  %v4367_v15 = vpack.c.bf16 %v2358_v12, %v2358_v12  ;;  %3822 = vst.msk [vmem:[%s7453_s3 + $0x3d0] sm:$0xf] %vm3577_vm1, %v4500_v13  ;;  %v4501_v4 = vpack.c.bf16 %v2492_v14, %v2492_v14 }
 0x2b5   :  { %v1632_v16 = vpop.f32.mrb[224].mxu0  ;;  %v2168_v17 = vpop.f32.mrb[224].mxu1 }
 0x2b6   :  { %3689 = vst.msk [vmem:[%s7453_s3 + $0x1bc] sm:$0xf] %vm3577_vm1, %v4367_v15  ;;  %3823 = vst.msk [vmem:[%s7453_s3 + $0x3d4] sm:$0xf] %vm3577_vm1, %v4501_v4  ;;  %v1633_v18 = vadd.f32 %v7200_v48, %v1632_v16  ;;  %v4905_v19 = vpop.f32.mrb[225].mxu0  ;;  %v2169_v20 = vadd.f32 %v7200_v48, %v2168_v17  ;;  %v5173_v21 = vpop.f32.mrb[225].mxu1 }
 0x2b7   :  { %v1635_v22 = vpop.f32.mrb[226].mxu0  ;;  %v2171_v23 = vpop.f32.mrb[226].mxu1 }
 0x2b8   :  { %v2359_v24 = vmax.f32 %v1633_v18, 0.0  ;;  %v1636_v25 = vadd.f32 %v7200_v48, %v1635_v22  ;;  %v4906_v26 = vpop.f32.mrb[227].mxu0  ;;  %v2493_v27 = vmax.f32 %v2169_v20, 0.0  ;;  %v2172_v28 = vadd.f32 %v7200_v48, %v2171_v23  ;;  %v5174_v29 = vpop.f32.mrb[227].mxu1 }
 0x2ba   :  { %v4368_v30 = vpack.c.bf16 %v2359_v24, %v2359_v24  ;;  %v2360_v31 = vmax.f32 %v1636_v25, 0.0  ;;  %v4502_v32 = vpack.c.bf16 %v2493_v27, %v2493_v27  ;;  %v2494_v33 = vmax.f32 %v2172_v28, 0.0 }
 0x2bc   :  { %3690 = vst.msk [vmem:[%s7453_s3 + $0x1c0] sm:$0xf] %vm3577_vm1, %v4368_v30  ;;  %v4369_v34 = vpack.c.bf16 %v2360_v31, %v2360_v31  ;;  %3824 = vst.msk [vmem:[%s7453_s3 + $0x3d8] sm:$0xf] %vm3577_vm1, %v4502_v32  ;;  %v4503_v35 = vpack.c.bf16 %v2494_v33, %v2494_v33 }
 0x2bd   :  { %v1640_v36 = vpop.f32.mrb[228].mxu0  ;;  %v2176_v37 = vpop.f32.mrb[228].mxu1 }
 0x2be   :  { %3691 = vst.msk [vmem:[%s7453_s3 + $0x1c4] sm:$0xf] %vm3577_vm1, %v4369_v34  ;;  %3825 = vst.msk [vmem:[%s7453_s3 + $0x3dc] sm:$0xf] %vm3577_vm1, %v4503_v35  ;;  %v1641_v38 = vadd.f32 %v7200_v48, %v1640_v36  ;;  %v4909_v39 = vpop.f32.mrb[229].mxu0  ;;  %v2177_v40 = vadd.f32 %v7200_v48, %v2176_v37  ;;  %v5177_v41 = vpop.f32.mrb[229].mxu1 }
 0x2bf   :  { %v1643_v42 = vpop.f32.mrb[230].mxu0  ;;  %v2179_v43 = vpop.f32.mrb[230].mxu1 }
 0x2c0   :  { %v2361_v44 = vmax.f32 %v1641_v38, 0.0  ;;  %v1644_v45 = vadd.f32 %v7200_v48, %v1643_v42  ;;  %v4910_v46 = vpop.f32.mrb[231].mxu0  ;;  %v2495_v47 = vmax.f32 %v2177_v40, 0.0  ;;  %v2180_v49 = vadd.f32 %v7200_v48, %v2179_v43  ;;  %v5178_v50 = vpop.f32.mrb[231].mxu1 }
 0x2c2   :  { %v4370_v51 = vpack.c.bf16 %v2361_v44, %v2361_v44  ;;  %v2362_v52 = vmax.f32 %v1644_v45, 0.0  ;;  %v4504_v53 = vpack.c.bf16 %v2495_v47, %v2495_v47  ;;  %v2496_v54 = vmax.f32 %v2180_v49, 0.0 }
 0x2c4   :  { %3692 = vst.msk [vmem:[%s7453_s3 + $0x1c8] sm:$0xf] %vm3577_vm1, %v4370_v51  ;;  %v4371_v0 = vpack.c.bf16 %v2362_v52, %v2362_v52  ;;  %3826 = vst.msk [vmem:[%s7453_s3 + $0x3e0] sm:$0xf] %vm3577_vm1, %v4504_v53  ;;  %v4505_v55 = vpack.c.bf16 %v2496_v54, %v2496_v54 }
 0x2c5   :  { %v1648_v10 = vpop.f32.mrb[232].mxu0  ;;  %v2184_v56 = vpop.f32.mrb[232].mxu1 }
 0x2c6   :  { %3693 = vst.msk [vmem:[%s7453_s3 + $0x1cc] sm:$0xf] %vm3577_vm1, %v4371_v0  ;;  %3827 = vst.msk [vmem:[%s7453_s3 + $0x3e4] sm:$0xf] %vm3577_vm1, %v4505_v55  ;;  %v1649_v57 = vadd.f32 %v7200_v48, %v1648_v10  ;;  %v4913_v58 = vpop.f32.mrb[233].mxu0  ;;  %v2185_v59 = vadd.f32 %v7200_v48, %v2184_v56  ;;  %v5181_v60 = vpop.f32.mrb[233].mxu1 }
 0x2c7   :  { %v1651_v61 = vpop.f32.mrb[234].mxu0  ;;  %v2187_v62 = vpop.f32.mrb[234].mxu1 }
 0x2c8   :  { %v2363_v1 = vmax.f32 %v1649_v57, 0.0  ;;  %v1652_v63 = vadd.f32 %v7200_v48, %v1651_v61  ;;  %v4914_v2 = vpop.f32.mrb[235].mxu0  ;;  %v2497_v3 = vmax.f32 %v2185_v59, 0.0  ;;  %v2188_v5 = vadd.f32 %v7200_v48, %v2187_v62  ;;  %v5182_v6 = vpop.f32.mrb[235].mxu1 }
 0x2ca   :  { %v4372_v7 = vpack.c.bf16 %v2363_v1, %v2363_v1  ;;  %v2364_v8 = vmax.f32 %v1652_v63, 0.0  ;;  %v4506_v9 = vpack.c.bf16 %v2497_v3, %v2497_v3  ;;  %v2498_v11 = vmax.f32 %v2188_v5, 0.0 }
 0x2cc   :  { %3694 = vst.msk [vmem:[%s7453_s3 + $0x1d0] sm:$0xf] %vm3577_vm1, %v4372_v7  ;;  %v4373_v12 = vpack.c.bf16 %v2364_v8, %v2364_v8  ;;  %3828 = vst.msk [vmem:[%s7453_s3 + $0x3e8] sm:$0xf] %vm3577_vm1, %v4506_v9  ;;  %v4507_v13 = vpack.c.bf16 %v2498_v11, %v2498_v11 }
 0x2cd   :  { %v1656_v14 = vpop.f32.mrb[236].mxu0  ;;  %v2192_v15 = vpop.f32.mrb[236].mxu1 }
 0x2ce   :  { %3695 = vst.msk [vmem:[%s7453_s3 + $0x1d4] sm:$0xf] %vm3577_vm1, %v4373_v12  ;;  %3829 = vst.msk [vmem:[%s7453_s3 + $0x3ec] sm:$0xf] %vm3577_vm1, %v4507_v13  ;;  %v1657_v4 = vadd.f32 %v7200_v48, %v1656_v14  ;;  %v4917_v16 = vpop.f32.mrb[237].mxu0  ;;  %v2193_v17 = vadd.f32 %v7200_v48, %v2192_v15  ;;  %v5185_v18 = vpop.f32.mrb[237].mxu1 }
 0x2cf   :  { %v1659_v19 = vpop.f32.mrb[238].mxu0  ;;  %v2195_v20 = vpop.f32.mrb[238].mxu1 }
 0x2d0   :  { %v2365_v21 = vmax.f32 %v1657_v4, 0.0  ;;  %v1660_v22 = vadd.f32 %v7200_v48, %v1659_v19  ;;  %v4918_v23 = vpop.f32.mrb[239].mxu0  ;;  %v2499_v24 = vmax.f32 %v2193_v17, 0.0  ;;  %v2196_v25 = vadd.f32 %v7200_v48, %v2195_v20  ;;  %v5186_v26 = vpop.f32.mrb[239].mxu1 }
 0x2d2   :  { %v4374_v27 = vpack.c.bf16 %v2365_v21, %v2365_v21  ;;  %v2366_v28 = vmax.f32 %v1660_v22, 0.0  ;;  %v4508_v29 = vpack.c.bf16 %v2499_v24, %v2499_v24  ;;  %v2500_v30 = vmax.f32 %v2196_v25, 0.0 }
 0x2d4   :  { %3696 = vst.msk [vmem:[%s7453_s3 + $0x1d8] sm:$0xf] %vm3577_vm1, %v4374_v27  ;;  %v4375_v31 = vpack.c.bf16 %v2366_v28, %v2366_v28  ;;  %3830 = vst.msk [vmem:[%s7453_s3 + $0x3f0] sm:$0xf] %vm3577_vm1, %v4508_v29  ;;  %v4509_v32 = vpack.c.bf16 %v2500_v30, %v2500_v30 }
 0x2d5   :  { %v1664_v33 = vpop.f32.mrb[240].mxu0  ;;  %v2200_v34 = vpop.f32.mrb[240].mxu1 }
 0x2d6   :  { %3697 = vst.msk [vmem:[%s7453_s3 + $0x1dc] sm:$0xf] %vm3577_vm1, %v4375_v31  ;;  %3831 = vst.msk [vmem:[%s7453_s3 + $0x3f4] sm:$0xf] %vm3577_vm1, %v4509_v32  ;;  %v1665_v35 = vadd.f32 %v7200_v48, %v1664_v33  ;;  %v4921_v36 = vpop.f32.mrb[241].mxu0  ;;  %v2201_v37 = vadd.f32 %v7200_v48, %v2200_v34  ;;  %v5189_v38 = vpop.f32.mrb[241].mxu1 }
 0x2d7   :  { %v1667_v39 = vpop.f32.mrb[242].mxu0  ;;  %v2203_v40 = vpop.f32.mrb[242].mxu1 }
 0x2d8   :  { %v2367_v41 = vmax.f32 %v1665_v35, 0.0  ;;  %v1668_v42 = vadd.f32 %v7200_v48, %v1667_v39  ;;  %v4922_v43 = vpop.f32.mrb[243].mxu0  ;;  %v2501_v44 = vmax.f32 %v2201_v37, 0.0  ;;  %v2204_v45 = vadd.f32 %v7200_v48, %v2203_v40  ;;  %v5190_v46 = vpop.f32.mrb[243].mxu1 }
 0x2da   :  { %v4376_v47 = vpack.c.bf16 %v2367_v41, %v2367_v41  ;;  %v2368_v49 = vmax.f32 %v1668_v42, 0.0  ;;  %v4510_v50 = vpack.c.bf16 %v2501_v44, %v2501_v44  ;;  %v2502_v51 = vmax.f32 %v2204_v45, 0.0 }
 0x2dc   :  { %3698 = vst.msk [vmem:[%s7453_s3 + $0x1e0] sm:$0xf] %vm3577_vm1, %v4376_v47  ;;  %v4377_v52 = vpack.c.bf16 %v2368_v49, %v2368_v49  ;;  %3832 = vst.msk [vmem:[%s7453_s3 + $0x3f8] sm:$0xf] %vm3577_vm1, %v4510_v50  ;;  %v4511_v53 = vpack.c.bf16 %v2502_v51, %v2502_v51 }
 0x2dd   :  { %v1672_v54 = vpop.f32.mrb[244].mxu0  ;;  %v2208_v0 = vpop.f32.mrb[244].mxu1 }
 0x2de   :  { %3699 = vst.msk [vmem:[%s7453_s3 + $0x1e4] sm:$0xf] %vm3577_vm1, %v4377_v52  ;;  %3833 = vst.msk [vmem:[%s7453_s3 + $0x3fc] sm:$0xf] %vm3577_vm1, %v4511_v53  ;;  %v1673_v55 = vadd.f32 %v7200_v48, %v1672_v54  ;;  %v4925_v10 = vpop.f32.mrb[245].mxu0  ;;  %v2209_v56 = vadd.f32 %v7200_v48, %v2208_v0  ;;  %v5193_v57 = vpop.f32.mrb[245].mxu1 }
 0x2df   :  { %v1675_v58 = vpop.f32.mrb[246].mxu0  ;;  %v2211_v59 = vpop.f32.mrb[246].mxu1 }
 0x2e0   :  { %v2369_v60 = vmax.f32 %v1673_v55, 0.0  ;;  %v1676_v61 = vadd.f32 %v7200_v48, %v1675_v58  ;;  %v4926_v62 = vpop.f32.mrb[247].mxu0  ;;  %v2503_v1 = vmax.f32 %v2209_v56, 0.0  ;;  %v2212_v63 = vadd.f32 %v7200_v48, %v2211_v59  ;;  %v5194_v2 = vpop.f32.mrb[247].mxu1 }
 0x2e2   :  { %v4378_v3 = vpack.c.bf16 %v2369_v60, %v2369_v60  ;;  %v2370_v5 = vmax.f32 %v1676_v61, 0.0  ;;  %v4512_v6 = vpack.c.bf16 %v2503_v1, %v2503_v1  ;;  %v2504_v7 = vmax.f32 %v2212_v63, 0.0 }
 0x2e4   :  { %3700 = vst.msk [vmem:[%s7453_s3 + $0x1e8] sm:$0xf] %vm3577_vm1, %v4378_v3  ;;  %v4379_v8 = vpack.c.bf16 %v2370_v5, %v2370_v5  ;;  %3834 = vst.msk [vmem:[%s7453_s3 + $0x400] sm:$0xf] %vm3577_vm1, %v4512_v6  ;;  %v4513_v9 = vpack.c.bf16 %v2504_v7, %v2504_v7 }
 0x2e5   :  { %v1680_v11 = vpop.f32.mrb[248].mxu0  ;;  %v2216_v12 = vpop.f32.mrb[248].mxu1 }
 0x2e6   :  { %3701 = vst.msk [vmem:[%s7453_s3 + $0x1ec] sm:$0xf] %vm3577_vm1, %v4379_v8  ;;  %3835 = vst.msk [vmem:[%s7453_s3 + $0x404] sm:$0xf] %vm3577_vm1, %v4513_v9  ;;  %v1681_v13 = vadd.f32 %v7200_v48, %v1680_v11  ;;  %v4929_v14 = vpop.f32.mrb[249].mxu0  ;;  %v2217_v15 = vadd.f32 %v7200_v48, %v2216_v12  ;;  %v5197_v4 = vpop.f32.mrb[249].mxu1 }
 0x2e7   :  { %v1683_v16 = vpop.f32.mrb[250].mxu0  ;;  %v2219_v17 = vpop.f32.mrb[250].mxu1 }
 0x2e8   :  { %v2371_v18 = vmax.f32 %v1681_v13, 0.0  ;;  %v1684_v19 = vadd.f32 %v7200_v48, %v1683_v16  ;;  %v4930_v20 = vpop.f32.mrb[251].mxu0  ;;  %v2505_v21 = vmax.f32 %v2217_v15, 0.0  ;;  %v2220_v22 = vadd.f32 %v7200_v48, %v2219_v17  ;;  %v5198_v23 = vpop.f32.mrb[251].mxu1 }
 0x2ea   :  { %v4380_v24 = vpack.c.bf16 %v2371_v18, %v2371_v18  ;;  %v2372_v25 = vmax.f32 %v1684_v19, 0.0  ;;  %v4514_v26 = vpack.c.bf16 %v2505_v21, %v2505_v21  ;;  %v2506_v27 = vmax.f32 %v2220_v22, 0.0 }
 0x2ec   :  { %3702 = vst.msk [vmem:[%s7453_s3 + $0x1f0] sm:$0xf] %vm3577_vm1, %v4380_v24  ;;  %v4381_v28 = vpack.c.bf16 %v2372_v25, %v2372_v25  ;;  %3836 = vst.msk [vmem:[%s7453_s3 + $0x408] sm:$0xf] %vm3577_vm1, %v4514_v26  ;;  %v4515_v29 = vpack.c.bf16 %v2506_v27, %v2506_v27 }
 0x2ed   :  { %v1688_v30 = vpop.f32.mrb[252].mxu0  ;;  %v2224_v31 = vpop.f32.mrb[252].mxu1 }
 0x2ee   :  { %3703 = vst.msk [vmem:[%s7453_s3 + $0x1f4] sm:$0xf] %vm3577_vm1, %v4381_v28  ;;  %3837 = vst.msk [vmem:[%s7453_s3 + $0x40c] sm:$0xf] %vm3577_vm1, %v4515_v29  ;;  %v1689_v32 = vadd.f32 %v7200_v48, %v1688_v30  ;;  %v4933_v33 = vpop.f32.mrb[253].mxu0  ;;  %v2225_v34 = vadd.f32 %v7200_v48, %v2224_v31  ;;  %v5201_v35 = vpop.f32.mrb[253].mxu1 }
 0x2ef   :  { %v1691_v36 = vpop.f32.mrb[254].mxu0  ;;  %v2227_v37 = vpop.f32.mrb[254].mxu1 }
 0x2f0   :  { %v2373_v38 = vmax.f32 %v1689_v32, 0.0  ;;  %v1692_v39 = vadd.f32 %v7200_v48, %v1691_v36  ;;  %v4934_v40 = vpop.f32.mrb[255].mxu0  ;;  %v2507_v41 = vmax.f32 %v2225_v34, 0.0  ;;  %v2228_v42 = vadd.f32 %v7200_v48, %v2227_v37  ;;  %v5202_v43 = vpop.f32.mrb[255].mxu1 }
 0x2f2   :  { %v4382_v44 = vpack.c.bf16 %v2373_v38, %v2373_v38  ;;  %v2374_v45 = vmax.f32 %v1692_v39, 0.0  ;;  %v4516_v46 = vpack.c.bf16 %v2507_v41, %v2507_v41  ;;  %v2508_v47 = vmax.f32 %v2228_v42, 0.0 }
 0x2f4   :  { %3704 = vst.msk [vmem:[%s7453_s3 + $0x1f8] sm:$0xf] %vm3577_vm1, %v4382_v44  ;;  %v4383_v49 = vpack.c.bf16 %v2374_v45, %v2374_v45  ;;  %3838 = vst.msk [vmem:[%s7453_s3 + $0x410] sm:$0xf] %vm3577_vm1, %v4516_v46  ;;  %v4517_v50 = vpack.c.bf16 %v2508_v47, %v2508_v47 }
 0x2f5   :  { %v1696_v51 = vpop.f32.mrb[0].mxu0  ;;  %v2232_v52 = vpop.f32.mrb[0].mxu1 }
 0x2f6   :  { %3705 = vst.msk [vmem:[%s7453_s3 + $0x1fc] sm:$0xf] %vm3577_vm1, %v4383_v49  ;;  %3839 = vst.msk [vmem:[%s7453_s3 + $0x414] sm:$0xf] %vm3577_vm1, %v4517_v50  ;;  %v1697_v53 = vadd.f32 %v7200_v48, %v1696_v51  ;;  %v4937_v54 = vpop.f32.mrb[1].mxu0  ;;  %v2233_v0 = vadd.f32 %v7200_v48, %v2232_v52  ;;  %v5205_v55 = vpop.f32.mrb[1].mxu1 }
 0x2f7   :  { %v1699_v10 = vpop.f32.mrb[2].mxu0  ;;  %v2235_v56 = vpop.f32.mrb[2].mxu1 }
 0x2f8   :  { %v2375_v57 = vmax.f32 %v1697_v53, 0.0  ;;  %v1700_v58 = vadd.f32 %v7200_v48, %v1699_v10  ;;  %v4938_v59 = vpop.f32.mrb[3].mxu0  ;;  %v2509_v60 = vmax.f32 %v2233_v0, 0.0  ;;  %v2236_v61 = vadd.f32 %v7200_v48, %v2235_v56  ;;  %v5206_v62 = vpop.f32.mrb[3].mxu1 }
 0x2fa   :  { %v4384_v1 = vpack.c.bf16 %v2375_v57, %v2375_v57  ;;  %v2376_v63 = vmax.f32 %v1700_v58, 0.0  ;;  %v4518_v2 = vpack.c.bf16 %v2509_v60, %v2509_v60  ;;  %v2510_v3 = vmax.f32 %v2236_v61, 0.0 }
 0x2fc   :  { %3706 = vst.msk [vmem:[%s7453_s3 + $0x200] sm:$0xf] %vm3577_vm1, %v4384_v1  ;;  %v4385_v5 = vpack.c.bf16 %v2376_v63, %v2376_v63  ;;  %3840 = vst.msk [vmem:[%s7453_s3 + $0x418] sm:$0xf] %vm3577_vm1, %v4518_v2  ;;  %v4519_v6 = vpack.c.bf16 %v2510_v3, %v2510_v3 }
 0x2fd   :  { %v1704_v7 = vpop.f32.mrb[4].mxu0  ;;  %v2240_v8 = vpop.f32.mrb[4].mxu1 }
 0x2fe   :  { %3707 = vst.msk [vmem:[%s7453_s3 + $0x204] sm:$0xf] %vm3577_vm1, %v4385_v5  ;;  %3841 = vst.msk [vmem:[%s7453_s3 + $0x41c] sm:$0xf] %vm3577_vm1, %v4519_v6  ;;  %v1705_v9 = vadd.f32 %v7200_v48, %v1704_v7  ;;  %v4941_v11 = vpop.f32.mrb[5].mxu0  ;;  %v2241_v12 = vadd.f32 %v7200_v48, %v2240_v8  ;;  %v5209_v13 = vpop.f32.mrb[5].mxu1 }
 0x2ff   :  { %v1707_v14 = vpop.f32.mrb[6].mxu0  ;;  %v2243_v15 = vpop.f32.mrb[6].mxu1 }
 0x300   :  { %v2377_v4 = vmax.f32 %v1705_v9, 0.0  ;;  %v1708_v16 = vadd.f32 %v7200_v48, %v1707_v14  ;;  %v4942_v17 = vpop.f32.mrb[7].mxu0  ;;  %v2511_v18 = vmax.f32 %v2241_v12, 0.0  ;;  %v2244_v19 = vadd.f32 %v7200_v48, %v2243_v15  ;;  %v5210_v20 = vpop.f32.mrb[7].mxu1 }
 0x302   :  { %v4386_v21 = vpack.c.bf16 %v2377_v4, %v2377_v4  ;;  %v2378_v22 = vmax.f32 %v1708_v16, 0.0  ;;  %v4520_v23 = vpack.c.bf16 %v2511_v18, %v2511_v18  ;;  %v2512_v24 = vmax.f32 %v2244_v19, 0.0 }
 0x304   :  { %3708 = vst.msk [vmem:[%s7453_s3 + $0x208] sm:$0xf] %vm3577_vm1, %v4386_v21  ;;  %v4387_v25 = vpack.c.bf16 %v2378_v22, %v2378_v22  ;;  %3842 = vst.msk [vmem:[%s7453_s3 + $0x420] sm:$0xf] %vm3577_vm1, %v4520_v23  ;;  %v4521_v26 = vpack.c.bf16 %v2512_v24, %v2512_v24 }
 0x305   :  { %v1712_v27 = vpop.f32.mrb[8].mxu0 }
 0x306   :  { %3709 = vst.msk [vmem:[%s7453_s3 + $0x20c] sm:$0xf] %vm3577_vm1, %v4387_v25  ;;  %3843 = vst.msk [vmem:[%s7453_s3 + $0x424] sm:$0xf] %vm3577_vm1, %v4521_v26  ;;  %v1713_v28 = vadd.f32 %v7200_v48, %v1712_v27  ;;  %v4945_v29 = vpop.f32.mrb[9].mxu0 }
 0x307   :  { %v1715_v30 = vpop.f32.mrb[10].mxu0 }
 0x308   :  { %v2379_v31 = vmax.f32 %v1713_v28, 0.0  ;;  %v1716_v32 = vadd.f32 %v7200_v48, %v1715_v30  ;;  %v4946_v33 = vpop.f32.mrb[11].mxu0 }
 0x30a   :  { %v4388_v34 = vpack.c.bf16 %v2379_v31, %v2379_v31  ;;  %v2380_v35 = vmax.f32 %v1716_v32, 0.0 }
 0x30c   :  { %3710 = vst.msk [vmem:[%s7453_s3 + $0x210] sm:$0xf] %vm3577_vm1, %v4388_v34  ;;  %v4389_v36 = vpack.c.bf16 %v2380_v35, %v2380_v35 }
 0x30e   :  { %3711 = vst.msk [vmem:[%s7453_s3 + $0x214] sm:$0xf] %vm3577_vm1, %v4389_v36 }

// kernel: agent_net_forward.5
= control target key start
LH: loop header
LB: loop body
LE: loop exit
PB: predicated region body
PF: predicated region fallthrough
CT: control target
= control target key end

     0   :  { %v1472_v0 = vmov 0   ;;  %vm1074_vm0 = vcmask 257024   ;;  %vm1133_vm1 = vcmask 254976   ;;  %s2049_s1 = inlined_call_operand.vmem [shape: bf16[256,32], index: 1, kind: input, shape index: {}]   ;;  %s2050_s0 = inlined_call_operand.vmem [shape: bf16[468,256], index: 0, kind: input, shape index: {}]   ;;  %s2051_s2 = inlined_call_operand.vmem [shape: f32[1,32], index: 2, kind: input, shape index: {}]   ;;  %s2052_s3 = inlined_call_operand.vmem [shape: bf16[468,32], index: 3, kind: output, shape index: {}]  }
   0x1   :  { %506 = vmatprep.subr.bf16.mxu0 %v1472_v0  ;;  %1334 = vmatprep.subr.bf16.mxu1 %v1472_v0  ;;  %v1367_v1 = vld [vmem:[%s2049_s1] sm:$0xff]   ;;  %v1368_v2 = vld [vmem:[%s2049_s1 + $0x8] sm:$0xff]   ;;  %v1369_v3 = vld [vmem:[%s2049_s1 + $0x10] sm:$0xff]  }
   0x2   :  { %507 = vmatpush1.bf16.msra.mxu0 %v1367_v1  ;;  %1350 = vmatpush1.bf16.msra.mxu1 %v1367_v1  ;;  %v1370_v4 = vld [vmem:[%s2049_s1 + $0x18] sm:$0xff]   ;;  %v1371_v5 = vld [vmem:[%s2049_s1 + $0x20] sm:$0xff]   ;;  %v1372_v7 = vld [vmem:[%s2049_s1 + $0x28] sm:$0xff]  }
   0x3   :  { %508 = vmatprep.subr.bf16.mxu0 %v1472_v0  ;;  %1335 = vmatprep.subr.bf16.mxu1 %v1472_v0  ;;  %v1385_v6 = vld [vmem:[%s2050_s0 + $0x4] ss:$8 sps:$4 sm:$0xff]   ;;  %v1388_v8 = vld [vmem:[%s2050_s0 + $0xf4] ss:$8 sps:$4 sm:$0xff]   ;;  %v1383_v19 = vld [vmem:[%s2050_s0] ss:$8 sps:$4 sm:$0xff]  }
   0x4   :  { %538 = vmatprep.mubr.bf16.mxu0 %v1385_v6  ;;  %658 = vmatprep.mubr.bf16.mxu1 %v1388_v8  ;;  %v1373_v9 = vld [vmem:[%s2049_s1 + $0x30] sm:$0xff]   ;;  %v1374_v10 = vld [vmem:[%s2049_s1 + $0x38] sm:$0xff]   ;;  %v1375_v11 = vld [vmem:[%s2049_s1 + $0x40] sm:$0xff]  }
   0x5   :  { %v1376_v12 = vld [vmem:[%s2049_s1 + $0x48] sm:$0xff]   ;;  %v1377_v13 = vld [vmem:[%s2049_s1 + $0x50] sm:$0xff]   ;;  %v1378_v14 = vld [vmem:[%s2049_s1 + $0x58] sm:$0xff]  }
   0x6   :  { %509 = vmatpush1.bf16.msra.mxu0 %v1368_v2  ;;  %1351 = vmatpush1.bf16.msra.mxu1 %v1368_v2  ;;  %v1379_v15 = vld [vmem:[%s2049_s1 + $0x60] sm:$0xff]   ;;  %v1380_v16 = vld [vmem:[%s2049_s1 + $0x68] sm:$0xff]   ;;  %v1381_v17 = vld [vmem:[%s2049_s1 + $0x70] sm:$0xff]  }
   0x7   :  { %510 = vmatprep.subr.bf16.mxu0 %v1472_v0  ;;  %1336 = vmatprep.subr.bf16.mxu1 %v1472_v0  ;;  %v1382_v18 = vld [vmem:[%s2049_s1 + $0x78] sm:$0xff]   ;;  %v1391_v22 = vld [vmem:[%s2050_s0 + $0x104] ss:$8 sps:$4 sm:$0xff]   ;;  %v1394_v24 = vld [vmem:[%s2050_s0 + $0x100] ss:$8 sps:$4 sm:$0xff]  }
   0x8   :  { %v1386_v20 = vld [vmem:[%s2050_s0 + $0xf0] ss:$8 sps:$4 sm:$0xff]   ;;  %v1389_v21 = vld [vmem:[%s2050_s0 + $0x14] ss:$8 sps:$4 sm:$0xff]   ;;  %v1395_v25 = vld [vmem:[%s2050_s0 + $0x24] ss:$8 sps:$4 sm:$0xff]  }
   0x9   :  { %v1393_v23 = vld [vmem:[%s2050_s0 + $0x10] ss:$8 sps:$4 sm:$0xff]   ;;  %v1397_v26 = vld [vmem:[%s2050_s0 + $0x114] ss:$8 sps:$4 sm:$0xff]   ;;  %v1399_v27 = vld [vmem:[%s2050_s0 + $0x20] ss:$8 sps:$4 sm:$0xff]  }
   0xa   :  { %511 = vmatpush1.bf16.msra.mxu0 %v1369_v3  ;;  %1352 = vmatpush1.bf16.msra.mxu1 %v1369_v3  ;;  %v1400_v28 = vld [vmem:[%s2050_s0 + $0x110] ss:$8 sps:$4 sm:$0xff]   ;;  %v1401_v29 = vld [vmem:[%s2050_s0 + $0x34] ss:$8 sps:$4 sm:$0xff]   ;;  %v1403_v30 = vld [vmem:[%s2050_s0 + $0x124] ss:$8 sps:$4 sm:$0xff]  }
   0xb   :  { %512 = vmatprep.subr.bf16.mxu0 %v1472_v0  ;;  %1337 = vmatprep.subr.bf16.mxu1 %v1472_v0  ;;  %v1405_v31 = vld [vmem:[%s2050_s0 + $0x30] ss:$8 sps:$4 sm:$0xff]   ;;  %v1406_v32 = vld [vmem:[%s2050_s0 + $0x120] ss:$8 sps:$4 sm:$0xff]   ;;  %v1407_v33 = vld [vmem:[%s2050_s0 + $0x44] ss:$8 sps:$4 sm:$0xff]  }
   0xc   :  { %v1409_v34 = vld [vmem:[%s2050_s0 + $0x134] ss:$8 sps:$4 sm:$0xff]   ;;  %v1411_v35 = vld [vmem:[%s2050_s0 + $0x40] ss:$8 sps:$4 sm:$0xff]   ;;  %v1412_v36 = vld [vmem:[%s2050_s0 + $0x130] ss:$8 sps:$4 sm:$0xff]  }
   0xd   :  { %v1413_v37 = vld [vmem:[%s2050_s0 + $0x54] ss:$8 sps:$4 sm:$0xff]   ;;  %v1415_v38 = vld [vmem:[%s2050_s0 + $0x144] ss:$8 sps:$4 sm:$0xff]   ;;  %v1417_v39 = vld [vmem:[%s2050_s0 + $0x50] ss:$8 sps:$4 sm:$0xff]  }
   0xe   :  { %513 = vmatpush1.bf16.msra.mxu0 %v1370_v4  ;;  %1353 = vmatpush1.bf16.msra.mxu1 %v1370_v4  ;;  %v1418_v40 = vld [vmem:[%s2050_s0 + $0x140] ss:$8 sps:$4 sm:$0xff]   ;;  %v1419_v41 = vld [vmem:[%s2050_s0 + $0x64] ss:$8 sps:$4 sm:$0xff]   ;;  %v1421_v42 = vld [vmem:[%s2050_s0 + $0x154] ss:$8 sps:$4 sm:$0xff]  }
   0xf   :  { %514 = vmatprep.subr.bf16.mxu0 %v1472_v0  ;;  %1338 = vmatprep.subr.bf16.mxu1 %v1472_v0  ;;  %v1423_v43 = vld [vmem:[%s2050_s0 + $0x60] ss:$8 sps:$4 sm:$0xff]   ;;  %v1424_v44 = vld [vmem:[%s2050_s0 + $0x150] ss:$8 sps:$4 sm:$0xff]   ;;  %v1425_v45 = vld [vmem:[%s2050_s0 + $0x74] ss:$8 sps:$4 sm:$0xff]  }
  0x10   :  { %v1427_v46 = vld [vmem:[%s2050_s0 + $0x164] ss:$8 sps:$4 sm:$0xff]   ;;  %v1429_v47 = vld [vmem:[%s2050_s0 + $0x70] ss:$8 sps:$4 sm:$0xff]   ;;  %v1430_v48 = vld [vmem:[%s2050_s0 + $0x160] ss:$8 sps:$4 sm:$0xff]  }
  0x11   :  { %v1431_v49 = vld [vmem:[%s2050_s0 + $0x84] ss:$8 sps:$4 sm:$0xff]   ;;  %v1433_v50 = vld [vmem:[%s2050_s0 + $0x174] ss:$8 sps:$4 sm:$0xff]   ;;  %v1435_v51 = vld [vmem:[%s2050_s0 + $0x80] ss:$8 sps:$4 sm:$0xff]  }
  0x12   :  { %515 = vmatpush1.bf16.msra.mxu0 %v1371_v5  ;;  %1354 = vmatpush1.bf16.msra.mxu1 %v1371_v5  ;;  %v1436_v52 = vld [vmem:[%s2050_s0 + $0x170] ss:$8 sps:$4 sm:$0xff]   ;;  %v1437_v53 = vld [vmem:[%s2050_s0 + $0x94] ss:$8 sps:$4 sm:$0xff]   ;;  %v1439_v54 = vld [vmem:[%s2050_s0 + $0x184] ss:$8 sps:$4 sm:$0xff]  }
  0x13   :  { %516 = vmatprep.subr.bf16.mxu0 %v1472_v0  ;;  %1339 = vmatprep.subr.bf16.mxu1 %v1472_v0  ;;  %v1441_v55 = vld [vmem:[%s2050_s0 + $0x90] ss:$8 sps:$4 sm:$0xff]   ;;  %v1442_v56 = vld [vmem:[%s2050_s0 + $0x180] ss:$8 sps:$4 sm:$0xff]   ;;  %v1443_v57 = vld [vmem:[%s2050_s0 + $0xa4] ss:$8 sps:$4 sm:$0xff]  }
  0x14   :  { %v1445_v58 = vld [vmem:[%s2050_s0 + $0x194] ss:$8 sps:$4 sm:$0xff]   ;;  %v1447_v59 = vld [vmem:[%s2050_s0 + $0xa0] ss:$8 sps:$4 sm:$0xff]   ;;  %v1448_v60 = vld [vmem:[%s2050_s0 + $0x190] ss:$8 sps:$4 sm:$0xff]  }
  0x15   :  { %v1449_v61 = vld [vmem:[%s2050_s0 + $0xb4] ss:$8 sps:$4 sm:$0xff]   ;;  %v1451_v62 = vld [vmem:[%s2050_s0 + $0x1a4] ss:$8 sps:$4 sm:$0xff]   ;;  %v1453_v63 = vld [vmem:[%s2050_s0 + $0xb0] ss:$8 sps:$4 sm:$0xff]  }
  0x16   :  { %517 = vmatpush1.bf16.msra.mxu0 %v1372_v7  ;;  %1355 = vmatpush1.bf16.msra.mxu1 %v1372_v7  ;;  %v1455_v1 = vld [vmem:[%s2050_s0 + $0xc4] ss:$8 sps:$4 sm:$0xff]   ;;  %v1457_v2 = vld [vmem:[%s2050_s0 + $0x1b4] ss:$8 sps:$4 sm:$0xff]   ;;  %v1459_v3 = vld [vmem:[%s2050_s0 + $0xc0] ss:$8 sps:$4 sm:$0xff]  }
  0x17   :  { %518 = vmatprep.subr.bf16.mxu0 %v1472_v0  ;;  %1340 = vmatprep.subr.bf16.mxu1 %v1472_v0  ;;  %v1460_v4 = vld [vmem:[%s2050_s0 + $0x1b0] ss:$8 sps:$4 sm:$0xff]   ;;  %v1461_v5 = vld [vmem:[%s2050_s0 + $0xd4] ss:$8 sps:$4 sm:$0xff]   ;;  %v1463_v6 = vld [vmem:[%s2050_s0 + $0x1c4] ss:$8 sps:$4 sm:$0xff]  }
  0x18   :  { %v73_v7 = vld [vmem:[%s2050_s0 + $0x1d0] sm:$0x33] }
  0x19   :  { %v1465_v8 = vld [vmem:[%s2050_s0 + $0xd0] ss:$8 sps:$4 sm:$0xff]  }
  0x1a   :  { %519 = vmatpush1.bf16.msra.mxu0 %v1373_v9  ;;  %1356 = vmatpush1.bf16.msra.mxu1 %v1373_v9  ;;  %v1466_v9 = vld [vmem:[%s2050_s0 + $0x1c0] ss:$8 sps:$4 sm:$0xff]  }
  0x1b   :  { %520 = vmatprep.subr.bf16.mxu0 %v1472_v0  ;;  %1341 = vmatprep.subr.bf16.mxu1 %v1472_v0 }
  0x1e   :  { %521 = vmatpush1.bf16.msra.mxu0 %v1374_v10  ;;  %1357 = vmatpush1.bf16.msra.mxu1 %v1374_v10  ;;  %v1467_v10 = vld [vmem:[%s2050_s0 + $0xe4] ss:$8 sps:$4 sm:$0xff]  }
  0x1f   :  { %522 = vmatprep.subr.bf16.mxu0 %v1472_v0  ;;  %1342 = vmatprep.subr.bf16.mxu1 %v1472_v0 }
  0x22   :  { %523 = vmatpush1.bf16.msra.mxu0 %v1375_v11  ;;  %1358 = vmatpush1.bf16.msra.mxu1 %v1375_v11  ;;  %v1199_v11 = vcombine.high %v73_v7, %v73_v7 }
  0x23   :  { %524 = vmatprep.subr.bf16.mxu0 %v1472_v0  ;;  %1343 = vmatprep.subr.bf16.mxu1 %v1472_v0 }
  0x26   :  { %525 = vmatpush1.bf16.msra.mxu0 %v1376_v12  ;;  %1359 = vmatpush1.bf16.msra.mxu1 %v1376_v12  ;;  %v1470_v12 = vld [vmem:[%s2050_s0 + $0xe0] ss:$8 sps:$4 sm:$0xff]  }
  0x27   :  { %526 = vmatprep.subr.bf16.mxu0 %v1472_v0  ;;  %1344 = vmatprep.subr.bf16.mxu1 %v1472_v0 }
  0x2a   :  { %527 = vmatpush1.bf16.msra.mxu0 %v1377_v13  ;;  %1360 = vmatpush1.bf16.msra.mxu1 %v1377_v13  ;;  %v1198_v13 = vcombine.low %v73_v7, %v73_v7 }
  0x2b   :  { %528 = vmatprep.subr.bf16.mxu0 %v1472_v0  ;;  %1345 = vmatprep.subr.bf16.mxu1 %v1472_v0 }
  0x2e   :  { %529 = vmatpush1.bf16.msra.mxu0 %v1378_v14  ;;  %1361 = vmatpush1.bf16.msra.mxu1 %v1378_v14  ;;  %v1753_v14 = vld [vmem:[%s2051_s2] ss:$0 sm:$0xff] }
  0x2f   :  { %530 = vmatprep.subr.bf16.mxu0 %v1472_v0  ;;  %1346 = vmatprep.subr.bf16.mxu1 %v1472_v0 }
  0x32   :  { %531 = vmatpush1.bf16.msra.mxu0 %v1379_v15  ;;  %1362 = vmatpush1.bf16.msra.mxu1 %v1379_v15 }
  0x33   :  { %532 = vmatprep.subr.bf16.mxu0 %v1472_v0  ;;  %1347 = vmatprep.subr.bf16.mxu1 %v1472_v0 }
  0x36   :  { %533 = vmatpush1.bf16.msra.mxu0 %v1380_v16  ;;  %1363 = vmatpush1.bf16.msra.mxu1 %v1380_v16 }
  0x37   :  { %534 = vmatprep.subr.bf16.mxu0 %v1472_v0  ;;  %1348 = vmatprep.subr.bf16.mxu1 %v1472_v0 }
  0x3a   :  { %535 = vmatpush1.bf16.msra.mxu0 %v1381_v17  ;;  %1364 = vmatpush1.bf16.msra.mxu1 %v1381_v17 }
  0x3b   :  { %536 = vmatprep.subr.bf16.mxu0 %v1472_v0  ;;  %1349 = vmatprep.subr.bf16.mxu1 %v1472_v0  ;;  %v1454_v0 = vld [vmem:[%s2050_s0 + $0x1a0] ss:$8 sps:$4 sm:$0xff]  }
  0x3e   :  { %537 = vmatpush1.bf16.msra.mxu0 %v1382_v18  ;;  %1365 = vmatpush1.bf16.msra.mxu1 %v1382_v18 }
  0x41   :  { %539 = vmatmul.mubr.bf16.vlgmr.msra.gmra.mrb[0].mxu0 %v1383_v19  ;;  %659 = vmatmul.mubr.bf16.vlgmr.msra.gmra.mrb[0].mxu1 %v1386_v20 }
  0x42   :  { %546 = vmatprep.mubr.bf16.mxu0 %v1389_v21  ;;  %666 = vmatprep.mubr.bf16.mxu1 %v1391_v22 }
  0x49   :  { %547 = vmatmul.mubr.bf16.gmra.mrb[4].mxu0 %v1393_v23  ;;  %667 = vmatmul.mubr.bf16.gmra.mrb[4].mxu1 %v1394_v24 }
  0x4a   :  { %554 = vmatprep.mubr.bf16.mxu0 %v1395_v25  ;;  %674 = vmatprep.mubr.bf16.mxu1 %v1397_v26 }
  0x51   :  { %555 = vmatmul.mubr.bf16.gmra.mrb[8].mxu0 %v1399_v27  ;;  %675 = vmatmul.mubr.bf16.gmra.mrb[8].mxu1 %v1400_v28 }
  0x52   :  { %562 = vmatprep.mubr.bf16.mxu0 %v1401_v29  ;;  %682 = vmatprep.mubr.bf16.mxu1 %v1403_v30 }
  0x59   :  { %563 = vmatmul.mubr.bf16.gmra.mrb[12].mxu0 %v1405_v31  ;;  %683 = vmatmul.mubr.bf16.gmra.mrb[12].mxu1 %v1406_v32 }
  0x5a   :  { %570 = vmatprep.mubr.bf16.mxu0 %v1407_v33  ;;  %690 = vmatprep.mubr.bf16.mxu1 %v1409_v34 }
  0x61   :  { %571 = vmatmul.mubr.bf16.gmra.mrb[16].mxu0 %v1411_v35  ;;  %691 = vmatmul.mubr.bf16.gmra.mrb[16].mxu1 %v1412_v36 }
  0x62   :  { %578 = vmatprep.mubr.bf16.mxu0 %v1413_v37  ;;  %698 = vmatprep.mubr.bf16.mxu1 %v1415_v38 }
  0x69   :  { %579 = vmatmul.mubr.bf16.gmra.mrb[20].mxu0 %v1417_v39  ;;  %699 = vmatmul.mubr.bf16.gmra.mrb[20].mxu1 %v1418_v40 }
  0x6a   :  { %586 = vmatprep.mubr.bf16.mxu0 %v1419_v41  ;;  %706 = vmatprep.mubr.bf16.mxu1 %v1421_v42 }
  0x71   :  { %587 = vmatmul.mubr.bf16.gmra.mrb[24].mxu0 %v1423_v43  ;;  %707 = vmatmul.mubr.bf16.gmra.mrb[24].mxu1 %v1424_v44 }
  0x72   :  { %594 = vmatprep.mubr.bf16.mxu0 %v1425_v45  ;;  %714 = vmatprep.mubr.bf16.mxu1 %v1427_v46 }
  0x79   :  { %595 = vmatmul.mubr.bf16.gmra.mrb[28].mxu0 %v1429_v47  ;;  %715 = vmatmul.mubr.bf16.gmra.mrb[28].mxu1 %v1430_v48 }
  0x7a   :  { %602 = vmatprep.mubr.bf16.mxu0 %v1431_v49  ;;  %722 = vmatprep.mubr.bf16.mxu1 %v1433_v50 }
  0x81   :  { %603 = vmatmul.mubr.bf16.gmra.mrb[32].mxu0 %v1435_v51  ;;  %723 = vmatmul.mubr.bf16.gmra.mrb[32].mxu1 %v1436_v52 }
  0x82   :  { %610 = vmatprep.mubr.bf16.mxu0 %v1437_v53  ;;  %730 = vmatprep.mubr.bf16.mxu1 %v1439_v54 }
  0x89   :  { %611 = vmatmul.mubr.bf16.gmra.mrb[36].mxu0 %v1441_v55  ;;  %731 = vmatmul.mubr.bf16.gmra.mrb[36].mxu1 %v1442_v56 }
  0x8a   :  { %618 = vmatprep.mubr.bf16.mxu0 %v1443_v57  ;;  %738 = vmatprep.mubr.bf16.mxu1 %v1445_v58 }
  0x91   :  { %619 = vmatmul.mubr.bf16.gmra.mrb[40].mxu0 %v1447_v59  ;;  %739 = vmatmul.mubr.bf16.gmra.mrb[40].mxu1 %v1448_v60 }
  0x92   :  { %626 = vmatprep.mubr.bf16.mxu0 %v1449_v61  ;;  %746 = vmatprep.mubr.bf16.mxu1 %v1451_v62 }
  0x99   :  { %627 = vmatmul.mubr.bf16.gmra.mrb[44].mxu0 %v1453_v63  ;;  %747 = vmatmul.mubr.bf16.gmra.mrb[44].mxu1 %v1454_v0 }
  0x9a   :  { %634 = vmatprep.mubr.bf16.mxu0 %v1455_v1  ;;  %754 = vmatprep.mubr.bf16.mxu1 %v1457_v2 }
  0xa1   :  { %635 = vmatmul.mubr.bf16.gmra.mrb[48].mxu0 %v1459_v3  ;;  %755 = vmatmul.mubr.bf16.gmra.mrb[48].mxu1 %v1460_v4 }
  0xa2   :  { %642 = vmatprep.mubr.bf16.mxu0 %v1461_v5  ;;  %762 = vmatprep.mubr.bf16.mxu1 %v1463_v6 }
  0xa9   :  { %643 = vmatmul.mubr.bf16.gmra.mrb[52].mxu0 %v1465_v8  ;;  %763 = vmatmul.mubr.bf16.gmra.mrb[52].mxu1 %v1466_v9 }
  0xaa   :  { %650 = vmatprep.mubr.bf16.mxu0 %v1467_v10  ;;  %770 = vmatprep.mubr.bf16.mxu1 %v1199_v11 }
  0xb1   :  { %651 = vmatmul.mubr.bf16.gmra.mrb[56].mxu0 %v1470_v12  ;;  %771 = vmatmul.mubr.bf16.gmra.mrb[56].mxu1 %v1198_v13 }
 0x114   :  { %v540_v15 = vpop.f32.mrb[0].mxu0  ;;  %v660_v16 = vpop.f32.mrb[0].mxu1 }
 0x115   :  { %v541_v17 = vadd.f32 %v1753_v14, %v540_v15  ;;  %v661_v18 = vadd.f32 %v1753_v14, %v660_v16  ;;  %v542_v19 = vpop.f32.mrb[1].mxu0  ;;  %v662_v20 = vpop.f32.mrb[1].mxu1 }
 0x116   :  { %v543_v21 = vpop.f32.mrb[2].mxu0  ;;  %v663_v22 = vpop.f32.mrb[2].mxu1 }
 0x117   :  { %v778_v23 = vmax.f32 %v541_v17, 0.0  ;;  %v808_v24 = vmax.f32 %v661_v18, 0.0  ;;  %v544_v25 = vadd.f32 %v1753_v14, %v543_v21  ;;  %v664_v26 = vadd.f32 %v1753_v14, %v663_v22  ;;  %v545_v27 = vpop.f32.mrb[3].mxu0  ;;  %v665_v28 = vpop.f32.mrb[3].mxu1 }
 0x119   :  { %v1275_v29 = vpack.c.bf16 %v778_v23, %v778_v23  ;;  %v1305_v30 = vpack.c.bf16 %v808_v24, %v808_v24  ;;  %v779_v31 = vmax.f32 %v544_v25, 0.0  ;;  %v809_v32 = vmax.f32 %v664_v26, 0.0 }
 0x11b   :  { %1075 = vst.msk [vmem:[%s2052_s3] sm:$0xf] %vm1074_vm0, %v1275_v29  ;;  %1105 = vst.msk [vmem:[%s2052_s3 + $0x78] sm:$0xf] %vm1074_vm0, %v1305_v30  ;;  %v1276_v33 = vpack.c.bf16 %v779_v31, %v779_v31  ;;  %v1306_v34 = vpack.c.bf16 %v809_v32, %v809_v32 }
 0x11c   :  { %v548_v35 = vpop.f32.mrb[4].mxu0  ;;  %v668_v36 = vpop.f32.mrb[4].mxu1 }
 0x11d   :  { %1076 = vst.msk [vmem:[%s2052_s3 + $0x4] sm:$0xf] %vm1074_vm0, %v1276_v33  ;;  %1106 = vst.msk [vmem:[%s2052_s3 + $0x7c] sm:$0xf] %vm1074_vm0, %v1306_v34  ;;  %v549_v37 = vadd.f32 %v1753_v14, %v548_v35  ;;  %v669_v38 = vadd.f32 %v1753_v14, %v668_v36  ;;  %v550_v39 = vpop.f32.mrb[5].mxu0  ;;  %v670_v40 = vpop.f32.mrb[5].mxu1 }
 0x11e   :  { %v551_v41 = vpop.f32.mrb[6].mxu0  ;;  %v671_v42 = vpop.f32.mrb[6].mxu1 }
 0x11f   :  { %v780_v43 = vmax.f32 %v549_v37, 0.0  ;;  %v810_v44 = vmax.f32 %v669_v38, 0.0  ;;  %v552_v45 = vadd.f32 %v1753_v14, %v551_v41  ;;  %v672_v46 = vadd.f32 %v1753_v14, %v671_v42  ;;  %v553_v47 = vpop.f32.mrb[7].mxu0  ;;  %v673_v48 = vpop.f32.mrb[7].mxu1 }
 0x121   :  { %v1277_v49 = vpack.c.bf16 %v780_v43, %v780_v43  ;;  %v1307_v50 = vpack.c.bf16 %v810_v44, %v810_v44  ;;  %v781_v51 = vmax.f32 %v552_v45, 0.0  ;;  %v811_v52 = vmax.f32 %v672_v46, 0.0 }
 0x123   :  { %1077 = vst.msk [vmem:[%s2052_s3 + $0x8] sm:$0xf] %vm1074_vm0, %v1277_v49  ;;  %1107 = vst.msk [vmem:[%s2052_s3 + $0x80] sm:$0xf] %vm1074_vm0, %v1307_v50  ;;  %v1278_v53 = vpack.c.bf16 %v781_v51, %v781_v51  ;;  %v1308_v54 = vpack.c.bf16 %v811_v52, %v811_v52 }
 0x124   :  { %v556_v55 = vpop.f32.mrb[8].mxu0  ;;  %v676_v56 = vpop.f32.mrb[8].mxu1 }
 0x125   :  { %1078 = vst.msk [vmem:[%s2052_s3 + $0xc] sm:$0xf] %vm1074_vm0, %v1278_v53  ;;  %1108 = vst.msk [vmem:[%s2052_s3 + $0x84] sm:$0xf] %vm1074_vm0, %v1308_v54  ;;  %v557_v57 = vadd.f32 %v1753_v14, %v556_v55  ;;  %v677_v58 = vadd.f32 %v1753_v14, %v676_v56  ;;  %v558_v59 = vpop.f32.mrb[9].mxu0  ;;  %v678_v60 = vpop.f32.mrb[9].mxu1 }
 0x126   :  { %v559_v61 = vpop.f32.mrb[10].mxu0  ;;  %v679_v62 = vpop.f32.mrb[10].mxu1 }
 0x127   :  { %v782_v63 = vmax.f32 %v557_v57, 0.0  ;;  %v812_v0 = vmax.f32 %v677_v58, 0.0  ;;  %v560_v1 = vadd.f32 %v1753_v14, %v559_v61  ;;  %v680_v2 = vadd.f32 %v1753_v14, %v679_v62  ;;  %v561_v3 = vpop.f32.mrb[11].mxu0  ;;  %v681_v4 = vpop.f32.mrb[11].mxu1 }
 0x129   :  { %v1279_v5 = vpack.c.bf16 %v782_v63, %v782_v63  ;;  %v1309_v6 = vpack.c.bf16 %v812_v0, %v812_v0  ;;  %v783_v7 = vmax.f32 %v560_v1, 0.0  ;;  %v813_v8 = vmax.f32 %v680_v2, 0.0 }
 0x12b   :  { %1079 = vst.msk [vmem:[%s2052_s3 + $0x10] sm:$0xf] %vm1074_vm0, %v1279_v5  ;;  %1109 = vst.msk [vmem:[%s2052_s3 + $0x88] sm:$0xf] %vm1074_vm0, %v1309_v6  ;;  %v1280_v9 = vpack.c.bf16 %v783_v7, %v783_v7  ;;  %v1310_v10 = vpack.c.bf16 %v813_v8, %v813_v8 }
 0x12c   :  { %v564_v11 = vpop.f32.mrb[12].mxu0  ;;  %v684_v12 = vpop.f32.mrb[12].mxu1 }
 0x12d   :  { %1080 = vst.msk [vmem:[%s2052_s3 + $0x14] sm:$0xf] %vm1074_vm0, %v1280_v9  ;;  %1110 = vst.msk [vmem:[%s2052_s3 + $0x8c] sm:$0xf] %vm1074_vm0, %v1310_v10  ;;  %v565_v13 = vadd.f32 %v1753_v14, %v564_v11  ;;  %v685_v15 = vadd.f32 %v1753_v14, %v684_v12  ;;  %v566_v16 = vpop.f32.mrb[13].mxu0  ;;  %v686_v17 = vpop.f32.mrb[13].mxu1 }
 0x12e   :  { %v567_v18 = vpop.f32.mrb[14].mxu0  ;;  %v687_v19 = vpop.f32.mrb[14].mxu1 }
 0x12f   :  { %v784_v20 = vmax.f32 %v565_v13, 0.0  ;;  %v814_v21 = vmax.f32 %v685_v15, 0.0  ;;  %v568_v22 = vadd.f32 %v1753_v14, %v567_v18  ;;  %v688_v23 = vadd.f32 %v1753_v14, %v687_v19  ;;  %v569_v24 = vpop.f32.mrb[15].mxu0  ;;  %v689_v25 = vpop.f32.mrb[15].mxu1 }
 0x131   :  { %v1281_v26 = vpack.c.bf16 %v784_v20, %v784_v20  ;;  %v1311_v27 = vpack.c.bf16 %v814_v21, %v814_v21  ;;  %v785_v28 = vmax.f32 %v568_v22, 0.0  ;;  %v815_v29 = vmax.f32 %v688_v23, 0.0 }
 0x133   :  { %1081 = vst.msk [vmem:[%s2052_s3 + $0x18] sm:$0xf] %vm1074_vm0, %v1281_v26  ;;  %1111 = vst.msk [vmem:[%s2052_s3 + $0x90] sm:$0xf] %vm1074_vm0, %v1311_v27  ;;  %v1282_v30 = vpack.c.bf16 %v785_v28, %v785_v28  ;;  %v1312_v31 = vpack.c.bf16 %v815_v29, %v815_v29 }
 0x134   :  { %v572_v32 = vpop.f32.mrb[16].mxu0  ;;  %v692_v33 = vpop.f32.mrb[16].mxu1 }
 0x135   :  { %1082 = vst.msk [vmem:[%s2052_s3 + $0x1c] sm:$0xf] %vm1074_vm0, %v1282_v30  ;;  %1112 = vst.msk [vmem:[%s2052_s3 + $0x94] sm:$0xf] %vm1074_vm0, %v1312_v31  ;;  %v573_v34 = vadd.f32 %v1753_v14, %v572_v32  ;;  %v693_v35 = vadd.f32 %v1753_v14, %v692_v33  ;;  %v574_v36 = vpop.f32.mrb[17].mxu0  ;;  %v694_v37 = vpop.f32.mrb[17].mxu1 }
 0x136   :  { %v575_v38 = vpop.f32.mrb[18].mxu0  ;;  %v695_v39 = vpop.f32.mrb[18].mxu1 }
 0x137   :  { %v786_v40 = vmax.f32 %v573_v34, 0.0  ;;  %v816_v41 = vmax.f32 %v693_v35, 0.0  ;;  %v576_v42 = vadd.f32 %v1753_v14, %v575_v38  ;;  %v696_v43 = vadd.f32 %v1753_v14, %v695_v39  ;;  %v577_v44 = vpop.f32.mrb[19].mxu0  ;;  %v697_v45 = vpop.f32.mrb[19].mxu1 }
 0x139   :  { %v1283_v46 = vpack.c.bf16 %v786_v40, %v786_v40  ;;  %v1313_v47 = vpack.c.bf16 %v816_v41, %v816_v41  ;;  %v787_v48 = vmax.f32 %v576_v42, 0.0  ;;  %v817_v49 = vmax.f32 %v696_v43, 0.0 }
 0x13b   :  { %1083 = vst.msk [vmem:[%s2052_s3 + $0x20] sm:$0xf] %vm1074_vm0, %v1283_v46  ;;  %1113 = vst.msk [vmem:[%s2052_s3 + $0x98] sm:$0xf] %vm1074_vm0, %v1313_v47  ;;  %v1284_v50 = vpack.c.bf16 %v787_v48, %v787_v48  ;;  %v1314_v51 = vpack.c.bf16 %v817_v49, %v817_v49 }
 0x13c   :  { %v580_v52 = vpop.f32.mrb[20].mxu0  ;;  %v700_v53 = vpop.f32.mrb[20].mxu1 }
 0x13d   :  { %1084 = vst.msk [vmem:[%s2052_s3 + $0x24] sm:$0xf] %vm1074_vm0, %v1284_v50  ;;  %1114 = vst.msk [vmem:[%s2052_s3 + $0x9c] sm:$0xf] %vm1074_vm0, %v1314_v51  ;;  %v581_v54 = vadd.f32 %v1753_v14, %v580_v52  ;;  %v701_v55 = vadd.f32 %v1753_v14, %v700_v53  ;;  %v582_v56 = vpop.f32.mrb[21].mxu0  ;;  %v702_v57 = vpop.f32.mrb[21].mxu1 }
 0x13e   :  { %v583_v58 = vpop.f32.mrb[22].mxu0  ;;  %v703_v59 = vpop.f32.mrb[22].mxu1 }
 0x13f   :  { %v788_v60 = vmax.f32 %v581_v54, 0.0  ;;  %v818_v61 = vmax.f32 %v701_v55, 0.0  ;;  %v584_v62 = vadd.f32 %v1753_v14, %v583_v58  ;;  %v704_v63 = vadd.f32 %v1753_v14, %v703_v59  ;;  %v585_v0 = vpop.f32.mrb[23].mxu0  ;;  %v705_v1 = vpop.f32.mrb[23].mxu1 }
 0x141   :  { %v1285_v2 = vpack.c.bf16 %v788_v60, %v788_v60  ;;  %v1315_v3 = vpack.c.bf16 %v818_v61, %v818_v61  ;;  %v789_v4 = vmax.f32 %v584_v62, 0.0  ;;  %v819_v5 = vmax.f32 %v704_v63, 0.0 }
 0x143   :  { %1085 = vst.msk [vmem:[%s2052_s3 + $0x28] sm:$0xf] %vm1074_vm0, %v1285_v2  ;;  %1115 = vst.msk [vmem:[%s2052_s3 + $0xa0] sm:$0xf] %vm1074_vm0, %v1315_v3  ;;  %v1286_v6 = vpack.c.bf16 %v789_v4, %v789_v4  ;;  %v1316_v7 = vpack.c.bf16 %v819_v5, %v819_v5 }
 0x144   :  { %v588_v8 = vpop.f32.mrb[24].mxu0  ;;  %v708_v9 = vpop.f32.mrb[24].mxu1 }
 0x145   :  { %1086 = vst.msk [vmem:[%s2052_s3 + $0x2c] sm:$0xf] %vm1074_vm0, %v1286_v6  ;;  %1116 = vst.msk [vmem:[%s2052_s3 + $0xa4] sm:$0xf] %vm1074_vm0, %v1316_v7  ;;  %v589_v10 = vadd.f32 %v1753_v14, %v588_v8  ;;  %v709_v11 = vadd.f32 %v1753_v14, %v708_v9  ;;  %v590_v12 = vpop.f32.mrb[25].mxu0  ;;  %v710_v13 = vpop.f32.mrb[25].mxu1 }
 0x146   :  { %v591_v15 = vpop.f32.mrb[26].mxu0  ;;  %v711_v16 = vpop.f32.mrb[26].mxu1 }
 0x147   :  { %v790_v17 = vmax.f32 %v589_v10, 0.0  ;;  %v820_v18 = vmax.f32 %v709_v11, 0.0  ;;  %v592_v19 = vadd.f32 %v1753_v14, %v591_v15  ;;  %v712_v20 = vadd.f32 %v1753_v14, %v711_v16  ;;  %v593_v21 = vpop.f32.mrb[27].mxu0  ;;  %v713_v22 = vpop.f32.mrb[27].mxu1 }
 0x149   :  { %v1287_v23 = vpack.c.bf16 %v790_v17, %v790_v17  ;;  %v1317_v24 = vpack.c.bf16 %v820_v18, %v820_v18  ;;  %v791_v25 = vmax.f32 %v592_v19, 0.0  ;;  %v821_v26 = vmax.f32 %v712_v20, 0.0 }
 0x14b   :  { %1087 = vst.msk [vmem:[%s2052_s3 + $0x30] sm:$0xf] %vm1074_vm0, %v1287_v23  ;;  %1117 = vst.msk [vmem:[%s2052_s3 + $0xa8] sm:$0xf] %vm1074_vm0, %v1317_v24  ;;  %v1288_v27 = vpack.c.bf16 %v791_v25, %v791_v25  ;;  %v1318_v28 = vpack.c.bf16 %v821_v26, %v821_v26 }
 0x14c   :  { %v596_v29 = vpop.f32.mrb[28].mxu0  ;;  %v716_v30 = vpop.f32.mrb[28].mxu1 }
 0x14d   :  { %1088 = vst.msk [vmem:[%s2052_s3 + $0x34] sm:$0xf] %vm1074_vm0, %v1288_v27  ;;  %1118 = vst.msk [vmem:[%s2052_s3 + $0xac] sm:$0xf] %vm1074_vm0, %v1318_v28  ;;  %v597_v31 = vadd.f32 %v1753_v14, %v596_v29  ;;  %v717_v32 = vadd.f32 %v1753_v14, %v716_v30  ;;  %v598_v33 = vpop.f32.mrb[29].mxu0  ;;  %v718_v34 = vpop.f32.mrb[29].mxu1 }
 0x14e   :  { %v599_v35 = vpop.f32.mrb[30].mxu0  ;;  %v719_v36 = vpop.f32.mrb[30].mxu1 }
 0x14f   :  { %v792_v37 = vmax.f32 %v597_v31, 0.0  ;;  %v822_v38 = vmax.f32 %v717_v32, 0.0  ;;  %v600_v39 = vadd.f32 %v1753_v14, %v599_v35  ;;  %v720_v40 = vadd.f32 %v1753_v14, %v719_v36  ;;  %v601_v41 = vpop.f32.mrb[31].mxu0  ;;  %v721_v42 = vpop.f32.mrb[31].mxu1 }
 0x151   :  { %v1289_v43 = vpack.c.bf16 %v792_v37, %v792_v37  ;;  %v1319_v44 = vpack.c.bf16 %v822_v38, %v822_v38  ;;  %v793_v45 = vmax.f32 %v600_v39, 0.0  ;;  %v823_v46 = vmax.f32 %v720_v40, 0.0 }
 0x153   :  { %1089 = vst.msk [vmem:[%s2052_s3 + $0x38] sm:$0xf] %vm1074_vm0, %v1289_v43  ;;  %1119 = vst.msk [vmem:[%s2052_s3 + $0xb0] sm:$0xf] %vm1074_vm0, %v1319_v44  ;;  %v1290_v47 = vpack.c.bf16 %v793_v45, %v793_v45  ;;  %v1320_v48 = vpack.c.bf16 %v823_v46, %v823_v46 }
 0x154   :  { %v604_v49 = vpop.f32.mrb[32].mxu0  ;;  %v724_v50 = vpop.f32.mrb[32].mxu1 }
 0x155   :  { %1090 = vst.msk [vmem:[%s2052_s3 + $0x3c] sm:$0xf] %vm1074_vm0, %v1290_v47  ;;  %1120 = vst.msk [vmem:[%s2052_s3 + $0xb4] sm:$0xf] %vm1074_vm0, %v1320_v48  ;;  %v605_v51 = vadd.f32 %v1753_v14, %v604_v49  ;;  %v725_v52 = vadd.f32 %v1753_v14, %v724_v50  ;;  %v606_v53 = vpop.f32.mrb[33].mxu0  ;;  %v726_v54 = vpop.f32.mrb[33].mxu1 }
 0x156   :  { %v607_v55 = vpop.f32.mrb[34].mxu0  ;;  %v727_v56 = vpop.f32.mrb[34].mxu1 }
 0x157   :  { %v794_v57 = vmax.f32 %v605_v51, 0.0  ;;  %v824_v58 = vmax.f32 %v725_v52, 0.0  ;;  %v608_v59 = vadd.f32 %v1753_v14, %v607_v55  ;;  %v728_v60 = vadd.f32 %v1753_v14, %v727_v56  ;;  %v609_v61 = vpop.f32.mrb[35].mxu0  ;;  %v729_v62 = vpop.f32.mrb[35].mxu1 }
 0x159   :  { %v1291_v63 = vpack.c.bf16 %v794_v57, %v794_v57  ;;  %v1321_v0 = vpack.c.bf16 %v824_v58, %v824_v58  ;;  %v795_v1 = vmax.f32 %v608_v59, 0.0  ;;  %v825_v2 = vmax.f32 %v728_v60, 0.0 }
 0x15b   :  { %1091 = vst.msk [vmem:[%s2052_s3 + $0x40] sm:$0xf] %vm1074_vm0, %v1291_v63  ;;  %1121 = vst.msk [vmem:[%s2052_s3 + $0xb8] sm:$0xf] %vm1074_vm0, %v1321_v0  ;;  %v1292_v3 = vpack.c.bf16 %v795_v1, %v795_v1  ;;  %v1322_v4 = vpack.c.bf16 %v825_v2, %v825_v2 }
 0x15c   :  { %v612_v5 = vpop.f32.mrb[36].mxu0  ;;  %v732_v6 = vpop.f32.mrb[36].mxu1 }
 0x15d   :  { %1092 = vst.msk [vmem:[%s2052_s3 + $0x44] sm:$0xf] %vm1074_vm0, %v1292_v3  ;;  %1122 = vst.msk [vmem:[%s2052_s3 + $0xbc] sm:$0xf] %vm1074_vm0, %v1322_v4  ;;  %v613_v7 = vadd.f32 %v1753_v14, %v612_v5  ;;  %v733_v8 = vadd.f32 %v1753_v14, %v732_v6  ;;  %v614_v9 = vpop.f32.mrb[37].mxu0  ;;  %v734_v10 = vpop.f32.mrb[37].mxu1 }
 0x15e   :  { %v615_v11 = vpop.f32.mrb[38].mxu0  ;;  %v735_v12 = vpop.f32.mrb[38].mxu1 }
 0x15f   :  { %v796_v13 = vmax.f32 %v613_v7, 0.0  ;;  %v826_v15 = vmax.f32 %v733_v8, 0.0  ;;  %v616_v16 = vadd.f32 %v1753_v14, %v615_v11  ;;  %v736_v17 = vadd.f32 %v1753_v14, %v735_v12  ;;  %v617_v18 = vpop.f32.mrb[39].mxu0  ;;  %v737_v19 = vpop.f32.mrb[39].mxu1 }
 0x161   :  { %v1293_v20 = vpack.c.bf16 %v796_v13, %v796_v13  ;;  %v1323_v21 = vpack.c.bf16 %v826_v15, %v826_v15  ;;  %v797_v22 = vmax.f32 %v616_v16, 0.0  ;;  %v827_v23 = vmax.f32 %v736_v17, 0.0 }
 0x163   :  { %1093 = vst.msk [vmem:[%s2052_s3 + $0x48] sm:$0xf] %vm1074_vm0, %v1293_v20  ;;  %1123 = vst.msk [vmem:[%s2052_s3 + $0xc0] sm:$0xf] %vm1074_vm0, %v1323_v21  ;;  %v1294_v24 = vpack.c.bf16 %v797_v22, %v797_v22  ;;  %v1324_v25 = vpack.c.bf16 %v827_v23, %v827_v23 }
 0x164   :  { %v620_v26 = vpop.f32.mrb[40].mxu0  ;;  %v740_v27 = vpop.f32.mrb[40].mxu1 }
 0x165   :  { %1094 = vst.msk [vmem:[%s2052_s3 + $0x4c] sm:$0xf] %vm1074_vm0, %v1294_v24  ;;  %1124 = vst.msk [vmem:[%s2052_s3 + $0xc4] sm:$0xf] %vm1074_vm0, %v1324_v25  ;;  %v621_v28 = vadd.f32 %v1753_v14, %v620_v26  ;;  %v741_v29 = vadd.f32 %v1753_v14, %v740_v27  ;;  %v622_v30 = vpop.f32.mrb[41].mxu0  ;;  %v742_v31 = vpop.f32.mrb[41].mxu1 }
 0x166   :  { %v623_v32 = vpop.f32.mrb[42].mxu0  ;;  %v743_v33 = vpop.f32.mrb[42].mxu1 }
 0x167   :  { %v798_v34 = vmax.f32 %v621_v28, 0.0  ;;  %v828_v35 = vmax.f32 %v741_v29, 0.0  ;;  %v624_v36 = vadd.f32 %v1753_v14, %v623_v32  ;;  %v744_v37 = vadd.f32 %v1753_v14, %v743_v33  ;;  %v625_v38 = vpop.f32.mrb[43].mxu0  ;;  %v745_v39 = vpop.f32.mrb[43].mxu1 }
 0x169   :  { %v1295_v40 = vpack.c.bf16 %v798_v34, %v798_v34  ;;  %v1325_v41 = vpack.c.bf16 %v828_v35, %v828_v35  ;;  %v799_v42 = vmax.f32 %v624_v36, 0.0  ;;  %v829_v43 = vmax.f32 %v744_v37, 0.0 }
 0x16b   :  { %1095 = vst.msk [vmem:[%s2052_s3 + $0x50] sm:$0xf] %vm1074_vm0, %v1295_v40  ;;  %1125 = vst.msk [vmem:[%s2052_s3 + $0xc8] sm:$0xf] %vm1074_vm0, %v1325_v41  ;;  %v1296_v44 = vpack.c.bf16 %v799_v42, %v799_v42  ;;  %v1326_v45 = vpack.c.bf16 %v829_v43, %v829_v43 }
 0x16c   :  { %v628_v46 = vpop.f32.mrb[44].mxu0  ;;  %v748_v47 = vpop.f32.mrb[44].mxu1 }
 0x16d   :  { %1096 = vst.msk [vmem:[%s2052_s3 + $0x54] sm:$0xf] %vm1074_vm0, %v1296_v44  ;;  %1126 = vst.msk [vmem:[%s2052_s3 + $0xcc] sm:$0xf] %vm1074_vm0, %v1326_v45  ;;  %v629_v48 = vadd.f32 %v1753_v14, %v628_v46  ;;  %v749_v49 = vadd.f32 %v1753_v14, %v748_v47  ;;  %v630_v50 = vpop.f32.mrb[45].mxu0  ;;  %v750_v51 = vpop.f32.mrb[45].mxu1 }
 0x16e   :  { %v631_v52 = vpop.f32.mrb[46].mxu0  ;;  %v751_v53 = vpop.f32.mrb[46].mxu1 }
 0x16f   :  { %v800_v54 = vmax.f32 %v629_v48, 0.0  ;;  %v830_v55 = vmax.f32 %v749_v49, 0.0  ;;  %v632_v56 = vadd.f32 %v1753_v14, %v631_v52  ;;  %v752_v57 = vadd.f32 %v1753_v14, %v751_v53  ;;  %v633_v58 = vpop.f32.mrb[47].mxu0  ;;  %v753_v59 = vpop.f32.mrb[47].mxu1 }
 0x171   :  { %v1297_v60 = vpack.c.bf16 %v800_v54, %v800_v54  ;;  %v1327_v61 = vpack.c.bf16 %v830_v55, %v830_v55  ;;  %v801_v62 = vmax.f32 %v632_v56, 0.0  ;;  %v831_v63 = vmax.f32 %v752_v57, 0.0 }
 0x173   :  { %1097 = vst.msk [vmem:[%s2052_s3 + $0x58] sm:$0xf] %vm1074_vm0, %v1297_v60  ;;  %1127 = vst.msk [vmem:[%s2052_s3 + $0xd0] sm:$0xf] %vm1074_vm0, %v1327_v61  ;;  %v1298_v0 = vpack.c.bf16 %v801_v62, %v801_v62  ;;  %v1328_v1 = vpack.c.bf16 %v831_v63, %v831_v63 }
 0x174   :  { %v636_v2 = vpop.f32.mrb[48].mxu0  ;;  %v756_v3 = vpop.f32.mrb[48].mxu1 }
 0x175   :  { %1098 = vst.msk [vmem:[%s2052_s3 + $0x5c] sm:$0xf] %vm1074_vm0, %v1298_v0  ;;  %1128 = vst.msk [vmem:[%s2052_s3 + $0xd4] sm:$0xf] %vm1074_vm0, %v1328_v1  ;;  %v637_v4 = vadd.f32 %v1753_v14, %v636_v2  ;;  %v757_v5 = vadd.f32 %v1753_v14, %v756_v3  ;;  %v638_v6 = vpop.f32.mrb[49].mxu0  ;;  %v758_v7 = vpop.f32.mrb[49].mxu1 }
 0x176   :  { %v639_v8 = vpop.f32.mrb[50].mxu0  ;;  %v759_v9 = vpop.f32.mrb[50].mxu1 }
 0x177   :  { %v802_v10 = vmax.f32 %v637_v4, 0.0  ;;  %v832_v11 = vmax.f32 %v757_v5, 0.0  ;;  %v640_v12 = vadd.f32 %v1753_v14, %v639_v8  ;;  %v760_v13 = vadd.f32 %v1753_v14, %v759_v9  ;;  %v641_v15 = vpop.f32.mrb[51].mxu0  ;;  %v761_v16 = vpop.f32.mrb[51].mxu1 }
 0x179   :  { %v1299_v17 = vpack.c.bf16 %v802_v10, %v802_v10  ;;  %v1329_v18 = vpack.c.bf16 %v832_v11, %v832_v11  ;;  %v803_v19 = vmax.f32 %v640_v12, 0.0  ;;  %v833_v20 = vmax.f32 %v760_v13, 0.0 }
 0x17b   :  { %1099 = vst.msk [vmem:[%s2052_s3 + $0x60] sm:$0xf] %vm1074_vm0, %v1299_v17  ;;  %1129 = vst.msk [vmem:[%s2052_s3 + $0xd8] sm:$0xf] %vm1074_vm0, %v1329_v18  ;;  %v1300_v21 = vpack.c.bf16 %v803_v19, %v803_v19  ;;  %v1330_v22 = vpack.c.bf16 %v833_v20, %v833_v20 }
 0x17c   :  { %v644_v23 = vpop.f32.mrb[52].mxu0  ;;  %v764_v24 = vpop.f32.mrb[52].mxu1 }
 0x17d   :  { %1100 = vst.msk [vmem:[%s2052_s3 + $0x64] sm:$0xf] %vm1074_vm0, %v1300_v21  ;;  %1130 = vst.msk [vmem:[%s2052_s3 + $0xdc] sm:$0xf] %vm1074_vm0, %v1330_v22  ;;  %v645_v25 = vadd.f32 %v1753_v14, %v644_v23  ;;  %v765_v26 = vadd.f32 %v1753_v14, %v764_v24  ;;  %v646_v27 = vpop.f32.mrb[53].mxu0  ;;  %v766_v28 = vpop.f32.mrb[53].mxu1 }
 0x17e   :  { %v647_v29 = vpop.f32.mrb[54].mxu0  ;;  %v767_v30 = vpop.f32.mrb[54].mxu1 }
 0x17f   :  { %v804_v31 = vmax.f32 %v645_v25, 0.0  ;;  %v834_v32 = vmax.f32 %v765_v26, 0.0  ;;  %v648_v33 = vadd.f32 %v1753_v14, %v647_v29  ;;  %v768_v34 = vadd.f32 %v1753_v14, %v767_v30  ;;  %v649_v35 = vpop.f32.mrb[55].mxu0  ;;  %v769_v36 = vpop.f32.mrb[55].mxu1 }
 0x181   :  { %v1301_v37 = vpack.c.bf16 %v804_v31, %v804_v31  ;;  %v1331_v38 = vpack.c.bf16 %v834_v32, %v834_v32  ;;  %v805_v39 = vmax.f32 %v648_v33, 0.0  ;;  %v835_v40 = vmax.f32 %v768_v34, 0.0 }
 0x183   :  { %1101 = vst.msk [vmem:[%s2052_s3 + $0x68] sm:$0xf] %vm1074_vm0, %v1301_v37  ;;  %1131 = vst.msk [vmem:[%s2052_s3 + $0xe0] sm:$0xf] %vm1074_vm0, %v1331_v38  ;;  %v1302_v41 = vpack.c.bf16 %v805_v39, %v805_v39  ;;  %v1332_v42 = vpack.c.bf16 %v835_v40, %v835_v40 }
 0x184   :  { %v652_v43 = vpop.f32.mrb[56].mxu0  ;;  %v772_v44 = vpop.f32.mrb[56].mxu1 }
 0x185   :  { %1102 = vst.msk [vmem:[%s2052_s3 + $0x6c] sm:$0xf] %vm1074_vm0, %v1302_v41  ;;  %1132 = vst.msk [vmem:[%s2052_s3 + $0xe4] sm:$0xf] %vm1074_vm0, %v1332_v42  ;;  %v653_v45 = vadd.f32 %v1753_v14, %v652_v43  ;;  %v773_v46 = vadd.f32 %v1753_v14, %v772_v44  ;;  %v654_v47 = vpop.f32.mrb[57].mxu0  ;;  %v774_v48 = vpop.f32.mrb[57].mxu1 }
 0x186   :  { %v655_v49 = vpop.f32.mrb[58].mxu0  ;;  %v775_v50 = vpop.f32.mrb[58].mxu1 }
 0x187   :  { %v806_v51 = vmax.f32 %v653_v45, 0.0  ;;  %v836_v52 = vmax.f32 %v773_v46, 0.0  ;;  %v656_v53 = vadd.f32 %v1753_v14, %v655_v49  ;;  %v657_v54 = vpop.f32.mrb[59].mxu0  ;;  %v776_v55 = vpop.f32.mrb[59].mxu1 }
 0x189   :  { %v1303_v56 = vpack.c.bf16 %v806_v51, %v806_v51  ;;  %v1333_v57 = vpack.c.bf16 %v836_v52, %v836_v52  ;;  %v807_v58 = vmax.f32 %v656_v53, 0.0 }
 0x18b   :  { %1103 = vst.msk [vmem:[%s2052_s3 + $0x70] sm:$0xf] %vm1074_vm0, %v1303_v56  ;;  %v1304_v59 = vpack.c.bf16 %v807_v58, %v807_v58 }
 0x18c   :  { %1134 = vst.msk [vmem:[%s2052_s3 + $0xe8] sm:$0x3] %vm1133_vm1, %v1333_v57 }
 0x18d   :  { %1104 = vst.msk [vmem:[%s2052_s3 + $0x74] sm:$0xf] %vm1074_vm0, %v1304_v59 }

// kernel: agent_net_forward.6
= control target key start
LH: loop header
LB: loop body
LE: loop exit
PB: predicated region body
PF: predicated region fallthrough
CT: control target
= control target key end

     0   :  { %v1744_v0 = vmov 0   ;;  %vm584_vm0 = vcmask 261120   ;;  %vm1289_vm1 = vcmask 257024   ;;  %s2344_s1 = inlined_call_operand.vmem [shape: bf16[288,32], index: 1, kind: input, shape index: {}]   ;;  %s2345_s0 = inlined_call_operand.vmem [shape: bf16[352,288], index: 0, kind: input, shape index: {}]   ;;  %s2346_s2 = inlined_call_operand.vmem [shape: f32[1,32], index: 2, kind: input, shape index: {}]   ;;  %s2347_s3 = inlined_call_operand.vmem [shape: bf16[352,32], index: 3, kind: output, shape index: {}]  }
   0x1   :  { %651 = vmatprep.subr.bf16.mxu0 %v1744_v0  ;;  %1605 = vmatprep.subr.bf16.mxu1 %v1744_v0  ;;  %v1638_v1 = vld [vmem:[%s2344_s1] sm:$0xff]   ;;  %v1639_v2 = vld [vmem:[%s2344_s1 + $0x8] sm:$0xff]   ;;  %v1640_v3 = vld [vmem:[%s2344_s1 + $0x10] sm:$0xff]  }
   0x2   :  { %652 = vmatpush1.bf16.msra.mxu0 %v1638_v1  ;;  %1621 = vmatpush1.bf16.msra.mxu1 %v1638_v1  ;;  %v1641_v4 = vld [vmem:[%s2344_s1 + $0x18] sm:$0xff]   ;;  %v1642_v5 = vld [vmem:[%s2344_s1 + $0x20] sm:$0xff]   ;;  %v1643_v7 = vld [vmem:[%s2344_s1 + $0x28] sm:$0xff]  }
   0x3   :  { %653 = vmatprep.subr.bf16.mxu0 %v1744_v0  ;;  %1606 = vmatprep.subr.bf16.mxu1 %v1744_v0  ;;  %v1656_v6 = vld [vmem:[%s2345_s0 + $0x4] ss:$12 sps:$4 sm:$0xff]   ;;  %v1659_v8 = vld [vmem:[%s2345_s0 + $0x19c] ss:$12 sps:$4 sm:$0xff]   ;;  %v1654_v19 = vld [vmem:[%s2345_s0] ss:$12 sps:$4 sm:$0xff]  }
   0x4   :  { %683 = vmatprep.mubr.bf16.mxu0 %v1656_v6  ;;  %819 = vmatprep.mubr.bf16.mxu1 %v1659_v8  ;;  %v1644_v9 = vld [vmem:[%s2344_s1 + $0x30] sm:$0xff]   ;;  %v1645_v10 = vld [vmem:[%s2344_s1 + $0x38] sm:$0xff]   ;;  %v1646_v11 = vld [vmem:[%s2344_s1 + $0x40] sm:$0xff]  }
   0x5   :  { %v1647_v12 = vld [vmem:[%s2344_s1 + $0x48] sm:$0xff]   ;;  %v1648_v13 = vld [vmem:[%s2344_s1 + $0x50] sm:$0xff]   ;;  %v1649_v14 = vld [vmem:[%s2344_s1 + $0x58] sm:$0xff]  }
   0x6   :  { %654 = vmatpush1.bf16.msra.mxu0 %v1639_v2  ;;  %1622 = vmatpush1.bf16.msra.mxu1 %v1639_v2  ;;  %v1650_v15 = vld [vmem:[%s2344_s1 + $0x60] sm:$0xff]   ;;  %v1651_v16 = vld [vmem:[%s2344_s1 + $0x68] sm:$0xff]   ;;  %v1652_v17 = vld [vmem:[%s2344_s1 + $0x70] sm:$0xff]  }
   0x7   :  { %655 = vmatprep.subr.bf16.mxu0 %v1744_v0  ;;  %1607 = vmatprep.subr.bf16.mxu1 %v1744_v0  ;;  %v1653_v18 = vld [vmem:[%s2344_s1 + $0x78] sm:$0xff]   ;;  %v1666_v20 = vld [vmem:[%s2344_s1 + $0x80] sm:$0xff]   ;;  %v1679_v24 = vld [vmem:[%s2344_s1 + $0x88] sm:$0xff]  }
   0x8   :  { %v1657_v21 = vld [vmem:[%s2345_s0 + $0x198] ss:$12 sps:$4 sm:$0xff]   ;;  %v1660_v22 = vld [vmem:[%s2345_s0 + $0x1c] ss:$12 sps:$4 sm:$0xff]   ;;  %v1662_v23 = vld [vmem:[%s2345_s0 + $0x1b4] ss:$12 sps:$4 sm:$0xff]  }
   0x9   :  { %v1664_v25 = vld [vmem:[%s2345_s0 + $0x18] ss:$12 sps:$4 sm:$0xff]   ;;  %v1665_v26 = vld [vmem:[%s2345_s0 + $0x1b0] ss:$12 sps:$4 sm:$0xff]   ;;  %v1667_v27 = vld [vmem:[%s2345_s0 + $0x34] ss:$12 sps:$4 sm:$0xff]  }
   0xa   :  { %656 = vmatpush1.bf16.msra.mxu0 %v1640_v3  ;;  %1623 = vmatpush1.bf16.msra.mxu1 %v1640_v3  ;;  %v1669_v28 = vld [vmem:[%s2345_s0 + $0x1cc] ss:$12 sps:$4 sm:$0xff]   ;;  %v1671_v29 = vld [vmem:[%s2345_s0 + $0x30] ss:$12 sps:$4 sm:$0xff]   ;;  %v1672_v30 = vld [vmem:[%s2345_s0 + $0x1c8] ss:$12 sps:$4 sm:$0xff]  }
   0xb   :  { %657 = vmatprep.subr.bf16.mxu0 %v1744_v0  ;;  %1608 = vmatprep.subr.bf16.mxu1 %v1744_v0  ;;  %v1673_v31 = vld [vmem:[%s2345_s0 + $0x4c] ss:$12 sps:$4 sm:$0xff]   ;;  %v1675_v32 = vld [vmem:[%s2345_s0 + $0x1e4] ss:$12 sps:$4 sm:$0xff]   ;;  %v1677_v33 = vld [vmem:[%s2345_s0 + $0x48] ss:$12 sps:$4 sm:$0xff]  }
   0xc   :  { %v1678_v34 = vld [vmem:[%s2345_s0 + $0x1e0] ss:$12 sps:$4 sm:$0xff]   ;;  %v1680_v35 = vld [vmem:[%s2345_s0 + $0x64] ss:$12 sps:$4 sm:$0xff]   ;;  %v1682_v36 = vld [vmem:[%s2345_s0 + $0x1fc] ss:$12 sps:$4 sm:$0xff]  }
   0xd   :  { %v1684_v37 = vld [vmem:[%s2345_s0 + $0x60] ss:$12 sps:$4 sm:$0xff]   ;;  %v1685_v38 = vld [vmem:[%s2345_s0 + $0x1f8] ss:$12 sps:$4 sm:$0xff]   ;;  %v1686_v39 = vld [vmem:[%s2345_s0 + $0x7c] ss:$12 sps:$4 sm:$0xff]  }
   0xe   :  { %658 = vmatpush1.bf16.msra.mxu0 %v1641_v4  ;;  %1624 = vmatpush1.bf16.msra.mxu1 %v1641_v4  ;;  %v1688_v40 = vld [vmem:[%s2345_s0 + $0x8] ss:$12 sps:$4 sm:$0xff]   ;;  %v1689_v41 = vld [vmem:[%s2345_s0 + $0x78] ss:$12 sps:$4 sm:$0xff]   ;;  %v1690_v42 = vld [vmem:[%s2345_s0 + $0x20] ss:$12 sps:$4 sm:$0xff]  }
   0xf   :  { %659 = vmatprep.subr.bf16.mxu0 %v1744_v0  ;;  %1609 = vmatprep.subr.bf16.mxu1 %v1744_v0  ;;  %v1691_v43 = vld [vmem:[%s2345_s0 + $0x94] ss:$12 sps:$4 sm:$0xff]   ;;  %v1693_v44 = vld [vmem:[%s2345_s0 + $0x38] ss:$12 sps:$4 sm:$0xff]   ;;  %v1694_v45 = vld [vmem:[%s2345_s0 + $0x90] ss:$12 sps:$4 sm:$0xff]  }
  0x10   :  { %v1695_v46 = vld [vmem:[%s2345_s0 + $0x50] ss:$12 sps:$4 sm:$0xff]   ;;  %v1696_v47 = vld [vmem:[%s2345_s0 + $0xac] ss:$12 sps:$4 sm:$0xff]   ;;  %v1698_v48 = vld [vmem:[%s2345_s0 + $0x68] ss:$12 sps:$4 sm:$0xff]  }
  0x11   :  { %v1699_v49 = vld [vmem:[%s2345_s0 + $0xa8] ss:$12 sps:$4 sm:$0xff]   ;;  %v1700_v50 = vld [vmem:[%s2345_s0 + $0x80] ss:$12 sps:$4 sm:$0xff]   ;;  %v1701_v51 = vld [vmem:[%s2345_s0 + $0xc4] ss:$12 sps:$4 sm:$0xff]  }
  0x12   :  { %660 = vmatpush1.bf16.msra.mxu0 %v1642_v5  ;;  %1625 = vmatpush1.bf16.msra.mxu1 %v1642_v5  ;;  %v1703_v52 = vld [vmem:[%s2345_s0 + $0x98] ss:$12 sps:$4 sm:$0xff]   ;;  %v1704_v53 = vld [vmem:[%s2345_s0 + $0xc0] ss:$12 sps:$4 sm:$0xff]   ;;  %v1705_v54 = vld [vmem:[%s2345_s0 + $0xb0] ss:$12 sps:$4 sm:$0xff]  }
  0x13   :  { %661 = vmatprep.subr.bf16.mxu0 %v1744_v0  ;;  %1610 = vmatprep.subr.bf16.mxu1 %v1744_v0  ;;  %v1706_v55 = vld [vmem:[%s2345_s0 + $0xdc] ss:$12 sps:$4 sm:$0xff]   ;;  %v1709_v57 = vld [vmem:[%s2345_s0 + $0xd8] ss:$12 sps:$4 sm:$0xff]   ;;  %v1710_v58 = vld [vmem:[%s2345_s0 + $0xe0] ss:$12 sps:$4 sm:$0xff]  }
  0x14   :  { %v1708_v56 = vld [vmem:[%s2345_s0 + $0xc8] ss:$12 sps:$4 sm:$0xff]   ;;  %v1713_v60 = vld [vmem:[%s2345_s0 + $0xf8] ss:$12 sps:$4 sm:$0xff]   ;;  %v1714_v61 = vld [vmem:[%s2345_s0 + $0xf0] ss:$12 sps:$4 sm:$0xff]  }
  0x15   :  { %v1711_v59 = vld [vmem:[%s2345_s0 + $0xf4] ss:$12 sps:$4 sm:$0xff]   ;;  %v1715_v62 = vld [vmem:[%s2345_s0 + $0x110] ss:$12 sps:$4 sm:$0xff]   ;;  %v1716_v63 = vld [vmem:[%s2345_s0 + $0x10c] ss:$12 sps:$4 sm:$0xff]  }
  0x16   :  { %662 = vmatpush1.bf16.msra.mxu0 %v1643_v7  ;;  %1626 = vmatpush1.bf16.msra.mxu1 %v1643_v7  ;;  %v1719_v1 = vld [vmem:[%s2345_s0 + $0x108] ss:$12 sps:$4 sm:$0xff]   ;;  %v1720_v2 = vld [vmem:[%s2345_s0 + $0x140] ss:$12 sps:$4 sm:$0xff]   ;;  %v1721_v3 = vld [vmem:[%s2345_s0 + $0x124] ss:$12 sps:$4 sm:$0xff]  }
  0x17   :  { %663 = vmatprep.subr.bf16.mxu0 %v1744_v0  ;;  %1611 = vmatprep.subr.bf16.mxu1 %v1744_v0  ;;  %v1723_v4 = vld [vmem:[%s2345_s0 + $0x158] ss:$12 sps:$4 sm:$0xff]   ;;  %v1724_v5 = vld [vmem:[%s2345_s0 + $0x120] ss:$12 sps:$4 sm:$0xff]   ;;  %v1725_v6 = vld [vmem:[%s2345_s0 + $0x170] ss:$12 sps:$4 sm:$0xff]  }
  0x18   :  { %v1726_v7 = vld [vmem:[%s2345_s0 + $0x13c] ss:$12 sps:$4 sm:$0xff]  }
  0x19   :  { %v1728_v8 = vld [vmem:[%s2345_s0 + $0x188] ss:$12 sps:$4 sm:$0xff]  }
  0x1a   :  { %664 = vmatpush1.bf16.msra.mxu0 %v1644_v9  ;;  %1627 = vmatpush1.bf16.msra.mxu1 %v1644_v9  ;;  %v1729_v9 = vld [vmem:[%s2345_s0 + $0x138] ss:$12 sps:$4 sm:$0xff]  }
  0x1b   :  { %665 = vmatprep.subr.bf16.mxu0 %v1744_v0  ;;  %1612 = vmatprep.subr.bf16.mxu1 %v1744_v0 }
  0x1e   :  { %666 = vmatpush1.bf16.msra.mxu0 %v1645_v10  ;;  %1628 = vmatpush1.bf16.msra.mxu1 %v1645_v10  ;;  %v1730_v10 = vld [vmem:[%s2345_s0 + $0x1a0] ss:$12 sps:$4 sm:$0xff]  }
  0x1f   :  { %667 = vmatprep.subr.bf16.mxu0 %v1744_v0  ;;  %1613 = vmatprep.subr.bf16.mxu1 %v1744_v0 }
  0x22   :  { %668 = vmatpush1.bf16.msra.mxu0 %v1646_v11  ;;  %1629 = vmatpush1.bf16.msra.mxu1 %v1646_v11  ;;  %v1731_v11 = vld [vmem:[%s2345_s0 + $0x154] ss:$12 sps:$4 sm:$0xff]  }
  0x23   :  { %669 = vmatprep.subr.bf16.mxu0 %v1744_v0  ;;  %1614 = vmatprep.subr.bf16.mxu1 %v1744_v0 }
  0x26   :  { %670 = vmatpush1.bf16.msra.mxu0 %v1647_v12  ;;  %1630 = vmatpush1.bf16.msra.mxu1 %v1647_v12  ;;  %v1733_v12 = vld [vmem:[%s2345_s0 + $0x1b8] ss:$12 sps:$4 sm:$0xff]  }
  0x27   :  { %671 = vmatprep.subr.bf16.mxu0 %v1744_v0  ;;  %1615 = vmatprep.subr.bf16.mxu1 %v1744_v0 }
  0x2a   :  { %672 = vmatpush1.bf16.msra.mxu0 %v1648_v13  ;;  %1631 = vmatpush1.bf16.msra.mxu1 %v1648_v13  ;;  %v1734_v13 = vld [vmem:[%s2345_s0 + $0x150] ss:$12 sps:$4 sm:$0xff]  }
  0x2b   :  { %673 = vmatprep.subr.bf16.mxu0 %v1744_v0  ;;  %1616 = vmatprep.subr.bf16.mxu1 %v1744_v0 }
  0x2e   :  { %674 = vmatpush1.bf16.msra.mxu0 %v1649_v14  ;;  %1632 = vmatpush1.bf16.msra.mxu1 %v1649_v14  ;;  %v1735_v14 = vld [vmem:[%s2345_s0 + $0x1d0] ss:$12 sps:$4 sm:$0xff]  }
  0x2f   :  { %675 = vmatprep.subr.bf16.mxu0 %v1744_v0  ;;  %1617 = vmatprep.subr.bf16.mxu1 %v1744_v0 }
  0x32   :  { %676 = vmatpush1.bf16.msra.mxu0 %v1650_v15  ;;  %1633 = vmatpush1.bf16.msra.mxu1 %v1650_v15  ;;  %v1736_v15 = vld [vmem:[%s2345_s0 + $0x16c] ss:$12 sps:$4 sm:$0xff]  }
  0x33   :  { %677 = vmatprep.subr.bf16.mxu0 %v1744_v0  ;;  %1618 = vmatprep.subr.bf16.mxu1 %v1744_v0 }
  0x36   :  { %678 = vmatpush1.bf16.msra.mxu0 %v1651_v16  ;;  %1634 = vmatpush1.bf16.msra.mxu1 %v1651_v16  ;;  %v1738_v16 = vld [vmem:[%s2345_s0 + $0x1e8] ss:$12 sps:$4 sm:$0xff]  }
  0x37   :  { %679 = vmatprep.subr.bf16.mxu0 %v1744_v0  ;;  %1619 = vmatprep.subr.bf16.mxu1 %v1744_v0 }
  0x3a   :  { %680 = vmatpush1.bf16.msra.mxu0 %v1652_v17  ;;  %1635 = vmatpush1.bf16.msra.mxu1 %v1652_v17  ;;  %v1739_v17 = vld [vmem:[%s2345_s0 + $0x168] ss:$12 sps:$4 sm:$0xff]  }
  0x3b   :  { %681 = vmatprep.subr.bf16.mxu0 %v1744_v0  ;;  %1620 = vmatprep.subr.bf16.mxu1 %v1744_v0  ;;  %v1718_v0 = vld [vmem:[%s2345_s0 + $0x128] ss:$12 sps:$4 sm:$0xff]  }
  0x3e   :  { %682 = vmatpush1.bf16.msra.mxu0 %v1653_v18  ;;  %1636 = vmatpush1.bf16.msra.mxu1 %v1653_v18  ;;  %v1740_v18 = vld [vmem:[%s2345_s0 + $0x200] ss:$12 sps:$4 sm:$0xff]  }
  0x3f   :  { %1557 = vmatprep.subr.bf16.mxu1 %v1666_v20 }
  0x41   :  { %684 = vmatmul.mubr.bf16.vlgmr.msra.gmra.mrb[0].mxu0 %v1654_v19  ;;  %820 = vmatmul.mubr.bf16.vlgmr.msra.gmra.mrb[0].mxu1 %v1657_v21  ;;  %v1741_v19 = vld [vmem:[%s2345_s0 + $0x184] ss:$12 sps:$4 sm:$0xff]  }
  0x42   :  { %691 = vmatprep.mubr.bf16.mxu0 %v1660_v22  ;;  %827 = vmatprep.mubr.bf16.mxu1 %v1662_v23 }
  0x43   :  { %1558 = vmatpush3.bf16.msra.mxu1 %v1666_v20  ;;  %v1743_v20 = vld [vmem:[%s2345_s0 + $0x180] ss:$12 sps:$4 sm:$0xff]  }
  0x44   :  { %1559 = vmatprep.subr.bf16.mxu1 %v1679_v24 }
  0x47   :  { %1560 = vmatpush3.bf16.msra.mxu1 %v1679_v24 }
  0x49   :  { %692 = vmatmul.mubr.bf16.gmra.mrb[4].mxu0 %v1664_v25  ;;  %828 = vmatmul.mubr.bf16.gmra.mrb[4].mxu1 %v1665_v26 }
  0x4a   :  { %699 = vmatprep.mubr.bf16.mxu0 %v1667_v27  ;;  %835 = vmatprep.mubr.bf16.mxu1 %v1669_v28 }
  0x51   :  { %700 = vmatmul.mubr.bf16.gmra.mrb[8].mxu0 %v1671_v29  ;;  %836 = vmatmul.mubr.bf16.gmra.mrb[8].mxu1 %v1672_v30 }
  0x52   :  { %707 = vmatprep.mubr.bf16.mxu0 %v1673_v31  ;;  %843 = vmatprep.mubr.bf16.mxu1 %v1675_v32 }
  0x59   :  { %708 = vmatmul.mubr.bf16.gmra.mrb[12].mxu0 %v1677_v33  ;;  %844 = vmatmul.mubr.bf16.gmra.mrb[12].mxu1 %v1678_v34 }
  0x5a   :  { %715 = vmatprep.mubr.bf16.mxu0 %v1680_v35  ;;  %851 = vmatprep.mubr.bf16.mxu1 %v1682_v36 }
  0x61   :  { %716 = vmatmul.mubr.bf16.gmra.mrb[16].mxu0 %v1684_v37  ;;  %852 = vmatmul.mubr.bf16.gmra.mrb[16].mxu1 %v1685_v38 }
  0x62   :  { %723 = vmatprep.mubr.bf16.mxu0 %v1686_v39  ;;  %1561 = vmatprep.mubr.msk.bf16.mxu1 %vm584_vm0, %v1688_v40 }
  0x69   :  { %724 = vmatmul.mubr.bf16.gmra.mrb[20].mxu0 %v1689_v41  ;;  %1562 = vmatmul.mubr.msk.bf16.vlgmr.msra.gmra.mrb[20].mxu1 %vm584_vm0, %v1690_v42 }
  0x6a   :  { %731 = vmatprep.mubr.bf16.mxu0 %v1691_v43  ;;  %1565 = vmatprep.mubr.msk.bf16.mxu1 %vm584_vm0, %v1693_v44 }
  0x71   :  { %732 = vmatmul.mubr.bf16.gmra.mrb[24].mxu0 %v1694_v45  ;;  %1566 = vmatmul.mubr.msk.bf16.gmra.mrb[24].mxu1 %vm584_vm0, %v1695_v46 }
  0x72   :  { %739 = vmatprep.mubr.bf16.mxu0 %v1696_v47  ;;  %1569 = vmatprep.mubr.msk.bf16.mxu1 %vm584_vm0, %v1698_v48 }
  0x79   :  { %740 = vmatmul.mubr.bf16.gmra.mrb[28].mxu0 %v1699_v49  ;;  %1570 = vmatmul.mubr.msk.bf16.gmra.mrb[28].mxu1 %vm584_vm0, %v1700_v50 }
  0x7a   :  { %747 = vmatprep.mubr.bf16.mxu0 %v1701_v51  ;;  %1573 = vmatprep.mubr.msk.bf16.mxu1 %vm584_vm0, %v1703_v52 }
  0x81   :  { %748 = vmatmul.mubr.bf16.gmra.mrb[32].mxu0 %v1704_v53  ;;  %1574 = vmatmul.mubr.msk.bf16.gmra.mrb[32].mxu1 %vm584_vm0, %v1705_v54 }
  0x82   :  { %755 = vmatprep.mubr.bf16.mxu0 %v1706_v55  ;;  %1577 = vmatprep.mubr.msk.bf16.mxu1 %vm584_vm0, %v1708_v56 }
  0x89   :  { %756 = vmatmul.mubr.bf16.gmra.mrb[36].mxu0 %v1709_v57  ;;  %1578 = vmatmul.mubr.msk.bf16.gmra.mrb[36].mxu1 %vm584_vm0, %v1710_v58 }
  0x8a   :  { %763 = vmatprep.mubr.bf16.mxu0 %v1711_v59  ;;  %1581 = vmatprep.mubr.msk.bf16.mxu1 %vm584_vm0, %v1713_v60 }
  0x91   :  { %764 = vmatmul.mubr.bf16.gmra.mrb[40].mxu0 %v1714_v61  ;;  %1582 = vmatmul.mubr.msk.bf16.gmra.mrb[40].mxu1 %vm584_vm0, %v1715_v62  ;;  %v2098_v61 = vld [vmem:[%s2346_s2] ss:$0 sm:$0xff] }
  0x92   :  { %771 = vmatprep.mubr.bf16.mxu0 %v1716_v63  ;;  %1585 = vmatprep.mubr.msk.bf16.mxu1 %vm584_vm0, %v1718_v0 }
  0x99   :  { %772 = vmatmul.mubr.bf16.gmra.mrb[44].mxu0 %v1719_v1  ;;  %1586 = vmatmul.mubr.msk.bf16.gmra.mrb[44].mxu1 %vm584_vm0, %v1720_v2 }
  0x9a   :  { %779 = vmatprep.mubr.bf16.mxu0 %v1721_v3  ;;  %1589 = vmatprep.mubr.msk.bf16.mxu1 %vm584_vm0, %v1723_v4 }
  0xa1   :  { %780 = vmatmul.mubr.bf16.gmra.mrb[48].mxu0 %v1724_v5  ;;  %1590 = vmatmul.mubr.msk.bf16.gmra.mrb[48].mxu1 %vm584_vm0, %v1725_v6 }
  0xa2   :  { %787 = vmatprep.mubr.bf16.mxu0 %v1726_v7  ;;  %1593 = vmatprep.mubr.msk.bf16.mxu1 %vm584_vm0, %v1728_v8 }
  0xa9   :  { %788 = vmatmul.mubr.bf16.gmra.mrb[52].mxu0 %v1729_v9  ;;  %1594 = vmatmul.mubr.msk.bf16.gmra.mrb[52].mxu1 %vm584_vm0, %v1730_v10 }
  0xaa   :  { %795 = vmatprep.mubr.bf16.mxu0 %v1731_v11  ;;  %1597 = vmatprep.mubr.msk.bf16.mxu1 %vm584_vm0, %v1733_v12 }
  0xb1   :  { %796 = vmatmul.mubr.bf16.gmra.mrb[56].mxu0 %v1734_v13  ;;  %1598 = vmatmul.mubr.msk.bf16.gmra.mrb[56].mxu1 %vm584_vm0, %v1735_v14 }
  0xb2   :  { %803 = vmatprep.mubr.bf16.mxu0 %v1736_v15  ;;  %1601 = vmatprep.mubr.msk.bf16.mxu1 %vm584_vm0, %v1738_v16 }
  0xb9   :  { %804 = vmatmul.mubr.bf16.gmra.mrb[60].mxu0 %v1739_v17  ;;  %1602 = vmatmul.mubr.msk.bf16.gmra.mrb[60].mxu1 %vm584_vm0, %v1740_v18 }
  0xba   :  { %811 = vmatprep.mubr.bf16.mxu0 %v1741_v19 }
  0xc1   :  { %812 = vmatmul.mubr.bf16.gmra.mrb[64].mxu0 %v1743_v20 }
 0x114   :  { %v685_v21 = vpop.f32.mrb[0].mxu0  ;;  %v2071_v22 = vpop.f32.mrb[0].mxu1 }
 0x115   :  { %v687_v23 = vpop.f32.mrb[1].mxu0  ;;  %v823_v24 = vpop.f32.mrb[1].mxu1  ;;  %v686_v63 = vadd.f32 %v2098_v61, %v685_v21 }
 0x116   :  { %v688_v25 = vpop.f32.mrb[2].mxu0  ;;  %v2073_v26 = vpop.f32.mrb[2].mxu1 }
 0x117   :  { %v690_v27 = vpop.f32.mrb[3].mxu0  ;;  %v826_v28 = vpop.f32.mrb[3].mxu1  ;;  %v689_v6 = vadd.f32 %v2098_v61, %v688_v25 }
 0x11c   :  { %v693_v29 = vpop.f32.mrb[4].mxu0  ;;  %v2075_v30 = vpop.f32.mrb[4].mxu1 }
 0x11d   :  { %v695_v31 = vpop.f32.mrb[5].mxu0  ;;  %v831_v32 = vpop.f32.mrb[5].mxu1  ;;  %v694_v62 = vadd.f32 %v2098_v61, %v693_v29 }
 0x11e   :  { %v696_v33 = vpop.f32.mrb[6].mxu0  ;;  %v2077_v34 = vpop.f32.mrb[6].mxu1 }
 0x11f   :  { %v698_v35 = vpop.f32.mrb[7].mxu0  ;;  %v834_v36 = vpop.f32.mrb[7].mxu1  ;;  %v697_v2 = vadd.f32 %v2098_v61, %v696_v33 }
 0x124   :  { %v701_v37 = vpop.f32.mrb[8].mxu0  ;;  %v2079_v38 = vpop.f32.mrb[8].mxu1 }
 0x125   :  { %v703_v39 = vpop.f32.mrb[9].mxu0  ;;  %v839_v40 = vpop.f32.mrb[9].mxu1  ;;  %v702_v23 = vadd.f32 %v2098_v61, %v701_v37 }
 0x126   :  { %v704_v41 = vpop.f32.mrb[10].mxu0  ;;  %v2081_v42 = vpop.f32.mrb[10].mxu1 }
 0x127   :  { %v706_v43 = vpop.f32.mrb[11].mxu0  ;;  %v842_v44 = vpop.f32.mrb[11].mxu1  ;;  %v705_v33 = vadd.f32 %v2098_v61, %v704_v41 }
 0x12c   :  { %v709_v45 = vpop.f32.mrb[12].mxu0  ;;  %v2083_v46 = vpop.f32.mrb[12].mxu1 }
 0x12d   :  { %v711_v47 = vpop.f32.mrb[13].mxu0  ;;  %v847_v48 = vpop.f32.mrb[13].mxu1  ;;  %v710_v20 = vadd.f32 %v2098_v61, %v709_v45 }
 0x12e   :  { %v712_v49 = vpop.f32.mrb[14].mxu0  ;;  %v2085_v50 = vpop.f32.mrb[14].mxu1 }
 0x12f   :  { %v714_v51 = vpop.f32.mrb[15].mxu0  ;;  %v850_v52 = vpop.f32.mrb[15].mxu1  ;;  %v713_v28 = vadd.f32 %v2098_v61, %v712_v49 }
 0x134   :  { %v2087_v53 = vpop.f32.mrb[16].mxu0  ;;  %v2089_v54 = vpop.f32.mrb[16].mxu1 }
 0x135   :  { %v719_v55 = vpop.f32.mrb[17].mxu0  ;;  %v855_v56 = vpop.f32.mrb[17].mxu1 }
 0x136   :  { %v2091_v57 = vpop.f32.mrb[18].mxu0  ;;  %v2093_v58 = vpop.f32.mrb[18].mxu1  ;;  %v718_v56 = vadd.f32 %v2098_v61, %v2087_v53 }
 0x137   :  { %v722_v59 = vpop.f32.mrb[19].mxu0  ;;  %v858_v60 = vpop.f32.mrb[19].mxu1  ;;  %v721_v53 = vadd.f32 %v2098_v61, %v2091_v57 }
 0x13c   :  { %v725_v0 = vpop.f32.mrb[20].mxu0  ;;  %v1563_v1 = vpop.f32.mrb[20].mxu1 }
 0x13d   :  { %v903_v3 = vadd.f32 %v1563_v1, %v694_v62  ;;  %v727_v4 = vpop.f32.mrb[21].mxu0  ;;  %v894_v5 = vpop.f32.mrb[21].mxu1  ;;  %v726_v41 = vadd.f32 %v2098_v61, %v725_v0 }
 0x13e   :  { %v895_v7 = vadd.f32 %v894_v5, %v686_v63  ;;  %v728_v8 = vpop.f32.mrb[22].mxu0  ;;  %v1564_v9 = vpop.f32.mrb[22].mxu1 }
 0x13f   :  { %v1071_v10 = vmax.f32 %v903_v3, 0.0  ;;  %v906_v11 = vadd.f32 %v1564_v9, %v697_v2  ;;  %v730_v12 = vpop.f32.mrb[23].mxu0  ;;  %v897_v13 = vpop.f32.mrb[23].mxu1  ;;  %v729_v63 = vadd.f32 %v2098_v61, %v728_v8 }
 0x140   :  { %v1069_v14 = vmax.f32 %v895_v7, 0.0  ;;  %v898_v15 = vadd.f32 %v897_v13, %v689_v6 }
 0x141   :  { %v1491_v16 = vpack.c.bf16 %v1071_v10, %v1071_v10  ;;  %v1072_v17 = vmax.f32 %v906_v11, 0.0 }
 0x142   :  { %v1489_v18 = vpack.c.bf16 %v1069_v14, %v1069_v14  ;;  %v1070_v19 = vmax.f32 %v898_v15, 0.0 }
 0x143   :  { %1292 = vst.msk [vmem:[%s2347_s3 + $0x8] sm:$0xf] %vm1289_vm1, %v1491_v16  ;;  %v1492_v21 = vpack.c.bf16 %v1072_v17, %v1072_v17 }
 0x144   :  { %1290 = vst.msk [vmem:[%s2347_s3] sm:$0xf] %vm1289_vm1, %v1489_v18  ;;  %v1490_v24 = vpack.c.bf16 %v1070_v19, %v1070_v19  ;;  %v733_v25 = vpop.f32.mrb[24].mxu0  ;;  %v1567_v27 = vpop.f32.mrb[24].mxu1 }
 0x145   :  { %1293 = vst.msk [vmem:[%s2347_s3 + $0xc] sm:$0xf] %vm1289_vm1, %v1492_v21  ;;  %v919_v29 = vadd.f32 %v1567_v27, %v710_v20  ;;  %v735_v31 = vpop.f32.mrb[25].mxu0  ;;  %v910_v32 = vpop.f32.mrb[25].mxu1  ;;  %v734_v17 = vadd.f32 %v2098_v61, %v733_v25 }
 0x146   :  { %1291 = vst.msk [vmem:[%s2347_s3 + $0x4] sm:$0xf] %vm1289_vm1, %v1490_v24  ;;  %v911_v35 = vadd.f32 %v910_v32, %v702_v23  ;;  %v736_v36 = vpop.f32.mrb[26].mxu0  ;;  %v1568_v37 = vpop.f32.mrb[26].mxu1 }
 0x147   :  { %v1075_v39 = vmax.f32 %v919_v29, 0.0  ;;  %v922_v40 = vadd.f32 %v1568_v37, %v713_v28  ;;  %v738_v43 = vpop.f32.mrb[27].mxu0  ;;  %v913_v44 = vpop.f32.mrb[27].mxu1  ;;  %v737_v25 = vadd.f32 %v2098_v61, %v736_v36 }
 0x148   :  { %v1073_v45 = vmax.f32 %v911_v35, 0.0  ;;  %v914_v47 = vadd.f32 %v913_v44, %v705_v33 }
 0x149   :  { %v1495_v48 = vpack.c.bf16 %v1075_v39, %v1075_v39  ;;  %v1076_v49 = vmax.f32 %v922_v40, 0.0 }
 0x14a   :  { %v1493_v51 = vpack.c.bf16 %v1073_v45, %v1073_v45  ;;  %v1074_v52 = vmax.f32 %v914_v47, 0.0 }
 0x14b   :  { %1296 = vst.msk [vmem:[%s2347_s3 + $0x18] sm:$0xf] %vm1289_vm1, %v1495_v48  ;;  %v1496_v55 = vpack.c.bf16 %v1076_v49, %v1076_v49 }
 0x14c   :  { %1294 = vst.msk [vmem:[%s2347_s3 + $0x10] sm:$0xf] %vm1289_vm1, %v1493_v51  ;;  %v1494_v59 = vpack.c.bf16 %v1074_v52, %v1074_v52  ;;  %v741_v60 = vpop.f32.mrb[28].mxu0  ;;  %v1571_v62 = vpop.f32.mrb[28].mxu1 }
 0x14d   :  { %1297 = vst.msk [vmem:[%s2347_s3 + $0x1c] sm:$0xf] %vm1289_vm1, %v1496_v55  ;;  %v935_v0 = vadd.f32 %v1571_v62, %v726_v41  ;;  %v743_v1 = vpop.f32.mrb[29].mxu0  ;;  %v926_v2 = vpop.f32.mrb[29].mxu1  ;;  %v742_v57 = vadd.f32 %v2098_v61, %v741_v60 }
 0x14e   :  { %1295 = vst.msk [vmem:[%s2347_s3 + $0x14] sm:$0xf] %vm1289_vm1, %v1494_v59  ;;  %v927_v3 = vadd.f32 %v926_v2, %v718_v56  ;;  %v744_v4 = vpop.f32.mrb[30].mxu0  ;;  %v1572_v5 = vpop.f32.mrb[30].mxu1 }
 0x14f   :  { %v1079_v6 = vmax.f32 %v935_v0, 0.0  ;;  %v938_v7 = vadd.f32 %v1572_v5, %v729_v63  ;;  %v746_v8 = vpop.f32.mrb[31].mxu0  ;;  %v929_v9 = vpop.f32.mrb[31].mxu1  ;;  %v745_v21 = vadd.f32 %v2098_v61, %v744_v4 }
 0x150   :  { %v1077_v10 = vmax.f32 %v927_v3, 0.0  ;;  %v930_v11 = vadd.f32 %v929_v9, %v721_v53 }
 0x151   :  { %v1499_v12 = vpack.c.bf16 %v1079_v6, %v1079_v6  ;;  %v1080_v13 = vmax.f32 %v938_v7, 0.0 }
 0x152   :  { %v1497_v14 = vpack.c.bf16 %v1077_v10, %v1077_v10  ;;  %v1078_v15 = vmax.f32 %v930_v11, 0.0 }
 0x153   :  { %1300 = vst.msk [vmem:[%s2347_s3 + $0x28] sm:$0xf] %vm1289_vm1, %v1499_v12  ;;  %v1500_v16 = vpack.c.bf16 %v1080_v13, %v1080_v13 }
 0x154   :  { %1298 = vst.msk [vmem:[%s2347_s3 + $0x20] sm:$0xf] %vm1289_vm1, %v1497_v14  ;;  %v1498_v18 = vpack.c.bf16 %v1078_v15, %v1078_v15  ;;  %v749_v19 = vpop.f32.mrb[32].mxu0  ;;  %v1575_v20 = vpop.f32.mrb[32].mxu1 }
 0x155   :  { %1301 = vst.msk [vmem:[%s2347_s3 + $0x2c] sm:$0xf] %vm1289_vm1, %v1500_v16  ;;  %v951_v23 = vadd.f32 %v1575_v20, %v742_v57  ;;  %v751_v24 = vpop.f32.mrb[33].mxu0  ;;  %v942_v27 = vpop.f32.mrb[33].mxu1  ;;  %v750_v48 = vadd.f32 %v2098_v61, %v749_v19 }
 0x156   :  { %1299 = vst.msk [vmem:[%s2347_s3 + $0x24] sm:$0xf] %vm1289_vm1, %v1498_v18  ;;  %v943_v28 = vadd.f32 %v942_v27, %v734_v17  ;;  %v752_v29 = vpop.f32.mrb[34].mxu0  ;;  %v1576_v31 = vpop.f32.mrb[34].mxu1 }
 0x157   :  { %v1083_v32 = vmax.f32 %v951_v23, 0.0  ;;  %v954_v33 = vadd.f32 %v1576_v31, %v745_v21  ;;  %v754_v35 = vpop.f32.mrb[35].mxu0  ;;  %v945_v37 = vpop.f32.mrb[35].mxu1  ;;  %v753_v59 = vadd.f32 %v2098_v61, %v752_v29 }
 0x158   :  { %v1081_v39 = vmax.f32 %v943_v28, 0.0  ;;  %v946_v40 = vadd.f32 %v945_v37, %v737_v25 }
 0x159   :  { %v1503_v43 = vpack.c.bf16 %v1083_v32, %v1083_v32  ;;  %v1084_v44 = vmax.f32 %v954_v33, 0.0 }
 0x15a   :  { %v1501_v45 = vpack.c.bf16 %v1081_v39, %v1081_v39  ;;  %v1082_v47 = vmax.f32 %v946_v40, 0.0 }
 0x15b   :  { %1304 = vst.msk [vmem:[%s2347_s3 + $0x38] sm:$0xf] %vm1289_vm1, %v1503_v43  ;;  %v1504_v36 = vpack.c.bf16 %v1084_v44, %v1084_v44 }
 0x15c   :  { %1302 = vst.msk [vmem:[%s2347_s3 + $0x30] sm:$0xf] %vm1289_vm1, %v1501_v45  ;;  %v1502_v49 = vpack.c.bf16 %v1082_v47, %v1082_v47  ;;  %v757_v51 = vpop.f32.mrb[36].mxu0  ;;  %v1579_v52 = vpop.f32.mrb[36].mxu1 }
 0x15d   :  { %1305 = vst.msk [vmem:[%s2347_s3 + $0x3c] sm:$0xf] %vm1289_vm1, %v1504_v36  ;;  %v758_v41 = vadd.f32 %v2098_v61, %v757_v51  ;;  %v759_v55 = vpop.f32.mrb[37].mxu0  ;;  %v958_v56 = vpop.f32.mrb[37].mxu1 }
 0x15e   :  { %1303 = vst.msk [vmem:[%s2347_s3 + $0x34] sm:$0xf] %vm1289_vm1, %v1502_v49  ;;  %v959_v60 = vadd.f32 %v958_v56, %v750_v48  ;;  %v760_v62 = vpop.f32.mrb[38].mxu0  ;;  %v1580_v63 = vpop.f32.mrb[38].mxu1 }
 0x15f   :  { %v967_v0 = vadd.f32 %v1579_v52, %v758_v41  ;;  %v761_v1 = vadd.f32 %v2098_v61, %v760_v62  ;;  %v762_v2 = vpop.f32.mrb[39].mxu0  ;;  %v961_v53 = vpop.f32.mrb[39].mxu1 }
 0x160   :  { %v1085_v3 = vmax.f32 %v959_v60, 0.0  ;;  %v962_v4 = vadd.f32 %v961_v53, %v753_v59 }
 0x161   :  { %v1087_v5 = vmax.f32 %v967_v0, 0.0  ;;  %v970_v6 = vadd.f32 %v1580_v63, %v761_v1 }
 0x162   :  { %v1505_v7 = vpack.c.bf16 %v1085_v3, %v1085_v3  ;;  %v1086_v8 = vmax.f32 %v962_v4, 0.0 }
 0x163   :  { %v1507_v9 = vpack.c.bf16 %v1087_v5, %v1087_v5  ;;  %v1088_v10 = vmax.f32 %v970_v6, 0.0  ;;  %v822_v5 = vadd.f32 %v2098_v61, %v2071_v22 }
 0x164   :  { %1306 = vst.msk [vmem:[%s2347_s3 + $0x40] sm:$0xf] %vm1289_vm1, %v1505_v7  ;;  %v1506_v11 = vpack.c.bf16 %v1086_v8, %v1086_v8  ;;  %v765_v12 = vpop.f32.mrb[40].mxu0  ;;  %v1583_v13 = vpop.f32.mrb[40].mxu1 }
 0x165   :  { %1308 = vst.msk [vmem:[%s2347_s3 + $0x48] sm:$0xf] %vm1289_vm1, %v1507_v9  ;;  %v1508_v14 = vpack.c.bf16 %v1088_v10, %v1088_v10  ;;  %v766_v15 = vadd.f32 %v2098_v61, %v765_v12  ;;  %v767_v57 = vpop.f32.mrb[41].mxu0  ;;  %v974_v16 = vpop.f32.mrb[41].mxu1  ;;  %v825_v10 = vadd.f32 %v2098_v61, %v2073_v26 }
 0x166   :  { %1307 = vst.msk [vmem:[%s2347_s3 + $0x44] sm:$0xf] %vm1289_vm1, %v1506_v11  ;;  %v768_v17 = vpop.f32.mrb[42].mxu0  ;;  %v1584_v18 = vpop.f32.mrb[42].mxu1 }
 0x167   :  { %1309 = vst.msk [vmem:[%s2347_s3 + $0x4c] sm:$0xf] %vm1289_vm1, %v1508_v14  ;;  %v769_v19 = vadd.f32 %v2098_v61, %v768_v17  ;;  %v975_v20 = vadd.f32 %v974_v16, %v766_v15  ;;  %v770_v21 = vpop.f32.mrb[43].mxu0  ;;  %v977_v23 = vpop.f32.mrb[43].mxu1 }
 0x169   :  { %v1089_v24 = vmax.f32 %v975_v20, 0.0  ;;  %v978_v27 = vadd.f32 %v977_v23, %v769_v19 }
 0x16b   :  { %v1509_v25 = vpack.c.bf16 %v1089_v24, %v1089_v24  ;;  %v1090_v28 = vmax.f32 %v978_v27, 0.0 }
 0x16c   :  { %v773_v29 = vpop.f32.mrb[44].mxu0  ;;  %v1587_v31 = vpop.f32.mrb[44].mxu1 }
 0x16d   :  { %1310 = vst.msk [vmem:[%s2347_s3 + $0x50] sm:$0xf] %vm1289_vm1, %v1509_v25  ;;  %v1510_v32 = vpack.c.bf16 %v1090_v28, %v1090_v28  ;;  %v774_v33 = vadd.f32 %v2098_v61, %v773_v29  ;;  %v775_v35 = vpop.f32.mrb[45].mxu0  ;;  %v990_v37 = vpop.f32.mrb[45].mxu1  ;;  %v838_v25 = vadd.f32 %v2098_v61, %v2079_v38 }
 0x16e   :  { %v776_v39 = vpop.f32.mrb[46].mxu0  ;;  %v1588_v40 = vpop.f32.mrb[46].mxu1 }
 0x16f   :  { %1311 = vst.msk [vmem:[%s2347_s3 + $0x54] sm:$0xf] %vm1289_vm1, %v1510_v32  ;;  %v983_v43 = vadd.f32 %v1583_v13, %v774_v33  ;;  %v777_v44 = vadd.f32 %v2098_v61, %v776_v39  ;;  %v778_v45 = vpop.f32.mrb[47].mxu0  ;;  %v993_v47 = vpop.f32.mrb[47].mxu1  ;;  %v830_v32 = vadd.f32 %v2098_v61, %v2075_v30 }
 0x171   :  { %v1091_v36 = vmax.f32 %v983_v43, 0.0  ;;  %v986_v48 = vadd.f32 %v1584_v18, %v777_v44  ;;  %v833_v44 = vadd.f32 %v2098_v61, %v2077_v34 }
 0x173   :  { %v1511_v49 = vpack.c.bf16 %v1091_v36, %v1091_v36  ;;  %v1092_v51 = vmax.f32 %v986_v48, 0.0 }
 0x174   :  { %v781_v52 = vpop.f32.mrb[48].mxu0  ;;  %v2214_v41 = vpop.f32.mrb[48].mxu1 }
 0x175   :  { %1312 = vst.msk [vmem:[%s2347_s3 + $0x58] sm:$0xf] %vm1289_vm1, %v1511_v49  ;;  %v1512_v55 = vpack.c.bf16 %v1092_v51, %v1092_v51  ;;  %v782_v56 = vadd.f32 %v2098_v61, %v781_v52  ;;  %v783_v59 = vpop.f32.mrb[49].mxu0  ;;  %v1006_v60 = vpop.f32.mrb[49].mxu1 }
 0x176   :  { %v784_v62 = vpop.f32.mrb[50].mxu0  ;;  %v2221_v63 = vpop.f32.mrb[50].mxu1 }
 0x177   :  { %1313 = vst.msk [vmem:[%s2347_s3 + $0x5c] sm:$0xf] %vm1289_vm1, %v1512_v55  ;;  %v991_v0 = vadd.f32 %v990_v37, %v782_v56  ;;  %v785_v1 = vadd.f32 %v2098_v61, %v784_v62  ;;  %v786_v2 = vpop.f32.mrb[51].mxu0  ;;  %v1009_v53 = vpop.f32.mrb[51].mxu1  ;;  %v841_v37 = vadd.f32 %v2098_v61, %v2081_v42 }
 0x179   :  { %v1093_v3 = vmax.f32 %v991_v0, 0.0  ;;  %v994_v4 = vadd.f32 %v993_v47, %v785_v1 }
 0x17b   :  { %v1513_v6 = vpack.c.bf16 %v1093_v3, %v1093_v3  ;;  %v1094_v7 = vmax.f32 %v994_v4, 0.0  ;;  %v854_v4 = vadd.f32 %v2098_v61, %v2089_v54  ;;  %v857_v54 = vadd.f32 %v2098_v61, %v2093_v58 }
 0x17c   :  { %v789_v8 = vpop.f32.mrb[52].mxu0  ;;  %v1595_v9 = vpop.f32.mrb[52].mxu1 }
 0x17d   :  { %1314 = vst.msk [vmem:[%s2347_s3 + $0x60] sm:$0xf] %vm1289_vm1, %v1513_v6  ;;  %v1514_v11 = vpack.c.bf16 %v1094_v7, %v1094_v7  ;;  %v790_v12 = vadd.f32 %v2098_v61, %v789_v8  ;;  %v1031_v13 = vadd.f32 %v1595_v9, %v822_v5  ;;  %v791_v14 = vpop.f32.mrb[53].mxu0  ;;  %v2237_v15 = vpop.f32.mrb[53].mxu1  ;;  %v846_v7 = vadd.f32 %v2098_v61, %v2083_v46 }
 0x17e   :  { %v792_v22 = vpop.f32.mrb[54].mxu0  ;;  %v1596_v57 = vpop.f32.mrb[54].mxu1  ;;  %v849_v14 = vadd.f32 %v2098_v61, %v2085_v50 }
 0x17f   :  { %1315 = vst.msk [vmem:[%s2347_s3 + $0x64] sm:$0xf] %vm1289_vm1, %v1514_v11  ;;  %v999_v26 = vadd.f32 %v1587_v31, %v790_v12  ;;  %v1103_v16 = vmax.f32 %v1031_v13, 0.0  ;;  %v793_v17 = vadd.f32 %v2098_v61, %v792_v22  ;;  %v1034_v18 = vadd.f32 %v1596_v57, %v825_v10  ;;  %v794_v19 = vpop.f32.mrb[55].mxu0  ;;  %v2244_v20 = vpop.f32.mrb[55].mxu1 }
 0x181   :  { %v1095_v21 = vmax.f32 %v999_v26, 0.0  ;;  %v1523_v23 = vpack.c.bf16 %v1103_v16, %v1103_v16  ;;  %v1002_v24 = vadd.f32 %v1588_v40, %v793_v17  ;;  %v1104_v27 = vmax.f32 %v1034_v18, 0.0 }
 0x183   :  { %v1515_v28 = vpack.c.bf16 %v1095_v21, %v1095_v21  ;;  %1324 = vst.msk [vmem:[%s2347_s3 + $0x88] sm:$0xf] %vm1289_vm1, %v1523_v23  ;;  %v1096_v29 = vmax.f32 %v1002_v24, 0.0  ;;  %v1524_v31 = vpack.c.bf16 %v1104_v27, %v1104_v27 }
 0x184   :  { %v797_v33 = vpop.f32.mrb[56].mxu0  ;;  %v1599_v35 = vpop.f32.mrb[56].mxu1 }
 0x185   :  { %1316 = vst.msk [vmem:[%s2347_s3 + $0x68] sm:$0xf] %vm1289_vm1, %v1515_v28  ;;  %v1516_v38 = vpack.c.bf16 %v1096_v29, %v1096_v29  ;;  %1325 = vst.msk [vmem:[%s2347_s3 + $0x8c] sm:$0xf] %vm1289_vm1, %v1524_v31  ;;  %v798_v39 = vadd.f32 %v2098_v61, %v797_v33  ;;  %v1047_v40 = vadd.f32 %v1599_v35, %v838_v25  ;;  %v799_v30 = vpop.f32.mrb[57].mxu0  ;;  %v1038_v43 = vpop.f32.mrb[57].mxu1 }
 0x186   :  { %v1039_v42 = vadd.f32 %v1038_v43, %v830_v32  ;;  %v800_v45 = vpop.f32.mrb[58].mxu0  ;;  %v1600_v47 = vpop.f32.mrb[58].mxu1 }
 0x187   :  { %1317 = vst.msk [vmem:[%s2347_s3 + $0x6c] sm:$0xf] %vm1289_vm1, %v1516_v38  ;;  %v1007_v36 = vadd.f32 %v1006_v60, %v798_v39  ;;  %v1107_v48 = vmax.f32 %v1047_v40, 0.0  ;;  %v801_v49 = vadd.f32 %v2098_v61, %v800_v45  ;;  %v1050_v51 = vadd.f32 %v1600_v47, %v841_v37  ;;  %v802_v52 = vpop.f32.mrb[59].mxu0  ;;  %v1041_v55 = vpop.f32.mrb[59].mxu1 }
 0x188   :  { %v1105_v56 = vmax.f32 %v1039_v42, 0.0  ;;  %v1042_v59 = vadd.f32 %v1041_v55, %v833_v44 }
 0x189   :  { %v1097_v62 = vmax.f32 %v1007_v36, 0.0  ;;  %v1527_v0 = vpack.c.bf16 %v1107_v48, %v1107_v48  ;;  %v1010_v34 = vadd.f32 %v1009_v53, %v801_v49  ;;  %v1108_v1 = vmax.f32 %v1050_v51, 0.0 }
 0x18a   :  { %v1525_v2 = vpack.c.bf16 %v1105_v56, %v1105_v56  ;;  %v1106_v3 = vmax.f32 %v1042_v59, 0.0 }
 0x18b   :  { %v1517_v5 = vpack.c.bf16 %v1097_v62, %v1097_v62  ;;  %1328 = vst.msk [vmem:[%s2347_s3 + $0x98] sm:$0xf] %vm1289_vm1, %v1527_v0  ;;  %v1098_v60 = vmax.f32 %v1010_v34, 0.0  ;;  %v1528_v6 = vpack.c.bf16 %v1108_v1, %v1108_v1 }
 0x18c   :  { %1326 = vst.msk [vmem:[%s2347_s3 + $0x90] sm:$0xf] %vm1289_vm1, %v1525_v2  ;;  %v1526_v53 = vpack.c.bf16 %v1106_v3, %v1106_v3  ;;  %v805_v8 = vpop.f32.mrb[60].mxu0  ;;  %v1603_v9 = vpop.f32.mrb[60].mxu1 }
 0x18d   :  { %1318 = vst.msk [vmem:[%s2347_s3 + $0x70] sm:$0xf] %vm1289_vm1, %v1517_v5  ;;  %v1518_v10 = vpack.c.bf16 %v1098_v60, %v1098_v60  ;;  %1329 = vst.msk [vmem:[%s2347_s3 + $0x9c] sm:$0xf] %vm1289_vm1, %v1528_v6  ;;  %v806_v46 = vadd.f32 %v2098_v61, %v805_v8  ;;  %v1063_v11 = vadd.f32 %v1603_v9, %v854_v4  ;;  %v807_v12 = vpop.f32.mrb[61].mxu0  ;;  %v1054_v13 = vpop.f32.mrb[61].mxu1 }
 0x18e   :  { %1327 = vst.msk [vmem:[%s2347_s3 + $0x94] sm:$0xf] %vm1289_vm1, %v1526_v53  ;;  %v1055_v58 = vadd.f32 %v1054_v13, %v846_v7  ;;  %v808_v22 = vpop.f32.mrb[62].mxu0  ;;  %v1604_v57 = vpop.f32.mrb[62].mxu1 }
 0x18f   :  { %1319 = vst.msk [vmem:[%s2347_s3 + $0x74] sm:$0xf] %vm1289_vm1, %v1518_v10  ;;  %v1015_v26 = vadd.f32 %v2214_v41, %v806_v46  ;;  %v1111_v16 = vmax.f32 %v1063_v11, 0.0  ;;  %v809_v17 = vadd.f32 %v2098_v61, %v808_v22  ;;  %v1066_v18 = vadd.f32 %v1604_v57, %v857_v54  ;;  %v810_v50 = vpop.f32.mrb[63].mxu0  ;;  %v1057_v19 = vpop.f32.mrb[63].mxu1 }
 0x190   :  { %v1109_v21 = vmax.f32 %v1055_v58, 0.0  ;;  %v1058_v23 = vadd.f32 %v1057_v19, %v849_v14 }
 0x191   :  { %v1099_v24 = vmax.f32 %v1015_v26, 0.0  ;;  %v1531_v27 = vpack.c.bf16 %v1111_v16, %v1111_v16  ;;  %v1018_v25 = vadd.f32 %v2221_v63, %v809_v17  ;;  %v1112_v28 = vmax.f32 %v1066_v18, 0.0 }
 0x192   :  { %v1529_v29 = vpack.c.bf16 %v1109_v21, %v1109_v21  ;;  %v1110_v31 = vmax.f32 %v1058_v23, 0.0 }
 0x193   :  { %v1519_v32 = vpack.c.bf16 %v1099_v24, %v1099_v24  ;;  %1332 = vst.msk [vmem:[%s2347_s3 + $0xa8] sm:$0xf] %vm1289_vm1, %v1531_v27  ;;  %v1100_v41 = vmax.f32 %v1018_v25, 0.0  ;;  %v1532_v33 = vpack.c.bf16 %v1112_v28, %v1112_v28 }
 0x194   :  { %1330 = vst.msk [vmem:[%s2347_s3 + $0xa0] sm:$0xf] %vm1289_vm1, %v1529_v29  ;;  %v1530_v35 = vpack.c.bf16 %v1110_v31, %v1110_v31  ;;  %v813_v37 = vpop.f32.mrb[64].mxu0 }
 0x195   :  { %1320 = vst.msk [vmem:[%s2347_s3 + $0x78] sm:$0xf] %vm1289_vm1, %v1519_v32  ;;  %v1520_v63 = vpack.c.bf16 %v1100_v41, %v1100_v41  ;;  %1333 = vst.msk [vmem:[%s2347_s3 + $0xac] sm:$0xf] %vm1289_vm1, %v1532_v33  ;;  %v814_v38 = vadd.f32 %v2098_v61, %v813_v37  ;;  %v815_v39 = vpop.f32.mrb[65].mxu0 }
 0x196   :  { %1331 = vst.msk [vmem:[%s2347_s3 + $0xa4] sm:$0xf] %vm1289_vm1, %v1530_v35  ;;  %v816_v40 = vpop.f32.mrb[66].mxu0 }
 0x197   :  { %1321 = vst.msk [vmem:[%s2347_s3 + $0x7c] sm:$0xf] %vm1289_vm1, %v1520_v63  ;;  %v1023_v30 = vadd.f32 %v2237_v15, %v814_v38  ;;  %v817_v43 = vadd.f32 %v2098_v61, %v816_v40  ;;  %v818_v44 = vpop.f32.mrb[67].mxu0 }
 0x199   :  { %v1101_v42 = vmax.f32 %v1023_v30, 0.0  ;;  %v1026_v45 = vadd.f32 %v2244_v20, %v817_v43 }
 0x19b   :  { %v1521_v47 = vpack.c.bf16 %v1101_v42, %v1101_v42  ;;  %v1102_v36 = vmax.f32 %v1026_v45, 0.0 }
 0x19d   :  { %1322 = vst.msk [vmem:[%s2347_s3 + $0x80] sm:$0xf] %vm1289_vm1, %v1521_v47  ;;  %v1522_v48 = vpack.c.bf16 %v1102_v36, %v1102_v36 }
 0x19f   :  { %1323 = vst.msk [vmem:[%s2347_s3 + $0x84] sm:$0xf] %vm1289_vm1, %v1522_v48 }

// kernel: agent_net_forward.7
= control target key start
LH: loop header
LB: loop body
LE: loop exit
PB: predicated region body
PF: predicated region fallthrough
CT: control target
= control target key end

     0   :  { %s4298_s18 = smov 0   ;;  %s4951_s0 = inlined_call_operand.vmem [shape: bf16[8,5632], index: 0, kind: input, shape index: {}]   ;;  %s4952_s1 = inlined_call_operand.vmem [shape: bf16[5632,512], index: 1, kind: input, shape index: {}]   ;;  %s4953_s2 = inlined_call_operand.vmem [shape: f32[1,512], index: 2, kind: input, shape index: {}]   ;;  %s4954_s3 = inlined_call_operand.vmem [shape: f32[512,4], index: 3, kind: input, shape index: {}]   ;;  %s4955_s4 = inlined_call_operand.vmem [shape: f32[1,4], index: 4, kind: input, shape index: {}]   ;;  %s4956_s5 = inlined_call_operand.vmem [shape: f32[8,4], index: 5, kind: output, shape index: {}]  }
   0x1 LB: > { %s4304_s19 = sadd.s32 4294967295, %s4264_s18   ;;  %p3201_p0 = scmp.ge.s32.totalorder %s4264_s18, 1  ;;  %s4264_s18 = sphi %s4298_s18, %s15_s18  }
   0x2   : > { %p195_p1 = scmp.lt.s32.totalorder %s4264_s18, 5 }
   0x4   : > { %p196_p2 = pnand %p3201_p0, %p195_p1 }
   0x5   : > { %s224_s20 = smul.u32 (!%p196_p2), 11, %s4304_s19  ;;  %p3205_p5 = scmp.ne.s32.totalorder (!%p196_p2), %s4304_s19, 0 }
   0x6   : > { %199 = sbr.rel (%p196_p2) target bundleno = 832 (0x340), region = 40 }
   0x7   : > { %s230_s21 = smul.u32 (!%p196_p2), 176, %s4304_s19  ;;  %p225_p3 = scmp.lt.s32.totalorder (!%p196_p2), %s224_s20, 43 }
   0x9   : > { %p231_p4 = scmp.lt.s32.totalorder (!%p196_p2), %s230_s21, 703 }
   0xd   : > { %s4958_s20 = smov (!%p225_p3, %s224_s20), 43  ;;  %s4960_s21 = smov (!%p231_p4, %s230_s21), 703 }
   0xe   : > { %s3202_s22 = sshll.u32 %s4958_s20, 2  ;;  %s3573_s26 = sshll.u32 %s4960_s21, 4  ;;  %v4266_v0 = vmov (!%p3205_p5), 0.0  }
   0xf   : > { %s4313_s25 = scalar_lea.vmem %s4951_s0, %s3202_s22  ;;  %s4318_s29 = scalar_lea.vmem %s4952_s1, %s3573_s26  ;;  %242 = vst [vmem:[#allocation2] sm:$0xff] (!%p3205_p5), %v4266_v0  ;;  %243 = vst [vmem:[#allocation2 + $0x8] sm:$0xff] (!%p3205_p5), %v4266_v0 }
  0x10   : > { %241 = sbr.rel (%p3205_p5) target bundleno = 23 (0x17), region = 44  ;;  %244 = vst [vmem:[#allocation2 + $0x10] sm:$0xff] (!%p3205_p5), %v4266_v0  ;;  %245 = vst [vmem:[#allocation2 + $0x18] sm:$0xff] (!%p3205_p5), %v4266_v0 }
  0x17 PF: > { %v3718_v1 = vld [vmem:[%s4318_s29 + $0x4] ss:$16 sps:$4 sm:$0xff]   ;;  %v3722_v3 = vld [vmem:[%s4318_s29] ss:$16 sps:$4 sm:$0xff]   ;;  %v251_v49 = vld [vmem:[%s4313_s25 + $0x8] sm:$0xff]  ;;  %p3569_p6 = scmp.ne.s32.totalorder %s4304_s19, 3 }
  0x18   : > { %v3720_v2 = vld [vmem:[%s4318_s29 + $0x204] ss:$16 sps:$4 sm:$0xff]   ;;  %2407 = vmatprep.subr.bf16.mxu0 %v3718_v1  ;;  %v3723_v4 = vld [vmem:[%s4318_s29 + $0x200] ss:$16 sps:$4 sm:$0xff]   ;;  %v4373_v52 = vcombine.high %v251_v49, %v251_v49  ;;  %vm3156_vm0 = vcmask (!%p3569_p6), 31744  }
  0x19   : > { %2448 = vmatprep.subr.bf16.mxu1 %v3720_v2  ;;  %v3724_v5 = vld [vmem:[%s4318_s29 + $0x24] ss:$16 sps:$4 sm:$0xff]   ;;  %2408 = vmatpush1.bf16.msra.mxu0 %v3722_v3  ;;  %v3728_v7 = vld [vmem:[%s4318_s29 + $0x20] ss:$16 sps:$4 sm:$0xff]  }
  0x1a   : > { %2449 = vmatpush1.bf16.msra.mxu1 %v3723_v4  ;;  %v3726_v6 = vld [vmem:[%s4318_s29 + $0x224] ss:$16 sps:$4 sm:$0xff]   ;;  %2409 = vmatprep.subr.bf16.mxu0 %v3724_v5  ;;  %v3729_v8 = vld [vmem:[%s4318_s29 + $0x220] ss:$16 sps:$4 sm:$0xff]  }
  0x1b   : > { %2450 = vmatprep.subr.bf16.mxu1 %v3726_v6  ;;  %v3730_v9 = vld [vmem:[%s4318_s29 + $0x44] ss:$16 sps:$4 sm:$0xff]   ;;  %v3734_v11 = vld [vmem:[%s4318_s29 + $0x40] ss:$16 sps:$4 sm:$0xff]   ;;  %2480 = vmatprep.mubr.bf16.mxu1 %v4373_v52 }
  0x1c   : > { %v3732_v10 = vld [vmem:[%s4318_s29 + $0x244] ss:$16 sps:$4 sm:$0xff]   ;;  %v3735_v12 = vld [vmem:[%s4318_s29 + $0x240] ss:$16 sps:$4 sm:$0xff]  }
  0x1d   : > { %2410 = vmatpush1.bf16.msra.mxu0 %v3728_v7  ;;  %v3736_v13 = vld [vmem:[%s4318_s29 + $0x64] ss:$16 sps:$4 sm:$0xff]   ;;  %v3740_v15 = vld [vmem:[%s4318_s29 + $0x60] ss:$16 sps:$4 sm:$0xff]  }
  0x1e   : > { %2451 = vmatpush1.bf16.msra.mxu1 %v3729_v8  ;;  %2411 = vmatprep.subr.bf16.mxu0 %v3730_v9  ;;  %v3738_v14 = vld [vmem:[%s4318_s29 + $0x264] ss:$16 sps:$4 sm:$0xff]   ;;  %v3741_v16 = vld [vmem:[%s4318_s29 + $0x260] ss:$16 sps:$4 sm:$0xff]   ;;  %v4397_v8 = vcombine.low %v251_v49, %v251_v49 }
  0x1f   : > { %2452 = vmatprep.subr.bf16.mxu1 %v3732_v10  ;;  %v3742_v17 = vld [vmem:[%s4318_s29 + $0x84] ss:$16 sps:$4 sm:$0xff]   ;;  %v3746_v19 = vld [vmem:[%s4318_s29 + $0x80] ss:$16 sps:$4 sm:$0xff]  }
  0x20   : > { %v3744_v18 = vld [vmem:[%s4318_s29 + $0x284] ss:$16 sps:$4 sm:$0xff]   ;;  %v3747_v20 = vld [vmem:[%s4318_s29 + $0x280] ss:$16 sps:$4 sm:$0xff]  }
  0x21   : > { %2412 = vmatpush1.bf16.msra.mxu0 %v3734_v11  ;;  %v3748_v21 = vld [vmem:[%s4318_s29 + $0xa4] ss:$16 sps:$4 sm:$0xff]   ;;  %v3752_v23 = vld [vmem:[%s4318_s29 + $0xa0] ss:$16 sps:$4 sm:$0xff]  }
  0x22   : > { %2453 = vmatpush1.bf16.msra.mxu1 %v3735_v12  ;;  %2413 = vmatprep.subr.bf16.mxu0 %v3736_v13  ;;  %v3750_v22 = vld [vmem:[%s4318_s29 + $0x2a4] ss:$16 sps:$4 sm:$0xff]   ;;  %v3753_v24 = vld [vmem:[%s4318_s29 + $0x2a0] ss:$16 sps:$4 sm:$0xff]  }
  0x23   : > { %2454 = vmatprep.subr.bf16.mxu1 %v3738_v14  ;;  %v3754_v25 = vld [vmem:[%s4318_s29 + $0xc4] ss:$16 sps:$4 sm:$0xff]   ;;  %v3758_v27 = vld [vmem:[%s4318_s29 + $0xc0] ss:$16 sps:$4 sm:$0xff]  }
  0x24   : > { %v3756_v26 = vld [vmem:[%s4318_s29 + $0x2c4] ss:$16 sps:$4 sm:$0xff]   ;;  %v3759_v28 = vld [vmem:[%s4318_s29 + $0x2c0] ss:$16 sps:$4 sm:$0xff]  }
  0x25   : > { %2414 = vmatpush1.bf16.msra.mxu0 %v3740_v15  ;;  %v3760_v29 = vld [vmem:[%s4318_s29 + $0xe4] ss:$16 sps:$4 sm:$0xff]   ;;  %v3764_v31 = vld [vmem:[%s4318_s29 + $0xe0] ss:$16 sps:$4 sm:$0xff]  }
  0x26   : > { %2455 = vmatpush1.bf16.msra.mxu1 %v3741_v16  ;;  %2415 = vmatprep.subr.bf16.mxu0 %v3742_v17  ;;  %v3762_v30 = vld [vmem:[%s4318_s29 + $0x2e4] ss:$16 sps:$4 sm:$0xff]   ;;  %v3765_v32 = vld [vmem:[%s4318_s29 + $0x2e0] ss:$16 sps:$4 sm:$0xff]  }
  0x27   : > { %2456 = vmatprep.subr.bf16.mxu1 %v3744_v18  ;;  %v3766_v33 = vld [vmem:[%s4318_s29 + $0x104] ss:$16 sps:$4 sm:$0xff]   ;;  %v3770_v35 = vld [vmem:[%s4318_s29 + $0x100] ss:$16 sps:$4 sm:$0xff]  }
  0x28   : > { %v3768_v34 = vld [vmem:[%s4318_s29 + $0x304] ss:$16 sps:$4 sm:$0xff]   ;;  %v3771_v36 = vld [vmem:[%s4318_s29 + $0x300] ss:$16 sps:$4 sm:$0xff]  }
  0x29   : > { %2416 = vmatpush1.bf16.msra.mxu0 %v3746_v19  ;;  %v3772_v37 = vld [vmem:[%s4318_s29 + $0x124] ss:$16 sps:$4 sm:$0xff]   ;;  %v3776_v39 = vld [vmem:[%s4318_s29 + $0x120] ss:$16 sps:$4 sm:$0xff]  }
  0x2a   : > { %2457 = vmatpush1.bf16.msra.mxu1 %v3747_v20  ;;  %2417 = vmatprep.subr.bf16.mxu0 %v3748_v21  ;;  %v3774_v38 = vld [vmem:[%s4318_s29 + $0x324] ss:$16 sps:$4 sm:$0xff]   ;;  %v3777_v40 = vld [vmem:[%s4318_s29 + $0x320] ss:$16 sps:$4 sm:$0xff]  }
  0x2b   : > { %2458 = vmatprep.subr.bf16.mxu1 %v3750_v22  ;;  %v3778_v41 = vld [vmem:[%s4318_s29 + $0x144] ss:$16 sps:$4 sm:$0xff]   ;;  %v3782_v43 = vld [vmem:[%s4318_s29 + $0x140] ss:$16 sps:$4 sm:$0xff]  }
  0x2c   : > { %v3780_v42 = vld [vmem:[%s4318_s29 + $0x344] ss:$16 sps:$4 sm:$0xff]   ;;  %v3783_v44 = vld [vmem:[%s4318_s29 + $0x340] ss:$16 sps:$4 sm:$0xff]  }
  0x2d   : > { %2418 = vmatpush1.bf16.msra.mxu0 %v3752_v23  ;;  %v3784_v45 = vld [vmem:[%s4318_s29 + $0x164] ss:$16 sps:$4 sm:$0xff]   ;;  %v3788_v50 = vld [vmem:[%s4318_s29 + $0x160] ss:$16 sps:$4 sm:$0xff]  }
  0x2e   : > { %2459 = vmatpush1.bf16.msra.mxu1 %v3753_v24  ;;  %2419 = vmatprep.subr.bf16.mxu0 %v3754_v25  ;;  %v3786_v46 = vld [vmem:[%s4318_s29 + $0x364] ss:$16 sps:$4 sm:$0xff]   ;;  %v3789_v51 = vld [vmem:[%s4318_s29 + $0x360] ss:$16 sps:$4 sm:$0xff]  }
  0x2f   : > { %2460 = vmatprep.subr.bf16.mxu1 %v3756_v26  ;;  %v250_v47 = vld [vmem:[%s4313_s25] sm:$0xff] }
  0x30   : > { %v4368_v48 = vcombine.high %v250_v47, %v250_v47  ;;  %v3790_v53 = vld [vmem:[%s4318_s29 + $0x184] ss:$16 sps:$4 sm:$0xff]   ;;  %v3794_v55 = vld [vmem:[%s4318_s29 + $0x180] ss:$16 sps:$4 sm:$0xff]   ;;  %v4395_v7 = vcombine.low %v250_v47, %v250_v47 }
  0x31   : > { %2420 = vmatpush1.bf16.msra.mxu0 %v3758_v27  ;;  %v3792_v54 = vld [vmem:[%s4318_s29 + $0x384] ss:$16 sps:$4 sm:$0xff]   ;;  %v3795_v56 = vld [vmem:[%s4318_s29 + $0x380] ss:$16 sps:$4 sm:$0xff]  }
  0x32   : > { %2461 = vmatpush1.bf16.msra.mxu1 %v3759_v28  ;;  %2421 = vmatprep.subr.bf16.mxu0 %v3760_v29  ;;  %v3796_v57 = vld [vmem:[%s4318_s29 + $0x1a4] ss:$16 sps:$4 sm:$0xff]   ;;  %v3800_v59 = vld [vmem:[%s4318_s29 + $0x1a0] ss:$16 sps:$4 sm:$0xff]  }
  0x33   : > { %2462 = vmatprep.subr.bf16.mxu1 %v3762_v30  ;;  %2439 = vmatprep.mubr.bf16.mxu0 %v4368_v48  ;;  %v3798_v58 = vld [vmem:[%s4318_s29 + $0x3a4] ss:$16 sps:$4 sm:$0xff]   ;;  %v3801_v60 = vld [vmem:[%s4318_s29 + $0x3a0] ss:$16 sps:$4 sm:$0xff]  }
  0x34   : > { %v3802_v61 = vld [vmem:[%s4318_s29 + $0x1c4] ss:$16 sps:$4 sm:$0xff]   ;;  %v3806_v63 = vld [vmem:[%s4318_s29 + $0x1c0] ss:$16 sps:$4 sm:$0xff]  }
  0x35   : > { %2422 = vmatpush1.bf16.msra.mxu0 %v3764_v31  ;;  %v3804_v62 = vld [vmem:[%s4318_s29 + $0x3c4] ss:$16 sps:$4 sm:$0xff]   ;;  %v3807_v0 = vld [vmem:[%s4318_s29 + $0x3c0] ss:$16 sps:$4 sm:$0xff]  }
  0x36   : > { %2463 = vmatpush1.bf16.msra.mxu1 %v3765_v32  ;;  %2423 = vmatprep.subr.bf16.mxu0 %v3766_v33  ;;  %v3808_v1 = vld [vmem:[%s4318_s29 + $0x1e4] ss:$16 sps:$4 sm:$0xff]   ;;  %v3812_v3 = vld [vmem:[%s4318_s29 + $0x1e0] ss:$16 sps:$4 sm:$0xff]  }
  0x37   : > { %2464 = vmatprep.subr.bf16.mxu1 %v3768_v34  ;;  %v3810_v2 = vld [vmem:[%s4318_s29 + $0x3e4] ss:$16 sps:$4 sm:$0xff]   ;;  %v3813_v4 = vld [vmem:[%s4318_s29 + $0x3e0] ss:$16 sps:$4 sm:$0xff]   ;;  %v4429_v34 = vld [vmem:[%s4313_s25 + $0x18] sm:$0xff] }
  0x38   : > { %v3820_v5 = vld [vmem:[%s4318_s29 + $0x404] ss:$16 sps:$4 sm:$0xff]   ;;  %v3818_v9 = vld [vmem:[%s4318_s29 + $0x400] ss:$16 sps:$4 sm:$0xff]  }
  0x39   : > { %2424 = vmatpush1.bf16.msra.mxu0 %v3770_v35  ;;  %v3823_v6 = vld [vmem:[%s4318_s29 + $0x604] ss:$16 sps:$4 sm:$0xff]   ;;  %v3821_v10 = vld [vmem:[%s4318_s29 + $0x600] ss:$16 sps:$4 sm:$0xff]  }
  0x3a   : > { %2465 = vmatpush1.bf16.msra.mxu1 %v3771_v36  ;;  %2425 = vmatprep.subr.bf16.mxu0 %v3772_v37  ;;  %v3826_v11 = vld [vmem:[%s4318_s29 + $0x424] ss:$16 sps:$4 sm:$0xff]   ;;  %v3824_v13 = vld [vmem:[%s4318_s29 + $0x420] ss:$16 sps:$4 sm:$0xff]  }
  0x3b   : > { %2466 = vmatprep.subr.bf16.mxu1 %v3774_v38  ;;  %v3829_v12 = vld [vmem:[%s4318_s29 + $0x624] ss:$16 sps:$4 sm:$0xff]   ;;  %v3827_v14 = vld [vmem:[%s4318_s29 + $0x620] ss:$16 sps:$4 sm:$0xff]   ;;  %v4439_v38 = vcombine.high %v4429_v34, %v4429_v34 }
  0x3c   : > { %v3832_v15 = vld [vmem:[%s4318_s29 + $0x444] ss:$16 sps:$4 sm:$0xff]   ;;  %v3830_v17 = vld [vmem:[%s4318_s29 + $0x440] ss:$16 sps:$4 sm:$0xff]  }
  0x3d   : > { %2426 = vmatpush1.bf16.msra.mxu0 %v3776_v39  ;;  %v3835_v16 = vld [vmem:[%s4318_s29 + $0x644] ss:$16 sps:$4 sm:$0xff]   ;;  %v3833_v18 = vld [vmem:[%s4318_s29 + $0x640] ss:$16 sps:$4 sm:$0xff]  }
  0x3e   : > { %2467 = vmatpush1.bf16.msra.mxu1 %v3777_v40  ;;  %2427 = vmatprep.subr.bf16.mxu0 %v3778_v41  ;;  %v3838_v19 = vld [vmem:[%s4318_s29 + $0x464] ss:$16 sps:$4 sm:$0xff]   ;;  %v3836_v21 = vld [vmem:[%s4318_s29 + $0x460] ss:$16 sps:$4 sm:$0xff]  }
  0x3f   : > { %2468 = vmatprep.subr.bf16.mxu1 %v3780_v42  ;;  %v3841_v20 = vld [vmem:[%s4318_s29 + $0x664] ss:$16 sps:$4 sm:$0xff]   ;;  %v3839_v22 = vld [vmem:[%s4318_s29 + $0x660] ss:$16 sps:$4 sm:$0xff]  }
  0x40   : > { %v3844_v23 = vld [vmem:[%s4318_s29 + $0x484] ss:$16 sps:$4 sm:$0xff]   ;;  %v3842_v25 = vld [vmem:[%s4318_s29 + $0x480] ss:$16 sps:$4 sm:$0xff]  }
  0x41   : > { %2428 = vmatpush1.bf16.msra.mxu0 %v3782_v43  ;;  %v3847_v24 = vld [vmem:[%s4318_s29 + $0x684] ss:$16 sps:$4 sm:$0xff]   ;;  %v3845_v26 = vld [vmem:[%s4318_s29 + $0x680] ss:$16 sps:$4 sm:$0xff]  }
  0x42   : > { %2469 = vmatpush1.bf16.msra.mxu1 %v3783_v44  ;;  %2429 = vmatprep.subr.bf16.mxu0 %v3784_v45  ;;  %v3850_v27 = vld [vmem:[%s4318_s29 + $0x4a4] ss:$16 sps:$4 sm:$0xff]   ;;  %v3848_v29 = vld [vmem:[%s4318_s29 + $0x4a0] ss:$16 sps:$4 sm:$0xff]  }
  0x43   : > { %2470 = vmatprep.subr.bf16.mxu1 %v3786_v46  ;;  %v3853_v28 = vld [vmem:[%s4318_s29 + $0x6a4] ss:$16 sps:$4 sm:$0xff]   ;;  %v3851_v30 = vld [vmem:[%s4318_s29 + $0x6a0] ss:$16 sps:$4 sm:$0xff]  }
  0x44   : > { %v3856_v31 = vld [vmem:[%s4318_s29 + $0x4c4] ss:$16 sps:$4 sm:$0xff]   ;;  %v3854_v35 = vld [vmem:[%s4318_s29 + $0x4c0] ss:$16 sps:$4 sm:$0xff]  }
  0x45   : > { %2430 = vmatpush1.bf16.msra.mxu0 %v3788_v50  ;;  %v3859_v32 = vld [vmem:[%s4318_s29 + $0x6c4] ss:$16 sps:$4 sm:$0xff]   ;;  %v3857_v36 = vld [vmem:[%s4318_s29 + $0x6c0] ss:$16 sps:$4 sm:$0xff]  }
  0x46   : > { %2471 = vmatpush1.bf16.msra.mxu1 %v3789_v51  ;;  %2431 = vmatprep.subr.bf16.mxu0 %v3790_v53  ;;  %v4426_v33 = vld [vmem:[%s4313_s25 + $0x10] sm:$0xff] }
  0x47   : > { %2472 = vmatprep.subr.bf16.mxu1 %v3792_v54  ;;  %v4435_v37 = vcombine.high %v4426_v33, %v4426_v33  ;;  %v3862_v39 = vld [vmem:[%s4318_s29 + $0x4e4] ss:$16 sps:$4 sm:$0xff]   ;;  %v3860_v41 = vld [vmem:[%s4318_s29 + $0x4e0] ss:$16 sps:$4 sm:$0xff]  }
  0x48   : > { %v3865_v40 = vld [vmem:[%s4318_s29 + $0x6e4] ss:$16 sps:$4 sm:$0xff]   ;;  %v3863_v42 = vld [vmem:[%s4318_s29 + $0x6e0] ss:$16 sps:$4 sm:$0xff]  }
  0x49   : > { %2432 = vmatpush1.bf16.msra.mxu0 %v3794_v55  ;;  %v3868_v43 = vld [vmem:[%s4318_s29 + $0x504] ss:$16 sps:$4 sm:$0xff]   ;;  %v3866_v45 = vld [vmem:[%s4318_s29 + $0x500] ss:$16 sps:$4 sm:$0xff]  }
  0x4a   : > { %2473 = vmatpush1.bf16.msra.mxu1 %v3795_v56  ;;  %2433 = vmatprep.subr.bf16.mxu0 %v3796_v57  ;;  %v3871_v44 = vld [vmem:[%s4318_s29 + $0x704] ss:$16 sps:$4 sm:$0xff]   ;;  %v3869_v46 = vld [vmem:[%s4318_s29 + $0x700] ss:$16 sps:$4 sm:$0xff]  }
  0x4b   : > { %2474 = vmatprep.subr.bf16.mxu1 %v3798_v58  ;;  %v3874_v47 = vld [vmem:[%s4318_s29 + $0x524] ss:$16 sps:$4 sm:$0xff]   ;;  %v3872_v50 = vld [vmem:[%s4318_s29 + $0x520] ss:$16 sps:$4 sm:$0xff]  }
  0x4c   : > { %v3877_v49 = vld [vmem:[%s4318_s29 + $0x724] ss:$16 sps:$4 sm:$0xff]   ;;  %v3875_v51 = vld [vmem:[%s4318_s29 + $0x720] ss:$16 sps:$4 sm:$0xff]  }
  0x4d   : > { %2434 = vmatpush1.bf16.msra.mxu0 %v3800_v59  ;;  %v3880_v53 = vld [vmem:[%s4318_s29 + $0x544] ss:$16 sps:$4 sm:$0xff]   ;;  %v3878_v55 = vld [vmem:[%s4318_s29 + $0x540] ss:$16 sps:$4 sm:$0xff]  }
  0x4e   : > { %2475 = vmatpush1.bf16.msra.mxu1 %v3801_v60  ;;  %2435 = vmatprep.subr.bf16.mxu0 %v3802_v61  ;;  %v3883_v54 = vld [vmem:[%s4318_s29 + $0x744] ss:$16 sps:$4 sm:$0xff]   ;;  %v3881_v56 = vld [vmem:[%s4318_s29 + $0x740] ss:$16 sps:$4 sm:$0xff]  }
  0x4f   : > { %2476 = vmatprep.subr.bf16.mxu1 %v3804_v62  ;;  %v3886_v57 = vld [vmem:[%s4318_s29 + $0x564] ss:$16 sps:$4 sm:$0xff]   ;;  %v3884_v59 = vld [vmem:[%s4318_s29 + $0x560] ss:$16 sps:$4 sm:$0xff]  }
  0x50   : > { %v3889_v58 = vld [vmem:[%s4318_s29 + $0x764] ss:$16 sps:$4 sm:$0xff]   ;;  %v3887_v60 = vld [vmem:[%s4318_s29 + $0x760] ss:$16 sps:$4 sm:$0xff]  }
  0x51   : > { %2436 = vmatpush1.bf16.msra.mxu0 %v3806_v63  ;;  %v3892_v61 = vld [vmem:[%s4318_s29 + $0x584] ss:$16 sps:$4 sm:$0xff]   ;;  %v3890_v63 = vld [vmem:[%s4318_s29 + $0x580] ss:$16 sps:$4 sm:$0xff]  }
  0x52   : > { %2477 = vmatpush1.bf16.msra.mxu1 %v3807_v0  ;;  %2437 = vmatprep.subr.bf16.mxu0 %v3808_v1  ;;  %v3895_v62 = vld [vmem:[%s4318_s29 + $0x784] ss:$16 sps:$4 sm:$0xff]   ;;  %v3893_v0 = vld [vmem:[%s4318_s29 + $0x780] ss:$16 sps:$4 sm:$0xff]  }
  0x53   : > { %2478 = vmatprep.subr.bf16.mxu1 %v3810_v2  ;;  %v3898_v1 = vld [vmem:[%s4318_s29 + $0x5a4] ss:$16 sps:$4 sm:$0xff]  }
  0x54   : > { %v3901_v2 = vld [vmem:[%s4318_s29 + $0x7a4] ss:$16 sps:$4 sm:$0xff]  }
  0x55   : > { %2438 = vmatpush1.bf16.msra.mxu0 %v3812_v3  ;;  %v3896_v3 = vld [vmem:[%s4318_s29 + $0x5a0] ss:$16 sps:$4 sm:$0xff]  }
  0x56   : > { %2479 = vmatpush1.bf16.msra.mxu1 %v3813_v4  ;;  %2489 = vmatprep.subr.bf16.mxu0 %v3820_v5  ;;  %v3899_v4 = vld [vmem:[%s4318_s29 + $0x7a0] ss:$16 sps:$4 sm:$0xff]   ;;  %v3904_v5 = vld [vmem:[%s4318_s29 + $0x5c4] ss:$16 sps:$4 sm:$0xff]  }
  0x57   : > { %2530 = vmatprep.subr.bf16.mxu1 %v3823_v6  ;;  %v3907_v6 = vld [vmem:[%s4318_s29 + $0x7c4] ss:$16 sps:$4 sm:$0xff]  }
  0x58   : > { %2440 = vmatmul.mubr.bf16.vlgmr.msra.gmra.mrb[0].mxu0 %v4395_v7 }
  0x59   : > { %2481 = vmatmul.mubr.bf16.vlgmr.msra.gmra.mrb[0].mxu1 %v4397_v8  ;;  %2490 = vmatpush1.bf16.msra.mxu0 %v3818_v9  ;;  %v3902_v9 = vld [vmem:[%s4318_s29 + $0x5c0] ss:$16 sps:$4 sm:$0xff]  }
  0x5a   : > { %2531 = vmatpush1.bf16.msra.mxu1 %v3821_v10  ;;  %2491 = vmatprep.subr.bf16.mxu0 %v3826_v11  ;;  %v3905_v10 = vld [vmem:[%s4318_s29 + $0x7c0] ss:$16 sps:$4 sm:$0xff]   ;;  %v3910_v11 = vld [vmem:[%s4318_s29 + $0x5e4] ss:$16 sps:$4 sm:$0xff]  }
  0x5b   : > { %2532 = vmatprep.subr.bf16.mxu1 %v3829_v12  ;;  %2521 = vmatprep.mubr.bf16.mxu0 %v4435_v37  ;;  %v3913_v12 = vld [vmem:[%s4318_s29 + $0x7e4] ss:$16 sps:$4 sm:$0xff]  }
  0x5c   : > { %2562 = vmatprep.mubr.bf16.mxu1 %v4439_v38 }
  0x5d   : > { %2492 = vmatpush1.bf16.msra.mxu0 %v3824_v13  ;;  %v3908_v13 = vld [vmem:[%s4318_s29 + $0x5e0] ss:$16 sps:$4 sm:$0xff]  }
  0x5e   : > { %2533 = vmatpush1.bf16.msra.mxu1 %v3827_v14  ;;  %2493 = vmatprep.subr.bf16.mxu0 %v3832_v15  ;;  %v3911_v14 = vld [vmem:[%s4318_s29 + $0x7e0] ss:$16 sps:$4 sm:$0xff]   ;;  %v3920_v15 = vld [vmem:[%s4318_s29 + $0x804] ss:$16 sps:$4 sm:$0xff]  }
  0x5f   : > { %2534 = vmatprep.subr.bf16.mxu1 %v3835_v16  ;;  %v3923_v16 = vld [vmem:[%s4318_s29 + $0xa04] ss:$16 sps:$4 sm:$0xff]  }
  0x61   : > { %2494 = vmatpush1.bf16.msra.mxu0 %v3830_v17  ;;  %v4483_v17 = vcombine.low %v4426_v33, %v4426_v33  ;;  %v3941_v33 = vld [vmem:[%s4318_s29 + $0xa64] ss:$16 sps:$4 sm:$0xff]  }
  0x62   : > { %2535 = vmatpush1.bf16.msra.mxu1 %v3833_v18  ;;  %2495 = vmatprep.subr.bf16.mxu0 %v3838_v19  ;;  %v4487_v18 = vcombine.low %v4429_v34, %v4429_v34  ;;  %v3918_v19 = vld [vmem:[%s4318_s29 + $0x800] ss:$16 sps:$4 sm:$0xff]  }
  0x63   : > { %2536 = vmatprep.subr.bf16.mxu1 %v3841_v20  ;;  %v3921_v20 = vld [vmem:[%s4318_s29 + $0xa00] ss:$16 sps:$4 sm:$0xff]  }
  0x64   : > { %v3936_v34 = vld [vmem:[%s4318_s29 + $0x860] ss:$16 sps:$4 sm:$0xff]  }
  0x65   : > { %2496 = vmatpush1.bf16.msra.mxu0 %v3836_v21  ;;  %v3926_v21 = vld [vmem:[%s4318_s29 + $0x824] ss:$16 sps:$4 sm:$0xff]  }
  0x66   : > { %2537 = vmatpush1.bf16.msra.mxu1 %v3839_v22  ;;  %2497 = vmatprep.subr.bf16.mxu0 %v3844_v23  ;;  %v3929_v22 = vld [vmem:[%s4318_s29 + $0xa24] ss:$16 sps:$4 sm:$0xff]  }
  0x67   : > { %2538 = vmatprep.subr.bf16.mxu1 %v3847_v24  ;;  %v4494_v23 = vld [vmem:[%s4313_s25 + $0x20] sm:$0xff] }
  0x68   : > { %v3924_v24 = vld [vmem:[%s4318_s29 + $0x820] ss:$16 sps:$4 sm:$0xff]  }
  0x69   : > { %2498 = vmatpush1.bf16.msra.mxu0 %v3842_v25  ;;  %v4501_v25 = vcombine.high %v4494_v23, %v4494_v23 }
  0x6a   : > { %2539 = vmatpush1.bf16.msra.mxu1 %v3845_v26  ;;  %2499 = vmatprep.subr.bf16.mxu0 %v3850_v27  ;;  %v3927_v26 = vld [vmem:[%s4318_s29 + $0xa20] ss:$16 sps:$4 sm:$0xff]   ;;  %v3932_v27 = vld [vmem:[%s4318_s29 + $0x844] ss:$16 sps:$4 sm:$0xff]  }
  0x6b   : > { %2540 = vmatprep.subr.bf16.mxu1 %v3853_v28  ;;  %v3935_v28 = vld [vmem:[%s4318_s29 + $0xa44] ss:$16 sps:$4 sm:$0xff]  }
  0x6d   : > { %2500 = vmatpush1.bf16.msra.mxu0 %v3848_v29  ;;  %v4267_v29 = vmov 0  }
  0x6e   : > { %2541 = vmatpush1.bf16.msra.mxu1 %v3851_v30  ;;  %2501 = vmatprep.subr.bf16.mxu0 %v3856_v31  ;;  %v3930_v30 = vld [vmem:[%s4318_s29 + $0x840] ss:$16 sps:$4 sm:$0xff]  }
  0x6f   : > { %2542 = vmatprep.subr.bf16.mxu1 %v3859_v32  ;;  %v3933_v31 = vld [vmem:[%s4318_s29 + $0xa40] ss:$16 sps:$4 sm:$0xff]   ;;  %v3938_v32 = vld [vmem:[%s4318_s29 + $0x864] ss:$16 sps:$4 sm:$0xff]  }
  0x71   : > { %2502 = vmatpush1.bf16.msra.mxu0 %v3854_v35  ;;  %v3939_v35 = vld [vmem:[%s4318_s29 + $0xa60] ss:$16 sps:$4 sm:$0xff]  }
  0x72   : > { %2543 = vmatpush1.bf16.msra.mxu1 %v3857_v36  ;;  %2503 = vmatprep.subr.bf16.mxu0 %v3862_v39  ;;  %v3944_v36 = vld [vmem:[%s4318_s29 + $0x884] ss:$16 sps:$4 sm:$0xff]  }
  0x73   : > { %2544 = vmatprep.subr.bf16.mxu1 %v3865_v40  ;;  %v3947_v39 = vld [vmem:[%s4318_s29 + $0xa84] ss:$16 sps:$4 sm:$0xff]   ;;  %v3942_v40 = vld [vmem:[%s4318_s29 + $0x880] ss:$16 sps:$4 sm:$0xff]  }
  0x75   : > { %2504 = vmatpush1.bf16.msra.mxu0 %v3860_v41  ;;  %v3945_v41 = vld [vmem:[%s4318_s29 + $0xa80] ss:$16 sps:$4 sm:$0xff]  }
  0x76   : > { %2545 = vmatpush1.bf16.msra.mxu1 %v3863_v42  ;;  %2505 = vmatprep.subr.bf16.mxu0 %v3868_v43  ;;  %v3950_v42 = vld [vmem:[%s4318_s29 + $0x8a4] ss:$16 sps:$4 sm:$0xff]  }
  0x77   : > { %2546 = vmatprep.subr.bf16.mxu1 %v3871_v44  ;;  %v3953_v43 = vld [vmem:[%s4318_s29 + $0xaa4] ss:$16 sps:$4 sm:$0xff]   ;;  %v3948_v44 = vld [vmem:[%s4318_s29 + $0x8a0] ss:$16 sps:$4 sm:$0xff]  }
  0x79   : > { %2506 = vmatpush1.bf16.msra.mxu0 %v3866_v45  ;;  %v3951_v45 = vld [vmem:[%s4318_s29 + $0xaa0] ss:$16 sps:$4 sm:$0xff]  }
  0x7a   : > { %2547 = vmatpush1.bf16.msra.mxu1 %v3869_v46  ;;  %2507 = vmatprep.subr.bf16.mxu0 %v3874_v47  ;;  %v3956_v46 = vld [vmem:[%s4318_s29 + $0x8c4] ss:$16 sps:$4 sm:$0xff]  }
  0x7b   : > { %2548 = vmatprep.subr.bf16.mxu1 %v3877_v49  ;;  %v3959_v47 = vld [vmem:[%s4318_s29 + $0xac4] ss:$16 sps:$4 sm:$0xff]   ;;  %v3954_v49 = vld [vmem:[%s4318_s29 + $0x8c0] ss:$16 sps:$4 sm:$0xff]  }
  0x7d   : > { %2508 = vmatpush1.bf16.msra.mxu0 %v3872_v50  ;;  %v3957_v50 = vld [vmem:[%s4318_s29 + $0xac0] ss:$16 sps:$4 sm:$0xff]  }
  0x7e   : > { %2549 = vmatpush1.bf16.msra.mxu1 %v3875_v51  ;;  %2509 = vmatprep.subr.bf16.mxu0 %v3880_v53  ;;  %v3962_v51 = vld [vmem:[%s4318_s29 + $0x8e4] ss:$16 sps:$4 sm:$0xff]  }
  0x7f   : > { %2550 = vmatprep.subr.bf16.mxu1 %v3883_v54  ;;  %v3965_v53 = vld [vmem:[%s4318_s29 + $0xae4] ss:$16 sps:$4 sm:$0xff]   ;;  %v3960_v54 = vld [vmem:[%s4318_s29 + $0x8e0] ss:$16 sps:$4 sm:$0xff]  }
  0x81   : > { %2510 = vmatpush1.bf16.msra.mxu0 %v3878_v55  ;;  %v3963_v55 = vld [vmem:[%s4318_s29 + $0xae0] ss:$16 sps:$4 sm:$0xff]  }
  0x82   : > { %2551 = vmatpush1.bf16.msra.mxu1 %v3881_v56  ;;  %2511 = vmatprep.subr.bf16.mxu0 %v3886_v57  ;;  %v3968_v56 = vld [vmem:[%s4318_s29 + $0x904] ss:$16 sps:$4 sm:$0xff]   ;;  %v3972_v57 = vld [vmem:[%s4318_s29 + $0xc] ss:$16 sps:$4 sm:$0xff]  }
  0x83   : > { %2552 = vmatprep.subr.bf16.mxu1 %v3889_v58  ;;  %v3966_v58 = vld [vmem:[%s4318_s29 + $0x900] ss:$16 sps:$4 sm:$0xff]  }
  0x85   : > { %2512 = vmatpush1.bf16.msra.mxu0 %v3884_v59  ;;  %v3969_v59 = vld [vmem:[%s4313_s25 + $0x28] ss:$0 sps:$4 sm:$0xff]  }
  0x86   : > { %2553 = vmatpush1.bf16.msra.mxu1 %v3887_v60  ;;  %2513 = vmatprep.subr.bf16.mxu0 %v3892_v61  ;;  %v3970_v60 = vld [vmem:[%s4318_s29 + $0x8] ss:$16 sps:$4 sm:$0xff]   ;;  %v3975_v61 = vld [vmem:[%s4318_s29 + $0x924] ss:$16 sps:$4 sm:$0xff]  }
  0x87   : > { %2554 = vmatprep.subr.bf16.mxu1 %v3895_v62  ;;  %v3978_v62 = vld [vmem:[%s4318_s29 + $0x2c] ss:$16 sps:$4 sm:$0xff]  }
  0x89   : > { %2514 = vmatpush1.bf16.msra.mxu0 %v3890_v63  ;;  %v3973_v63 = vld [vmem:[%s4318_s29 + $0x920] ss:$16 sps:$4 sm:$0xff]  }
  0x8a   : > { %2555 = vmatpush1.bf16.msra.mxu1 %v3893_v0  ;;  %2515 = vmatprep.subr.bf16.mxu0 %v3898_v1  ;;  %v3976_v0 = vld [vmem:[%s4318_s29 + $0x28] ss:$16 sps:$4 sm:$0xff]   ;;  %v3981_v1 = vld [vmem:[%s4318_s29 + $0x944] ss:$16 sps:$4 sm:$0xff]  }
  0x8b   : > { %2556 = vmatprep.subr.bf16.mxu1 %v3901_v2  ;;  %v3984_v2 = vld [vmem:[%s4318_s29 + $0x4c] ss:$16 sps:$4 sm:$0xff]  }
  0x8d   : > { %2516 = vmatpush1.bf16.msra.mxu0 %v3896_v3  ;;  %v3979_v3 = vld [vmem:[%s4318_s29 + $0x940] ss:$16 sps:$4 sm:$0xff]  }
  0x8e   : > { %2557 = vmatpush1.bf16.msra.mxu1 %v3899_v4  ;;  %2517 = vmatprep.subr.bf16.mxu0 %v3904_v5  ;;  %v3982_v4 = vld [vmem:[%s4318_s29 + $0x48] ss:$16 sps:$4 sm:$0xff]   ;;  %v3987_v5 = vld [vmem:[%s4318_s29 + $0x964] ss:$16 sps:$4 sm:$0xff]  }
  0x8f   : > { %2558 = vmatprep.subr.bf16.mxu1 %v3907_v6  ;;  %v3990_v6 = vld [vmem:[%s4318_s29 + $0x6c] ss:$16 sps:$4 sm:$0xff]  }
  0x91   : > { %2518 = vmatpush1.bf16.msra.mxu0 %v3902_v9  ;;  %v3985_v9 = vld [vmem:[%s4318_s29 + $0x960] ss:$16 sps:$4 sm:$0xff]  }
  0x92   : > { %2559 = vmatpush1.bf16.msra.mxu1 %v3905_v10  ;;  %2519 = vmatprep.subr.bf16.mxu0 %v3910_v11  ;;  %v3988_v10 = vld [vmem:[%s4318_s29 + $0x68] ss:$16 sps:$4 sm:$0xff]   ;;  %v3996_v11 = vld [vmem:[%s4318_s29 + $0x8c] ss:$16 sps:$4 sm:$0xff]  }
  0x93   : > { %2560 = vmatprep.subr.bf16.mxu1 %v3913_v12  ;;  %v3991_v12 = vld [vmem:[%s4318_s29 + $0x980] ss:$16 sps:$4 sm:$0xff]  }
  0x95   : > { %2520 = vmatpush1.bf16.msra.mxu0 %v3908_v13  ;;  %v3994_v13 = vld [vmem:[%s4318_s29 + $0x88] ss:$16 sps:$4 sm:$0xff]  }
  0x96   : > { %2561 = vmatpush1.bf16.msra.mxu1 %v3911_v14  ;;  %2571 = vmatprep.subr.bf16.mxu0 %v3920_v15  ;;  %v3999_v14 = vld [vmem:[%s4318_s29 + $0x9a4] ss:$16 sps:$4 sm:$0xff]   ;;  %v4002_v15 = vld [vmem:[%s4318_s29 + $0xac] ss:$16 sps:$4 sm:$0xff]  }
  0x97   : > { %2612 = vmatprep.subr.bf16.mxu1 %v3923_v16  ;;  %v3997_v16 = vld [vmem:[%s4318_s29 + $0x9a0] ss:$16 sps:$4 sm:$0xff]  }
  0x98   : > { %2522 = vmatmul.mubr.bf16.vlgmr.msra.gmra.mrb[4].mxu0 %v4483_v17 }
  0x99   : > { %2563 = vmatmul.mubr.bf16.vlgmr.msra.gmra.mrb[4].mxu1 %v4487_v18  ;;  %2572 = vmatpush1.bf16.msra.mxu0 %v3918_v19  ;;  %v4000_v19 = vld [vmem:[%s4318_s29 + $0xa8] ss:$16 sps:$4 sm:$0xff]  }
  0x9a   : > { %2613 = vmatpush1.bf16.msra.mxu1 %v3921_v20  ;;  %2573 = vmatprep.subr.bf16.mxu0 %v3926_v21  ;;  %v4005_v20 = vld [vmem:[%s4318_s29 + $0x9c4] ss:$16 sps:$4 sm:$0xff]   ;;  %v4008_v21 = vld [vmem:[%s4318_s29 + $0xcc] ss:$16 sps:$4 sm:$0xff]  }
  0x9b   : > { %2614 = vmatprep.subr.bf16.mxu1 %v3929_v22  ;;  %2644 = vmatprep.mubr.bf16.mxu1 %v4267_v29  ;;  %v4003_v22 = vld [vmem:[%s4318_s29 + $0x9c0] ss:$16 sps:$4 sm:$0xff]  }
  0x9c   : > { %2603 = vmatprep.mubr.bf16.mxu0 %v4501_v25 }
  0x9d   : > { %2574 = vmatpush1.bf16.msra.mxu0 %v3924_v24  ;;  %v4006_v24 = vld [vmem:[%s4318_s29 + $0xc8] ss:$16 sps:$4 sm:$0xff]  }
  0x9e   : > { %2615 = vmatpush1.bf16.msra.mxu1 %v3927_v26  ;;  %2575 = vmatprep.subr.bf16.mxu0 %v3932_v27  ;;  %v4011_v26 = vld [vmem:[%s4318_s29 + $0x9e4] ss:$16 sps:$4 sm:$0xff]   ;;  %v4014_v27 = vld [vmem:[%s4318_s29 + $0xec] ss:$16 sps:$4 sm:$0xff]  }
  0x9f   : > { %2616 = vmatprep.subr.bf16.mxu1 %v3935_v28  ;;  %v4009_v28 = vld [vmem:[%s4318_s29 + $0x9e0] ss:$16 sps:$4 sm:$0xff]  }
  0xa1   : > { %2576 = vmatpush1.bf16.msra.mxu0 %v3930_v30  ;;  %v4012_v30 = vld [vmem:[%s4318_s29 + $0xe8] ss:$16 sps:$4 sm:$0xff]  }
  0xa2   : > { %2617 = vmatpush1.bf16.msra.mxu1 %v3933_v31  ;;  %2577 = vmatprep.subr.bf16.mxu0 %v3938_v32  ;;  %v4019_v31 = vld [vmem:[%s4318_s29 + $0x10c] ss:$16 sps:$4 sm:$0xff]  }
  0xa3   : > { %2618 = vmatprep.subr.bf16.mxu1 %v3941_v33  ;;  %v4022_v32 = vld [vmem:[%s4318_s29 + $0x20c] ss:$16 sps:$4 sm:$0xff]   ;;  %v4568_v33 = vcombine.low %v4494_v23, %v4494_v23  ;;  %v4026_v23 = vld [vmem:[%s4318_s29 + $0x228] ss:$16 sps:$4 sm:$0xff]  }
  0xa5   : > { %2578 = vmatpush1.bf16.msra.mxu0 %v3936_v34  ;;  %v4017_v34 = vld [vmem:[%s4318_s29 + $0x108] ss:$16 sps:$4 sm:$0xff]  }
  0xa6   : > { %2619 = vmatpush1.bf16.msra.mxu1 %v3939_v35  ;;  %2579 = vmatprep.subr.bf16.mxu0 %v3944_v36  ;;  %v4020_v35 = vld [vmem:[%s4318_s29 + $0x208] ss:$16 sps:$4 sm:$0xff]   ;;  %v4025_v36 = vld [vmem:[%s4318_s29 + $0x12c] ss:$16 sps:$4 sm:$0xff]  }
  0xa7   : > { %2620 = vmatprep.subr.bf16.mxu1 %v3947_v39  ;;  %v4028_v39 = vld [vmem:[%s4318_s29 + $0x22c] ss:$16 sps:$4 sm:$0xff]  }
  0xa9   : > { %2580 = vmatpush1.bf16.msra.mxu0 %v3942_v40  ;;  %v4023_v40 = vld [vmem:[%s4318_s29 + $0x128] ss:$16 sps:$4 sm:$0xff]  }
  0xaa   : > { %2621 = vmatpush1.bf16.msra.mxu1 %v3945_v41  ;;  %2581 = vmatprep.subr.bf16.mxu0 %v3950_v42  ;;  %v4031_v41 = vld [vmem:[%s4318_s29 + $0x14c] ss:$16 sps:$4 sm:$0xff]  }
  0xab   : > { %2622 = vmatprep.subr.bf16.mxu1 %v3953_v43  ;;  %v4034_v42 = vld [vmem:[%s4318_s29 + $0x24c] ss:$16 sps:$4 sm:$0xff]   ;;  %v4029_v43 = vld [vmem:[%s4318_s29 + $0x148] ss:$16 sps:$4 sm:$0xff]  }
  0xad   : > { %2582 = vmatpush1.bf16.msra.mxu0 %v3948_v44  ;;  %v4032_v44 = vld [vmem:[%s4318_s29 + $0x248] ss:$16 sps:$4 sm:$0xff]  }
  0xae   : > { %2623 = vmatpush1.bf16.msra.mxu1 %v3951_v45  ;;  %2583 = vmatprep.subr.bf16.mxu0 %v3956_v46  ;;  %v4037_v45 = vld [vmem:[%s4318_s29 + $0x16c] ss:$16 sps:$4 sm:$0xff]  }
  0xaf   : > { %2624 = vmatprep.subr.bf16.mxu1 %v3959_v47  ;;  %v4040_v46 = vld [vmem:[%s4318_s29 + $0x26c] ss:$16 sps:$4 sm:$0xff]   ;;  %v4035_v47 = vld [vmem:[%s4318_s29 + $0x168] ss:$16 sps:$4 sm:$0xff]  }
  0xb1   : > { %2584 = vmatpush1.bf16.msra.mxu0 %v3954_v49  ;;  %v4038_v49 = vld [vmem:[%s4318_s29 + $0x268] ss:$16 sps:$4 sm:$0xff]  }
  0xb2   : > { %2625 = vmatpush1.bf16.msra.mxu1 %v3957_v50  ;;  %2585 = vmatprep.subr.bf16.mxu0 %v3962_v51  ;;  %v4046_v50 = vld [vmem:[%s4318_s29 + $0x28c] ss:$16 sps:$4 sm:$0xff]   ;;  %v4041_v51 = vld [vmem:[%s4318_s29 + $0x188] ss:$16 sps:$4 sm:$0xff]  }
  0xb3   : > { %2626 = vmatprep.subr.bf16.mxu1 %v3965_v53  ;;  %v4044_v53 = vld [vmem:[%s4318_s29 + $0x288] ss:$16 sps:$4 sm:$0xff]  }
  0xb5   : > { %2586 = vmatpush1.bf16.msra.mxu0 %v3960_v54  ;;  %v4049_v54 = vld [vmem:[%s4318_s29 + $0x1ac] ss:$16 sps:$4 sm:$0xff]  }
  0xb6   : > { %2627 = vmatpush1.bf16.msra.mxu1 %v3963_v55  ;;  %2587 = vmatprep.subr.bf16.mxu0 %v3968_v56  ;;  %v4052_v55 = vld [vmem:[%s4318_s29 + $0x2ac] ss:$16 sps:$4 sm:$0xff]   ;;  %v4047_v56 = vld [vmem:[%s4318_s29 + $0x1a8] ss:$16 sps:$4 sm:$0xff]  }
  0xb7   : > { %2653 = vmatprep.subr.bf16.mxu1 %v3972_v57  ;;  %v4050_v57 = vld [vmem:[%s4318_s29 + $0x2a8] ss:$16 sps:$4 sm:$0xff]  }
  0xb9   : > { %2645 = vmatmul.mubr.bf16.vlgmr.msra.gmra.mrb[8].mxu1 %v3969_v59  ;;  %2588 = vmatpush1.bf16.msra.mxu0 %v3966_v58  ;;  %v4055_v58 = vld [vmem:[%s4318_s29 + $0x1cc] ss:$16 sps:$4 sm:$0xff]  }
  0xba   : > { %2654 = vmatpush1.bf16.msra.mxu1 %v3970_v60  ;;  %2589 = vmatprep.subr.bf16.mxu0 %v3975_v61  ;;  %v4058_v59 = vld [vmem:[%s4318_s29 + $0x2cc] ss:$16 sps:$4 sm:$0xff]   ;;  %v4053_v60 = vld [vmem:[%s4318_s29 + $0x1c8] ss:$16 sps:$4 sm:$0xff]  }
  0xbb   : > { %2655 = vmatprep.subr.bf16.mxu1 %v3978_v62  ;;  %2685 = vmatprep.mubr.bf16.mxu1 %v4368_v48  ;;  %v3993_v48 = vld [vmem:[%s4318_s29 + $0x984] ss:$16 sps:$4 sm:$0xff]   ;;  %v4056_v61 = vld [vmem:[%s4318_s29 + $0x2c8] ss:$16 sps:$4 sm:$0xff]   ;;  %v4061_v62 = vld [vmem:[%s4318_s29 + $0x1ec] ss:$16 sps:$4 sm:$0xff]  }
  0xbd   : > { %2590 = vmatpush1.bf16.msra.mxu0 %v3973_v63  ;;  %v4064_v63 = vld [vmem:[%s4318_s29 + $0x2ec] ss:$16 sps:$4 sm:$0xff]  }
  0xbe   : > { %2656 = vmatpush1.bf16.msra.mxu1 %v3976_v0  ;;  %2591 = vmatprep.subr.bf16.mxu0 %v3981_v1  ;;  %v4059_v0 = vld [vmem:[%s4318_s29 + $0x1e8] ss:$16 sps:$4 sm:$0xff]  }
  0xbf   : > { %2657 = vmatprep.subr.bf16.mxu1 %v3984_v2  ;;  %v4062_v1 = vld [vmem:[%s4318_s29 + $0x2e8] ss:$16 sps:$4 sm:$0xff]   ;;  %v4067_v2 = vld [vmem:[%s4318_s29 + $0x30c] ss:$16 sps:$4 sm:$0xff]  }
  0xc1   : > { %2592 = vmatpush1.bf16.msra.mxu0 %v3979_v3  ;;  %v4070_v3 = vld [vmem:[%s4318_s29 + $0x40c] ss:$16 sps:$4 sm:$0xff]  }
  0xc2   : > { %2658 = vmatpush1.bf16.msra.mxu1 %v3982_v4  ;;  %2593 = vmatprep.subr.bf16.mxu0 %v3987_v5  ;;  %v4065_v4 = vld [vmem:[%s4318_s29 + $0x308] ss:$16 sps:$4 sm:$0xff]  }
  0xc3   : > { %2659 = vmatprep.subr.bf16.mxu1 %v3990_v6  ;;  %v4068_v5 = vld [vmem:[%s4318_s29 + $0x408] ss:$16 sps:$4 sm:$0xff]   ;;  %v4073_v6 = vld [vmem:[%s4318_s29 + $0x32c] ss:$16 sps:$4 sm:$0xff]  }
  0xc5   : > { %2594 = vmatpush1.bf16.msra.mxu0 %v3985_v9  ;;  %v4076_v9 = vld [vmem:[%s4318_s29 + $0x42c] ss:$16 sps:$4 sm:$0xff]  }
  0xc6   : > { %2660 = vmatpush1.bf16.msra.mxu1 %v3988_v10  ;;  %2595 = vmatprep.subr.bf16.mxu0 %v3993_v48  ;;  %v4071_v10 = vld [vmem:[%s4318_s29 + $0x328] ss:$16 sps:$4 sm:$0xff]  }
  0xc7   : > { %2661 = vmatprep.subr.bf16.mxu1 %v3996_v11  ;;  %v4074_v48 = vld [vmem:[%s4318_s29 + $0x428] ss:$16 sps:$4 sm:$0xff]   ;;  %v4079_v11 = vld [vmem:[%s4318_s29 + $0x34c] ss:$16 sps:$4 sm:$0xff]  }
  0xc9   : > { %2596 = vmatpush1.bf16.msra.mxu0 %v3991_v12  ;;  %v4082_v12 = vld [vmem:[%s4318_s29 + $0x44c] ss:$16 sps:$4 sm:$0xff]  }
  0xca   : > { %2662 = vmatpush1.bf16.msra.mxu1 %v3994_v13  ;;  %2597 = vmatprep.subr.bf16.mxu0 %v3999_v14  ;;  %v4077_v13 = vld [vmem:[%s4318_s29 + $0x348] ss:$16 sps:$4 sm:$0xff]   ;;  %v4085_v14 = vld [vmem:[%s4318_s29 + $0x36c] ss:$16 sps:$4 sm:$0xff]  }
  0xcb   : > { %2663 = vmatprep.subr.bf16.mxu1 %v4002_v15  ;;  %v4088_v15 = vld [vmem:[%s4318_s29 + $0x46c] ss:$16 sps:$4 sm:$0xff]  }
  0xcd   : > { %2598 = vmatpush1.bf16.msra.mxu0 %v3997_v16  ;;  %v4083_v16 = vld [vmem:[%s4318_s29 + $0x368] ss:$16 sps:$4 sm:$0xff]  }
  0xce   : > { %2664 = vmatpush1.bf16.msra.mxu1 %v4000_v19  ;;  %2599 = vmatprep.subr.bf16.mxu0 %v4005_v20  ;;  %v4086_v19 = vld [vmem:[%s4318_s29 + $0x468] ss:$16 sps:$4 sm:$0xff]   ;;  %v4094_v20 = vld [vmem:[%s4318_s29 + $0x48c] ss:$16 sps:$4 sm:$0xff]  }
  0xcf   : > { %2665 = vmatprep.subr.bf16.mxu1 %v4008_v21  ;;  %v4089_v21 = vld [vmem:[%s4318_s29 + $0x388] ss:$16 sps:$4 sm:$0xff]  }
  0xd1   : > { %2600 = vmatpush1.bf16.msra.mxu0 %v4003_v22  ;;  %v4092_v22 = vld [vmem:[%s4318_s29 + $0x488] ss:$16 sps:$4 sm:$0xff]  }
  0xd2   : > { %2666 = vmatpush1.bf16.msra.mxu1 %v4006_v24  ;;  %2601 = vmatprep.subr.bf16.mxu0 %v4011_v26  ;;  %v4097_v24 = vld [vmem:[%s4318_s29 + $0x3ac] ss:$16 sps:$4 sm:$0xff]  }
  0xd3   : > { %2667 = vmatprep.subr.bf16.mxu1 %v4014_v27  ;;  %v4100_v26 = vld [vmem:[%s4318_s29 + $0x4ac] ss:$16 sps:$4 sm:$0xff]   ;;  %v4095_v27 = vld [vmem:[%s4318_s29 + $0x3a8] ss:$16 sps:$4 sm:$0xff]  }
  0xd5   : > { %2602 = vmatpush1.bf16.msra.mxu0 %v4009_v28  ;;  %v4098_v28 = vld [vmem:[%s4318_s29 + $0x4a8] ss:$16 sps:$4 sm:$0xff]  }
  0xd6   : > { %2668 = vmatpush1.bf16.msra.mxu1 %v4012_v30  ;;  %2694 = vmatprep.subr.bf16.mxu0 %v4022_v32  ;;  %v4103_v30 = vld [vmem:[%s4318_s29 + $0x3cc] ss:$16 sps:$4 sm:$0xff]   ;;  %v4101_v32 = vld [vmem:[%s4318_s29 + $0x3c8] ss:$16 sps:$4 sm:$0xff]  }
  0xd7   : > { %2669 = vmatprep.subr.bf16.mxu1 %v4019_v31  ;;  %v4106_v31 = vld [vmem:[%s4318_s29 + $0x4cc] ss:$16 sps:$4 sm:$0xff]  }
  0xd8   : > { %2604 = vmatmul.mubr.bf16.vlgmr.msra.gmra.mrb[8].mxu0 %v4568_v33 }
  0xd9   : > { %2695 = vmatpush1.bf16.msra.mxu0 %v4020_v35  ;;  %2726 = vmatprep.mubr.bf16.mxu0 %v4373_v52  ;;  %v4043_v52 = vld [vmem:[%s4318_s29 + $0x18c] ss:$16 sps:$4 sm:$0xff]  }
  0xda   : > { %2670 = vmatpush1.bf16.msra.mxu1 %v4017_v34  ;;  %2696 = vmatprep.subr.bf16.mxu0 %v4028_v39  ;;  %v4104_v34 = vld [vmem:[%s4318_s29 + $0x4c8] ss:$16 sps:$4 sm:$0xff]   ;;  %v4109_v35 = vld [vmem:[%s4318_s29 + $0x3ec] ss:$16 sps:$4 sm:$0xff]  }
  0xdb   : > { %2671 = vmatprep.subr.bf16.mxu1 %v4025_v36  ;;  %v4112_v36 = vld [vmem:[%s4318_s29 + $0x4ec] ss:$16 sps:$4 sm:$0xff]   ;;  %v4107_v39 = vld [vmem:[%s4318_s29 + $0x3e8] ss:$16 sps:$4 sm:$0xff]  }
  0xdd   : > { %2697 = vmatpush1.bf16.msra.mxu0 %v4026_v23  ;;  %v4115_v23 = vld [vmem:[%s4318_s29 + $0x50c] ss:$16 sps:$4 sm:$0xff]  }
  0xde   : > { %2672 = vmatpush1.bf16.msra.mxu1 %v4023_v40  ;;  %2698 = vmatprep.subr.bf16.mxu0 %v4034_v42  ;;  %v4110_v40 = vld [vmem:[%s4318_s29 + $0x4e8] ss:$16 sps:$4 sm:$0xff]  }
  0xdf   : > { %2673 = vmatprep.subr.bf16.mxu1 %v4031_v41  ;;  %v4118_v41 = vld [vmem:[%s4318_s29 + $0x60c] ss:$16 sps:$4 sm:$0xff]   ;;  %v4113_v42 = vld [vmem:[%s4318_s29 + $0x508] ss:$16 sps:$4 sm:$0xff]  }
  0xe1   : > { %2699 = vmatpush1.bf16.msra.mxu0 %v4032_v44  ;;  %v4121_v44 = vld [vmem:[%s4318_s29 + $0x52c] ss:$16 sps:$4 sm:$0xff]  }
  0xe2   : > { %2674 = vmatpush1.bf16.msra.mxu1 %v4029_v43  ;;  %2700 = vmatprep.subr.bf16.mxu0 %v4040_v46  ;;  %v4116_v43 = vld [vmem:[%s4318_s29 + $0x608] ss:$16 sps:$4 sm:$0xff]  }
  0xe3   : > { %2675 = vmatprep.subr.bf16.mxu1 %v4037_v45  ;;  %v4124_v45 = vld [vmem:[%s4318_s29 + $0x62c] ss:$16 sps:$4 sm:$0xff]   ;;  %v4119_v46 = vld [vmem:[%s4318_s29 + $0x528] ss:$16 sps:$4 sm:$0xff]  }
  0xe5   : > { %2701 = vmatpush1.bf16.msra.mxu0 %v4038_v49  ;;  %v4127_v49 = vld [vmem:[%s4318_s29 + $0x54c] ss:$16 sps:$4 sm:$0xff]  }
  0xe6   : > { %2676 = vmatpush1.bf16.msra.mxu1 %v4035_v47  ;;  %2702 = vmatprep.subr.bf16.mxu0 %v4046_v50  ;;  %v4122_v47 = vld [vmem:[%s4318_s29 + $0x628] ss:$16 sps:$4 sm:$0xff]  }
  0xe7   : > { %2677 = vmatprep.subr.bf16.mxu1 %v4043_v52  ;;  %v4130_v52 = vld [vmem:[%s4318_s29 + $0x64c] ss:$16 sps:$4 sm:$0xff]   ;;  %v4125_v50 = vld [vmem:[%s4318_s29 + $0x548] ss:$16 sps:$4 sm:$0xff]  }
  0xe9   : > { %2703 = vmatpush1.bf16.msra.mxu0 %v4044_v53  ;;  %v4136_v53 = vld [vmem:[%s4318_s29 + $0x66c] ss:$16 sps:$4 sm:$0xff]  }
  0xea   : > { %2678 = vmatpush1.bf16.msra.mxu1 %v4041_v51  ;;  %2704 = vmatprep.subr.bf16.mxu0 %v4052_v55  ;;  %v4133_v51 = vld [vmem:[%s4318_s29 + $0x56c] ss:$16 sps:$4 sm:$0xff]   ;;  %v4134_v55 = vld [vmem:[%s4318_s29 + $0x668] ss:$16 sps:$4 sm:$0xff]  }
  0xeb   : > { %2679 = vmatprep.subr.bf16.mxu1 %v4049_v54  ;;  %v4131_v54 = vld [vmem:[%s4318_s29 + $0x568] ss:$16 sps:$4 sm:$0xff]  }
  0xed   : > { %2705 = vmatpush1.bf16.msra.mxu0 %v4050_v57  ;;  %v4137_v57 = vld [vmem:[%s4318_s29 + $0x588] ss:$16 sps:$4 sm:$0xff]  }
  0xee   : > { %2680 = vmatpush1.bf16.msra.mxu1 %v4047_v56  ;;  %2706 = vmatprep.subr.bf16.mxu0 %v4058_v59  ;;  %v4142_v56 = vld [vmem:[%s4318_s29 + $0x68c] ss:$16 sps:$4 sm:$0xff]  }
  0xef   : > { %2681 = vmatprep.subr.bf16.mxu1 %v4055_v58  ;;  %v4140_v58 = vld [vmem:[%s4318_s29 + $0x688] ss:$16 sps:$4 sm:$0xff]   ;;  %v4145_v59 = vld [vmem:[%s4318_s29 + $0x5ac] ss:$16 sps:$4 sm:$0xff]  }
  0xf1   : > { %2707 = vmatpush1.bf16.msra.mxu0 %v4056_v61  ;;  %v4143_v61 = vld [vmem:[%s4318_s29 + $0x5a8] ss:$16 sps:$4 sm:$0xff]  }
  0xf2   : > { %2682 = vmatpush1.bf16.msra.mxu1 %v4053_v60  ;;  %2708 = vmatprep.subr.bf16.mxu0 %v4064_v63  ;;  %v4148_v60 = vld [vmem:[%s4318_s29 + $0x6ac] ss:$16 sps:$4 sm:$0xff]  }
  0xf3   : > { %2683 = vmatprep.subr.bf16.mxu1 %v4061_v62  ;;  %v4146_v62 = vld [vmem:[%s4318_s29 + $0x6a8] ss:$16 sps:$4 sm:$0xff]   ;;  %v4151_v63 = vld [vmem:[%s4318_s29 + $0x5cc] ss:$16 sps:$4 sm:$0xff]  }
  0xf5   : > { %2709 = vmatpush1.bf16.msra.mxu0 %v4062_v1 }
  0xf6   : > { %2684 = vmatpush1.bf16.msra.mxu1 %v4059_v0  ;;  %2710 = vmatprep.subr.bf16.mxu0 %v4067_v2  ;;  %v4154_v0 = vld [vmem:[%s4318_s29 + $0x6cc] ss:$16 sps:$4 sm:$0xff]  }
  0xf7   : > { %2735 = vmatprep.subr.bf16.mxu1 %v4070_v3 }
  0xf9   : > { %2686 = vmatmul.mubr.bf16.vlgmr.msra.gmra.mrb[12].mxu1 %v4395_v7  ;;  %2711 = vmatpush1.bf16.msra.mxu0 %v4065_v4  ;;  %v4080_v7 = vld [vmem:[%s4318_s29 + $0x448] ss:$16 sps:$4 sm:$0xff]  }
  0xfa   : > { %2736 = vmatpush1.bf16.msra.mxu1 %v4068_v5  ;;  %2712 = vmatprep.subr.bf16.mxu0 %v4073_v6 }
  0xfb   : > { %2737 = vmatprep.subr.bf16.mxu1 %v4076_v9  ;;  %2767 = vmatprep.mubr.bf16.mxu1 %v4435_v37  ;;  %v4091_v37 = vld [vmem:[%s4318_s29 + $0x38c] ss:$16 sps:$4 sm:$0xff]  }
  0xfd   : > { %2713 = vmatpush1.bf16.msra.mxu0 %v4071_v10 }
  0xfe   : > { %2738 = vmatpush1.bf16.msra.mxu1 %v4074_v48  ;;  %2714 = vmatprep.subr.bf16.mxu0 %v4079_v11  ;;  %v4149_v48 = vld [vmem:[%s4318_s29 + $0x5c8] ss:$16 sps:$4 sm:$0xff]  }
  0xff   : > { %2739 = vmatprep.subr.bf16.mxu1 %v4082_v12  ;;  %v4152_v11 = vld [vmem:[%s4318_s29 + $0x6c8] ss:$16 sps:$4 sm:$0xff]  }
 0x101   : > { %2715 = vmatpush1.bf16.msra.mxu0 %v4077_v13 }
 0x102   : > { %2740 = vmatpush1.bf16.msra.mxu1 %v4080_v7  ;;  %2716 = vmatprep.subr.bf16.mxu0 %v4085_v14  ;;  %v4157_v7 = vld [vmem:[%s4318_s29 + $0x5ec] ss:$16 sps:$4 sm:$0xff]  }
 0x103   : > { %2741 = vmatprep.subr.bf16.mxu1 %v4088_v15  ;;  %v4160_v14 = vld [vmem:[%s4318_s29 + $0x6ec] ss:$16 sps:$4 sm:$0xff]   ;;  %v4155_v15 = vld [vmem:[%s4318_s29 + $0x5e8] ss:$16 sps:$4 sm:$0xff]  }
 0x105   : > { %2717 = vmatpush1.bf16.msra.mxu0 %v4083_v16  ;;  %v4158_v16 = vld [vmem:[%s4318_s29 + $0x6e8] ss:$16 sps:$4 sm:$0xff]  }
 0x106   : > { %2742 = vmatpush1.bf16.msra.mxu1 %v4086_v19  ;;  %2718 = vmatprep.subr.bf16.mxu0 %v4091_v37  ;;  %v4163_v19 = vld [vmem:[%s4318_s29 + $0x70c] ss:$16 sps:$4 sm:$0xff]  }
 0x107   : > { %2743 = vmatprep.subr.bf16.mxu1 %v4094_v20  ;;  %v4166_v37 = vld [vmem:[%s4318_s29 + $0x80c] ss:$16 sps:$4 sm:$0xff]   ;;  %v4161_v20 = vld [vmem:[%s4318_s29 + $0x708] ss:$16 sps:$4 sm:$0xff]  }
 0x109   : > { %2719 = vmatpush1.bf16.msra.mxu0 %v4089_v21  ;;  %v4164_v21 = vld [vmem:[%s4318_s29 + $0x808] ss:$16 sps:$4 sm:$0xff]  }
 0x10a   : > { %2744 = vmatpush1.bf16.msra.mxu1 %v4092_v22  ;;  %2720 = vmatprep.subr.bf16.mxu0 %v4097_v24  ;;  %v4169_v22 = vld [vmem:[%s4318_s29 + $0x72c] ss:$16 sps:$4 sm:$0xff]  }
 0x10b   : > { %2745 = vmatprep.subr.bf16.mxu1 %v4100_v26  ;;  %v4172_v24 = vld [vmem:[%s4318_s29 + $0x82c] ss:$16 sps:$4 sm:$0xff]   ;;  %v4167_v26 = vld [vmem:[%s4318_s29 + $0x728] ss:$16 sps:$4 sm:$0xff]  }
 0x10d   : > { %2721 = vmatpush1.bf16.msra.mxu0 %v4095_v27  ;;  %v4170_v27 = vld [vmem:[%s4318_s29 + $0x828] ss:$16 sps:$4 sm:$0xff]  }
 0x10e   : > { %2746 = vmatpush1.bf16.msra.mxu1 %v4098_v28  ;;  %2722 = vmatprep.subr.bf16.mxu0 %v4103_v30  ;;  %v4175_v28 = vld [vmem:[%s4318_s29 + $0x74c] ss:$16 sps:$4 sm:$0xff]  }
 0x10f   : > { %2747 = vmatprep.subr.bf16.mxu1 %v4106_v31  ;;  %v4178_v30 = vld [vmem:[%s4318_s29 + $0x84c] ss:$16 sps:$4 sm:$0xff]   ;;  %v4173_v31 = vld [vmem:[%s4318_s29 + $0x748] ss:$16 sps:$4 sm:$0xff]  }
 0x111   : > { %2723 = vmatpush1.bf16.msra.mxu0 %v4101_v32  ;;  %v4181_v32 = vld [vmem:[%s4318_s29 + $0x76c] ss:$16 sps:$4 sm:$0xff]  }
 0x112   : > { %2748 = vmatpush1.bf16.msra.mxu1 %v4104_v34  ;;  %2724 = vmatprep.subr.bf16.mxu0 %v4109_v35  ;;  %v4184_v34 = vld [vmem:[%s4318_s29 + $0x86c] ss:$16 sps:$4 sm:$0xff]   ;;  %v4179_v35 = vld [vmem:[%s4318_s29 + $0x768] ss:$16 sps:$4 sm:$0xff]  }
 0x113   : > { %2749 = vmatprep.subr.bf16.mxu1 %v4112_v36  ;;  %v4182_v36 = vld [vmem:[%s4318_s29 + $0x868] ss:$16 sps:$4 sm:$0xff]  }
 0x115   : > { %2725 = vmatpush1.bf16.msra.mxu0 %v4107_v39  ;;  %v4190_v39 = vld [vmem:[%s4318_s29 + $0x88c] ss:$16 sps:$4 sm:$0xff]  }
 0x116   : > { %2750 = vmatpush1.bf16.msra.mxu1 %v4110_v40  ;;  %2776 = vmatprep.subr.bf16.mxu0 %v4118_v41  ;;  %v4185_v40 = vld [vmem:[%s4318_s29 + $0x788] ss:$16 sps:$4 sm:$0xff]   ;;  %v4193_v41 = vld [vmem:[%s4318_s29 + $0x7ac] ss:$16 sps:$4 sm:$0xff]  }
 0x117   : > { %2751 = vmatprep.subr.bf16.mxu1 %v4115_v23  ;;  %v4188_v23 = vld [vmem:[%s4318_s29 + $0x888] ss:$16 sps:$4 sm:$0xff]  }
 0x118   : > { %2727 = vmatmul.mubr.bf16.vlgmr.msra.gmra.mrb[12].mxu0 %v4397_v8  ;;  %v4128_v8 = vld [vmem:[%s4318_s29 + $0x648] ss:$16 sps:$4 sm:$0xff]  }
 0x119   : > { %2777 = vmatpush1.bf16.msra.mxu0 %v4116_v43  ;;  %2808 = vmatprep.mubr.bf16.mxu0 %v4439_v38  ;;  %v4139_v38 = vld [vmem:[%s4318_s29 + $0x58c] ss:$16 sps:$4 sm:$0xff]   ;;  %v4191_v43 = vld [vmem:[%s4318_s29 + $0x7a8] ss:$16 sps:$4 sm:$0xff]  }
 0x11a   : > { %2752 = vmatpush1.bf16.msra.mxu1 %v4113_v42  ;;  %2778 = vmatprep.subr.bf16.mxu0 %v4124_v45  ;;  %v4196_v42 = vld [vmem:[%s4318_s29 + $0x8ac] ss:$16 sps:$4 sm:$0xff]  }
 0x11b   : > { %2753 = vmatprep.subr.bf16.mxu1 %v4121_v44  ;;  %v4194_v44 = vld [vmem:[%s4318_s29 + $0x8a8] ss:$16 sps:$4 sm:$0xff]   ;;  %v4199_v45 = vld [vmem:[%s4318_s29 + $0x7cc] ss:$16 sps:$4 sm:$0xff]  }
 0x11d   : > { %2779 = vmatpush1.bf16.msra.mxu0 %v4122_v47  ;;  %v4197_v47 = vld [vmem:[%s4318_s29 + $0x7c8] ss:$16 sps:$4 sm:$0xff]  }
 0x11e   : > { %2754 = vmatpush1.bf16.msra.mxu1 %v4119_v46  ;;  %2780 = vmatprep.subr.bf16.mxu0 %v4130_v52  ;;  %v4202_v46 = vld [vmem:[%s4318_s29 + $0x8cc] ss:$16 sps:$4 sm:$0xff]  }
 0x11f   : > { %2755 = vmatprep.subr.bf16.mxu1 %v4127_v49  ;;  %v4200_v49 = vld [vmem:[%s4318_s29 + $0x8c8] ss:$16 sps:$4 sm:$0xff]   ;;  %v4205_v52 = vld [vmem:[%s4318_s29 + $0x7ec] ss:$16 sps:$4 sm:$0xff]  }
 0x121   : > { %2781 = vmatpush1.bf16.msra.mxu0 %v4128_v8  ;;  %v4203_v8 = vld [vmem:[%s4318_s29 + $0x7e8] ss:$16 sps:$4 sm:$0xff]  }
 0x122   : > { %2756 = vmatpush1.bf16.msra.mxu1 %v4125_v50  ;;  %2782 = vmatprep.subr.bf16.mxu0 %v4136_v53  ;;  %v4208_v50 = vld [vmem:[%s4318_s29 + $0x8ec] ss:$16 sps:$4 sm:$0xff]  }
 0x123   : > { %2757 = vmatprep.subr.bf16.mxu1 %v4133_v51  ;;  %v4206_v51 = vld [vmem:[%s4318_s29 + $0x8e8] ss:$16 sps:$4 sm:$0xff]   ;;  %v4211_v53 = vld [vmem:[%s4318_s29 + $0x90c] ss:$16 sps:$4 sm:$0xff]  }
 0x125   : > { %2783 = vmatpush1.bf16.msra.mxu0 %v4134_v55  ;;  %v4209_v55 = vld [vmem:[%s4318_s29 + $0x908] ss:$16 sps:$4 sm:$0xff]  }
 0x126   : > { %2758 = vmatpush1.bf16.msra.mxu1 %v4131_v54  ;;  %2784 = vmatprep.subr.bf16.mxu0 %v4142_v56  ;;  %v4214_v54 = vld [vmem:[%s4318_s29 + $0xa0c] ss:$16 sps:$4 sm:$0xff]  }
 0x127   : > { %2759 = vmatprep.subr.bf16.mxu1 %v4139_v38  ;;  %v4212_v38 = vld [vmem:[%s4318_s29 + $0xa08] ss:$16 sps:$4 sm:$0xff]   ;;  %v4217_v56 = vld [vmem:[%s4318_s29 + $0x92c] ss:$16 sps:$4 sm:$0xff]  }
 0x129   : > { %2785 = vmatpush1.bf16.msra.mxu0 %v4140_v58  ;;  %v4215_v58 = vld [vmem:[%s4318_s29 + $0x928] ss:$16 sps:$4 sm:$0xff]  }
 0x12a   : > { %2760 = vmatpush1.bf16.msra.mxu1 %v4137_v57  ;;  %2786 = vmatprep.subr.bf16.mxu0 %v4148_v60  ;;  %v4220_v57 = vld [vmem:[%s4318_s29 + $0xa2c] ss:$16 sps:$4 sm:$0xff]  }
 0x12b   : > { %2761 = vmatprep.subr.bf16.mxu1 %v4145_v59  ;;  %v2441_v1 = vpop.f32.mrb[0].mxu0  ;;  %v4218_v59 = vld [vmem:[%s4318_s29 + $0xa28] ss:$16 sps:$4 sm:$0xff]   ;;  %v4223_v60 = vld [vmem:[%s4318_s29 + $0x94c] ss:$16 sps:$4 sm:$0xff]  }
 0x12c   : > { %v2482_v2 = vpop.f32.mrb[0].mxu1  ;;  %v2443_v4 = vpop.f32.mrb[1].mxu0 }
 0x12d   : > { %v4664_v3 = vadd.f32 %v2482_v2, %v2441_v1  ;;  %v2484_v5 = vpop.f32.mrb[1].mxu1  ;;  %v2445_v9 = vpop.f32.mrb[2].mxu0  ;;  %2787 = vmatpush1.bf16.msra.mxu0 %v4146_v62  ;;  %v4221_v62 = vld [vmem:[%s4318_s29 + $0x948] ss:$16 sps:$4 sm:$0xff]  }
 0x12e   : > { %v4666_v6 = vadd.f32 %v2484_v5, %v2443_v4  ;;  %v2486_v10 = vpop.f32.mrb[2].mxu1  ;;  %2762 = vmatpush1.bf16.msra.mxu1 %v4143_v61  ;;  %v2446_v12 = vpop.f32.mrb[3].mxu0  ;;  %2788 = vmatprep.subr.bf16.mxu0 %v4154_v0  ;;  %v4226_v61 = vld [vmem:[%s4318_s29 + $0xa4c] ss:$16 sps:$4 sm:$0xff]   ;;  %v4227_v1 = vld [vmem:[%s4318_s29 + $0x968] ss:$16 sps:$4 sm:$0xff]  }
 0x12f   : > { %v2487_v13 = vpop.f32.mrb[3].mxu1  ;;  %2763 = vmatprep.subr.bf16.mxu1 %v4151_v63  ;;  %v4229_v63 = vld [vmem:[%s4318_s29 + $0x96c] ss:$16 sps:$4 sm:$0xff]   ;;  %v4230_v2 = vld [vmem:[%s4318_s29 + $0xa68] ss:$16 sps:$4 sm:$0xff]  }
 0x130   : > { %v4232_v0 = vld [vmem:[%s4318_s29 + $0xa6c] ss:$16 sps:$4 sm:$0xff]   ;;  %v4233_v5 = vld [vmem:[%s4318_s29 + $0x988] ss:$16 sps:$4 sm:$0xff]  }
 0x131   : > { %2789 = vmatpush1.bf16.msra.mxu0 %v4152_v11  ;;  %v4238_v4 = vld [vmem:[%s4318_s29 + $0xa8c] ss:$16 sps:$4 sm:$0xff]   ;;  %v4236_v9 = vld [vmem:[%s4318_s29 + $0xa88] ss:$16 sps:$4 sm:$0xff]  }
 0x132   : > { %2764 = vmatpush1.bf16.msra.mxu1 %v4149_v48  ;;  %2790 = vmatprep.subr.bf16.mxu0 %v4160_v14  ;;  %v4241_v10 = vld [vmem:[%s4318_s29 + $0x9ac] ss:$16 sps:$4 sm:$0xff]   ;;  %v4239_v11 = vld [vmem:[%s4318_s29 + $0x9a8] ss:$16 sps:$4 sm:$0xff]  }
 0x133   : > { %2765 = vmatprep.subr.bf16.mxu1 %v4157_v7  ;;  %v4244_v48 = vld [vmem:[%s4318_s29 + $0xaac] ss:$16 sps:$4 sm:$0xff]   ;;  %v4242_v12 = vld [vmem:[%s4318_s29 + $0xaa8] ss:$16 sps:$4 sm:$0xff]  }
 0x134   : > { %v4247_v13 = vld [vmem:[%s4318_s29 + $0x9cc] ss:$16 sps:$4 sm:$0xff]  }
 0x135   : > { %2791 = vmatpush1.bf16.msra.mxu0 %v4158_v16  ;;  %v4250_v7 = vld [vmem:[%s4318_s29 + $0xacc] ss:$16 sps:$4 sm:$0xff]  }
 0x136   : > { %2766 = vmatpush1.bf16.msra.mxu1 %v4155_v15  ;;  %2792 = vmatprep.subr.bf16.mxu0 %v4163_v19 }
 0x137   : > { %2817 = vmatprep.subr.bf16.mxu1 %v4166_v37 }
 0x139   : > { %2768 = vmatmul.mubr.bf16.vlgmr.msra.gmra.mrb[16].mxu1 %v4483_v17  ;;  %2793 = vmatpush1.bf16.msra.mxu0 %v4161_v20  ;;  %v4176_v17 = vld [vmem:[%s4318_s29 + $0x848] ss:$16 sps:$4 sm:$0xff]  }
 0x13a   : > { %2818 = vmatpush1.bf16.msra.mxu1 %v4164_v21  ;;  %2794 = vmatprep.subr.bf16.mxu0 %v4169_v22 }
 0x13b   : > { %2819 = vmatprep.subr.bf16.mxu1 %v4172_v24  ;;  %2849 = vmatprep.mubr.bf16.mxu1 %v4501_v25  ;;  %v4187_v25 = vld [vmem:[%s4318_s29 + $0x78c] ss:$16 sps:$4 sm:$0xff]   ;;  %v4245_v24 = vld [vmem:[%s4318_s29 + $0x9c8] ss:$16 sps:$4 sm:$0xff]  }
 0x13d   : > { %2795 = vmatpush1.bf16.msra.mxu0 %v4167_v26  ;;  %v4248_v26 = vld [vmem:[%s4318_s29 + $0xac8] ss:$16 sps:$4 sm:$0xff]  }
 0x13e   : > { %2820 = vmatpush1.bf16.msra.mxu1 %v4170_v27  ;;  %2796 = vmatprep.subr.bf16.mxu0 %v4175_v28 }
 0x13f   : > { %2821 = vmatprep.subr.bf16.mxu1 %v4178_v30 }
 0x141   : > { %2797 = vmatpush1.bf16.msra.mxu0 %v4173_v31  ;;  %v4256_v31 = vld [vmem:[%s4318_s29 + $0xaec] ss:$16 sps:$4 sm:$0xff]  }
 0x142   : > { %2822 = vmatpush1.bf16.msra.mxu1 %v4176_v17  ;;  %2798 = vmatprep.subr.bf16.mxu0 %v4181_v32  ;;  %v4254_v32 = vld [vmem:[%s4318_s29 + $0xae8] ss:$16 sps:$4 sm:$0xff]  }
 0x143   : > { %2823 = vmatprep.subr.bf16.mxu1 %v4184_v34  ;;  %v4257_v34 = vld [vmem:[%s4313_s25 + $0x28] ss:$0 sps:$4 sm:$0xff]  }
 0x145   : > { %2799 = vmatpush1.bf16.msra.mxu0 %v4179_v35 }
 0x146   : > { %2824 = vmatpush1.bf16.msra.mxu1 %v4182_v36  ;;  %2800 = vmatprep.subr.bf16.mxu0 %v4187_v25 }
 0x147   : > { %2825 = vmatprep.subr.bf16.mxu1 %v4190_v39 }
 0x149   : > { %2801 = vmatpush1.bf16.msra.mxu0 %v4185_v40 }
 0x14a   : > { %2826 = vmatpush1.bf16.msra.mxu1 %v4188_v23  ;;  %2802 = vmatprep.subr.bf16.mxu0 %v4193_v41 }
 0x14b   : > { %2827 = vmatprep.subr.bf16.mxu1 %v4196_v42  ;;  %v246_v42 = vld [vmem:[#allocation2] sm:$0xff] }
 0x14d   : > { %2803 = vmatpush1.bf16.msra.mxu0 %v4191_v43 }
 0x14e   : > { %2828 = vmatpush1.bf16.msra.mxu1 %v4194_v44  ;;  %2804 = vmatprep.subr.bf16.mxu0 %v4199_v45 }
 0x14f   : > { %2829 = vmatprep.subr.bf16.mxu1 %v4202_v46  ;;  %v247_v46 = vld [vmem:[#allocation2 + $0x8] sm:$0xff] }
 0x151   : > { %2805 = vmatpush1.bf16.msra.mxu0 %v4197_v47 }
 0x152   : > { %2830 = vmatpush1.bf16.msra.mxu1 %v4200_v49  ;;  %2806 = vmatprep.subr.bf16.mxu0 %v4205_v52 }
 0x153   : > { %2831 = vmatprep.subr.bf16.mxu1 %v4208_v50 }
 0x155   : > { %2807 = vmatpush1.bf16.msra.mxu0 %v4203_v8 }
 0x156   : > { %2832 = vmatpush1.bf16.msra.mxu1 %v4206_v51  ;;  %2858 = vmatprep.subr.bf16.mxu0 %v4214_v54 }
 0x157   : > { %2833 = vmatprep.subr.bf16.mxu1 %v4211_v53 }
 0x158   : > { %2809 = vmatmul.mubr.bf16.vlgmr.msra.gmra.mrb[16].mxu0 %v4487_v18  ;;  %v4224_v18 = vld [vmem:[%s4318_s29 + $0xa48] ss:$16 sps:$4 sm:$0xff]  }
 0x159   : > { %2859 = vmatpush1.bf16.msra.mxu0 %v4212_v38  ;;  %2890 = vmatprep.mubr.bf16.mxu0 %v4267_v29  ;;  %v4235_v29 = vld [vmem:[%s4318_s29 + $0x98c] ss:$16 sps:$4 sm:$0xff]  }
 0x15a   : > { %2834 = vmatpush1.bf16.msra.mxu1 %v4209_v55  ;;  %2860 = vmatprep.subr.bf16.mxu0 %v4220_v57 }
 0x15b   : > { %2835 = vmatprep.subr.bf16.mxu1 %v4217_v56 }
 0x15d   : > { %2861 = vmatpush1.bf16.msra.mxu0 %v4218_v59 }
 0x15e   : > { %2836 = vmatpush1.bf16.msra.mxu1 %v4215_v58  ;;  %2862 = vmatprep.subr.bf16.mxu0 %v4226_v61 }
 0x15f   : > { %2837 = vmatprep.subr.bf16.mxu1 %v4223_v60 }
 0x161   : > { %2863 = vmatpush1.bf16.msra.mxu0 %v4224_v18 }
 0x162   : > { %2838 = vmatpush1.bf16.msra.mxu1 %v4221_v62  ;;  %2864 = vmatprep.subr.bf16.mxu0 %v4232_v0 }
 0x163   : > { %2839 = vmatprep.subr.bf16.mxu1 %v4229_v63 }
 0x165   : > { %2865 = vmatpush1.bf16.msra.mxu0 %v4230_v2 }
 0x166   : > { %2840 = vmatpush1.bf16.msra.mxu1 %v4227_v1  ;;  %2866 = vmatprep.subr.bf16.mxu0 %v4238_v4 }
 0x167   : > { %2841 = vmatprep.subr.bf16.mxu1 %v4235_v29 }
 0x169   : > { %2867 = vmatpush1.bf16.msra.mxu0 %v4236_v9 }
 0x16a   : > { %2842 = vmatpush1.bf16.msra.mxu1 %v4233_v5  ;;  %2868 = vmatprep.subr.bf16.mxu0 %v4244_v48 }
 0x16b   : > { %2843 = vmatprep.subr.bf16.mxu1 %v4241_v10  ;;  %v2523_v14 = vpop.f32.mrb[4].mxu0 }
 0x16c   : > { %v2564_v15 = vpop.f32.mrb[4].mxu1  ;;  %v2524_v16 = vadd.f32 %v2523_v14, %v4664_v3  ;;  %v2525_v19 = vpop.f32.mrb[5].mxu0  ;;  %v4253_v3 = vld [vmem:[%s4318_s29 + $0x9ec] ss:$16 sps:$4 sm:$0xff]  }
 0x16d   : > { %v2566_v37 = vpop.f32.mrb[5].mxu1  ;;  %v2526_v20 = vadd.f32 %v2525_v19, %v4666_v6  ;;  %v2527_v21 = vpop.f32.mrb[6].mxu0  ;;  %2869 = vmatpush1.bf16.msra.mxu0 %v4242_v12  ;;  %v4251_v6 = vld [vmem:[%s4318_s29 + $0x9e8] ss:$16 sps:$4 sm:$0xff]  }
 0x16e   : > { %v2568_v22 = vpop.f32.mrb[6].mxu1  ;;  %2844 = vmatpush1.bf16.msra.mxu1 %v4239_v11  ;;  %v2565_v27 = vadd.f32 %v2564_v15, %v2524_v16  ;;  %v2528_v28 = vpop.f32.mrb[7].mxu0  ;;  %2870 = vmatprep.subr.bf16.mxu0 %v4250_v7  ;;  %v249_v19 = vld [vmem:[#allocation2 + $0x18] sm:$0xff] }
 0x16f   : > { %v2569_v30 = vpop.f32.mrb[7].mxu1  ;;  %2845 = vmatprep.subr.bf16.mxu1 %v4247_v13  ;;  %v2567_v17 = vadd.f32 %v2566_v37, %v2526_v20  ;;  %v248_v13 = vld [vmem:[#allocation2 + $0x10] sm:$0xff]  ;;  %v2945_v28 = vld [vmem:[%s4954_s3] sm:$0xff] (!%p3569_p6) }
 0x171   : > { %2871 = vmatpush1.bf16.msra.mxu0 %v4248_v26  ;;  %v2961_v26 = vld [vmem:[%s4954_s3 + $0x80] sm:$0xff] (!%p3569_p6) }
 0x172   : > { %2846 = vmatpush1.bf16.msra.mxu1 %v4245_v24  ;;  %2872 = vmatprep.subr.bf16.mxu0 %v4256_v31  ;;  %v2993_v31 = vld [vmem:[%s4954_s3 + $0x180] sm:$0xff] (!%p3569_p6) }
 0x173   : > { %2847 = vmatprep.subr.bf16.mxu1 %v4253_v3  ;;  %v2946_v3 = vld [vmem:[%s4954_s3 + $0x8] sm:$0xff] (!%p3569_p6) }
 0x175   : > { %2873 = vmatpush1.bf16.msra.mxu0 %v4254_v32 }
 0x176   : > { %2848 = vmatpush1.bf16.msra.mxu1 %v4251_v6  ;;  %v3646_v6 = vpack.c.bf16 (!%p3569_p6), %v2946_v3, %v2945_v28  ;;  %v2956_v3 = vld [vmem:[%s4954_s3 + $0x58] sm:$0xff] (!%p3569_p6) }
 0x178   : > { %2891 = vmatmul.mubr.bf16.vlgmr.msra.gmra.mrb[20].mxu0 %v4257_v34  ;;  %v2977_v34 = vld [vmem:[%s4954_s3 + $0x100] sm:$0xff] (!%p3569_p6) }
 0x179   : > { %2850 = vmatmul.mubr.bf16.vlgmr.msra.gmra.mrb[20].mxu1 %v4568_v33 }
 0x18c   : > { %v2646_v35 = vpop.f32.mrb[8].mxu1 }
 0x18d   : > { %v2648_v36 = vpop.f32.mrb[9].mxu1 }
 0x18e   : > { %v2650_v25 = vpop.f32.mrb[10].mxu1 }
 0x18f   : > { %v2651_v39 = vpop.f32.mrb[11].mxu1 }
 0x190   : > { %v2964_v39 = vld [vmem:[%s4954_s3 + $0x98] sm:$0xff] (!%p3569_p6) }
 0x1ab   : > { %v2605_v40 = vpop.f32.mrb[8].mxu0 }
 0x1ac   : > { %v2606_v23 = vadd.f32 %v2605_v40, %v2565_v27  ;;  %v2607_v41 = vpop.f32.mrb[9].mxu0  ;;  %v2962_v27 = vld [vmem:[%s4954_s3 + $0x88] sm:$0xff] (!%p3569_p6)  ;;  %v2947_v40 = vld [vmem:[%s4954_s3 + $0x10] sm:$0xff] (!%p3569_p6) }
 0x1ad   : > { %v2608_v43 = vadd.f32 %v2607_v41, %v2567_v17  ;;  %v2609_v44 = vpop.f32.mrb[10].mxu0  ;;  %v3644_v30 = vpack.c.bf16 (!%p3569_p6), %v2962_v27, %v2961_v26  ;;  %v2994_v17 = vld [vmem:[%s4954_s3 + $0x188] sm:$0xff] (!%p3569_p6) }
 0x1ae   : > { %v2647_v45 = vadd.f32 %v2646_v35, %v2606_v23  ;;  %v2610_v47 = vpop.f32.mrb[11].mxu0  ;;  %v3676_v32 = vpack.c.bf16 (!%p3569_p6), %v2994_v17, %v2993_v31  ;;  %v2978_v35 = vld [vmem:[%s4954_s3 + $0x108] sm:$0xff] (!%p3569_p6)  ;;  %v2948_v23 = vld [vmem:[%s4954_s3 + $0x18] sm:$0xff] (!%p3569_p6)  ;;  %v2987_v31 = vld [vmem:[%s4954_s3 + $0x150] sm:$0xff] (!%p3569_p6) }
 0x1af   : > { %v2649_v49 = vadd.f32 %v2648_v36, %v2608_v43  ;;  %v2963_v36 = vld [vmem:[%s4954_s3 + $0x90] sm:$0xff] (!%p3569_p6)  ;;  %3645 = vmatprep.subr.bf16.mxu0 (!%p3569_p6), %v3644_v30  ;;  %v3678_v25 = vpack.c.bf16 (!%p3569_p6), %v2978_v35, %v2977_v34  ;;  %v2996_v44 = vld [vmem:[%s4954_s3 + $0x198] sm:$0xff] (!%p3569_p6)  ;;  %v2974_v34 = vld [vmem:[%s4954_s3 + $0xe8] sm:$0xff] (!%p3569_p6) }
 0x1b0   : > { %v2899_v52 = vadd.f32 %v2647_v45, %v246_v42  ;;  %3647 = vmatpush3.bf16.msra.mxu0 (!%p3569_p6), %v3646_v6  ;;  %3677 = vmatprep.subr.bf16.mxu1 (!%p3569_p6), %v3676_v32  ;;  %v3648_v41 = vpack.c.bf16 (!%p3569_p6), %v2964_v39, %v2963_v36  ;;  %v3650_v42 = vpack.c.bf16 (!%p3569_p6), %v2948_v23, %v2947_v40  ;;  %v2995_v43 = vld [vmem:[%s4954_s3 + $0x190] sm:$0xff] (!%p3569_p6)  ;;  %v2980_v47 = vld [vmem:[%s4954_s3 + $0x118] sm:$0xff] (!%p3569_p6)  ;;  %v2973_v32 = vld [vmem:[%s4954_s3 + $0xe0] sm:$0xff] (!%p3569_p6) }
 0x1b1   : > { %v2900_v50 = vadd.f32 %v2649_v49, %v247_v46  ;;  %v2979_v45 = vld [vmem:[%s4954_s3 + $0x110] sm:$0xff] (!%p3569_p6)  ;;  %3679 = vmatpush3.bf16.msra.mxu1 (!%p3569_p6), %v3678_v25  ;;  %v3680_v46 = vpack.c.bf16 (!%p3569_p6), %v2996_v44, %v2995_v43  ;;  %v2965_v49 = vld [vmem:[%s4954_s3 + $0xa0] sm:$0xff] (!%p3569_p6)  ;;  %v2988_v6 = vld [vmem:[%s4954_s3 + $0x158] sm:$0xff] (!%p3569_p6) }
 0x1b2   : > { %2903 = vst [vmem:[#allocation2] sm:$0xff] %v2899_v52  ;;  %v2966_v52 = vld [vmem:[%s4954_s3 + $0xa8] sm:$0xff] (!%p3569_p6)  ;;  %3649 = vmatprep.subr.bf16.mxu0 (!%p3569_p6), %v3648_v41  ;;  %v2955_v30 = vld [vmem:[%s4954_s3 + $0x50] sm:$0xff] (!%p3569_p6)  ;;  %v3005_v25 = vld [vmem:[%s4954_s3 + $0x1e0] sm:$0xff] (!%p3569_p6) }
 0x1b3   : > { %2904 = vst [vmem:[#allocation2 + $0x8] sm:$0xff] %v2900_v50  ;;  %v3682_v50 = vpack.c.bf16 (!%p3569_p6), %v2980_v47, %v2979_v45  ;;  %3681 = vmatprep.subr.bf16.mxu1 (!%p3569_p6), %v3680_v46  ;;  %v3006_v39 = vld [vmem:[%s4954_s3 + $0x1e8] sm:$0xff] (!%p3569_p6)  ;;  %v3666_v23 = vpack.c.bf16 (!%p3569_p6), %v2956_v3, %v2955_v30  ;;  %v2957_v41 = vld [vmem:[%s4954_s3 + $0x60] sm:$0xff] (!%p3569_p6)  ;;  %v3698_v45 = vpack.c.bf16 (!%p3569_p6), %v2988_v6, %v2987_v31 }
 0x1b4   : > { %3651 = vmatpush3.bf16.msra.mxu0 (!%p3569_p6), %v3650_v42  ;;  %v2958_v42 = vld [vmem:[%s4954_s3 + $0x68] sm:$0xff] (!%p3569_p6)  ;;  %v2989_v43 = vld [vmem:[%s4954_s3 + $0x160] sm:$0xff] (!%p3569_p6)  ;;  %v3668_v46 = vpack.c.bf16 (!%p3569_p6), %v2974_v34, %v2973_v32 }
 0x1b5   : > { %3683 = vmatpush3.bf16.msra.mxu1 (!%p3569_p6), %v3682_v50  ;;  %v2990_v47 = vld [vmem:[%s4954_s3 + $0x168] sm:$0xff] (!%p3569_p6)  ;;  %v3700_v50 = vpack.c.bf16 (!%p3569_p6), %v3006_v39, %v3005_v25 }
 0x1cc   : > { %v2687_v33 = vpop.f32.mrb[12].mxu1 }
 0x1cd   : > { %v2689_v8 = vpop.f32.mrb[13].mxu1 }
 0x1ce   : > { %v2691_v51 = vpop.f32.mrb[14].mxu1 }
 0x1cf   : > { %v2692_v53 = vpop.f32.mrb[15].mxu1  ;;  %v2950_v51 = vld [vmem:[%s4954_s3 + $0x28] sm:$0xff] (!%p3569_p6) }
 0x1d0   : > { %v2997_v53 = vld [vmem:[%s4954_s3 + $0x1a0] sm:$0xff] (!%p3569_p6) }
 0x1eb   : > { %v2728_v54 = vpop.f32.mrb[12].mxu0 }
 0x1ec   : > { %v2729_v55 = vadd.f32 %v2728_v54, %v2687_v33  ;;  %v2730_v38 = vpop.f32.mrb[13].mxu0  ;;  %v3652_v33 = vpack.c.bf16 (!%p3569_p6), %v2966_v52, %v2965_v49  ;;  %v2998_v54 = vld [vmem:[%s4954_s3 + $0x1a8] sm:$0xff] (!%p3569_p6)  ;;  %v2915_v52 = vld [vmem:[%s4953_s2] sm:$0xf] (!%p3569_p6) }
 0x1ed   : > { %v2731_v56 = vadd.f32 %v2730_v38, %v2689_v8  ;;  %v2732_v57 = vpop.f32.mrb[14].mxu0  ;;  %v2949_v8 = vld [vmem:[%s4954_s3 + $0x20] sm:$0xff] (!%p3569_p6)  ;;  %v2982_v38 = vld [vmem:[%s4954_s3 + $0x128] sm:$0xff] (!%p3569_p6) }
 0x1ee   : > { %v2733_v58 = vpop.f32.mrb[15].mxu0  ;;  %v3684_v57 = vpack.c.bf16 (!%p3569_p6), %v2998_v54, %v2997_v53  ;;  %3653 = vmatprep.subr.bf16.mxu0 (!%p3569_p6), %v3652_v33  ;;  %v2912_v49 = vld [vmem:[#allocation2 + $0x8] sm:$0xff] (!%p3569_p6)  ;;  %v2975_v33 = vld [vmem:[%s4954_s3 + $0xf0] sm:$0xff] (!%p3569_p6) }
 0x1ef   : > { %v2967_v58 = vld [vmem:[%s4954_s3 + $0xb0] sm:$0xff] (!%p3569_p6) }
 0x1f0   : > { %3685 = vmatprep.subr.bf16.mxu1 (!%p3569_p6), %v3684_v57  ;;  %v3670_v57 = vpack.c.bf16 (!%p3569_p6), %v2958_v42, %v2957_v41 }
 0x20c   : > { %v2769_v59 = vpop.f32.mrb[16].mxu1 }
 0x20d   : > { %v2770_v60 = vadd.f32 %v2769_v59, %v2729_v55  ;;  %v2771_v61 = vpop.f32.mrb[17].mxu1  ;;  %v2981_v55 = vld [vmem:[%s4954_s3 + $0x120] sm:$0xff] (!%p3569_p6)  ;;  %v2968_v59 = vld [vmem:[%s4954_s3 + $0xb8] sm:$0xff] (!%p3569_p6) }
 0x20e   : > { %v2772_v62 = vadd.f32 %v2771_v61, %v2731_v56  ;;  %v2773_v18 = vpop.f32.mrb[18].mxu1  ;;  %v3654_v56 = vpack.c.bf16 (!%p3569_p6), %v2950_v51, %v2949_v8  ;;  %v3686_v61 = vpack.c.bf16 (!%p3569_p6), %v2982_v38, %v2981_v55  ;;  %v2976_v8 = vld [vmem:[%s4954_s3 + $0xf8] sm:$0xff] (!%p3569_p6)  ;;  %v3007_v55 = vld [vmem:[%s4954_s3 + $0x1f0] sm:$0xff] (!%p3569_p6) }
 0x20f   : > { %v2774_v63 = vpop.f32.mrb[19].mxu1  ;;  %v2952_v18 = vld [vmem:[%s4954_s3 + $0x38] sm:$0xff] (!%p3569_p6) }
 0x210   : > { %v2999_v63 = vld [vmem:[%s4954_s3 + $0x1b0] sm:$0xff] (!%p3569_p6)  ;;  %3655 = vmatpush3.bf16.msra.mxu0 (!%p3569_p6), %v3654_v56  ;;  %3687 = vmatpush3.bf16.msra.mxu1 (!%p3569_p6), %v3686_v61  ;;  %v3008_v38 = vld [vmem:[%s4954_s3 + $0x1f8] sm:$0xff] (!%p3569_p6) }
 0x22b   : > { %v2810_v0 = vpop.f32.mrb[16].mxu0 }
 0x22c   : > { %v2811_v1 = vadd.f32 %v2810_v0, %v2770_v60  ;;  %v2812_v2 = vpop.f32.mrb[17].mxu0  ;;  %v2951_v60 = vld [vmem:[%s4954_s3 + $0x30] sm:$0xff] (!%p3569_p6)  ;;  %v3000_v0 = vld [vmem:[%s4954_s3 + $0x1b8] sm:$0xff] (!%p3569_p6) }
 0x22d   : > { %v2813_v29 = vadd.f32 %v2812_v2, %v2772_v62  ;;  %v2814_v4 = vpop.f32.mrb[18].mxu0  ;;  %v3656_v62 = vpack.c.bf16 (!%p3569_p6), %v2968_v59, %v2967_v58  ;;  %v2983_v2 = vld [vmem:[%s4954_s3 + $0x130] sm:$0xff] (!%p3569_p6)  ;;  %v2911_v59 = vld [vmem:[#allocation2] sm:$0xff] (!%p3569_p6) }
 0x22e   : > { %v2815_v5 = vpop.f32.mrb[19].mxu0  ;;  %v2969_v4 = vld [vmem:[%s4954_s3 + $0xc0] sm:$0xff] (!%p3569_p6) }
 0x22f   : > { %v2917_v5 = vlaneseq (!%p3569_p6)  ;;  %3657 = vmatprep.subr.bf16.mxu0 (!%p3569_p6), %v3656_v62  ;;  %v3702_v62 = vpack.c.bf16 (!%p3569_p6), %v2990_v47, %v2989_v43 }
 0x24b   : > { %v2892_v10 = vpop.f32.mrb[20].mxu0 }
 0x24c   : > { %v2851_v9 = vpop.f32.mrb[20].mxu1  ;;  %v2894_v12 = vpop.f32.mrb[21].mxu0 }
 0x24d   : > { %v2852_v48 = vadd.f32 %v2851_v9, %v2811_v1  ;;  %v2853_v11 = vpop.f32.mrb[21].mxu1  ;;  %v2896_v15 = vpop.f32.mrb[22].mxu0  ;;  %v3688_v1 = vpack.c.bf16 (!%p3569_p6), %v3000_v0, %v2999_v63  ;;  %v2970_v9 = vld [vmem:[%s4954_s3 + $0xc8] sm:$0xff] (!%p3569_p6)  ;;  %v2959_v63 = vld [vmem:[%s4954_s3 + $0x70] sm:$0xff] (!%p3569_p6)  ;;  %v2960_v0 = vld [vmem:[%s4954_s3 + $0x78] sm:$0xff] (!%p3569_p6) }
 0x24e   : > { %v2854_v7 = vadd.f32 %v2853_v11, %v2813_v29  ;;  %v2855_v14 = vpop.f32.mrb[22].mxu1  ;;  %v2897_v20 = vpop.f32.mrb[23].mxu0  ;;  %2910 = sbr.rel (%p3569_p6) target bundleno = 832 (0x340), region = 48  ;;  %v2984_v29 = vld [vmem:[%s4954_s3 + $0x138] sm:$0xff] (!%p3569_p6)  ;;  %v3002_v11 = vld [vmem:[%s4954_s3 + $0x1c8] sm:$0xff] (!%p3569_p6)  ;;  %v2985_v15 = vld [vmem:[%s4954_s3 + $0x140] sm:$0xff] (!%p3569_p6) }
 0x24f   : > { %v2893_v16 = vadd.f32 %v2892_v10, %v2852_v48  ;;  %v2856_v37 = vpop.f32.mrb[23].mxu1  ;;  %v3658_v10 = vpack.c.bf16 (!%p3569_p6), %v2952_v18, %v2951_v60  ;;  %v3001_v48 = vld [vmem:[%s4954_s3 + $0x1c0] sm:$0xff] (!%p3569_p6)  ;;  %v2954_v14 = vld [vmem:[%s4954_s3 + $0x48] sm:$0xff] (!%p3569_p6)  ;;  %3689 = vmatprep.subr.bf16.mxu1 (!%p3569_p6), %v3688_v1  ;;  %v2972_v20 = vld [vmem:[%s4954_s3 + $0xd8] sm:$0xff] (!%p3569_p6)  ;;  %v3672_v18 = vpack.c.bf16 (!%p3569_p6), %v2976_v8, %v2975_v33 }
 0x250   : > { %v2895_v21 = vadd.f32 %v2894_v12, %v2854_v7  ;;  %v3690_v12 = vpack.c.bf16 (!%p3569_p6), %v2984_v29, %v2983_v2  ;;  %v2953_v7 = vld [vmem:[%s4954_s3 + $0x40] sm:$0xff] (!%p3569_p6)  ;;  %v2971_v37 = vld [vmem:[%s4954_s3 + $0xd0] sm:$0xff] (!%p3569_p6)  ;;  %v3704_v2 = vpack.c.bf16 (!%p3569_p6), %v3008_v38, %v3007_v55 }
 0x251   : > { %v2901_v22 = vadd.f32 %v2893_v16, %v248_v13  ;;  %v3660_v13 = vpack.c.bf16 (!%p3569_p6), %v2970_v9, %v2969_v4  ;;  %v3692_v16 = vpack.c.bf16 (!%p3569_p6), %v3002_v11, %v3001_v48  ;;  %3659 = vmatpush3.bf16.msra.mxu0 (!%p3569_p6), %v3658_v10  ;;  %v3662_v26 = vpack.c.bf16 (!%p3569_p6), %v2954_v14, %v2953_v7  ;;  %v2991_v29 = vld [vmem:[%s4954_s3 + $0x170] sm:$0xff] (!%p3569_p6)  ;;  %v2992_v4 = vld [vmem:[%s4954_s3 + $0x178] sm:$0xff] (!%p3569_p6) }
 0x252   : > { %v2902_v24 = vadd.f32 %v2895_v21, %v249_v19  ;;  %v2986_v19 = vld [vmem:[%s4954_s3 + $0x148] sm:$0xff] (!%p3569_p6)  ;;  %v2918_v21 = vshrl.u32 (!%p3569_p6), %v2917_v5, 7  ;;  %3691 = vmatpush3.bf16.msra.mxu1 (!%p3569_p6), %v3690_v12  ;;  %v3664_v28 = vpack.c.bf16 (!%p3569_p6), %v2972_v20, %v2971_v37  ;;  %v3674_v48 = vpack.c.bf16 (!%p3569_p6), %v2960_v0, %v2959_v63 }
 0x253   : > { %2905 = vst [vmem:[#allocation2 + $0x10] sm:$0xff] %v2901_v22  ;;  %v3003_v22 = vld [vmem:[%s4954_s3 + $0x1d0] sm:$0xff] (!%p3569_p6)  ;;  %3661 = vmatprep.subr.bf16.mxu0 (!%p3569_p6), %v3660_v13  ;;  %v3694_v27 = vpack.c.bf16 (!%p3569_p6), %v2986_v19, %v2985_v15  ;;  %3693 = vmatprep.subr.bf16.mxu1 (!%p3569_p6), %v3692_v16  ;;  %v3706_v12 = vpack.c.bf16 (!%p3569_p6), %v2992_v4, %v2991_v29  ;;  %v3570_v15 = vld [vmem:[%s4955_s4] ss:$0 sm:$0xff] (!%p3569_p6) }
 0x254   : > { %2906 = vst [vmem:[#allocation2 + $0x18] sm:$0xff] %v2902_v24  ;;  %v3004_v24 = vld [vmem:[%s4954_s3 + $0x1d8] sm:$0xff] (!%p3569_p6)  ;;  %v2923_v35 = vsub.s32 (!%p3569_p6), 1, %v2918_v21  ;;  %v2931_v36 = vsub.s32 (!%p3569_p6), 3, %v2918_v21  ;;  %v2919_v40 = vsub.s32 (!%p3569_p6), 0, %v2918_v21  ;;  %v2927_v44 = vsub.s32 (!%p3569_p6), 2, %v2918_v21 }
 0x255   : > { %v3696_v17 = vpack.c.bf16 %v3004_v24, %v3003_v22  ;;  %3663 = vmatpush3.bf16.msra.mxu0 %v3662_v26 }
 0x256   : > { %3695 = vmatpush3.bf16.msra.mxu1 %v3694_v27  ;;  %3665 = vmatprep.subr.bf16.mxu0 %v3664_v28  ;;  %v2924_v51 = vrot.slane %v2915_v52, %v2923_v35  ;;  %v2932_v54 = vrot.slane %v2915_v52, %v2931_v36  ;;  %v2920_v56 = vrot.slane %v2915_v52, %v2919_v40 }
 0x257   : > { %3697 = vmatprep.subr.bf16.mxu1 %v3696_v17  ;;  %v2928_v61 = vrot.slane %v2915_v52, %v2927_v44 }
 0x258   : > { %v2938_v58 = vadd.f32 %v2924_v51, %v2912_v49  ;;  %v2937_v10 = vadd.f32 %v2920_v56, %v2911_v59 }
 0x259   : > { %3667 = vmatpush3.bf16.msra.mxu0 %v3666_v23 }
 0x25a   : > { %3699 = vmatpush3.bf16.msra.mxu1 %v3698_v45  ;;  %3669 = vmatprep.subr.bf16.mxu0 %v3668_v46  ;;  %v2913_v1 = vld [vmem:[#allocation2 + $0x10] sm:$0xff]  ;;  %v2942_v5 = vmax.f32 %v2938_v58, 0.0  ;;  %v2941_v13 = vmax.f32 %v2937_v10, 0.0 }
 0x25b   : > { %v2914_v53 = vld [vmem:[#allocation2 + $0x18] sm:$0xff]  ;;  %3701 = vmatprep.subr.bf16.mxu1 %v3700_v50  ;;  %v2939_v11 = vadd.f32 %v2928_v61, %v2913_v1 }
 0x25c   : > { %v2940_v60 = vadd.f32 %v2932_v54, %v2914_v53  ;;  %3080 = vmatprep.mubr.f32.mxu0 %v2942_v5 }
 0x25d   : > { %3671 = vmatpush3.bf16.msra.mxu0 %v3670_v57  ;;  %v2943_v7 = vmax.f32 %v2939_v11, 0.0 }
 0x25e   : > { %v2944_v9 = vmax.f32 %v2940_v60, 0.0  ;;  %3703 = vmatpush3.bf16.msra.mxu1 %v3702_v62  ;;  %3673 = vmatprep.subr.bf16.mxu0 %v3672_v18 }
 0x25f   : > { %3705 = vmatprep.subr.bf16.mxu1 %v3704_v2 }
 0x260   : > { %3150 = vmatprep.mubr.f32.mxu1 %v2944_v9 }
 0x261   : > { %3675 = vmatpush3.bf16.msra.mxu0 %v3674_v48 }
 0x262   : > { %3707 = vmatpush3.bf16.msra.mxu1 %v3706_v12 }
 0x264   : > { %3081 = vmatmul.mubr.f32.vlgmr.msra.gmra.mrb[0].mxu0 %v2941_v13 }
 0x265   : > { %3151 = vmatmul.mubr.f32.vlgmr.msra.gmra.mrb[0].mxu1 %v2943_v7 }
 0x337   : > { %v3606_v14 = vpop.f32.mrb[0].mxu0 }
 0x338   : > { %v3607_v16 = vpop.f32.mrb[1].mxu0  ;;  %v3641_v19 = vpop.f32.mrb[0].mxu1 }
 0x339   : > { %v3608_v37 = vadd.f32 %v3607_v16, %v3606_v14  ;;  %v3642_v20 = vpop.f32.mrb[1].mxu1 }
 0x33a   : > { %v3643_v21 = vadd.f32 %v3642_v20, %v3641_v19 }
 0x33b   : > { %v3083_v22 = vadd.f32 %v3608_v37, %v3570_v15 }
 0x33d   : > { %v3153_v24 = vadd.f32 %v3643_v21, %v3083_v22 }
 0x33f   : > { %3157 = vst.msk [vmem:[%s4956_s5] sm:$0xff] %vm3156_vm0, %v3153_v24 }
 0x340 PF: > { %s15_s18 = sadd.s32 1, %s4264_s18  }
 0x341   : > { %p12_p7 = scmp.ge.s32.totalorder %s15_s18, 6  }
 0x343   :  { %14 = sbr.rel (!%p12_p7) target bundleno = 1 (0x1), region = 77 }

</bundles_post_ra>
